<compile_context>
chip_gen: v7x
topology: tpu7x:2x2x1
jax: 0.10.0
libtpu: 0.0.40
codegen_flags: <defaults>
</compile_context>

<pallas_src>
import functools

import jax
import jax.numpy as jnp
from jax import lax
from jax.experimental import pallas as pl
from jax.experimental.pallas import tpu as pltpu


def _gelu(x):
    return jax.nn.gelu(x, approximate=True)


# ----------------------------------------------------------------------------
# Pallas kernels
# ----------------------------------------------------------------------------

def _stage1_kernel(x_ref, mult_ref, n1w_ref, n1b_ref, w4_ref, b4_ref, o_ref, *, eps):
    """LayerNorm1 + Hadamard multiply (groups 1-3) + group-4 1x1 conv + GELU.

    x_ref:    (1, TM, C)  flattened-spatial row tile, channels-last
    mult_ref: (TM, C)     per-position multipliers, zeros in group-4 columns
    w4_ref:   (C, C)      group-4 1x1 weights embedded in the bottom-right block
    """
    x = x_ref[0]                                              # (TM, C)
    u = jnp.mean(x, axis=-1, keepdims=True)
    s = jnp.mean((x - u) ** 2, axis=-1, keepdims=True)
    xn = (x - u) * lax.rsqrt(s + eps) * n1w_ref[...] + n1b_ref[...]
    # group-4 columns: gelu(x4n @ W4 + b4); all other columns: gelu(0 + 0) == 0.
    t4 = _gelu(jnp.dot(xn, w4_ref[...], preferred_element_type=jnp.float32)
               + b4_ref[...])
    o_ref[0] = xn * mult_ref[...] + t4


def _stage2_kernel(y_ref, k4_ref, b4_ref, n2w_ref, n2b_ref, mask_ref,
                   kl_ref, bl_ref, wp_ref, bp_ref, o_ref, *, H, W, eps):
    """Group-4 depthwise 3x3 + LayerNorm2 + ldw (dw3x3 -> GELU -> 1x1), fused.

    y_ref: (1, H+4, W+4, C) -- stage-1 output zero-padded by 2 on each side.
    """
    C = o_ref.shape[-1]
    yb = y_ref[0]                                             # (H+4, W+4, C)
    k4 = k4_ref[...]                                          # (9, C)
    kl = kl_ref[...]                                          # (9, C)

    # Depthwise 3x3 over the extended (H+2, W+2) window: groups 1-3 use a delta
    # kernel (pass-through), group 4 uses the real `dw` depthwise weights.  The
    # width-2 zero pad of y supplies the conv's zero halo; the extra ring is
    # masked away after LayerNorm2.
    xc = jnp.zeros((H + 2, W + 2, C), jnp.float32)
    for da in range(3):
        for de in range(3):
            t = da * 3 + de
            xc = xc + yb[da:da + H + 2, de:de + W + 2, :] * k4[t:t + 1, :]
    xc = xc + b4_ref[...]

    # LayerNorm2 (channels_first in PyTorch == per-position over channels here).
    u = jnp.mean(xc, axis=-1, keepdims=True)
    s = jnp.mean((xc - u) ** 2, axis=-1, keepdims=True)
    xn = (xc - u) * lax.rsqrt(s + eps) * n2w_ref[...] + n2b_ref[...]

    # Zero the 1-wide ring so it becomes the zero padding of the ldw conv.
    xn = xn * mask_ref[...]                                   # mask: (H+2, W+2, 1)

    # ldw depthwise 3x3 + GELU.
    acc = jnp.zeros((H, W, C), jnp.float32)
    for da in range(3):
        for de in range(3):
            t = da * 3 + de
            acc = acc + xn[da:da + H, de:de + W, :] * kl[t:t + 1, :]
    a = _gelu(acc + bl_ref[...])

    # ldw 1x1 channel mix; row-by-row keeps every dot strictly 2-D.
    wp = wp_ref[...]
    bp = bp_ref[...]
    for h in range(H):
        o_ref[0, h] = jnp.dot(a[h], wp, preferred_element_type=jnp.float32) + bp


# ----------------------------------------------------------------------------
# Plain-JAX glue (tiny, parameter-sized computations)
# ----------------------------------------------------------------------------

def _bilinear_align_corners(p, out_h, out_w):
    """F.interpolate(mode='bilinear', align_corners=True) over the last 2 dims."""
    hin, win = p.shape[-2], p.shape[-1]

    def coords(n_in, n_out):
        if n_out == 1 or n_in == 1:
            return jnp.zeros((n_out,), jnp.float32)
        return jnp.arange(n_out, dtype=jnp.float32) * ((n_in - 1) / (n_out - 1))

    yc = coords(hin, out_h)
    xc = coords(win, out_w)
    y0 = jnp.floor(yc).astype(jnp.int32)
    y1 = jnp.minimum(y0 + 1, hin - 1)
    wy = (yc - y0.astype(jnp.float32))[:, None]
    x0 = jnp.floor(xc).astype(jnp.int32)
    x1 = jnp.minimum(x0 + 1, win - 1)
    wx = xc - x0.astype(jnp.float32)

    top = jnp.take(p, y0, axis=-2)
    bot = jnp.take(p, y1, axis=-2)

    def hlerp(q):
        l = jnp.take(q, x0, axis=-1)
        r = jnp.take(q, x1, axis=-1)
        return l + (r - l) * wx

    t = hlerp(top)
    b = hlerp(bot)
    return t + (b - t) * wy


def _dw3x3_jax(x, w33c, b_c):
    """Depthwise 3x3, zero padding 1.  x: (..., H, W, C), w33c: (3, 3, C)."""
    H, W = x.shape[-3], x.shape[-2]
    pad = [(0, 0)] * (x.ndim - 3) + [(1, 1), (1, 1), (0, 0)]
    xp = jnp.pad(x, pad)
    acc = jnp.zeros_like(x)
    for da in range(3):
        for de in range(3):
            acc = acc + xp[..., da:da + H, de:de + W, :] * w33c[da, de]
    return acc + b_c


def _dw1d3_jax(x_lc, w3c, b_c):
    """Depthwise k=3 Conv1d, padding 1.  x_lc: (L, C), w3c: (3, C)."""
    L = x_lc.shape[0]
    xp = jnp.pad(x_lc, ((1, 1), (0, 0)))
    return xp[0:L] * w3c[0] + xp[1:L + 1] * w3c[1] + xp[2:L + 2] * w3c[2] + b_c


def _branch_multipliers(p, H, W):
    """Parameter-derived Hadamard multipliers for branches 1-3 (plain JAX)."""
    # branch 1: conv_xy(interp(params_xy -> (H, W)))           -> (H, W, Cq)
    m1 = _bilinear_align_corners(p["params_xy"][0], H, W)       # (Cq, H, W)
    m1 = jnp.transpose(m1, (1, 2, 0))
    m1 = _gelu(_dw3x3_jax(m1, p["conv_xy_dw_w"], p["conv_xy_dw_b"]))
    m1 = m1 @ p["conv_xy_pw_w"] + p["conv_xy_pw_b"]
    # branch 2: conv_zx(interp(params_zx -> (Cq, H)))           -> (H, Cq)
    cq = p["conv_xy_pw_w"].shape[0]
    p2 = _bilinear_align_corners(p["params_zx"][0, 0], cq, H)    # (Cq, H)
    m2 = _gelu(_dw1d3_jax(p2.T, p["conv_zx_dw_w"], p["conv_zx_dw_b"]))
    m2 = m2 @ p["conv_zx_pw_w"] + p["conv_zx_pw_b"]
    # branch 3: conv_zy(interp(params_zy -> (Cq, W)))           -> (W, Cq)
    p3 = _bilinear_align_corners(p["params_zy"][0, 0], cq, W)    # (Cq, W)
    m3 = _gelu(_dw1d3_jax(p3.T, p["conv_zy_dw_w"], p["conv_zy_dw_b"]))
    m3 = m3 @ p["conv_zy_pw_w"] + p["conv_zy_pw_b"]
    return m1, m2, m3


def _pick_row_tile(hw):
    if hw <= 1024:
        return hw
    for tm in range(1024, 7, -8):
        if hw % tm == 0:
            return tm
    return hw


# ----------------------------------------------------------------------------
# Forward pass
# ----------------------------------------------------------------------------

def ghpa_forward(params, x_nchw, eps=1e-6):
    """GHPA forward.  x_nchw: (N, C, H, W), returns (N, C, H, W)."""
    N, C, H, W = x_nchw.shape
    Cq = C // 4
    x = jnp.transpose(x_nchw, (0, 2, 3, 1)).astype(jnp.float32)     # (N, H, W, C)

    # --- tiny parameter-derived multipliers: plain JAX, fused by XLA ---------
    m1, m2, m3 = _branch_multipliers(params, H, W)
    mult = jnp.concatenate(
        [m1,
         jnp.broadcast_to(m2[:, None, :], (H, W, Cq)),
         jnp.broadcast_to(m3[None, :, :], (H, W, Cq)),
         jnp.zeros((H, W, Cq), jnp.float32)], axis=-1).reshape(H * W, C)

    w4 = jnp.zeros((C, C), jnp.float32).at[3 * Cq:, 3 * Cq:].set(params["dw_pw_w"])
    b4 = jnp.zeros((1, C), jnp.float32).at[0, 3 * Cq:].set(params["dw_pw_b"])

    # --- stage 1: norm1 + Hadamard multiplies + branch-4 1x1+GELU ------------
    HW = H * W
    TM = _pick_row_tile(HW)
    cost1 = pl.CostEstimate(
        flops=int(N * HW * (2 * C * C + 12 * C)),
        transcendentals=int(N * HW * C),
        bytes_accessed=int(4 * (2 * N * HW * C + HW * C + C * C)))
    y = pl.pallas_call(
        functools.partial(_stage1_kernel, eps=eps),
        out_shape=jax.ShapeDtypeStruct((N, HW, C), jnp.float32),
        grid=(N, HW // TM),
        in_specs=[
            pl.BlockSpec((1, TM, C), lambda n, j: (n, j, 0)),
            pl.BlockSpec((TM, C), lambda n, j: (j, 0)),
            pl.BlockSpec((1, C), lambda n, j: (0, 0)),
            pl.BlockSpec((1, C), lambda n, j: (0, 0)),
            pl.BlockSpec((C, C), lambda n, j: (0, 0)),
            pl.BlockSpec((1, C), lambda n, j: (0, 0)),
        ],
        out_specs=pl.BlockSpec((1, TM, C), lambda n, j: (n, j, 0)),
        compiler_params=pltpu.CompilerParams(
            dimension_semantics=("parallel", "parallel")),
        cost_estimate=cost1,
    )(x.reshape(N, HW, C), mult,
      params["norm1_w"].reshape(1, C), params["norm1_b"].reshape(1, C), w4, b4)

    # --- stage 2: branch-4 dw3x3 + norm2 + ldw(dw3x3, GELU, 1x1) -------------
    delta = jnp.zeros((9, 1), jnp.float32).at[4, 0].set(1.0)
    k4 = jnp.concatenate([jnp.broadcast_to(delta, (9, 3 * Cq)),
                          params["dw_dw_w"].reshape(9, Cq)], axis=1)
    b4dw = jnp.zeros((1, C), jnp.float32).at[0, 3 * Cq:].set(params["dw_dw_b"])
    kl = params["ldw_dw_w"].reshape(9, C)
    bl = params["ldw_dw_b"].reshape(1, C)
    wp = params["ldw_pw_w"]
    bp = params["ldw_pw_b"].reshape(1, C)
    mask = jnp.zeros((H + 2, W + 2, 1), jnp.float32).at[1:H + 1, 1:W + 1, :].set(1.0)

    y_p = jnp.pad(y.reshape(N, H, W, C), ((0, 0), (2, 2), (2, 2), (0, 0)))

    cost2 = pl.CostEstimate(
        flops=int(N * H * W * (2 * C * C + 50 * C)),
        transcendentals=int(N * H * W * C),
        bytes_accessed=int(4 * N * ((H + 4) * (W + 4) * C + H * W * C)))
    vec_spec = pl.BlockSpec((1, C), lambda n: (0, 0))
    tap_spec = pl.BlockSpec((9, C), lambda n: (0, 0))
    out = pl.pallas_call(
        functools.partial(_stage2_kernel, H=H, W=W, eps=eps),
        out_shape=jax.ShapeDtypeStruct((N, H, W, C), jnp.float32),
        grid=(N,),
        in_specs=[
            pl.BlockSpec((1, H + 4, W + 4, C), lambda n: (n, 0, 0, 0)),
            tap_spec,                                   # k4
            vec_spec,                                   # b4dw
            vec_spec,                                   # norm2 w
            vec_spec,                                   # norm2 b
            pl.BlockSpec((H + 2, W + 2, 1), lambda n: (0, 0, 0)),   # interior mask
            tap_spec,                                   # ldw dw weights
            vec_spec,                                   # ldw dw bias
            pl.BlockSpec((C, C), lambda n: (0, 0)),     # ldw 1x1 weights
            vec_spec,                                   # ldw 1x1 bias
        ],
        out_specs=pl.BlockSpec((1, H, W, C), lambda n: (n, 0, 0, 0)),
        compiler_params=pltpu.CompilerParams(dimension_semantics=("parallel",)),
        cost_estimate=cost2,
    )(y_p, k4, b4dw,
      params["norm2_w"].reshape(1, C), params["norm2_b"].reshape(1, C),
      mask, kl, bl, wp, bp)

    return jnp.transpose(out, (0, 3, 1, 2))


# ----------------------------------------------------------------------------
# Pure-JAX reference (same weight-layout conventions) for correctness checking
# ----------------------------------------------------------------------------

def ghpa_reference(p, x_nchw, eps=1e-6):
    N, C, H, W = x_nchw.shape
    x = jnp.transpose(x_nchw, (0, 2, 3, 1)).astype(jnp.float32)

    u = jnp.mean(x, -1, keepdims=True)
    s = jnp.mean((x - u) ** 2, -1, keepdims=True)
    xn = (x - u) / jnp.sqrt(s + eps) * p["norm1_w"] + p["norm1_b"]
    x1, x2, x3, x4 = jnp.split(xn, 4, axis=-1)

    m1, m2, m3 = _branch_multipliers(p, H, W)
    y1 = x1 * m1[None]
    y2 = x2 * m2[None, :, None, :]
    y3 = x3 * m3[None, None, :, :]
    t4 = _gelu(x4 @ p["dw_pw_w"] + p["dw_pw_b"])
    y4 = _dw3x3_jax(t4, p["dw_dw_w"], p["dw_dw_b"])

    xc = jnp.concatenate([y1, y2, y3, y4], axis=-1)
    u = jnp.mean(xc, -1, keepdims=True)
    s = jnp.mean((xc - u) ** 2, -1, keepdims=True)
    x2n = (xc - u) / jnp.sqrt(s + eps) * p["norm2_w"] + p["norm2_b"]

    a = _gelu(_dw3x3_jax(x2n, p["ldw_dw_w"], p["ldw_dw_b"]))
    out = a @ p["ldw_pw_w"] + p["ldw_pw_b"]
    return jnp.transpose(out, (0, 3, 1, 2))


# ----------------------------------------------------------------------------
# Deterministic parameter construction (shapes follow the PyTorch __init__)
# ----------------------------------------------------------------------------

def make_ghpa_params(key, dim_in, grid_x=8, grid_y=8):
    cq = dim_in // 4
    ks = list(jax.random.split(key, 20))

    def nrm(shape, scale=0.1):
        return (scale * jax.random.normal(ks.pop(), shape)).astype(jnp.float32)

    return {
        "params_xy": jnp.ones((1, cq, grid_x, grid_y), jnp.float32),
        "conv_xy_dw_w": nrm((3, 3, cq)), "conv_xy_dw_b": nrm((cq,)),
        "conv_xy_pw_w": nrm((cq, cq)), "conv_xy_pw_b": nrm((cq,)),
        "params_zx": jnp.ones((1, 1, cq, grid_x), jnp.float32),
        "conv_zx_dw_w": nrm((3, cq)), "conv_zx_dw_b": nrm((cq,)),
        "conv_zx_pw_w": nrm((cq, cq)), "conv_zx_pw_b": nrm((cq,)),
        "params_zy": jnp.ones((1, 1, cq, grid_y), jnp.float32),
        "conv_zy_dw_w": nrm((3, cq)), "conv_zy_dw_b": nrm((cq,)),
        "conv_zy_pw_w": nrm((cq, cq)), "conv_zy_pw_b": nrm((cq,)),
        "dw_pw_w": nrm((cq, cq)), "dw_pw_b": nrm((cq,)),
        "dw_dw_w": nrm((3, 3, cq)), "dw_dw_b": nrm((cq,)),
        "norm1_w": jnp.ones((dim_in,), jnp.float32),
        "norm1_b": jnp.zeros((dim_in,), jnp.float32),
        "norm2_w": jnp.ones((dim_in,), jnp.float32),
        "norm2_b": jnp.zeros((dim_in,), jnp.float32),
        "ldw_dw_w": nrm((3, 3, dim_in)), "ldw_dw_b": nrm((dim_in,)),
        "ldw_pw_w": nrm((dim_in, dim_in)), "ldw_pw_b": nrm((dim_in,)),
    }


# ----------------------------------------------------------------------------

if __name__ == "__main__":
    N, C, H, W = 2, 32, 16, 16          # PyTorch input layout (N, C, H, W)
    key = jax.random.PRNGKey(0)
    kp, kx = jax.random.split(key)
    params = make_ghpa_params(kp, C)
    x = jax.random.normal(kx, (N, C, H, W), jnp.float32)

    fwd = jax.jit(ghpa_forward)
    out = fwd(params, x)
    jax.block_until_ready(out)
    assert out.shape == (N, C, H, W)

    ref = ghpa_reference(params, x)
    err = float(jnp.max(jnp.abs(out - ref)))
    assert err < 5e-3, f"kernel/reference mismatch: max abs err = {err}"

    print("KERNEL_OK")
</pallas_src>

<mosaic_0001>
module attributes {stable_mosaic.version = 11 : i64} {
  func.func @_stage1_kernel(%arg0: i32, %arg1: i32, %arg2: memref<1x256x32xf32, #tpu.memory_space<vmem>>, %arg3: memref<256x32xf32, #tpu.memory_space<vmem>>, %arg4: memref<1x32xf32, #tpu.memory_space<vmem>>, %arg5: memref<1x32xf32, #tpu.memory_space<vmem>>, %arg6: memref<32x32xf32, #tpu.memory_space<vmem>>, %arg7: memref<1x32xf32, #tpu.memory_space<vmem>>, %arg8: memref<1x256x32xf32, #tpu.memory_space<vmem>>) attributes {dimension_semantics = [#tpu.dimension_semantics<parallel>, #tpu.dimension_semantics<parallel>], iteration_bounds = array<i64: 2, 1>, scalar_prefetch = 0 : i64, scratch_operands = 0 : i64, tpu.core_type = #tpu.core_type<tc>, window_params = [{transform_indices = @transform_0, window_bounds = array<i64: 1, 256, 32>}, {transform_indices = @transform_1, window_bounds = array<i64: 256, 32>}, {pipeline_mode = #tpu.pipeline_mode<synchronous>, transform_indices = @transform_2, window_bounds = array<i64: 1, 32>}, {pipeline_mode = #tpu.pipeline_mode<synchronous>, transform_indices = @transform_3, window_bounds = array<i64: 1, 32>}, {pipeline_mode = #tpu.pipeline_mode<synchronous>, transform_indices = @transform_4, window_bounds = array<i64: 32, 32>}, {pipeline_mode = #tpu.pipeline_mode<synchronous>, transform_indices = @transform_5, window_bounds = array<i64: 1, 32>}, {transform_indices = @transform_6, window_bounds = array<i64: 1, 256, 32>}]} {
    %c0 = arith.constant 0 : index
    %c0_0 = arith.constant 0 : index
    %c0_1 = arith.constant 0 : index
    %0 = vector.load %arg2[%c0, %c0_0, %c0_1] : memref<1x256x32xf32, #tpu.memory_space<vmem>>, vector<1x256x32xf32>
    %1 = vector.shape_cast %0 : vector<1x256x32xf32> to vector<256x32xf32>
    %cst = arith.constant dense<0.000000e+00> : vector<256xf32>
    %2 = vector.multi_reduction <add>, %1, %cst [1] : vector<256x32xf32> to vector<256xf32>
    %3 = vector.shape_cast %2 : vector<256xf32> to vector<256x1xf32>
    %cst_2 = arith.constant 3.200000e+01 : f32
    %4 = vector.broadcast %cst_2 : f32 to vector<256x1xf32>
    %5 = arith.divf %3, %4 : vector<256x1xf32>
    %6 = vector.broadcast %5 : vector<256x1xf32> to vector<256x32xf32>
    %7 = arith.subf %1, %6 : vector<256x32xf32>
    %8 = arith.mulf %7, %7 : vector<256x32xf32>
    %cst_3 = arith.constant dense<0.000000e+00> : vector<256xf32>
    %9 = vector.multi_reduction <add>, %8, %cst_3 [1] : vector<256x32xf32> to vector<256xf32>
    %10 = vector.shape_cast %9 : vector<256xf32> to vector<256x1xf32>
    %cst_4 = arith.constant 3.200000e+01 : f32
    %11 = vector.broadcast %cst_4 : f32 to vector<256x1xf32>
    %12 = arith.divf %10, %11 : vector<256x1xf32>
    %13 = vector.broadcast %5 : vector<256x1xf32> to vector<256x32xf32>
    %14 = arith.subf %1, %13 : vector<256x32xf32>
    %cst_5 = arith.constant 9.99999997E-7 : f32
    %15 = vector.broadcast %cst_5 : f32 to vector<256x1xf32>
    %16 = arith.addf %12, %15 : vector<256x1xf32>
    %17 = math.rsqrt %16 : vector<256x1xf32>
    %18 = vector.broadcast %17 : vector<256x1xf32> to vector<256x32xf32>
    %19 = arith.mulf %14, %18 : vector<256x32xf32>
    %c0_6 = arith.constant 0 : index
    %c0_7 = arith.constant 0 : index
    %20 = vector.load %arg4[%c0_6, %c0_7] : memref<1x32xf32, #tpu.memory_space<vmem>>, vector<1x32xf32>
    %21 = vector.broadcast %20 : vector<1x32xf32> to vector<256x32xf32>
    %22 = arith.mulf %19, %21 : vector<256x32xf32>
    %c0_8 = arith.constant 0 : index
    %c0_9 = arith.constant 0 : index
    %23 = vector.load %arg5[%c0_8, %c0_9] : memref<1x32xf32, #tpu.memory_space<vmem>>, vector<1x32xf32>
    %24 = vector.broadcast %23 : vector<1x32xf32> to vector<256x32xf32>
    %25 = arith.addf %22, %24 : vector<256x32xf32>
    %c0_10 = arith.constant 0 : index
    %c0_11 = arith.constant 0 : index
    %26 = vector.load %arg6[%c0_10, %c0_11] : memref<32x32xf32, #tpu.memory_space<vmem>>, vector<32x32xf32>
    %cst_12 = arith.constant dense<0.000000e+00> : vector<256x32xf32>
    %27 = tpu.matmul %25, %26, %cst_12 {dimension_numbers = #tpu.dot_dimension_numbers<[1], [0], [0], [1], [0, 0, 1, 1], [], []>} : vector<256x32xf32>, vector<32x32xf32>, vector<256x32xf32> -> vector<256x32xf32>
    %c0_13 = arith.constant 0 : index
    %c0_14 = arith.constant 0 : index
    %28 = vector.load %arg7[%c0_13, %c0_14] : memref<1x32xf32, #tpu.memory_space<vmem>>, vector<1x32xf32>
    %29 = vector.broadcast %28 : vector<1x32xf32> to vector<256x32xf32>
    %30 = arith.addf %27, %29 : vector<256x32xf32>
    %31 = arith.mulf %30, %30 : vector<256x32xf32>
    %32 = arith.mulf %30, %31 : vector<256x32xf32>
    %cst_15 = arith.constant 4.471500e-02 : f32
    %33 = vector.broadcast %cst_15 : f32 to vector<256x32xf32>
    %34 = arith.mulf %33, %32 : vector<256x32xf32>
    %35 = arith.addf %30, %34 : vector<256x32xf32>
    %cst_16 = arith.constant 0.797884583 : f32
    %36 = vector.broadcast %cst_16 : f32 to vector<256x32xf32>
    %37 = arith.mulf %36, %35 : vector<256x32xf32>
    %38 = math.tanh %37 : vector<256x32xf32>
    %cst_17 = arith.constant 1.000000e+00 : f32
    %39 = vector.broadcast %cst_17 : f32 to vector<256x32xf32>
    %40 = arith.addf %39, %38 : vector<256x32xf32>
    %cst_18 = arith.constant 5.000000e-01 : f32
    %41 = vector.broadcast %cst_18 : f32 to vector<256x32xf32>
    %42 = arith.mulf %41, %40 : vector<256x32xf32>
    %43 = arith.mulf %30, %42 : vector<256x32xf32>
    %c0_19 = arith.constant 0 : index
    %c0_20 = arith.constant 0 : index
    %44 = vector.load %arg3[%c0_19, %c0_20] : memref<256x32xf32, #tpu.memory_space<vmem>>, vector<256x32xf32>
    %45 = arith.mulf %25, %44 : vector<256x32xf32>
    %46 = arith.addf %45, %43 : vector<256x32xf32>
    %c0_21 = arith.constant 0 : index
    %c0_22 = arith.constant 0 : index
    %c0_23 = arith.constant 0 : index
    %47 = vector.load %arg8[%c0_21, %c0_22, %c0_23] : memref<1x256x32xf32, #tpu.memory_space<vmem>>, vector<1x256x32xf32>
    %48 = vector.shape_cast %47 : vector<1x256x32xf32> to vector<256x32xf32>
    %49 = vector.shape_cast %46 : vector<256x32xf32> to vector<1x256x32xf32>
    tpu.vector_store %arg8[%c0_21, %c0_22, %c0_23], %49 {strides = array<i32>} : memref<1x256x32xf32, #tpu.memory_space<vmem>>, vector<1x256x32xf32>,
    return
  }
  func.func @transform_0(%arg0: i32, %arg1: i32) -> (i32, i32, i32) {
    %c0_i32 = arith.constant 0 : i32
    %c0_i32_0 = arith.constant 0 : i32
    return %arg0, %arg1, %c0_i32 : i32, i32, i32
  }
  func.func @transform_1(%arg0: i32, %arg1: i32) -> (i32, i32) {
    %c0_i32 = arith.constant 0 : i32
    %c0_i32_0 = arith.constant 0 : i32
    return %arg1, %c0_i32 : i32, i32
  }
  func.func @transform_2(%arg0: i32, %arg1: i32) -> (i32, i32) {
    %c0_i32 = arith.constant 0 : i32
    %c0_i32_0 = arith.constant 0 : i32
    %c0_i32_1 = arith.constant 0 : i32
    return %c0_i32, %c0_i32_0 : i32, i32
  }
  func.func @transform_3(%arg0: i32, %arg1: i32) -> (i32, i32) {
    %c0_i32 = arith.constant 0 : i32
    %c0_i32_0 = arith.constant 0 : i32
    %c0_i32_1 = arith.constant 0 : i32
    return %c0_i32, %c0_i32_0 : i32, i32
  }
  func.func @transform_4(%arg0: i32, %arg1: i32) -> (i32, i32) {
    %c0_i32 = arith.constant 0 : i32
    %c0_i32_0 = arith.constant 0 : i32
    %c0_i32_1 = arith.constant 0 : i32
    return %c0_i32, %c0_i32_0 : i32, i32
  }
  func.func @transform_5(%arg0: i32, %arg1: i32) -> (i32, i32) {
    %c0_i32 = arith.constant 0 : i32
    %c0_i32_0 = arith.constant 0 : i32
    %c0_i32_1 = arith.constant 0 : i32
    return %c0_i32, %c0_i32_0 : i32, i32
  }
  func.func @transform_6(%arg0: i32, %arg1: i32) -> (i32, i32, i32) {
    %c0_i32 = arith.constant 0 : i32
    %c0_i32_0 = arith.constant 0 : i32
    return %arg0, %arg1, %c0_i32 : i32, i32, i32
  }
}

module attributes {stable_mosaic.version = 11 : i64} {
  func.func @_stage2_kernel(%arg0: i32, %arg1: memref<1x20x20x32xf32, #tpu.memory_space<vmem>>, %arg2: memref<9x32xf32, #tpu.memory_space<vmem>>, %arg3: memref<1x32xf32, #tpu.memory_space<vmem>>, %arg4: memref<1x32xf32, #tpu.memory_space<vmem>>, %arg5: memref<1x32xf32, #tpu.memory_space<vmem>>, %arg6: memref<18x18x1xf32, #tpu.memory_space<vmem>>, %arg7: memref<9x32xf32, #tpu.memory_space<vmem>>, %arg8: memref<1x32xf32, #tpu.memory_space<vmem>>, %arg9: memref<32x32xf32, #tpu.memory_space<vmem>>, %arg10: memref<1x32xf32, #tpu.memory_space<vmem>>, %arg11: memref<1x16x16x32xf32, #tpu.memory_space<vmem>>) attributes {dimension_semantics = [#tpu.dimension_semantics<parallel>], iteration_bounds = array<i64: 2>, scalar_prefetch = 0 : i64, scratch_operands = 0 : i64, tpu.core_type = #tpu.core_type<tc>, window_params = [{transform_indices = @transform_0, window_bounds = array<i64: 1, 20, 20, 32>}, {pipeline_mode = #tpu.pipeline_mode<synchronous>, transform_indices = @transform_1, window_bounds = array<i64: 9, 32>}, {pipeline_mode = #tpu.pipeline_mode<synchronous>, transform_indices = @transform_2, window_bounds = array<i64: 1, 32>}, {pipeline_mode = #tpu.pipeline_mode<synchronous>, transform_indices = @transform_3, window_bounds = array<i64: 1, 32>}, {pipeline_mode = #tpu.pipeline_mode<synchronous>, transform_indices = @transform_4, window_bounds = array<i64: 1, 32>}, {pipeline_mode = #tpu.pipeline_mode<synchronous>, transform_indices = @transform_5, window_bounds = array<i64: 18, 18, 1>}, {pipeline_mode = #tpu.pipeline_mode<synchronous>, transform_indices = @transform_6, window_bounds = array<i64: 9, 32>}, {pipeline_mode = #tpu.pipeline_mode<synchronous>, transform_indices = @transform_7, window_bounds = array<i64: 1, 32>}, {pipeline_mode = #tpu.pipeline_mode<synchronous>, transform_indices = @transform_8, window_bounds = array<i64: 32, 32>}, {pipeline_mode = #tpu.pipeline_mode<synchronous>, transform_indices = @transform_9, window_bounds = array<i64: 1, 32>}, {transform_indices = @transform_10, window_bounds = array<i64: 1, 16, 16, 32>}]} {
    %c0 = arith.constant 0 : index
    %c0_0 = arith.constant 0 : index
    %c0_1 = arith.constant 0 : index
    %c0_2 = arith.constant 0 : index
    %0 = vector.load %arg1[%c0, %c0_0, %c0_1, %c0_2] : memref<1x20x20x32xf32, #tpu.memory_space<vmem>>, vector<1x20x20x32xf32>
    %1 = vector.shape_cast %0 : vector<1x20x20x32xf32> to vector<20x20x32xf32>
    %c0_3 = arith.constant 0 : index
    %c0_4 = arith.constant 0 : index
    %2 = vector.load %arg2[%c0_3, %c0_4] : memref<9x32xf32, #tpu.memory_space<vmem>>, vector<9x32xf32>
    %c0_5 = arith.constant 0 : index
    %c0_6 = arith.constant 0 : index
    %3 = vector.load %arg7[%c0_5, %c0_6] : memref<9x32xf32, #tpu.memory_space<vmem>>, vector<9x32xf32>
    %cst = arith.constant 0.000000e+00 : f32
    %4 = vector.broadcast %cst : f32 to vector<18x18x32xf32>
    %5 = vector.extract_strided_slice %1 {offsets = [0, 0, 0], sizes = [18, 18, 32], strides = [1, 1, 1]} : vector<20x20x32xf32> to vector<18x18x32xf32>
    %6 = vector.extract_strided_slice %2 {offsets = [0, 0], sizes = [1, 32], strides = [1, 1]} : vector<9x32xf32> to vector<1x32xf32>
    %7 = vector.shape_cast %6 : vector<1x32xf32> to vector<1x1x32xf32>
    %8 = vector.broadcast %7 : vector<1x1x32xf32> to vector<18x18x32xf32>
    %9 = arith.mulf %5, %8 : vector<18x18x32xf32>
    %10 = arith.addf %4, %9 : vector<18x18x32xf32>
    %11 = vector.extract_strided_slice %1 {offsets = [0, 1, 0], sizes = [18, 18, 32], strides = [1, 1, 1]} : vector<20x20x32xf32> to vector<18x18x32xf32>
    %12 = vector.extract_strided_slice %2 {offsets = [1, 0], sizes = [1, 32], strides = [1, 1]} : vector<9x32xf32> to vector<1x32xf32>
    %13 = vector.shape_cast %12 : vector<1x32xf32> to vector<1x1x32xf32>
    %14 = vector.broadcast %13 : vector<1x1x32xf32> to vector<18x18x32xf32>
    %15 = arith.mulf %11, %14 : vector<18x18x32xf32>
    %16 = arith.addf %10, %15 : vector<18x18x32xf32>
    %17 = vector.extract_strided_slice %1 {offsets = [0, 2, 0], sizes = [18, 18, 32], strides = [1, 1, 1]} : vector<20x20x32xf32> to vector<18x18x32xf32>
    %18 = vector.extract_strided_slice %2 {offsets = [2, 0], sizes = [1, 32], strides = [1, 1]} : vector<9x32xf32> to vector<1x32xf32>
    %19 = vector.shape_cast %18 : vector<1x32xf32> to vector<1x1x32xf32>
    %20 = vector.broadcast %19 : vector<1x1x32xf32> to vector<18x18x32xf32>
    %21 = arith.mulf %17, %20 : vector<18x18x32xf32>
    %22 = arith.addf %16, %21 : vector<18x18x32xf32>
    %23 = vector.extract_strided_slice %1 {offsets = [1, 0, 0], sizes = [18, 18, 32], strides = [1, 1, 1]} : vector<20x20x32xf32> to vector<18x18x32xf32>
    %24 = vector.extract_strided_slice %2 {offsets = [3, 0], sizes = [1, 32], strides = [1, 1]} : vector<9x32xf32> to vector<1x32xf32>
    %25 = vector.shape_cast %24 : vector<1x32xf32> to vector<1x1x32xf32>
    %26 = vector.broadcast %25 : vector<1x1x32xf32> to vector<18x18x32xf32>
    %27 = arith.mulf %23, %26 : vector<18x18x32xf32>
    %28 = arith.addf %22, %27 : vector<18x18x32xf32>
    %29 = vector.extract_strided_slice %1 {offsets = [1, 1, 0], sizes = [18, 18, 32], strides = [1, 1, 1]} : vector<20x20x32xf32> to vector<18x18x32xf32>
    %30 = vector.extract_strided_slice %2 {offsets = [4, 0], sizes = [1, 32], strides = [1, 1]} : vector<9x32xf32> to vector<1x32xf32>
    %31 = vector.shape_cast %30 : vector<1x32xf32> to vector<1x1x32xf32>
    %32 = vector.broadcast %31 : vector<1x1x32xf32> to vector<18x18x32xf32>
    %33 = arith.mulf %29, %32 : vector<18x18x32xf32>
    %34 = arith.addf %28, %33 : vector<18x18x32xf32>
    %35 = vector.extract_strided_slice %1 {offsets = [1, 2, 0], sizes = [18, 18, 32], strides = [1, 1, 1]} : vector<20x20x32xf32> to vector<18x18x32xf32>
    %36 = vector.extract_strided_slice %2 {offsets = [5, 0], sizes = [1, 32], strides = [1, 1]} : vector<9x32xf32> to vector<1x32xf32>
    %37 = vector.shape_cast %36 : vector<1x32xf32> to vector<1x1x32xf32>
    %38 = vector.broadcast %37 : vector<1x1x32xf32> to vector<18x18x32xf32>
    %39 = arith.mulf %35, %38 : vector<18x18x32xf32>
    %40 = arith.addf %34, %39 : vector<18x18x32xf32>
    %41 = vector.extract_strided_slice %1 {offsets = [2, 0, 0], sizes = [18, 18, 32], strides = [1, 1, 1]} : vector<20x20x32xf32> to vector<18x18x32xf32>
    %42 = vector.extract_strided_slice %2 {offsets = [6, 0], sizes = [1, 32], strides = [1, 1]} : vector<9x32xf32> to vector<1x32xf32>
    %43 = vector.shape_cast %42 : vector<1x32xf32> to vector<1x1x32xf32>
    %44 = vector.broadcast %43 : vector<1x1x32xf32> to vector<18x18x32xf32>
    %45 = arith.mulf %41, %44 : vector<18x18x32xf32>
    %46 = arith.addf %40, %45 : vector<18x18x32xf32>
    %47 = vector.extract_strided_slice %1 {offsets = [2, 1, 0], sizes = [18, 18, 32], strides = [1, 1, 1]} : vector<20x20x32xf32> to vector<18x18x32xf32>
    %48 = vector.extract_strided_slice %2 {offsets = [7, 0], sizes = [1, 32], strides = [1, 1]} : vector<9x32xf32> to vector<1x32xf32>
    %49 = vector.shape_cast %48 : vector<1x32xf32> to vector<1x1x32xf32>
    %50 = vector.broadcast %49 : vector<1x1x32xf32> to vector<18x18x32xf32>
    %51 = arith.mulf %47, %50 : vector<18x18x32xf32>
    %52 = arith.addf %46, %51 : vector<18x18x32xf32>
    %53 = vector.extract_strided_slice %1 {offsets = [2, 2, 0], sizes = [18, 18, 32], strides = [1, 1, 1]} : vector<20x20x32xf32> to vector<18x18x32xf32>
    %54 = vector.extract_strided_slice %2 {offsets = [8, 0], sizes = [1, 32], strides = [1, 1]} : vector<9x32xf32> to vector<1x32xf32>
    %55 = vector.shape_cast %54 : vector<1x32xf32> to vector<1x1x32xf32>
    %56 = vector.broadcast %55 : vector<1x1x32xf32> to vector<18x18x32xf32>
    %57 = arith.mulf %53, %56 : vector<18x18x32xf32>
    %58 = arith.addf %52, %57 : vector<18x18x32xf32>
    %c0_7 = arith.constant 0 : index
    %c0_8 = arith.constant 0 : index
    %59 = vector.load %arg3[%c0_7, %c0_8] : memref<1x32xf32, #tpu.memory_space<vmem>>, vector<1x32xf32>
    %60 = vector.shape_cast %59 : vector<1x32xf32> to vector<1x1x32xf32>
    %61 = vector.broadcast %60 : vector<1x1x32xf32> to vector<18x18x32xf32>
    %62 = arith.addf %58, %61 : vector<18x18x32xf32>
    %cst_9 = arith.constant dense<0.000000e+00> : vector<18x18xf32>
    %63 = vector.multi_reduction <add>, %62, %cst_9 [2] : vector<18x18x32xf32> to vector<18x18xf32>
    %64 = vector.shape_cast %63 : vector<18x18xf32> to vector<18x18x1xf32>
    %cst_10 = arith.constant 3.200000e+01 : f32
    %65 = vector.broadcast %cst_10 : f32 to vector<18x18x1xf32>
    %66 = arith.divf %64, %65 : vector<18x18x1xf32>
    %67 = vector.broadcast %66 : vector<18x18x1xf32> to vector<18x18x32xf32>
    %68 = arith.subf %62, %67 : vector<18x18x32xf32>
    %69 = arith.mulf %68, %68 : vector<18x18x32xf32>
    %cst_11 = arith.constant dense<0.000000e+00> : vector<18x18xf32>
    %70 = vector.multi_reduction <add>, %69, %cst_11 [2] : vector<18x18x32xf32> to vector<18x18xf32>
    %71 = vector.shape_cast %70 : vector<18x18xf32> to vector<18x18x1xf32>
    %cst_12 = arith.constant 3.200000e+01 : f32
    %72 = vector.broadcast %cst_12 : f32 to vector<18x18x1xf32>
    %73 = arith.divf %71, %72 : vector<18x18x1xf32>
    %74 = vector.broadcast %66 : vector<18x18x1xf32> to vector<18x18x32xf32>
    %75 = arith.subf %62, %74 : vector<18x18x32xf32>
    %cst_13 = arith.constant 9.99999997E-7 : f32
    %76 = vector.broadcast %cst_13 : f32 to vector<18x18x1xf32>
    %77 = arith.addf %73, %76 : vector<18x18x1xf32>
    %78 = math.rsqrt %77 : vector<18x18x1xf32>
    %79 = vector.broadcast %78 : vector<18x18x1xf32> to vector<18x18x32xf32>
    %80 = arith.mulf %75, %79 : vector<18x18x32xf32>
    %c0_14 = arith.constant 0 : index
    %c0_15 = arith.constant 0 : index
    %81 = vector.load %arg4[%c0_14, %c0_15] : memref<1x32xf32, #tpu.memory_space<vmem>>, vector<1x32xf32>
    %82 = vector.shape_cast %81 : vector<1x32xf32> to vector<1x1x32xf32>
    %83 = vector.broadcast %82 : vector<1x1x32xf32> to vector<18x18x32xf32>
    %84 = arith.mulf %80, %83 : vector<18x18x32xf32>
    %c0_16 = arith.constant 0 : index
    %c0_17 = arith.constant 0 : index
    %85 = vector.load %arg5[%c0_16, %c0_17] : memref<1x32xf32, #tpu.memory_space<vmem>>, vector<1x32xf32>
    %86 = vector.shape_cast %85 : vector<1x32xf32> to vector<1x1x32xf32>
    %87 = vector.broadcast %86 : vector<1x1x32xf32> to vector<18x18x32xf32>
    %88 = arith.addf %84, %87 : vector<18x18x32xf32>
    %c0_18 = arith.constant 0 : index
    %c0_19 = arith.constant 0 : index
    %c0_20 = arith.constant 0 : index
    %89 = vector.load %arg6[%c0_18, %c0_19, %c0_20] : memref<18x18x1xf32, #tpu.memory_space<vmem>>, vector<18x18x1xf32>
    %90 = vector.broadcast %89 : vector<18x18x1xf32> to vector<18x18x32xf32>
    %91 = arith.mulf %88, %90 : vector<18x18x32xf32>
    %cst_21 = arith.constant 0.000000e+00 : f32
    %92 = vector.broadcast %cst_21 : f32 to vector<16x16x32xf32>
    %93 = vector.extract_strided_slice %91 {offsets = [0, 0, 0], sizes = [16, 16, 32], strides = [1, 1, 1]} : vector<18x18x32xf32> to vector<16x16x32xf32>
    %94 = vector.extract_strided_slice %3 {offsets = [0, 0], sizes = [1, 32], strides = [1, 1]} : vector<9x32xf32> to vector<1x32xf32>
    %95 = vector.shape_cast %94 : vector<1x32xf32> to vector<1x1x32xf32>
    %96 = vector.broadcast %95 : vector<1x1x32xf32> to vector<16x16x32xf32>
    %97 = arith.mulf %93, %96 : vector<16x16x32xf32>
    %98 = arith.addf %92, %97 : vector<16x16x32xf32>
    %99 = vector.extract_strided_slice %91 {offsets = [0, 1, 0], sizes = [16, 16, 32], strides = [1, 1, 1]} : vector<18x18x32xf32> to vector<16x16x32xf32>
    %100 = vector.extract_strided_slice %3 {offsets = [1, 0], sizes = [1, 32], strides = [1, 1]} : vector<9x32xf32> to vector<1x32xf32>
    %101 = vector.shape_cast %100 : vector<1x32xf32> to vector<1x1x32xf32>
    %102 = vector.broadcast %101 : vector<1x1x32xf32> to vector<16x16x32xf32>
    %103 = arith.mulf %99, %102 : vector<16x16x32xf32>
    %104 = arith.addf %98, %103 : vector<16x16x32xf32>
    %105 = vector.extract_strided_slice %91 {offsets = [0, 2, 0], sizes = [16, 16, 32], strides = [1, 1, 1]} : vector<18x18x32xf32> to vector<16x16x32xf32>
    %106 = vector.extract_strided_slice %3 {offsets = [2, 0], sizes = [1, 32], strides = [1, 1]} : vector<9x32xf32> to vector<1x32xf32>
    %107 = vector.shape_cast %106 : vector<1x32xf32> to vector<1x1x32xf32>
    %108 = vector.broadcast %107 : vector<1x1x32xf32> to vector<16x16x32xf32>
    %109 = arith.mulf %105, %108 : vector<16x16x32xf32>
    %110 = arith.addf %104, %109 : vector<16x16x32xf32>
    %111 = vector.extract_strided_slice %91 {offsets = [1, 0, 0], sizes = [16, 16, 32], strides = [1, 1, 1]} : vector<18x18x32xf32> to vector<16x16x32xf32>
    %112 = vector.extract_strided_slice %3 {offsets = [3, 0], sizes = [1, 32], strides = [1, 1]} : vector<9x32xf32> to vector<1x32xf32>
    %113 = vector.shape_cast %112 : vector<1x32xf32> to vector<1x1x32xf32>
    %114 = vector.broadcast %113 : vector<1x1x32xf32> to vector<16x16x32xf32>
    %115 = arith.mulf %111, %114 : vector<16x16x32xf32>
    %116 = arith.addf %110, %115 : vector<16x16x32xf32>
    %117 = vector.extract_strided_slice %91 {offsets = [1, 1, 0], sizes = [16, 16, 32], strides = [1, 1, 1]} : vector<18x18x32xf32> to vector<16x16x32xf32>
    %118 = vector.extract_strided_slice %3 {offsets = [4, 0], sizes = [1, 32], strides = [1, 1]} : vector<9x32xf32> to vector<1x32xf32>
    %119 = vector.shape_cast %118 : vector<1x32xf32> to vector<1x1x32xf32>
    %120 = vector.broadcast %119 : vector<1x1x32xf32> to vector<16x16x32xf32>
    %121 = arith.mulf %117, %120 : vector<16x16x32xf32>
    %122 = arith.addf %116, %121 : vector<16x16x32xf32>
    %123 = vector.extract_strided_slice %91 {offsets = [1, 2, 0], sizes = [16, 16, 32], strides = [1, 1, 1]} : vector<18x18x32xf32> to vector<16x16x32xf32>
    %124 = vector.extract_strided_slice %3 {offsets = [5, 0], sizes = [1, 32], strides = [1, 1]} : vector<9x32xf32> to vector<1x32xf32>
    %125 = vector.shape_cast %124 : vector<1x32xf32> to vector<1x1x32xf32>
    %126 = vector.broadcast %125 : vector<1x1x32xf32> to vector<16x16x32xf32>
    %127 = arith.mulf %123, %126 : vector<16x16x32xf32>
    %128 = arith.addf %122, %127 : vector<16x16x32xf32>
    %129 = vector.extract_strided_slice %91 {offsets = [2, 0, 0], sizes = [16, 16, 32], strides = [1, 1, 1]} : vector<18x18x32xf32> to vector<16x16x32xf32>
    %130 = vector.extract_strided_slice %3 {offsets = [6, 0], sizes = [1, 32], strides = [1, 1]} : vector<9x32xf32> to vector<1x32xf32>
    %131 = vector.shape_cast %130 : vector<1x32xf32> to vector<1x1x32xf32>
    %132 = vector.broadcast %131 : vector<1x1x32xf32> to vector<16x16x32xf32>
    %133 = arith.mulf %129, %132 : vector<16x16x32xf32>
    %134 = arith.addf %128, %133 : vector<16x16x32xf32>
    %135 = vector.extract_strided_slice %91 {offsets = [2, 1, 0], sizes = [16, 16, 32], strides = [1, 1, 1]} : vector<18x18x32xf32> to vector<16x16x32xf32>
    %136 = vector.extract_strided_slice %3 {offsets = [7, 0], sizes = [1, 32], strides = [1, 1]} : vector<9x32xf32> to vector<1x32xf32>
    %137 = vector.shape_cast %136 : vector<1x32xf32> to vector<1x1x32xf32>
    %138 = vector.broadcast %137 : vector<1x1x32xf32> to vector<16x16x32xf32>
    %139 = arith.mulf %135, %138 : vector<16x16x32xf32>
    %140 = arith.addf %134, %139 : vector<16x16x32xf32>
    %141 = vector.extract_strided_slice %91 {offsets = [2, 2, 0], sizes = [16, 16, 32], strides = [1, 1, 1]} : vector<18x18x32xf32> to vector<16x16x32xf32>
    %142 = vector.extract_strided_slice %3 {offsets = [8, 0], sizes = [1, 32], strides = [1, 1]} : vector<9x32xf32> to vector<1x32xf32>
    %143 = vector.shape_cast %142 : vector<1x32xf32> to vector<1x1x32xf32>
    %144 = vector.broadcast %143 : vector<1x1x32xf32> to vector<16x16x32xf32>
    %145 = arith.mulf %141, %144 : vector<16x16x32xf32>
    %146 = arith.addf %140, %145 : vector<16x16x32xf32>
    %c0_22 = arith.constant 0 : index
    %c0_23 = arith.constant 0 : index
    %147 = vector.load %arg8[%c0_22, %c0_23] : memref<1x32xf32, #tpu.memory_space<vmem>>, vector<1x32xf32>
    %148 = vector.shape_cast %147 : vector<1x32xf32> to vector<1x1x32xf32>
    %149 = vector.broadcast %148 : vector<1x1x32xf32> to vector<16x16x32xf32>
    %150 = arith.addf %146, %149 : vector<16x16x32xf32>
    %151 = arith.mulf %150, %150 : vector<16x16x32xf32>
    %152 = arith.mulf %150, %151 : vector<16x16x32xf32>
    %cst_24 = arith.constant 4.471500e-02 : f32
    %153 = vector.broadcast %cst_24 : f32 to vector<16x16x32xf32>
    %154 = arith.mulf %153, %152 : vector<16x16x32xf32>
    %155 = arith.addf %150, %154 : vector<16x16x32xf32>
    %cst_25 = arith.constant 0.797884583 : f32
    %156 = vector.broadcast %cst_25 : f32 to vector<16x16x32xf32>
    %157 = arith.mulf %156, %155 : vector<16x16x32xf32>
    %158 = math.tanh %157 : vector<16x16x32xf32>
    %cst_26 = arith.constant 1.000000e+00 : f32
    %159 = vector.broadcast %cst_26 : f32 to vector<16x16x32xf32>
    %160 = arith.addf %159, %158 : vector<16x16x32xf32>
    %cst_27 = arith.constant 5.000000e-01 : f32
    %161 = vector.broadcast %cst_27 : f32 to vector<16x16x32xf32>
    %162 = arith.mulf %161, %160 : vector<16x16x32xf32>
    %163 = arith.mulf %150, %162 : vector<16x16x32xf32>
    %c0_28 = arith.constant 0 : index
    %c0_29 = arith.constant 0 : index
    %164 = vector.load %arg9[%c0_28, %c0_29] : memref<32x32xf32, #tpu.memory_space<vmem>>, vector<32x32xf32>
    %c0_30 = arith.constant 0 : index
    %c0_31 = arith.constant 0 : index
    %165 = vector.load %arg10[%c0_30, %c0_31] : memref<1x32xf32, #tpu.memory_space<vmem>>, vector<1x32xf32>
    %166 = vector.extract_strided_slice %163 {offsets = [0, 0, 0], sizes = [1, 16, 32], strides = [1, 1, 1]} : vector<16x16x32xf32> to vector<1x16x32xf32>
    %167 = vector.shape_cast %166 : vector<1x16x32xf32> to vector<16x32xf32>
    %cst_32 = arith.constant dense<0.000000e+00> : vector<16x32xf32>
    %168 = tpu.matmul %167, %164, %cst_32 {dimension_numbers = #tpu.dot_dimension_numbers<[1], [0], [0], [1], [0, 0, 1, 1], [], []>} : vector<16x32xf32>, vector<32x32xf32>, vector<16x32xf32> -> vector<16x32xf32>
    %169 = vector.broadcast %165 : vector<1x32xf32> to vector<16x32xf32>
    %170 = arith.addf %168, %169 : vector<16x32xf32>
    %c0_33 = arith.constant 0 : index
    %c0_34 = arith.constant 0 : index
    %c0_35 = arith.constant 0 : index
    %c0_36 = arith.constant 0 : index
    %171 = vector.load %arg11[%c0_33, %c0_34, %c0_35, %c0_36] : memref<1x16x16x32xf32, #tpu.memory_space<vmem>>, vector<1x1x16x32xf32>
    %172 = vector.shape_cast %171 : vector<1x1x16x32xf32> to vector<16x32xf32>
    %173 = vector.shape_cast %170 : vector<16x32xf32> to vector<1x1x16x32xf32>
    tpu.vector_store %arg11[%c0_33, %c0_34, %c0_35, %c0_36], %173 {strides = array<i32>} : memref<1x16x16x32xf32, #tpu.memory_space<vmem>>, vector<1x1x16x32xf32>,
    %174 = vector.extract_strided_slice %163 {offsets = [1, 0, 0], sizes = [1, 16, 32], strides = [1, 1, 1]} : vector<16x16x32xf32> to vector<1x16x32xf32>
    %175 = vector.shape_cast %174 : vector<1x16x32xf32> to vector<16x32xf32>
    %cst_37 = arith.constant dense<0.000000e+00> : vector<16x32xf32>
    %176 = tpu.matmul %175, %164, %cst_37 {dimension_numbers = #tpu.dot_dimension_numbers<[1], [0], [0], [1], [0, 0, 1, 1], [], []>} : vector<16x32xf32>, vector<32x32xf32>, vector<16x32xf32> -> vector<16x32xf32>
    %177 = vector.broadcast %165 : vector<1x32xf32> to vector<16x32xf32>
    %178 = arith.addf %176, %177 : vector<16x32xf32>
    %c0_38 = arith.constant 0 : index
    %c1 = arith.constant 1 : index
    %c0_39 = arith.constant 0 : index
    %c0_40 = arith.constant 0 : index
    %179 = vector.load %arg11[%c0_38, %c1, %c0_39, %c0_40] : memref<1x16x16x32xf32, #tpu.memory_space<vmem>>, vector<1x1x16x32xf32>
    %180 = vector.shape_cast %179 : vector<1x1x16x32xf32> to vector<16x32xf32>
    %181 = vector.shape_cast %178 : vector<16x32xf32> to vector<1x1x16x32xf32>
    tpu.vector_store %arg11[%c0_38, %c1, %c0_39, %c0_40], %181 {strides = array<i32>} : memref<1x16x16x32xf32, #tpu.memory_space<vmem>>, vector<1x1x16x32xf32>,
    %182 = vector.extract_strided_slice %163 {offsets = [2, 0, 0], sizes = [1, 16, 32], strides = [1, 1, 1]} : vector<16x16x32xf32> to vector<1x16x32xf32>
    %183 = vector.shape_cast %182 : vector<1x16x32xf32> to vector<16x32xf32>
    %cst_41 = arith.constant dense<0.000000e+00> : vector<16x32xf32>
    %184 = tpu.matmul %183, %164, %cst_41 {dimension_numbers = #tpu.dot_dimension_numbers<[1], [0], [0], [1], [0, 0, 1, 1], [], []>} : vector<16x32xf32>, vector<32x32xf32>, vector<16x32xf32> -> vector<16x32xf32>
    %185 = vector.broadcast %165 : vector<1x32xf32> to vector<16x32xf32>
    %186 = arith.addf %184, %185 : vector<16x32xf32>
    %c0_42 = arith.constant 0 : index
    %c2 = arith.constant 2 : index
    %c0_43 = arith.constant 0 : index
    %c0_44 = arith.constant 0 : index
    %187 = vector.load %arg11[%c0_42, %c2, %c0_43, %c0_44] : memref<1x16x16x32xf32, #tpu.memory_space<vmem>>, vector<1x1x16x32xf32>
    %188 = vector.shape_cast %187 : vector<1x1x16x32xf32> to vector<16x32xf32>
    %189 = vector.shape_cast %186 : vector<16x32xf32> to vector<1x1x16x32xf32>
    tpu.vector_store %arg11[%c0_42, %c2, %c0_43, %c0_44], %189 {strides = array<i32>} : memref<1x16x16x32xf32, #tpu.memory_space<vmem>>, vector<1x1x16x32xf32>,
    %190 = vector.extract_strided_slice %163 {offsets = [3, 0, 0], sizes = [1, 16, 32], strides = [1, 1, 1]} : vector<16x16x32xf32> to vector<1x16x32xf32>
    %191 = vector.shape_cast %190 : vector<1x16x32xf32> to vector<16x32xf32>
    %cst_45 = arith.constant dense<0.000000e+00> : vector<16x32xf32>
    %192 = tpu.matmul %191, %164, %cst_45 {dimension_numbers = #tpu.dot_dimension_numbers<[1], [0], [0], [1], [0, 0, 1, 1], [], []>} : vector<16x32xf32>, vector<32x32xf32>, vector<16x32xf32> -> vector<16x32xf32>
    %193 = vector.broadcast %165 : vector<1x32xf32> to vector<16x32xf32>
    %194 = arith.addf %192, %193 : vector<16x32xf32>
    %c0_46 = arith.constant 0 : index
    %c3 = arith.constant 3 : index
    %c0_47 = arith.constant 0 : index
    %c0_48 = arith.constant 0 : index
    %195 = vector.load %arg11[%c0_46, %c3, %c0_47, %c0_48] : memref<1x16x16x32xf32, #tpu.memory_space<vmem>>, vector<1x1x16x32xf32>
    %196 = vector.shape_cast %195 : vector<1x1x16x32xf32> to vector<16x32xf32>
    %197 = vector.shape_cast %194 : vector<16x32xf32> to vector<1x1x16x32xf32>
    tpu.vector_store %arg11[%c0_46, %c3, %c0_47, %c0_48], %197 {strides = array<i32>} : memref<1x16x16x32xf32, #tpu.memory_space<vmem>>, vector<1x1x16x32xf32>,
    %198 = vector.extract_strided_slice %163 {offsets = [4, 0, 0], sizes = [1, 16, 32], strides = [1, 1, 1]} : vector<16x16x32xf32> to vector<1x16x32xf32>
    %199 = vector.shape_cast %198 : vector<1x16x32xf32> to vector<16x32xf32>
    %cst_49 = arith.constant dense<0.000000e+00> : vector<16x32xf32>
    %200 = tpu.matmul %199, %164, %cst_49 {dimension_numbers = #tpu.dot_dimension_numbers<[1], [0], [0], [1], [0, 0, 1, 1], [], []>} : vector<16x32xf32>, vector<32x32xf32>, vector<16x32xf32> -> vector<16x32xf32>
    %201 = vector.broadcast %165 : vector<1x32xf32> to vector<16x32xf32>
    %202 = arith.addf %200, %201 : vector<16x32xf32>
    %c0_50 = arith.constant 0 : index
    %c4 = arith.constant 4 : index
    %c0_51 = arith.constant 0 : index
    %c0_52 = arith.constant 0 : index
    %203 = vector.load %arg11[%c0_50, %c4, %c0_51, %c0_52] : memref<1x16x16x32xf32, #tpu.memory_space<vmem>>, vector<1x1x16x32xf32>
    %204 = vector.shape_cast %203 : vector<1x1x16x32xf32> to vector<16x32xf32>
    %205 = vector.shape_cast %202 : vector<16x32xf32> to vector<1x1x16x32xf32>
    tpu.vector_store %arg11[%c0_50, %c4, %c0_51, %c0_52], %205 {strides = array<i32>} : memref<1x16x16x32xf32, #tpu.memory_space<vmem>>, vector<1x1x16x32xf32>,
    %206 = vector.extract_strided_slice %163 {offsets = [5, 0, 0], sizes = [1, 16, 32], strides = [1, 1, 1]} : vector<16x16x32xf32> to vector<1x16x32xf32>
    %207 = vector.shape_cast %206 : vector<1x16x32xf32> to vector<16x32xf32>
    %cst_53 = arith.constant dense<0.000000e+00> : vector<16x32xf32>
    %208 = tpu.matmul %207, %164, %cst_53 {dimension_numbers = #tpu.dot_dimension_numbers<[1], [0], [0], [1], [0, 0, 1, 1], [], []>} : vector<16x32xf32>, vector<32x32xf32>, vector<16x32xf32> -> vector<16x32xf32>
    %209 = vector.broadcast %165 : vector<1x32xf32> to vector<16x32xf32>
    %210 = arith.addf %208, %209 : vector<16x32xf32>
    %c0_54 = arith.constant 0 : index
    %c5 = arith.constant 5 : index
    %c0_55 = arith.constant 0 : index
    %c0_56 = arith.constant 0 : index
    %211 = vector.load %arg11[%c0_54, %c5, %c0_55, %c0_56] : memref<1x16x16x32xf32, #tpu.memory_space<vmem>>, vector<1x1x16x32xf32>
    %212 = vector.shape_cast %211 : vector<1x1x16x32xf32> to vector<16x32xf32>
    %213 = vector.shape_cast %210 : vector<16x32xf32> to vector<1x1x16x32xf32>
    tpu.vector_store %arg11[%c0_54, %c5, %c0_55, %c0_56], %213 {strides = array<i32>} : memref<1x16x16x32xf32, #tpu.memory_space<vmem>>, vector<1x1x16x32xf32>,
    %214 = vector.extract_strided_slice %163 {offsets = [6, 0, 0], sizes = [1, 16, 32], strides = [1, 1, 1]} : vector<16x16x32xf32> to vector<1x16x32xf32>
    %215 = vector.shape_cast %214 : vector<1x16x32xf32> to vector<16x32xf32>
    %cst_57 = arith.constant dense<0.000000e+00> : vector<16x32xf32>
    %216 = tpu.matmul %215, %164, %cst_57 {dimension_numbers = #tpu.dot_dimension_numbers<[1], [0], [0], [1], [0, 0, 1, 1], [], []>} : vector<16x32xf32>, vector<32x32xf32>, vector<16x32xf32> -> vector<16x32xf32>
    %217 = vector.broadcast %165 : vector<1x32xf32> to vector<16x32xf32>
    %218 = arith.addf %216, %217 : vector<16x32xf32>
    %c0_58 = arith.constant 0 : index
    %c6 = arith.constant 6 : index
    %c0_59 = arith.constant 0 : index
    %c0_60 = arith.constant 0 : index
    %219 = vector.load %arg11[%c0_58, %c6, %c0_59, %c0_60] : memref<1x16x16x32xf32, #tpu.memory_space<vmem>>, vector<1x1x16x32xf32>
    %220 = vector.shape_cast %219 : vector<1x1x16x32xf32> to vector<16x32xf32>
    %221 = vector.shape_cast %218 : vector<16x32xf32> to vector<1x1x16x32xf32>
    tpu.vector_store %arg11[%c0_58, %c6, %c0_59, %c0_60], %221 {strides = array<i32>} : memref<1x16x16x32xf32, #tpu.memory_space<vmem>>, vector<1x1x16x32xf32>,
    %222 = vector.extract_strided_slice %163 {offsets = [7, 0, 0], sizes = [1, 16, 32], strides = [1, 1, 1]} : vector<16x16x32xf32> to vector<1x16x32xf32>
    %223 = vector.shape_cast %222 : vector<1x16x32xf32> to vector<16x32xf32>
    %cst_61 = arith.constant dense<0.000000e+00> : vector<16x32xf32>
    %224 = tpu.matmul %223, %164, %cst_61 {dimension_numbers = #tpu.dot_dimension_numbers<[1], [0], [0], [1], [0, 0, 1, 1], [], []>} : vector<16x32xf32>, vector<32x32xf32>, vector<16x32xf32> -> vector<16x32xf32>
    %225 = vector.broadcast %165 : vector<1x32xf32> to vector<16x32xf32>
    %226 = arith.addf %224, %225 : vector<16x32xf32>
    %c0_62 = arith.constant 0 : index
    %c7 = arith.constant 7 : index
    %c0_63 = arith.constant 0 : index
    %c0_64 = arith.constant 0 : index
    %227 = vector.load %arg11[%c0_62, %c7, %c0_63, %c0_64] : memref<1x16x16x32xf32, #tpu.memory_space<vmem>>, vector<1x1x16x32xf32>
    %228 = vector.shape_cast %227 : vector<1x1x16x32xf32> to vector<16x32xf32>
    %229 = vector.shape_cast %226 : vector<16x32xf32> to vector<1x1x16x32xf32>
    tpu.vector_store %arg11[%c0_62, %c7, %c0_63, %c0_64], %229 {strides = array<i32>} : memref<1x16x16x32xf32, #tpu.memory_space<vmem>>, vector<1x1x16x32xf32>,
    %230 = vector.extract_strided_slice %163 {offsets = [8, 0, 0], sizes = [1, 16, 32], strides = [1, 1, 1]} : vector<16x16x32xf32> to vector<1x16x32xf32>
    %231 = vector.shape_cast %230 : vector<1x16x32xf32> to vector<16x32xf32>
    %cst_65 = arith.constant dense<0.000000e+00> : vector<16x32xf32>
    %232 = tpu.matmul %231, %164, %cst_65 {dimension_numbers = #tpu.dot_dimension_numbers<[1], [0], [0], [1], [0, 0, 1, 1], [], []>} : vector<16x32xf32>, vector<32x32xf32>, vector<16x32xf32> -> vector<16x32xf32>
    %233 = vector.broadcast %165 : vector<1x32xf32> to vector<16x32xf32>
    %234 = arith.addf %232, %233 : vector<16x32xf32>
    %c0_66 = arith.constant 0 : index
    %c8 = arith.constant 8 : index
    %c0_67 = arith.constant 0 : index
    %c0_68 = arith.constant 0 : index
    %235 = vector.load %arg11[%c0_66, %c8, %c0_67, %c0_68] : memref<1x16x16x32xf32, #tpu.memory_space<vmem>>, vector<1x1x16x32xf32>
    %236 = vector.shape_cast %235 : vector<1x1x16x32xf32> to vector<16x32xf32>
    %237 = vector.shape_cast %234 : vector<16x32xf32> to vector<1x1x16x32xf32>
    tpu.vector_store %arg11[%c0_66, %c8, %c0_67, %c0_68], %237 {strides = array<i32>} : memref<1x16x16x32xf32, #tpu.memory_space<vmem>>, vector<1x1x16x32xf32>,
    %238 = vector.extract_strided_slice %163 {offsets = [9, 0, 0], sizes = [1, 16, 32], strides = [1, 1, 1]} : vector<16x16x32xf32> to vector<1x16x32xf32>
    %239 = vector.shape_cast %238 : vector<1x16x32xf32> to vector<16x32xf32>
    %cst_69 = arith.constant dense<0.000000e+00> : vector<16x32xf32>
    %240 = tpu.matmul %239, %164, %cst_69 {dimension_numbers = #tpu.dot_dimension_numbers<[1], [0], [0], [1], [0, 0, 1, 1], [], []>} : vector<16x32xf32>, vector<32x32xf32>, vector<16x32xf32> -> vector<16x32xf32>
    %241 = vector.broadcast %165 : vector<1x32xf32> to vector<16x32xf32>
    %242 = arith.addf %240, %241 : vector<16x32xf32>
    %c0_70 = arith.constant 0 : index
    %c9 = arith.constant 9 : index
    %c0_71 = arith.constant 0 : index
    %c0_72 = arith.constant 0 : index
    %243 = vector.load %arg11[%c0_70, %c9, %c0_71, %c0_72] : memref<1x16x16x32xf32, #tpu.memory_space<vmem>>, vector<1x1x16x32xf32>
    %244 = vector.shape_cast %243 : vector<1x1x16x32xf32> to vector<16x32xf32>
    %245 = vector.shape_cast %242 : vector<16x32xf32> to vector<1x1x16x32xf32>
    tpu.vector_store %arg11[%c0_70, %c9, %c0_71, %c0_72], %245 {strides = array<i32>} : memref<1x16x16x32xf32, #tpu.memory_space<vmem>>, vector<1x1x16x32xf32>,
    %246 = vector.extract_strided_slice %163 {offsets = [10, 0, 0], sizes = [1, 16, 32], strides = [1, 1, 1]} : vector<16x16x32xf32> to vector<1x16x32xf32>
    %247 = vector.shape_cast %246 : vector<1x16x32xf32> to vector<16x32xf32>
    %cst_73 = arith.constant dense<0.000000e+00> : vector<16x32xf32>
    %248 = tpu.matmul %247, %164, %cst_73 {dimension_numbers = #tpu.dot_dimension_numbers<[1], [0], [0], [1], [0, 0, 1, 1], [], []>} : vector<16x32xf32>, vector<32x32xf32>, vector<16x32xf32> -> vector<16x32xf32>
    %249 = vector.broadcast %165 : vector<1x32xf32> to vector<16x32xf32>
    %250 = arith.addf %248, %249 : vector<16x32xf32>
    %c0_74 = arith.constant 0 : index
    %c10 = arith.constant 10 : index
    %c0_75 = arith.constant 0 : index
    %c0_76 = arith.constant 0 : index
    %251 = vector.load %arg11[%c0_74, %c10, %c0_75, %c0_76] : memref<1x16x16x32xf32, #tpu.memory_space<vmem>>, vector<1x1x16x32xf32>
    %252 = vector.shape_cast %251 : vector<1x1x16x32xf32> to vector<16x32xf32>
    %253 = vector.shape_cast %250 : vector<16x32xf32> to vector<1x1x16x32xf32>
    tpu.vector_store %arg11[%c0_74, %c10, %c0_75, %c0_76], %253 {strides = array<i32>} : memref<1x16x16x32xf32, #tpu.memory_space<vmem>>, vector<1x1x16x32xf32>,
    %254 = vector.extract_strided_slice %163 {offsets = [11, 0, 0], sizes = [1, 16, 32], strides = [1, 1, 1]} : vector<16x16x32xf32> to vector<1x16x32xf32>
    %255 = vector.shape_cast %254 : vector<1x16x32xf32> to vector<16x32xf32>
    %cst_77 = arith.constant dense<0.000000e+00> : vector<16x32xf32>
    %256 = tpu.matmul %255, %164, %cst_77 {dimension_numbers = #tpu.dot_dimension_numbers<[1], [0], [0], [1], [0, 0, 1, 1], [], []>} : vector<16x32xf32>, vector<32x32xf32>, vector<16x32xf32> -> vector<16x32xf32>
    %257 = vector.broadcast %165 : vector<1x32xf32> to vector<16x32xf32>
    %258 = arith.addf %256, %257 : vector<16x32xf32>
    %c0_78 = arith.constant 0 : index
    %c11 = arith.constant 11 : index
    %c0_79 = arith.constant 0 : index
    %c0_80 = arith.constant 0 : index
    %259 = vector.load %arg11[%c0_78, %c11, %c0_79, %c0_80] : memref<1x16x16x32xf32, #tpu.memory_space<vmem>>, vector<1x1x16x32xf32>
    %260 = vector.shape_cast %259 : vector<1x1x16x32xf32> to vector<16x32xf32>
    %261 = vector.shape_cast %258 : vector<16x32xf32> to vector<1x1x16x32xf32>
    tpu.vector_store %arg11[%c0_78, %c11, %c0_79, %c0_80], %261 {strides = array<i32>} : memref<1x16x16x32xf32, #tpu.memory_space<vmem>>, vector<1x1x16x32xf32>,
    %262 = vector.extract_strided_slice %163 {offsets = [12, 0, 0], sizes = [1, 16, 32], strides = [1, 1, 1]} : vector<16x16x32xf32> to vector<1x16x32xf32>
    %263 = vector.shape_cast %262 : vector<1x16x32xf32> to vector<16x32xf32>
    %cst_81 = arith.constant dense<0.000000e+00> : vector<16x32xf32>
    %264 = tpu.matmul %263, %164, %cst_81 {dimension_numbers = #tpu.dot_dimension_numbers<[1], [0], [0], [1], [0, 0, 1, 1], [], []>} : vector<16x32xf32>, vector<32x32xf32>, vector<16x32xf32> -> vector<16x32xf32>
    %265 = vector.broadcast %165 : vector<1x32xf32> to vector<16x32xf32>
    %266 = arith.addf %264, %265 : vector<16x32xf32>
    %c0_82 = arith.constant 0 : index
    %c12 = arith.constant 12 : index
    %c0_83 = arith.constant 0 : index
    %c0_84 = arith.constant 0 : index
    %267 = vector.load %arg11[%c0_82, %c12, %c0_83, %c0_84] : memref<1x16x16x32xf32, #tpu.memory_space<vmem>>, vector<1x1x16x32xf32>
    %268 = vector.shape_cast %267 : vector<1x1x16x32xf32> to vector<16x32xf32>
    %269 = vector.shape_cast %266 : vector<16x32xf32> to vector<1x1x16x32xf32>
    tpu.vector_store %arg11[%c0_82, %c12, %c0_83, %c0_84], %269 {strides = array<i32>} : memref<1x16x16x32xf32, #tpu.memory_space<vmem>>, vector<1x1x16x32xf32>,
    %270 = vector.extract_strided_slice %163 {offsets = [13, 0, 0], sizes = [1, 16, 32], strides = [1, 1, 1]} : vector<16x16x32xf32> to vector<1x16x32xf32>
    %271 = vector.shape_cast %270 : vector<1x16x32xf32> to vector<16x32xf32>
    %cst_85 = arith.constant dense<0.000000e+00> : vector<16x32xf32>
    %272 = tpu.matmul %271, %164, %cst_85 {dimension_numbers = #tpu.dot_dimension_numbers<[1], [0], [0], [1], [0, 0, 1, 1], [], []>} : vector<16x32xf32>, vector<32x32xf32>, vector<16x32xf32> -> vector<16x32xf32>
    %273 = vector.broadcast %165 : vector<1x32xf32> to vector<16x32xf32>
    %274 = arith.addf %272, %273 : vector<16x32xf32>
    %c0_86 = arith.constant 0 : index
    %c13 = arith.constant 13 : index
    %c0_87 = arith.constant 0 : index
    %c0_88 = arith.constant 0 : index
    %275 = vector.load %arg11[%c0_86, %c13, %c0_87, %c0_88] : memref<1x16x16x32xf32, #tpu.memory_space<vmem>>, vector<1x1x16x32xf32>
    %276 = vector.shape_cast %275 : vector<1x1x16x32xf32> to vector<16x32xf32>
    %277 = vector.shape_cast %274 : vector<16x32xf32> to vector<1x1x16x32xf32>
    tpu.vector_store %arg11[%c0_86, %c13, %c0_87, %c0_88], %277 {strides = array<i32>} : memref<1x16x16x32xf32, #tpu.memory_space<vmem>>, vector<1x1x16x32xf32>,
    %278 = vector.extract_strided_slice %163 {offsets = [14, 0, 0], sizes = [1, 16, 32], strides = [1, 1, 1]} : vector<16x16x32xf32> to vector<1x16x32xf32>
    %279 = vector.shape_cast %278 : vector<1x16x32xf32> to vector<16x32xf32>
    %cst_89 = arith.constant dense<0.000000e+00> : vector<16x32xf32>
    %280 = tpu.matmul %279, %164, %cst_89 {dimension_numbers = #tpu.dot_dimension_numbers<[1], [0], [0], [1], [0, 0, 1, 1], [], []>} : vector<16x32xf32>, vector<32x32xf32>, vector<16x32xf32> -> vector<16x32xf32>
    %281 = vector.broadcast %165 : vector<1x32xf32> to vector<16x32xf32>
    %282 = arith.addf %280, %281 : vector<16x32xf32>
    %c0_90 = arith.constant 0 : index
    %c14 = arith.constant 14 : index
    %c0_91 = arith.constant 0 : index
    %c0_92 = arith.constant 0 : index
    %283 = vector.load %arg11[%c0_90, %c14, %c0_91, %c0_92] : memref<1x16x16x32xf32, #tpu.memory_space<vmem>>, vector<1x1x16x32xf32>
    %284 = vector.shape_cast %283 : vector<1x1x16x32xf32> to vector<16x32xf32>
    %285 = vector.shape_cast %282 : vector<16x32xf32> to vector<1x1x16x32xf32>
    tpu.vector_store %arg11[%c0_90, %c14, %c0_91, %c0_92], %285 {strides = array<i32>} : memref<1x16x16x32xf32, #tpu.memory_space<vmem>>, vector<1x1x16x32xf32>,
    %286 = vector.extract_strided_slice %163 {offsets = [15, 0, 0], sizes = [1, 16, 32], strides = [1, 1, 1]} : vector<16x16x32xf32> to vector<1x16x32xf32>
    %287 = vector.shape_cast %286 : vector<1x16x32xf32> to vector<16x32xf32>
    %cst_93 = arith.constant dense<0.000000e+00> : vector<16x32xf32>
    %288 = tpu.matmul %287, %164, %cst_93 {dimension_numbers = #tpu.dot_dimension_numbers<[1], [0], [0], [1], [0, 0, 1, 1], [], []>} : vector<16x32xf32>, vector<32x32xf32>, vector<16x32xf32> -> vector<16x32xf32>
    %289 = vector.broadcast %165 : vector<1x32xf32> to vector<16x32xf32>
    %290 = arith.addf %288, %289 : vector<16x32xf32>
    %c0_94 = arith.constant 0 : index
    %c15 = arith.constant 15 : index
    %c0_95 = arith.constant 0 : index
    %c0_96 = arith.constant 0 : index
    %291 = vector.load %arg11[%c0_94, %c15, %c0_95, %c0_96] : memref<1x16x16x32xf32, #tpu.memory_space<vmem>>, vector<1x1x16x32xf32>
    %292 = vector.shape_cast %291 : vector<1x1x16x32xf32> to vector<16x32xf32>
    %293 = vector.shape_cast %290 : vector<16x32xf32> to vector<1x1x16x32xf32>
    tpu.vector_store %arg11[%c0_94, %c15, %c0_95, %c0_96], %293 {strides = array<i32>} : memref<1x16x16x32xf32, #tpu.memory_space<vmem>>, vector<1x1x16x32xf32>,
    return
  }
  func.func @transform_0(%arg0: i32) -> (i32, i32, i32, i32) {
    %c0_i32 = arith.constant 0 : i32
    %c0_i32_0 = arith.constant 0 : i32
    %c0_i32_1 = arith.constant 0 : i32
    %c0_i32_2 = arith.constant 0 : i32
    return %arg0, %c0_i32, %c0_i32_0, %c0_i32_1 : i32, i32, i32, i32
  }
  func.func @transform_1(%arg0: i32) -> (i32, i32) {
    %c0_i32 = arith.constant 0 : i32
    %c0_i32_0 = arith.constant 0 : i32
    %c0_i32_1 = arith.constant 0 : i32
    return %c0_i32, %c0_i32_0 : i32, i32
  }
  func.func @transform_2(%arg0: i32) -> (i32, i32) {
    %c0_i32 = arith.constant 0 : i32
    %c0_i32_0 = arith.constant 0 : i32
    %c0_i32_1 = arith.constant 0 : i32
    return %c0_i32, %c0_i32_0 : i32, i32
  }
  func.func @transform_3(%arg0: i32) -> (i32, i32) {
    %c0_i32 = arith.constant 0 : i32
    %c0_i32_0 = arith.constant 0 : i32
    %c0_i32_1 = arith.constant 0 : i32
    return %c0_i32, %c0_i32_0 : i32, i32
  }
  func.func @transform_4(%arg0: i32) -> (i32, i32) {
    %c0_i32 = arith.constant 0 : i32
    %c0_i32_0 = arith.constant 0 : i32
    %c0_i32_1 = arith.constant 0 : i32
    return %c0_i32, %c0_i32_0 : i32, i32
  }
  func.func @transform_5(%arg0: i32) -> (i32, i32, i32) {
    %c0_i32 = arith.constant 0 : i32
    %c0_i32_0 = arith.constant 0 : i32
    %c0_i32_1 = arith.constant 0 : i32
    %c0_i32_2 = arith.constant 0 : i32
    return %c0_i32, %c0_i32_0, %c0_i32_1 : i32, i32, i32
  }
  func.func @transform_6(%arg0: i32) -> (i32, i32) {
    %c0_i32 = arith.constant 0 : i32
    %c0_i32_0 = arith.constant 0 : i32
    %c0_i32_1 = arith.constant 0 : i32
    return %c0_i32, %c0_i32_0 : i32, i32
  }
  func.func @transform_7(%arg0: i32) -> (i32, i32) {
    %c0_i32 = arith.constant 0 : i32
    %c0_i32_0 = arith.constant 0 : i32
    %c0_i32_1 = arith.constant 0 : i32
    return %c0_i32, %c0_i32_0 : i32, i32
  }
  func.func @transform_8(%arg0: i32) -> (i32, i32) {
    %c0_i32 = arith.constant 0 : i32
    %c0_i32_0 = arith.constant 0 : i32
    %c0_i32_1 = arith.constant 0 : i32
    return %c0_i32, %c0_i32_0 : i32, i32
  }
  func.func @transform_9(%arg0: i32) -> (i32, i32) {
    %c0_i32 = arith.constant 0 : i32
    %c0_i32_0 = arith.constant 0 : i32
    %c0_i32_1 = arith.constant 0 : i32
    return %c0_i32, %c0_i32_0 : i32, i32
  }
  func.func @transform_10(%arg0: i32) -> (i32, i32, i32, i32) {
    %c0_i32 = arith.constant 0 : i32
    %c0_i32_0 = arith.constant 0 : i32
    %c0_i32_1 = arith.constant 0 : i32
    %c0_i32_2 = arith.constant 0 : i32
    return %arg0, %c0_i32, %c0_i32_0, %c0_i32_1 : i32, i32, i32, i32
  }
}

</mosaic_0001>

<bundles_post_ra>
// kernel: ghpa_forward.2
= control target key start
LH: loop header
LB: loop body
LE: loop exit
PB: predicated region body
PF: predicated region fallthrough
CT: control target
= control target key end

     0   :  { %s2055_s21 = smov 0   ;;  %s2057_s22 = smov 0   ;;  %s3243_s0 = inlined_call_operand.vmem [shape: f32[2,256,32], index: 0, kind: input, shape index: {}]   ;;  %s3244_s1 = inlined_call_operand.vmem [shape: f32[256,32], index: 1, kind: input, shape index: {}]   ;;  %s3245_s2 = inlined_call_operand.vmem [shape: f32[1,32], index: 2, kind: input, shape index: {}]   ;;  %s3246_s3 = inlined_call_operand.vmem [shape: f32[1,32], index: 3, kind: input, shape index: {}]   ;;  %s3247_s4 = inlined_call_operand.vmem [shape: f32[32,32], index: 4, kind: input, shape index: {}]   ;;  %s3248_s5 = inlined_call_operand.vmem [shape: f32[1,32], index: 5, kind: input, shape index: {}]   ;;  %s3249_s6 = inlined_call_operand.vmem [shape: f32[2,256,32], index: 6, kind: output, shape index: {}]  }
   0x1   :  { %s2059_s23 = smov 0  }
   0x2 LB: > { %s28_s24 = sadd.s32 1, %s2014_s22  ;;  %p1696_p0 = scmp.ge.s32.totalorder %s2018_s23, 1  ;;  %s2018_s23 = sphi %s2059_s23, %s16_s23   ;;  %s2014_s22 = sphi %s2057_s22, %s3263_s22   ;;  %s2010_s21 = sphi %s2055_s21, %s3262_s21  }
   0x3   : > { %p30_p1 = scmp.ge.s32.totalorder %s28_s24, 2  ;;  %p244_p2 = scmp.lt.s32.totalorder %s2018_s23, 3 }
   0x5   : > { %s3265_s24 = smov (%p30_p1, %s28_s24), 0  ;;  %p245_p3 = pnand %p1696_p0, %p244_p2 }
   0x7   : > { %248 = sbr.rel (%p245_p3) target bundleno = 661 (0x295), region = 44 }
   0xe   : > { %p288_p4 = scmp.lt.s32.totalorder %s2010_s21, 1  ;;  %vm345_vm0 = vcmask 261120  }
  0x10   : > { %s3267_s21 = smov (!%p288_p4, %s2010_s21), 1 }
  0x11   : > { %s1738_s25 = sshll.u32 %s3267_s21, 8 }
  0x12   : > { %s2081_s28 = scalar_lea.vmem %s3243_s0, %s1738_s25  ;;  %s2910_s8 = scalar_lea.vmem %s3249_s6, %s1738_s25 }
  0x13   : > { %v2084_v0 = vld [vmem:[%s2081_s28] sm:$0xff]  ;;  %v2087_v1 = vld [vmem:[%s2081_s28 + $0x8] sm:$0xff]  ;;  %v2104_v8 = vld [vmem:[%s2081_s28 + $0x10] sm:$0xff] }
  0x14   : > { %v2090_v2 = vld [vmem:[%s2081_s28 + $0x80] sm:$0xff]  ;;  %v346_v3 = vsel %vm345_vm0, %v2084_v0, 0.0  ;;  %v349_v4 = vsel %vm345_vm0, %v2087_v1, 0.0  ;;  %v2097_v5 = vld [vmem:[%s2081_s28 + $0x88] sm:$0xff]  ;;  %v2107_v9 = vld [vmem:[%s2081_s28 + $0x90] sm:$0xff]  ;;  %v352_v10 = vsel %vm345_vm0, %v2104_v8, 0.0 }
  0x15   : > { %347 = vadd.xlane.f32.xlu0 %v346_v3  ;;  %350 = vadd.xlane.f32.xlu1 %v349_v4  ;;  %v394_v6 = vsel %vm345_vm0, %v2090_v2, 0.0  ;;  %v397_v7 = vsel %vm345_vm0, %v2097_v5, 0.0  ;;  %v400_v11 = vsel %vm345_vm0, %v2107_v9, 0.0  ;;  %v2114_v12 = vld [vmem:[%s2081_s28 + $0x18] sm:$0xff]  ;;  %v2124_v16 = vld [vmem:[%s2081_s28 + $0x20] sm:$0xff]  ;;  %v2134_v20 = vld [vmem:[%s2081_s28 + $0x28] sm:$0xff] }
  0x16   : > { %v2117_v13 = vld [vmem:[%s2081_s28 + $0x98] sm:$0xff]  ;;  %v355_v14 = vsel %vm345_vm0, %v2114_v12, 0.0  ;;  %v2127_v17 = vld [vmem:[%s2081_s28 + $0xa0] sm:$0xff]  ;;  %v358_v18 = vsel %vm345_vm0, %v2124_v16, 0.0  ;;  %v2137_v21 = vld [vmem:[%s2081_s28 + $0xa8] sm:$0xff]  ;;  %v361_v22 = vsel %vm345_vm0, %v2134_v20, 0.0 }
  0x17   : > { %v403_v15 = vsel %vm345_vm0, %v2117_v13, 0.0  ;;  %v406_v19 = vsel %vm345_vm0, %v2127_v17, 0.0  ;;  %v409_v23 = vsel %vm345_vm0, %v2137_v21, 0.0  ;;  %v2144_v24 = vld [vmem:[%s2081_s28 + $0x30] sm:$0xff]  ;;  %v2154_v28 = vld [vmem:[%s2081_s28 + $0x38] sm:$0xff]  ;;  %v2164_v32 = vld [vmem:[%s2081_s28 + $0x40] sm:$0xff] }
  0x18   : > { %v2147_v25 = vld [vmem:[%s2081_s28 + $0xb0] sm:$0xff]  ;;  %v364_v26 = vsel %vm345_vm0, %v2144_v24, 0.0  ;;  %v2157_v29 = vld [vmem:[%s2081_s28 + $0xb8] sm:$0xff]  ;;  %v367_v30 = vsel %vm345_vm0, %v2154_v28, 0.0  ;;  %v2167_v33 = vld [vmem:[%s2081_s28 + $0xc0] sm:$0xff]  ;;  %v370_v34 = vsel %vm345_vm0, %v2164_v32, 0.0 }
  0x19   : > { %395 = vadd.xlane.f32.xlu0 %v394_v6  ;;  %398 = vadd.xlane.f32.xlu1 %v397_v7  ;;  %v412_v27 = vsel %vm345_vm0, %v2147_v25, 0.0  ;;  %v415_v31 = vsel %vm345_vm0, %v2157_v29, 0.0  ;;  %v418_v35 = vsel %vm345_vm0, %v2167_v33, 0.0  ;;  %v2174_v36 = vld [vmem:[%s2081_s28 + $0x48] sm:$0xff]  ;;  %v2184_v40 = vld [vmem:[%s2081_s28 + $0x50] sm:$0xff]  ;;  %v2194_v44 = vld [vmem:[%s2081_s28 + $0x58] sm:$0xff] }
  0x1a   : > { %v2177_v37 = vld [vmem:[%s2081_s28 + $0xc8] sm:$0xff]  ;;  %v373_v38 = vsel %vm345_vm0, %v2174_v36, 0.0  ;;  %v2187_v41 = vld [vmem:[%s2081_s28 + $0xd0] sm:$0xff]  ;;  %v376_v42 = vsel %vm345_vm0, %v2184_v40, 0.0  ;;  %v2197_v45 = vld [vmem:[%s2081_s28 + $0xd8] sm:$0xff]  ;;  %v379_v46 = vsel %vm345_vm0, %v2194_v44, 0.0 }
  0x1b   : > { %v421_v39 = vsel %vm345_vm0, %v2177_v37, 0.0  ;;  %v424_v43 = vsel %vm345_vm0, %v2187_v41, 0.0  ;;  %v427_v47 = vsel %vm345_vm0, %v2197_v45, 0.0  ;;  %v2204_v48 = vld [vmem:[%s2081_s28 + $0x60] sm:$0xff]  ;;  %v2214_v52 = vld [vmem:[%s2081_s28 + $0x68] sm:$0xff]  ;;  %v2224_v56 = vld [vmem:[%s2081_s28 + $0x70] sm:$0xff] }
  0x1c   : > { %v2207_v49 = vld [vmem:[%s2081_s28 + $0xe0] sm:$0xff]  ;;  %v382_v50 = vsel %vm345_vm0, %v2204_v48, 0.0  ;;  %v2217_v53 = vld [vmem:[%s2081_s28 + $0xe8] sm:$0xff]  ;;  %v385_v54 = vsel %vm345_vm0, %v2214_v52, 0.0  ;;  %v2227_v57 = vld [vmem:[%s2081_s28 + $0xf0] sm:$0xff]  ;;  %v388_v58 = vsel %vm345_vm0, %v2224_v56, 0.0 }
  0x1d   : > { %353 = vadd.xlane.f32.xlu0 %v352_v10  ;;  %401 = vadd.xlane.f32.xlu1 %v400_v11  ;;  %v430_v51 = vsel %vm345_vm0, %v2207_v49, 0.0  ;;  %v433_v55 = vsel %vm345_vm0, %v2217_v53, 0.0  ;;  %v436_v59 = vsel %vm345_vm0, %v2227_v57, 0.0  ;;  %v2234_v60 = vld [vmem:[%s2081_s28 + $0x78] sm:$0xff] }
  0x1e   : > { %v2237_v61 = vld [vmem:[%s2081_s28 + $0xf8] sm:$0xff]  ;;  %v391_v62 = vsel %vm345_vm0, %v2234_v60, 0.0 }
  0x1f   : > { %v439_v63 = vsel %vm345_vm0, %v2237_v61, 0.0 }
  0x21   : > { %356 = vadd.xlane.f32.xlu0 %v355_v14  ;;  %404 = vadd.xlane.f32.xlu1 %v403_v15 }
  0x25   : > { %359 = vadd.xlane.f32.xlu0 %v358_v18  ;;  %407 = vadd.xlane.f32.xlu1 %v406_v19 }
  0x29   : > { %362 = vadd.xlane.f32.xlu0 %v361_v22  ;;  %410 = vadd.xlane.f32.xlu1 %v409_v23 }
  0x2d   : > { %365 = vadd.xlane.f32.xlu0 %v364_v26  ;;  %413 = vadd.xlane.f32.xlu1 %v412_v27 }
  0x31   : > { %368 = vadd.xlane.f32.xlu0 %v367_v30  ;;  %416 = vadd.xlane.f32.xlu1 %v415_v31 }
  0x35   : > { %371 = vadd.xlane.f32.xlu0 %v370_v34  ;;  %419 = vadd.xlane.f32.xlu1 %v418_v35 }
  0x39   : > { %374 = vadd.xlane.f32.xlu0 %v373_v38  ;;  %422 = vadd.xlane.f32.xlu1 %v421_v39 }
  0x3d   : > { %377 = vadd.xlane.f32.xlu0 %v376_v42  ;;  %425 = vadd.xlane.f32.xlu1 %v424_v43 }
  0x41   : > { %380 = vadd.xlane.f32.xlu0 %v379_v46  ;;  %428 = vadd.xlane.f32.xlu1 %v427_v47 }
  0x45   : > { %383 = vadd.xlane.f32.xlu0 %v382_v50  ;;  %431 = vadd.xlane.f32.xlu1 %v430_v51 }
  0x49   : > { %386 = vadd.xlane.f32.xlu0 %v385_v54  ;;  %434 = vadd.xlane.f32.xlu1 %v433_v55 }
  0x4d   : > { %389 = vadd.xlane.f32.xlu0 %v388_v58  ;;  %437 = vadd.xlane.f32.xlu1 %v436_v59 }
  0x51   : > { %392 = vadd.xlane.f32.xlu0 %v391_v62  ;;  %440 = vadd.xlane.f32.xlu1 %v439_v63 }
  0xa2   : > { %v348_v3 = vpop.xlane.xlu0 %347  ;;  %v351_v4 = vpop.xlane.xlu1 %350 }
  0xa3   : > { %v443_v6 = vmul.f32 0.03125, %v348_v3  ;;  %v444_v7 = vmul.f32 0.03125, %v351_v4 }
  0xa5   : > { %v2244_v10 = vsub.f32 %v2084_v0, %v443_v6  ;;  %v2247_v11 = vsub.f32 %v2087_v1, %v444_v7 }
  0xa6   : > { %v396_v14 = vpop.xlane.xlu0 %395  ;;  %v399_v15 = vpop.xlane.xlu1 %398 }
  0xa7   : > { %v459_v18 = vmul.f32 0.03125, %v396_v14  ;;  %v460_v19 = vmul.f32 0.03125, %v399_v15  ;;  %v507_v22 = vmul.f32 %v2244_v10, %v2244_v10  ;;  %v508_v23 = vmul.f32 %v2247_v11, %v2247_v11 }
  0xa9   : > { %v2254_v26 = vsub.f32 %v2090_v2, %v459_v18  ;;  %v2257_v27 = vsub.f32 %v2097_v5, %v460_v19  ;;  %v539_v0 = vsel %vm345_vm0, %v507_v22, 0.0  ;;  %v542_v31 = vsel %vm345_vm0, %v508_v23, 0.0 }
  0xaa   : > { %540 = vadd.xlane.f32.xlu0 %v539_v0  ;;  %v354_v1 = vpop.xlane.xlu0 %353  ;;  %v402_v30 = vpop.xlane.xlu1 %401 }
  0xab   : > { %v445_v34 = vmul.f32 0.03125, %v354_v1  ;;  %v461_v35 = vmul.f32 0.03125, %v402_v30  ;;  %v523_v38 = vmul.f32 %v2254_v26, %v2254_v26  ;;  %v524_v39 = vmul.f32 %v2257_v27, %v2257_v27 }
  0xad   : > { %v2266_v2 = vsub.f32 %v2104_v8, %v445_v34  ;;  %v2269_v5 = vsub.f32 %v2107_v9, %v461_v35  ;;  %v587_v42 = vsel %vm345_vm0, %v523_v38, 0.0  ;;  %v590_v47 = vsel %vm345_vm0, %v524_v39, 0.0 }
  0xae   : > { %543 = vadd.xlane.f32.xlu0 %v542_v31  ;;  %588 = vadd.xlane.f32.xlu1 %v587_v42  ;;  %v357_v43 = vpop.xlane.xlu0 %356  ;;  %v405_v46 = vpop.xlane.xlu1 %404 }
  0xaf   : > { %v446_v50 = vmul.f32 0.03125, %v357_v43  ;;  %v462_v51 = vmul.f32 0.03125, %v405_v46  ;;  %v509_v54 = vmul.f32 %v2266_v2, %v2266_v2  ;;  %v525_v8 = vmul.f32 %v2269_v5, %v2269_v5 }
  0xb1   : > { %v2278_v55 = vsub.f32 %v2114_v12, %v446_v50  ;;  %v2281_v9 = vsub.f32 %v2117_v13, %v462_v51  ;;  %v545_v58 = vsel %vm345_vm0, %v509_v54, 0.0  ;;  %v593_v63 = vsel %vm345_vm0, %v525_v8, 0.0 }
  0xb2   : > { %591 = vadd.xlane.f32.xlu1 %v590_v47  ;;  %546 = vadd.xlane.f32.xlu0 %v545_v58  ;;  %v360_v59 = vpop.xlane.xlu0 %359  ;;  %v408_v62 = vpop.xlane.xlu1 %407 }
  0xb3   : > { %v447_v3 = vmul.f32 0.03125, %v360_v59  ;;  %v463_v4 = vmul.f32 0.03125, %v408_v62  ;;  %v510_v6 = vmul.f32 %v2278_v55, %v2278_v55  ;;  %v526_v12 = vmul.f32 %v2281_v9, %v2281_v9 }
  0xb5   : > { %v2290_v7 = vsub.f32 %v2124_v16, %v447_v3  ;;  %v2293_v13 = vsub.f32 %v2127_v17, %v463_v4  ;;  %v548_v14 = vsel %vm345_vm0, %v510_v6, 0.0  ;;  %v596_v19 = vsel %vm345_vm0, %v526_v12, 0.0 }
  0xb6   : > { %594 = vadd.xlane.f32.xlu1 %v593_v63  ;;  %549 = vadd.xlane.f32.xlu0 %v548_v14  ;;  %v363_v15 = vpop.xlane.xlu0 %362  ;;  %v411_v18 = vpop.xlane.xlu1 %410 }
  0xb7   : > { %v448_v22 = vmul.f32 0.03125, %v363_v15  ;;  %v464_v23 = vmul.f32 0.03125, %v411_v18  ;;  %v511_v0 = vmul.f32 %v2290_v7, %v2290_v7  ;;  %v527_v16 = vmul.f32 %v2293_v13, %v2293_v13 }
  0xb9   : > { %v2302_v1 = vsub.f32 %v2134_v20, %v448_v22  ;;  %v2305_v17 = vsub.f32 %v2137_v21, %v464_v23  ;;  %v551_v30 = vsel %vm345_vm0, %v511_v0, 0.0  ;;  %v599_v35 = vsel %vm345_vm0, %v527_v16, 0.0 }
  0xba   : > { %597 = vadd.xlane.f32.xlu1 %v596_v19  ;;  %552 = vadd.xlane.f32.xlu0 %v551_v30  ;;  %v366_v31 = vpop.xlane.xlu0 %365  ;;  %v414_v34 = vpop.xlane.xlu1 %413 }
  0xbb   : > { %v449_v38 = vmul.f32 0.03125, %v366_v31  ;;  %v465_v39 = vmul.f32 0.03125, %v414_v34  ;;  %v512_v42 = vmul.f32 %v2302_v1, %v2302_v1  ;;  %v528_v20 = vmul.f32 %v2305_v17, %v2305_v17  ;;  %v842_v31 = vld [vmem:[%s3247_s4 + $0x8] sm:$0xff] }
  0xbd   : > { %v2314_v43 = vsub.f32 %v2144_v24, %v449_v38  ;;  %v2317_v21 = vsub.f32 %v2147_v25, %v465_v39  ;;  %v554_v46 = vsel %vm345_vm0, %v512_v42, 0.0  ;;  %v602_v51 = vsel %vm345_vm0, %v528_v20, 0.0 }
  0xbe   : > { %600 = vadd.xlane.f32.xlu1 %v599_v35  ;;  %555 = vadd.xlane.f32.xlu0 %v554_v46  ;;  %v369_v47 = vpop.xlane.xlu0 %368  ;;  %v417_v50 = vpop.xlane.xlu1 %416 }
  0xbf   : > { %v450_v54 = vmul.f32 0.03125, %v369_v47  ;;  %v466_v8 = vmul.f32 0.03125, %v417_v50  ;;  %v513_v58 = vmul.f32 %v2314_v43, %v2314_v43  ;;  %v529_v24 = vmul.f32 %v2317_v21, %v2317_v21 }
  0xc1   : > { %v2326_v59 = vsub.f32 %v2154_v28, %v450_v54  ;;  %v2329_v25 = vsub.f32 %v2157_v29, %v466_v8  ;;  %v557_v62 = vsel %vm345_vm0, %v513_v58, 0.0  ;;  %v605_v4 = vsel %vm345_vm0, %v529_v24, 0.0  ;;  %v844_v54 = vld [vmem:[%s3247_s4 + $0x18] sm:$0xff] }
  0xc2   : > { %603 = vadd.xlane.f32.xlu1 %v602_v51  ;;  %558 = vadd.xlane.f32.xlu0 %v557_v62  ;;  %v372_v63 = vpop.xlane.xlu0 %371  ;;  %v420_v3 = vpop.xlane.xlu1 %419 }
  0xc3   : > { %v451_v6 = vmul.f32 0.03125, %v372_v63  ;;  %v467_v12 = vmul.f32 0.03125, %v420_v3  ;;  %v514_v14 = vmul.f32 %v2326_v59, %v2326_v59  ;;  %v530_v28 = vmul.f32 %v2329_v25, %v2329_v25 }
  0xc5   : > { %v2338_v15 = vsub.f32 %v2164_v32, %v451_v6  ;;  %v2341_v29 = vsub.f32 %v2167_v33, %v467_v12  ;;  %v560_v18 = vsel %vm345_vm0, %v514_v14, 0.0  ;;  %v608_v23 = vsel %vm345_vm0, %v530_v28, 0.0  ;;  %v841_v33 = vld [vmem:[%s3247_s4] sm:$0xff] }
  0xc6   : > { %606 = vadd.xlane.f32.xlu1 %v605_v4  ;;  %561 = vadd.xlane.f32.xlu0 %v560_v18  ;;  %v375_v19 = vpop.xlane.xlu0 %374  ;;  %v423_v22 = vpop.xlane.xlu1 %422  ;;  %v1832_v34 = vpack.c.bf16 %v842_v31, %v841_v33 }
  0xc7   : > { %v452_v0 = vmul.f32 0.03125, %v375_v19  ;;  %v468_v16 = vmul.f32 0.03125, %v423_v22  ;;  %v515_v30 = vmul.f32 %v2338_v15, %v2338_v15  ;;  %v531_v32 = vmul.f32 %v2341_v29, %v2341_v29 }
  0xc8   : > { %1833 = vmatprep.subr.bf16.mxu0 %v1832_v34  ;;  %1840 = vmatprep.subr.bf16.mxu1 %v1832_v34 }
  0xc9   : > { %v2356_v35 = vsub.f32 %v2174_v36, %v452_v0  ;;  %v2359_v38 = vsub.f32 %v2177_v37, %v468_v16  ;;  %v563_v39 = vsel %vm345_vm0, %v515_v30, 0.0  ;;  %v611_v46 = vsel %vm345_vm0, %v531_v32, 0.0  ;;  %v843_v37 = vld [vmem:[%s3247_s4 + $0x10] sm:$0xff]  ;;  %1835 = vmatpush3.bf16.msra.mxu0 %v1832_v34  ;;  %1842 = vmatpush3.bf16.msra.mxu1 %v1832_v34 }
  0xca   : > { %609 = vadd.xlane.f32.xlu1 %v608_v23  ;;  %564 = vadd.xlane.f32.xlu0 %v563_v39  ;;  %v378_v42 = vpop.xlane.xlu0 %377  ;;  %v426_v20 = vpop.xlane.xlu1 %425  ;;  %v1836_v8 = vpack.c.bf16 %v844_v54, %v843_v37 }
  0xcb   : > { %v453_v47 = vmul.f32 0.03125, %v378_v42  ;;  %v469_v50 = vmul.f32 0.03125, %v426_v20  ;;  %v516_v51 = vmul.f32 %v2356_v35, %v2356_v35  ;;  %v532_v36 = vmul.f32 %v2359_v38, %v2359_v38 }
  0xcc   : > { %1837 = vmatprep.subr.bf16.mxu0 %v1836_v8  ;;  %1841 = vmatprep.subr.bf16.mxu1 %v1836_v8 }
  0xcd   : > { %v2374_v58 = vsub.f32 %v2184_v40, %v453_v47  ;;  %v2377_v24 = vsub.f32 %v2187_v41, %v469_v50  ;;  %v566_v62 = vsel %vm345_vm0, %v516_v51, 0.0  ;;  %v614_v4 = vsel %vm345_vm0, %v532_v36, 0.0  ;;  %1839 = vmatpush3.bf16.msra.mxu0 %v1836_v8  ;;  %1843 = vmatpush3.bf16.msra.mxu1 %v1836_v8 }
  0xce   : > { %612 = vadd.xlane.f32.xlu1 %v611_v46  ;;  %567 = vadd.xlane.f32.xlu0 %v566_v62  ;;  %v381_v63 = vpop.xlane.xlu0 %380  ;;  %v429_v3 = vpop.xlane.xlu1 %428 }
  0xcf   : > { %v454_v6 = vmul.f32 0.03125, %v381_v63  ;;  %v470_v12 = vmul.f32 0.03125, %v429_v3  ;;  %v517_v14 = vmul.f32 %v2374_v58, %v2374_v58  ;;  %v533_v40 = vmul.f32 %v2377_v24, %v2377_v24 }
  0xd1   : > { %v2386_v41 = vsub.f32 %v2194_v44, %v454_v6  ;;  %v2389_v28 = vsub.f32 %v2197_v45, %v470_v12  ;;  %v569_v18 = vsel %vm345_vm0, %v517_v14, 0.0  ;;  %v617_v23 = vsel %vm345_vm0, %v533_v40, 0.0 }
  0xd2   : > { %615 = vadd.xlane.f32.xlu1 %v614_v4  ;;  %570 = vadd.xlane.f32.xlu0 %v569_v18  ;;  %v384_v19 = vpop.xlane.xlu0 %383  ;;  %v432_v22 = vpop.xlane.xlu1 %431 }
  0xd3   : > { %v455_v0 = vmul.f32 0.03125, %v384_v19  ;;  %v471_v16 = vmul.f32 0.03125, %v432_v22  ;;  %v518_v30 = vmul.f32 %v2386_v41, %v2386_v41  ;;  %v534_v44 = vmul.f32 %v2389_v28, %v2389_v28 }
  0xd5   : > { %v2398_v32 = vsub.f32 %v2204_v48, %v455_v0  ;;  %v2401_v45 = vsub.f32 %v2207_v49, %v471_v16  ;;  %v572_v33 = vsel %vm345_vm0, %v518_v30, 0.0  ;;  %v620_v39 = vsel %vm345_vm0, %v534_v44, 0.0 }
  0xd6   : > { %618 = vadd.xlane.f32.xlu1 %v617_v23  ;;  %573 = vadd.xlane.f32.xlu0 %v572_v33  ;;  %v387_v31 = vpop.xlane.xlu0 %386  ;;  %v435_v34 = vpop.xlane.xlu1 %434 }
  0xd7   : > { %v456_v42 = vmul.f32 0.03125, %v387_v31  ;;  %v472_v20 = vmul.f32 0.03125, %v435_v34  ;;  %v519_v46 = vmul.f32 %v2398_v32, %v2398_v32  ;;  %v535_v48 = vmul.f32 %v2401_v45, %v2401_v45 }
  0xd9   : > { %v2410_v47 = vsub.f32 %v2214_v52, %v456_v42  ;;  %v2413_v49 = vsub.f32 %v2217_v53, %v472_v20  ;;  %v575_v50 = vsel %vm345_vm0, %v519_v46, 0.0  ;;  %v623_v37 = vsel %vm345_vm0, %v535_v48, 0.0 }
  0xda   : > { %621 = vadd.xlane.f32.xlu1 %v620_v39  ;;  %576 = vadd.xlane.f32.xlu0 %v575_v50  ;;  %v390_v51 = vpop.xlane.xlu0 %389  ;;  %v438_v36 = vpop.xlane.xlu1 %437 }
  0xdb   : > { %v457_v54 = vmul.f32 0.03125, %v390_v51  ;;  %v473_v8 = vmul.f32 0.03125, %v438_v36  ;;  %v520_v62 = vmul.f32 %v2410_v47, %v2410_v47  ;;  %v536_v52 = vmul.f32 %v2413_v49, %v2413_v49 }
  0xdd   : > { %v2422_v63 = vsub.f32 %v2224_v56, %v457_v54  ;;  %v2425_v53 = vsub.f32 %v2227_v57, %v473_v8  ;;  %v578_v3 = vsel %vm345_vm0, %v520_v62, 0.0  ;;  %v626_v12 = vsel %vm345_vm0, %v536_v52, 0.0 }
  0xde   : > { %624 = vadd.xlane.f32.xlu1 %v623_v37  ;;  %579 = vadd.xlane.f32.xlu0 %v578_v3  ;;  %v393_v4 = vpop.xlane.xlu0 %392  ;;  %v441_v6 = vpop.xlane.xlu1 %440 }
  0xdf   : > { %v458_v14 = vmul.f32 0.03125, %v393_v4  ;;  %v474_v40 = vmul.f32 0.03125, %v441_v6  ;;  %v521_v18 = vmul.f32 %v2422_v63, %v2422_v63  ;;  %v537_v56 = vmul.f32 %v2425_v53, %v2425_v53 }
  0xe1   : > { %v2434_v19 = vsub.f32 %v2234_v60, %v458_v14  ;;  %v2437_v57 = vsub.f32 %v2237_v61, %v474_v40  ;;  %v581_v22 = vsel %vm345_vm0, %v521_v18, 0.0  ;;  %v629_v23 = vsel %vm345_vm0, %v537_v56, 0.0  ;;  %v2450_v14 = vld [vmem:[%s3245_s2] ss:$0 sm:$0xff] }
  0xe2   : > { %627 = vadd.xlane.f32.xlu1 %v626_v12  ;;  %582 = vadd.xlane.f32.xlu0 %v581_v22 }
  0xe3   : > { %v522_v0 = vmul.f32 %v2434_v19, %v2434_v19  ;;  %v538_v16 = vmul.f32 %v2437_v57, %v2437_v57 }
  0xe5   : > { %v584_v30 = vsel %vm345_vm0, %v522_v0, 0.0  ;;  %v632_v60 = vsel %vm345_vm0, %v538_v16, 0.0  ;;  %v2456_v0 = vld [vmem:[%s3246_s3] ss:$0 sm:$0xff] }
  0xe6   : > { %630 = vadd.xlane.f32.xlu1 %v629_v23  ;;  %585 = vadd.xlane.f32.xlu0 %v584_v30 }
  0xea   : > { %633 = vadd.xlane.f32.xlu1 %v632_v60 }
 0x137   : > { %v541_v61 = vpop.xlane.xlu0 %540 }
 0x138   : > { %v635_v44 = vmul.f32 0.03125, %v541_v61 }
 0x13a   : > { %v667_v33 = vadd.f32 1e-06, %v635_v44 }
 0x13b   : > { %v589_v31 = vpop.xlane.xlu1 %588  ;;  %v544_v34 = vpop.xlane.xlu0 %543 }
 0x13c   : > { %1868 = vrsqrt.f32 %v667_v33  ;;  %v651_v39 = vmul.f32 0.03125, %v589_v31  ;;  %v636_v42 = vmul.f32 0.03125, %v544_v34 }
 0x13e   : > { %v683_v20 = vadd.f32 1e-06, %v651_v39  ;;  %v668_v46 = vadd.f32 1e-06, %v636_v42 }
 0x13f   : > { %v592_v48 = vpop.xlane.xlu1 %591  ;;  %v547_v50 = vpop.xlane.xlu0 %546 }
 0x140   : > { %1870 = vrsqrt.f32 %v683_v20  ;;  %v652_v51 = vmul.f32 0.03125, %v592_v48  ;;  %v637_v36 = vmul.f32 0.03125, %v547_v50 }
 0x141   : > { %1872 = vrsqrt.f32 %v668_v46 }
 0x142   : > { %v684_v37 = vadd.f32 1e-06, %v652_v51  ;;  %v669_v54 = vadd.f32 1e-06, %v637_v36 }
 0x143   : > { %v595_v8 = vpop.xlane.xlu1 %594  ;;  %v550_v62 = vpop.xlane.xlu0 %549 }
 0x144   : > { %1874 = vrsqrt.f32 %v684_v37  ;;  %v653_v52 = vmul.f32 0.03125, %v595_v8  ;;  %v638_v3 = vmul.f32 0.03125, %v550_v62 }
 0x145   : > { %1876 = vrsqrt.f32 %v669_v54 }
 0x146   : > { %v1869_v4 = vpop.eup %1868  ;;  %v685_v6 = vadd.f32 1e-06, %v653_v52  ;;  %v670_v12 = vadd.f32 1e-06, %v638_v3 }
 0x147   : > { %v598_v40 = vpop.xlane.xlu1 %597  ;;  %v553_v18 = vpop.xlane.xlu0 %552  ;;  %v731_v56 = vmul.f32 %v1869_v4, %v2244_v10 }
 0x148   : > { %1878 = vrsqrt.f32 %v685_v6  ;;  %v654_v22 = vmul.f32 0.03125, %v598_v40  ;;  %v639_v23 = vmul.f32 0.03125, %v553_v18 }
 0x149   : > { %1880 = vrsqrt.f32 %v670_v12  ;;  %v770_v16 = vmul.f32 %v2450_v14, %v731_v56 }
 0x14a   : > { %v1871_v30 = vpop.eup %1870  ;;  %v686_v60 = vadd.f32 1e-06, %v654_v22  ;;  %v671_v61 = vadd.f32 1e-06, %v639_v23 }
 0x14b   : > { %v1873_v44 = vpop.eup %1872  ;;  %v601_v33 = vpop.xlane.xlu1 %600  ;;  %v2460_v34 = vadd.f32 %v2456_v0, %v770_v16  ;;  %v747_v10 = vmul.f32 %v1871_v30, %v2254_v26 }
 0x14c   : > { %v556_v31 = vpop.xlane.xlu0 %555  ;;  %1882 = vrsqrt.f32 %v686_v60  ;;  %v655_v39 = vmul.f32 0.03125, %v601_v33  ;;  %v732_v20 = vmul.f32 %v1873_v44, %v2247_v11 }
 0x14d   : > { %v640_v42 = vmul.f32 0.03125, %v556_v31  ;;  %1884 = vrsqrt.f32 %v671_v61  ;;  %1784 = vmatprep.mubr.msk.f32.mxu0 %vm345_vm0, %v2460_v34  ;;  %v786_v46 = vmul.f32 %v2450_v14, %v747_v10 }
 0x14e   : > { %v1875_v48 = vpop.eup %1874  ;;  %v687_v50 = vadd.f32 1e-06, %v655_v39  ;;  %v771_v36 = vmul.f32 %v2450_v14, %v732_v20 }
 0x14f   : > { %v672_v51 = vadd.f32 1e-06, %v640_v42  ;;  %v1877_v37 = vpop.eup %1876  ;;  %v604_v54 = vpop.xlane.xlu1 %603  ;;  %v2469_v26 = vadd.f32 %v2456_v0, %v786_v46  ;;  %v748_v62 = vmul.f32 %v1875_v48, %v2257_v27 }
 0x150   : > { %v559_v8 = vpop.xlane.xlu0 %558  ;;  %1886 = vrsqrt.f32 %v687_v50  ;;  %v656_v11 = vmul.f32 0.03125, %v604_v54  ;;  %v2473_v3 = vadd.f32 %v2456_v0, %v771_v36  ;;  %v733_v4 = vmul.f32 %v1877_v37, %v2266_v2 }
 0x151   : > { %v641_v52 = vmul.f32 0.03125, %v559_v8  ;;  %1888 = vrsqrt.f32 %v672_v51  ;;  %1808 = vmatprep.mubr.msk.f32.mxu1 %vm345_vm0, %v2469_v26  ;;  %v787_v6 = vmul.f32 %v2450_v14, %v748_v62 }
 0x152   : > { %v1879_v12 = vpop.eup %1878  ;;  %v688_v40 = vadd.f32 1e-06, %v656_v11  ;;  %1785 = vmatmul.mubr.msk.f32.vlgmr.msra.gmra.mrb[0].mxu0 %vm345_vm0, %v2473_v3  ;;  %v772_v23 = vmul.f32 %v2450_v14, %v733_v4 }
 0x153   : > { %v673_v18 = vadd.f32 1e-06, %v641_v52  ;;  %v1881_v27 = vpop.eup %1880  ;;  %v607_v56 = vpop.xlane.xlu1 %606  ;;  %v2483_v16 = vadd.f32 %v2456_v0, %v787_v6  ;;  %v749_v30 = vmul.f32 %v1879_v12, %v2269_v5 }
 0x154   : > { %v562_v22 = vpop.xlane.xlu0 %561  ;;  %1890 = vrsqrt.f32 %v688_v40  ;;  %v657_v2 = vmul.f32 0.03125, %v607_v56  ;;  %v734_v61 = vmul.f32 %v1881_v27, %v2278_v55  ;;  %v2488_v44 = vadd.f32 %v2456_v0, %v772_v23 }
 0x155   : > { %v642_v60 = vmul.f32 0.03125, %v562_v22  ;;  %1892 = vrsqrt.f32 %v673_v18  ;;  %1809 = vmatmul.mubr.msk.f32.vlgmr.msra.gmra.mrb[0].mxu1 %vm345_vm0, %v2483_v16  ;;  %v788_v33 = vmul.f32 %v2450_v14, %v749_v30 }
 0x156   : > { %v1883_v31 = vpop.eup %1882  ;;  %v689_v10 = vadd.f32 1e-06, %v657_v2  ;;  %v773_v42 = vmul.f32 %v2450_v14, %v734_v61  ;;  %1787 = vmatprep.mubr.msk.f32.mxu0 %vm345_vm0, %v2488_v44 }
 0x157   : > { %v674_v39 = vadd.f32 1e-06, %v642_v60  ;;  %v1885_v5 = vpop.eup %1884  ;;  %v610_v20 = vpop.xlane.xlu1 %609  ;;  %v2497_v46 = vadd.f32 %v2456_v0, %v788_v33  ;;  %v750_v48 = vmul.f32 %v1883_v31, %v2281_v9 }
 0x158   : > { %v565_v55 = vpop.xlane.xlu0 %564  ;;  %1894 = vrsqrt.f32 %v689_v10  ;;  %v658_v50 = vmul.f32 0.03125, %v610_v20  ;;  %v2501_v36 = vadd.f32 %v2456_v0, %v773_v42  ;;  %v735_v37 = vmul.f32 %v1885_v5, %v2290_v7 }
 0x159   : > { %v643_v51 = vmul.f32 0.03125, %v565_v55  ;;  %1896 = vrsqrt.f32 %v674_v39  ;;  %1811 = vmatprep.mubr.msk.f32.mxu1 %vm345_vm0, %v2497_v46  ;;  %v789_v54 = vmul.f32 %v2450_v14, %v750_v48 }
 0x15a   : > { %v1887_v8 = vpop.eup %1886  ;;  %v690_v62 = vadd.f32 1e-06, %v658_v50  ;;  %1788 = vmatmul.mubr.msk.f32.gmra.mrb[2].mxu0 %vm345_vm0, %v2501_v36  ;;  %v774_v6 = vmul.f32 %v2450_v14, %v735_v37 }
 0x15b   : > { %v675_v11 = vadd.f32 1e-06, %v643_v51  ;;  %v1889_v9 = vpop.eup %1888  ;;  %v613_v52 = vpop.xlane.xlu1 %612  ;;  %v2511_v12 = vadd.f32 %v2456_v0, %v789_v54  ;;  %v751_v40 = vmul.f32 %v1887_v8, %v2293_v13 }
 0x15c   : > { %v568_v4 = vpop.xlane.xlu0 %567  ;;  %1898 = vrsqrt.f32 %v690_v62  ;;  %v659_v7 = vmul.f32 0.03125, %v613_v52  ;;  %v736_v27 = vmul.f32 %v1889_v9, %v2302_v1  ;;  %v2516_v56 = vadd.f32 %v2456_v0, %v774_v6 }
 0x15d   : > { %v644_v18 = vmul.f32 0.03125, %v568_v4  ;;  %1900 = vrsqrt.f32 %v675_v11  ;;  %1812 = vmatmul.mubr.msk.f32.gmra.mrb[2].mxu1 %vm345_vm0, %v2511_v12  ;;  %v790_v22 = vmul.f32 %v2450_v14, %v751_v40 }
 0x15e   : > { %v1891_v23 = vpop.eup %1890  ;;  %v691_v30 = vadd.f32 1e-06, %v659_v7  ;;  %v775_v60 = vmul.f32 %v2450_v14, %v736_v27  ;;  %1790 = vmatprep.mubr.msk.f32.mxu0 %vm345_vm0, %v2516_v56 }
 0x15f   : > { %v676_v2 = vadd.f32 1e-06, %v644_v18  ;;  %v1893_v13 = vpop.eup %1892  ;;  %v616_v61 = vpop.xlane.xlu1 %615  ;;  %v2525_v33 = vadd.f32 %v2456_v0, %v790_v22  ;;  %v752_v31 = vmul.f32 %v1891_v23, %v2305_v17 }
 0x160   : > { %v571_v1 = vpop.xlane.xlu0 %570  ;;  %1902 = vrsqrt.f32 %v691_v30  ;;  %v660_v10 = vmul.f32 0.03125, %v616_v61  ;;  %v2529_v42 = vadd.f32 %v2456_v0, %v775_v60  ;;  %v737_v5 = vmul.f32 %v1893_v13, %v2314_v43 }
 0x161   : > { %v645_v39 = vmul.f32 0.03125, %v571_v1  ;;  %1904 = vrsqrt.f32 %v676_v2  ;;  %1814 = vmatprep.mubr.msk.f32.mxu1 %vm345_vm0, %v2525_v33  ;;  %v791_v20 = vmul.f32 %v2450_v14, %v752_v31 }
 0x162   : > { %v1895_v55 = vpop.eup %1894  ;;  %v692_v48 = vadd.f32 1e-06, %v660_v10  ;;  %1791 = vmatmul.mubr.msk.f32.gmra.mrb[4].mxu0 %vm345_vm0, %v2529_v42  ;;  %v776_v54 = vmul.f32 %v2450_v14, %v737_v5 }
 0x163   : > { %v677_v50 = vadd.f32 1e-06, %v645_v39  ;;  %v1897_v17 = vpop.eup %1896  ;;  %v619_v51 = vpop.xlane.xlu1 %618  ;;  %v2539_v8 = vadd.f32 %v2456_v0, %v791_v20  ;;  %v753_v62 = vmul.f32 %v1895_v55, %v2317_v21 }
 0x164   : > { %v574_v37 = vpop.xlane.xlu0 %573  ;;  %1906 = vrsqrt.f32 %v692_v48  ;;  %v661_v43 = vmul.f32 0.03125, %v619_v51  ;;  %v738_v9 = vmul.f32 %v1897_v17, %v2326_v59  ;;  %v2544_v52 = vadd.f32 %v2456_v0, %v776_v54 }
 0x165   : > { %v646_v11 = vmul.f32 0.03125, %v574_v37  ;;  %1908 = vrsqrt.f32 %v677_v50  ;;  %1815 = vmatmul.mubr.msk.f32.gmra.mrb[4].mxu1 %vm345_vm0, %v2539_v8  ;;  %v792_v4 = vmul.f32 %v2450_v14, %v753_v62 }
 0x166   : > { %v1899_v6 = vpop.eup %1898  ;;  %v693_v40 = vadd.f32 1e-06, %v661_v43  ;;  %v777_v18 = vmul.f32 %v2450_v14, %v738_v9  ;;  %1793 = vmatprep.mubr.msk.f32.mxu0 %vm345_vm0, %v2544_v52 }
 0x167   : > { %v678_v7 = vadd.f32 1e-06, %v646_v11  ;;  %v1901_v21 = vpop.eup %1900  ;;  %v622_v27 = vpop.xlane.xlu1 %621  ;;  %v2553_v22 = vadd.f32 %v2456_v0, %v792_v4  ;;  %v754_v23 = vmul.f32 %v1899_v6, %v2329_v25 }
 0x168   : > { %v577_v59 = vpop.xlane.xlu0 %576  ;;  %1910 = vrsqrt.f32 %v693_v40  ;;  %v662_v30 = vmul.f32 0.03125, %v622_v27  ;;  %v2557_v60 = vadd.f32 %v2456_v0, %v777_v18  ;;  %v739_v13 = vmul.f32 %v1901_v21, %v2338_v15 }
 0x169   : > { %v647_v2 = vmul.f32 0.03125, %v577_v59  ;;  %1912 = vrsqrt.f32 %v678_v7  ;;  %1817 = vmatprep.mubr.msk.f32.mxu1 %vm345_vm0, %v2553_v22  ;;  %v793_v61 = vmul.f32 %v2450_v14, %v754_v23 }
 0x16a   : > { %v1903_v1 = vpop.eup %1902  ;;  %v694_v31 = vadd.f32 1e-06, %v662_v30  ;;  %1794 = vmatmul.mubr.msk.f32.gmra.mrb[6].mxu0 %vm345_vm0, %v2557_v60  ;;  %v778_v20 = vmul.f32 %v2450_v14, %v739_v13 }
 0x16b   : > { %v679_v10 = vadd.f32 1e-06, %v647_v2  ;;  %v1905_v25 = vpop.eup %1904  ;;  %v625_v39 = vpop.xlane.xlu1 %624  ;;  %v2567_v55 = vadd.f32 %v2456_v0, %v793_v61  ;;  %v755_v48 = vmul.f32 %v1903_v1, %v2341_v29 }
 0x16c   : > { %v580_v5 = vpop.xlane.xlu0 %579  ;;  %1914 = vrsqrt.f32 %v694_v31  ;;  %v663_v15 = vmul.f32 0.03125, %v625_v39  ;;  %v740_v17 = vmul.f32 %v1905_v25, %v2356_v35  ;;  %v2572_v51 = vadd.f32 %v2456_v0, %v778_v20 }
 0x16d   : > { %v648_v50 = vmul.f32 0.03125, %v580_v5  ;;  %1916 = vrsqrt.f32 %v679_v10  ;;  %1818 = vmatmul.mubr.msk.f32.gmra.mrb[6].mxu1 %vm345_vm0, %v2567_v55  ;;  %v794_v37 = vmul.f32 %v2450_v14, %v755_v48 }
 0x16e   : > { %v1907_v54 = vpop.eup %1906  ;;  %v695_v62 = vadd.f32 1e-06, %v663_v15  ;;  %v779_v11 = vmul.f32 %v2450_v14, %v740_v17  ;;  %1796 = vmatprep.mubr.msk.f32.mxu0 %vm345_vm0, %v2572_v51 }
 0x16f   : > { %v680_v43 = vadd.f32 1e-06, %v648_v50  ;;  %v1909_v29 = vpop.eup %1908  ;;  %v628_v9 = vpop.xlane.xlu1 %627  ;;  %v2581_v4 = vadd.f32 %v2456_v0, %v794_v37  ;;  %v756_v6 = vmul.f32 %v1907_v54, %v2359_v38 }
 0x170   : > { %v583_v35 = vpop.xlane.xlu0 %582  ;;  %1918 = vrsqrt.f32 %v695_v62  ;;  %v664_v40 = vmul.f32 0.03125, %v628_v9  ;;  %v2585_v18 = vadd.f32 %v2456_v0, %v779_v11  ;;  %v741_v21 = vmul.f32 %v1909_v29, %v2374_v58 }
 0x171   : > { %v649_v7 = vmul.f32 0.03125, %v583_v35  ;;  %1920 = vrsqrt.f32 %v680_v43  ;;  %1820 = vmatprep.mubr.msk.f32.mxu1 %vm345_vm0, %v2581_v4  ;;  %v795_v27 = vmul.f32 %v2450_v14, %v756_v6 }
 0x172   : > { %v1911_v59 = vpop.eup %1910  ;;  %v696_v23 = vadd.f32 1e-06, %v664_v40  ;;  %1797 = vmatmul.mubr.msk.f32.gmra.mrb[8].mxu0 %vm345_vm0, %v2585_v18  ;;  %v780_v61 = vmul.f32 %v2450_v14, %v741_v21 }
 0x173   : > { %v681_v30 = vadd.f32 1e-06, %v649_v7  ;;  %v1913_v38 = vpop.eup %1912  ;;  %v631_v2 = vpop.xlane.xlu1 %630  ;;  %v2595_v1 = vadd.f32 %v2456_v0, %v795_v27  ;;  %v757_v31 = vmul.f32 %v1911_v59, %v2377_v24 }
 0x174   : > { %v586_v13 = vpop.xlane.xlu0 %585  ;;  %1922 = vrsqrt.f32 %v696_v23  ;;  %v665_v58 = vmul.f32 0.03125, %v631_v2  ;;  %v742_v25 = vmul.f32 %v1913_v38, %v2386_v41  ;;  %v2600_v39 = vadd.f32 %v2456_v0, %v780_v61 }
 0x175   : > { %v650_v10 = vmul.f32 0.03125, %v586_v13  ;;  %1924 = vrsqrt.f32 %v681_v30  ;;  %1821 = vmatmul.mubr.msk.f32.gmra.mrb[8].mxu1 %vm345_vm0, %v2595_v1  ;;  %v796_v5 = vmul.f32 %v2450_v14, %v757_v31 }
 0x176   : > { %v1915_v20 = vpop.eup %1914  ;;  %v697_v48 = vadd.f32 1e-06, %v665_v58  ;;  %v781_v50 = vmul.f32 %v2450_v14, %v742_v25  ;;  %1799 = vmatprep.mubr.msk.f32.mxu0 %vm345_vm0, %v2600_v39 }
 0x177   : > { %v682_v15 = vadd.f32 1e-06, %v650_v10  ;;  %v1917_v24 = vpop.eup %1916  ;;  %v634_v17 = vpop.xlane.xlu1 %633  ;;  %v2609_v41 = vadd.f32 %v2456_v0, %v796_v5  ;;  %v758_v37 = vmul.f32 %v1915_v20, %v2389_v28 }
 0x178   : > { %1926 = vrsqrt.f32 %v697_v48  ;;  %v666_v54 = vmul.f32 0.03125, %v634_v17  ;;  %v2613_v62 = vadd.f32 %v2456_v0, %v781_v50  ;;  %v743_v43 = vmul.f32 %v1917_v24, %v2398_v32  ;;  %v1461_v24 = vld [vmem:[%s3244_s1] sm:$0xff]  ;;  %v1478_v17 = vld [vmem:[%s3244_s1 + $0x88] sm:$0xff] }
 0x179   : > { %1928 = vrsqrt.f32 %v682_v15  ;;  %1823 = vmatprep.mubr.msk.f32.mxu1 %vm345_vm0, %v2609_v41  ;;  %v797_v11 = vmul.f32 %v2450_v14, %v758_v37 }
 0x17a   : > { %v1919_v29 = vpop.eup %1918  ;;  %v698_v9 = vadd.f32 1e-06, %v666_v54  ;;  %1800 = vmatmul.mubr.msk.f32.gmra.mrb[10].mxu0 %vm345_vm0, %v2613_v62  ;;  %v782_v28 = vmul.f32 %v2450_v14, %v743_v43  ;;  %v1463_v54 = vld [vmem:[%s3244_s1 + $0x10] sm:$0xff] }
 0x17b   : > { %v1921_v35 = vpop.eup %1920  ;;  %v2623_v6 = vadd.f32 %v2456_v0, %v797_v11  ;;  %v759_v40 = vmul.f32 %v1919_v29, %v2401_v45  ;;  %v1479_v43 = vld [vmem:[%s3244_s1 + $0x90] sm:$0xff] }
 0x17c   : > { %1930 = vrsqrt.f32 %v698_v9  ;;  %v2627_v32 = vadd.f32 %v2456_v0, %v782_v28  ;;  %v744_v7 = vmul.f32 %v1921_v35, %v2410_v47  ;;  %v2708_v9 = vmul.f32 %v1461_v24, %v2460_v34  ;;  %v1464_v28 = vld [vmem:[%s3244_s1 + $0x18] sm:$0xff] }
 0x17d   : > { %1824 = vmatmul.mubr.msk.f32.gmra.mrb[10].mxu1 %vm345_vm0, %v2623_v6  ;;  %v798_v21 = vmul.f32 %v2450_v14, %v759_v40  ;;  %v1480_v35 = vld [vmem:[%s3244_s1 + $0x98] sm:$0xff]  ;;  %v2726_v34 = vmul.f32 %v1478_v17, %v2483_v16  ;;  %v1466_v16 = vld [vmem:[%s3244_s1 + $0x28] sm:$0xff] }
 0x17e   : > { %v1923_v27 = vpop.eup %1922  ;;  %1802 = vmatprep.mubr.msk.f32.mxu0 %vm345_vm0, %v2627_v32  ;;  %v783_v59 = vmul.f32 %v2450_v14, %v744_v7 }
 0x17f   : > { %v1925_v23 = vpop.eup %1924  ;;  %v2637_v45 = vadd.f32 %v2456_v0, %v798_v21  ;;  %v760_v30 = vmul.f32 %v1923_v27, %v2413_v49  ;;  %v1465_v27 = vld [vmem:[%s3244_s1 + $0x20] sm:$0xff] }
 0x180   : > { %v2641_v38 = vadd.f32 %v2456_v0, %v783_v59  ;;  %v745_v47 = vmul.f32 %v1925_v23, %v2422_v63  ;;  %v1481_v59 = vld [vmem:[%s3244_s1 + $0xa0] sm:$0xff] }
 0x181   : > { %1826 = vmatprep.mubr.msk.f32.mxu1 %vm345_vm0, %v2637_v45  ;;  %v799_v2 = vmul.f32 %v2450_v14, %v760_v30 }
 0x182   : > { %v1927_v13 = vpop.eup %1926  ;;  %1803 = vmatmul.mubr.msk.f32.gmra.mrb[12].mxu0 %vm345_vm0, %v2641_v38  ;;  %v784_v61 = vmul.f32 %v2450_v14, %v745_v47  ;;  %v1482_v47 = vld [vmem:[%s3244_s1 + $0xa8] sm:$0xff] }
 0x183   : > { %v1929_v31 = vpop.eup %1928  ;;  %v2651_v58 = vadd.f32 %v2456_v0, %v799_v2  ;;  %v761_v49 = vmul.f32 %v1927_v13, %v2425_v53  ;;  %v2785_v24 = vmul.f32 %v1482_v47, %v2539_v8 }
 0x184   : > { %v2655_v10 = vadd.f32 %v2456_v0, %v784_v61  ;;  %v746_v63 = vmul.f32 %v1929_v31, %v2434_v19  ;;  %v1467_v31 = vld [vmem:[%s3244_s1 + $0x30] sm:$0xff] }
 0x185   : > { %1827 = vmatmul.mubr.msk.f32.gmra.mrb[12].mxu1 %vm345_vm0, %v2651_v58  ;;  %v800_v25 = vmul.f32 %v2450_v14, %v761_v49  ;;  %v1483_v49 = vld [vmem:[%s3244_s1 + $0xb0] sm:$0xff] }
 0x186   : > { %3254 = vst [vmem:[#allocation2_spill] sm:$0xff] %v2655_v10  ;;  %v1931_v5 = vpop.eup %1930  ;;  %1805 = vmatprep.mubr.msk.f32.mxu0 %vm345_vm0, %v2655_v10  ;;  %v785_v20 = vmul.f32 %v2450_v14, %v746_v63  ;;  %v2796_v17 = vmul.f32 %v1483_v49, %v2553_v22 }
 0x187   : > { %v2665_v48 = vadd.f32 %v2456_v0, %v800_v25  ;;  %v762_v53 = vmul.f32 %v1931_v5, %v2437_v57  ;;  %v2684_v57 = vld [vmem:[%s3248_s5] ss:$0 sm:$0xff]  ;;  %v2770_v5 = vmul.f32 %v1465_v27, %v2516_v56  ;;  %v1484_v56 = vld [vmem:[%s3244_s1 + $0xb8] sm:$0xff] }
 0x188   : > { %v2669_v15 = vadd.f32 %v2456_v0, %v785_v20 }
 0x189   : > { %3255 = vst [vmem:[#allocation3_spill] sm:$0xff] %v2665_v48  ;;  %1829 = vmatprep.mubr.msk.f32.mxu1 %vm345_vm0, %v2665_v48  ;;  %v801_v19 = vmul.f32 %v2450_v14, %v762_v53  ;;  %v1462_v14 = vld [vmem:[%s3244_s1 + $0x8] sm:$0xff] }
 0x18a   : > { %3256 = vst [vmem:[#allocation4_spill] sm:$0xff] %v2669_v15  ;;  %1806 = vmatmul.mubr.msk.f32.gmra.mrb[14].mxu0 %vm345_vm0, %v2669_v15  ;;  %v2720_v7 = vmul.f32 %v1462_v14, %v2473_v3  ;;  %v2737_v3 = vmul.f32 %v1463_v54, %v2488_v44  ;;  %v2754_v44 = vmul.f32 %v1464_v28, %v2501_v36 }
 0x18b   : > { %v2677_v50 = vadd.f32 %v2456_v0, %v801_v19  ;;  %v1477_v0 = vld [vmem:[%s3244_s1 + $0x80] sm:$0xff]  ;;  %v2773_v36 = vmul.f32 %v1481_v59, %v2525_v33  ;;  %v2782_v19 = vmul.f32 %v1466_v16, %v2529_v42 }
 0x18c   : > { %v2723_v21 = vmul.f32 %v1477_v0, %v2469_v26  ;;  %v2740_v26 = vmul.f32 %v1479_v43, %v2497_v46  ;;  %v2757_v46 = vmul.f32 %v1480_v35, %v2511_v12  ;;  %v1468_v12 = vld [vmem:[%s3244_s1 + $0x38] sm:$0xff]  ;;  %v2793_v0 = vmul.f32 %v1467_v31, %v2544_v52  ;;  %v1469_v42 = vld [vmem:[%s3244_s1 + $0x40] sm:$0xff] }
 0x18d   : > { %3257 = vst [vmem:[#allocation5_spill] sm:$0xff] %v2677_v50  ;;  %1830 = vmatmul.mubr.msk.f32.gmra.mrb[14].mxu1 %vm345_vm0, %v2677_v50  ;;  %v2803_v43 = vmul.f32 %v1468_v12, %v2557_v60  ;;  %v2811_v35 = vmul.f32 %v1484_v56, %v2567_v55  ;;  %v2818_v60 = vmul.f32 %v1469_v42, %v2572_v51  ;;  %v1485_v55 = vld [vmem:[%s3244_s1 + $0xc0] sm:$0xff]  ;;  %v1470_v12 = vld [vmem:[%s3244_s1 + $0x48] sm:$0xff] }
 0x225   : > { %v1786_v37 = vpop.f32.mrb[0].mxu0 }
 0x226   : > { %v2705_v11 = vadd.f32 %v1786_v37, %v2684_v57  ;;  %v1014_v29 = vpop.f32.mrb[1].mxu0 }
 0x227   : > { %v2717_v40 = vadd.f32 %v2684_v57, %v1014_v29 }
 0x228   : > { %v1174_v23 = vmul.f32 %v2705_v11, %v2705_v11  ;;  %v1810_v30 = vpop.f32.mrb[0].mxu1 }
 0x229   : > { %v1173_v2 = vmul.f32 %v2717_v40, %v2717_v40  ;;  %v2751_v13 = vadd.f32 %v1810_v30, %v2684_v57  ;;  %v1094_v61 = vpop.f32.mrb[1].mxu1 }
 0x22a   : > { %v1206_v63 = vmul.f32 %v1174_v23, %v2705_v11  ;;  %v2767_v25 = vadd.f32 %v2684_v57, %v1094_v61 }
 0x22b   : > { %v1205_v20 = vmul.f32 %v1173_v2, %v2717_v40  ;;  %v1190_v53 = vmul.f32 %v2751_v13, %v2751_v13 }
 0x22c   : > { %v1238_v33 = vmul.f32 0.044715, %v1206_v63  ;;  %v1189_v14 = vmul.f32 %v2767_v25, %v2767_v25 }
 0x22d   : > { %v1237_v8 = vmul.f32 0.044715, %v1205_v20  ;;  %v1222_v37 = vmul.f32 %v1190_v53, %v2751_v13  ;;  %v1789_v54 = vpop.f32.mrb[2].mxu0 }
 0x22e   : > { %v1270_v29 = vadd.f32 %v1238_v33, %v2705_v11  ;;  %v1221_v28 = vmul.f32 %v1189_v14, %v2767_v25  ;;  %v2808_v52 = vadd.f32 %v1789_v54, %v2684_v57  ;;  %v1024_v22 = vpop.f32.mrb[3].mxu0 }
 0x22f   : > { %v1269_v27 = vadd.f32 %v1237_v8, %v2717_v40  ;;  %v1254_v59 = vmul.f32 0.044715, %v1222_v37  ;;  %v2815_v23 = vadd.f32 %v2684_v57, %v1024_v22  ;;  %v2843_v8 = vmul.f32 %v1485_v55, %v2581_v4  ;;  %v1486_v37 = vld [vmem:[%s3244_s1 + $0xc8] sm:$0xff] }
 0x230   : > { %v1302_v30 = vmul.f32 0.7978846, %v1270_v29  ;;  %v1253_v16 = vmul.f32 0.044715, %v1221_v28  ;;  %v1176_v47 = vmul.f32 %v2808_v52, %v2808_v52  ;;  %v1813_v2 = vpop.f32.mrb[2].mxu1  ;;  %v2851_v22 = vmul.f32 %v1470_v12, %v2585_v18 }
 0x231   : > { %v1301_v61 = vmul.f32 0.7978846, %v1269_v27  ;;  %v1286_v31 = vadd.f32 %v1254_v59, %v2751_v13  ;;  %v1175_v49 = vmul.f32 %v2815_v23, %v2815_v23  ;;  %v2829_v63 = vadd.f32 %v1813_v2, %v2684_v57  ;;  %v1104_v51 = vpop.f32.mrb[3].mxu1  ;;  %v1471_v27 = vld [vmem:[%s3244_s1 + $0x50] sm:$0xff] }
 0x232   : > { %1932 = vtanh.f32 %v1302_v30  ;;  %v1285_v20 = vadd.f32 %v1253_v16, %v2767_v25  ;;  %v1208_v53 = vmul.f32 %v1176_v47, %v2808_v52  ;;  %v2837_v56 = vadd.f32 %v2684_v57, %v1104_v51 }
 0x233   : > { %1934 = vtanh.f32 %v1301_v61  ;;  %v1318_v33 = vmul.f32 0.7978846, %v1286_v31  ;;  %v1207_v14 = vmul.f32 %v1175_v49, %v2815_v23  ;;  %v1192_v42 = vmul.f32 %v2829_v63, %v2829_v63 }
 0x234   : > { %v1317_v54 = vmul.f32 0.7978846, %v1285_v20  ;;  %v1240_v29 = vmul.f32 0.044715, %v1208_v53  ;;  %v1191_v28 = vmul.f32 %v2837_v56, %v2837_v56  ;;  %v2863_v18 = vmul.f32 %v1486_v37, %v2595_v1  ;;  %v1472_v1 = vld [vmem:[%s3244_s1 + $0x58] sm:$0xff] }
 0x235   : > { %1936 = vtanh.f32 %v1318_v33  ;;  %v1239_v59 = vmul.f32 0.044715, %v1207_v14  ;;  %v1224_v4 = vmul.f32 %v1192_v42, %v2829_v63  ;;  %v1792_v30 = vpop.f32.mrb[4].mxu0  ;;  %v2870_v51 = vmul.f32 %v1471_v27, %v2600_v39 }
 0x236   : > { %1938 = vtanh.f32 %v1317_v54  ;;  %v1272_v16 = vadd.f32 %v1240_v29, %v2808_v52  ;;  %v1223_v47 = vmul.f32 %v1191_v28, %v2837_v56  ;;  %v2860_v2 = vadd.f32 %v1792_v30, %v2684_v57  ;;  %v1034_v55 = vpop.f32.mrb[5].mxu0 }
 0x237   : > { %v1271_v61 = vadd.f32 %v1239_v59, %v2815_v23  ;;  %v1256_v31 = vmul.f32 0.044715, %v1224_v4  ;;  %v2867_v49 = vadd.f32 %v2684_v57, %v1034_v55 }
 0x238   : > { %v1304_v12 = vmul.f32 0.7978846, %v1272_v16  ;;  %v1255_v20 = vmul.f32 0.044715, %v1223_v47  ;;  %v1178_v53 = vmul.f32 %v2860_v2, %v2860_v2  ;;  %v1816_v33 = vpop.f32.mrb[4].mxu1  ;;  %v2892_v47 = vmul.f32 %v1472_v1, %v2613_v62 }
 0x239   : > { %v1303_v14 = vmul.f32 0.7978846, %v1271_v61  ;;  %v1288_v42 = vadd.f32 %v1256_v31, %v2829_v63  ;;  %v1177_v37 = vmul.f32 %v2867_v49, %v2867_v49  ;;  %v2881_v54 = vadd.f32 %v1816_v33, %v2684_v57  ;;  %v1114_v39 = vpop.f32.mrb[5].mxu1 }
 0x23a   : > { %1940 = vtanh.f32 %v1304_v12  ;;  %v1287_v29 = vadd.f32 %v1255_v20, %v2837_v56  ;;  %v1210_v28 = vmul.f32 %v1178_v53, %v2860_v2  ;;  %v2886_v27 = vadd.f32 %v2684_v57, %v1114_v39 }
 0x23b   : > { %1942 = vtanh.f32 %v1303_v14  ;;  %v1320_v59 = vmul.f32 0.7978846, %v1288_v42  ;;  %v1209_v4 = vmul.f32 %v1177_v37, %v2867_v49  ;;  %v1194_v30 = vmul.f32 %v2881_v54, %v2881_v54 }
 0x23c   : > { %v1933_v16 = vpop.eup %1932  ;;  %v1319_v55 = vmul.f32 0.7978846, %v1287_v29  ;;  %v1242_v61 = vmul.f32 0.044715, %v1210_v28  ;;  %v1193_v31 = vmul.f32 %v2886_v27, %v2886_v27 }
 0x23d   : > { %v1935_v12 = vpop.eup %1934  ;;  %v1366_v20 = vadd.f32 1.0, %v1933_v16  ;;  %1944 = vtanh.f32 %v1320_v59  ;;  %v1241_v53 = vmul.f32 0.044715, %v1209_v4  ;;  %v1226_v33 = vmul.f32 %v1194_v30, %v2881_v54  ;;  %v1795_v14 = vpop.f32.mrb[6].mxu0 }
 0x23e   : > { %v1365_v42 = vadd.f32 1.0, %v1935_v12  ;;  %1946 = vtanh.f32 %v1319_v55  ;;  %v1274_v37 = vadd.f32 %v1242_v61, %v2860_v2  ;;  %v1225_v39 = vmul.f32 %v1193_v31, %v2886_v27  ;;  %v1044_v62 = vpop.f32.mrb[7].mxu0 }
 0x23f   : > { %v1937_v1 = vpop.eup %1936  ;;  %v1398_v29 = vmul.f32 0.5, %v1366_v20  ;;  %v1273_v28 = vadd.f32 %v1241_v53, %v2867_v49  ;;  %v1258_v48 = vmul.f32 0.044715, %v1226_v33  ;;  %v2901_v16 = vadd.f32 %v1795_v14, %v2684_v57 }
 0x240   : > { %v1939_v59 = vpop.eup %1938  ;;  %v1397_v4 = vmul.f32 0.5, %v1365_v42  ;;  %v1382_v30 = vadd.f32 1.0, %v1937_v1  ;;  %v1306_v50 = vmul.f32 0.7978846, %v1274_v37  ;;  %v1257_v12 = vmul.f32 0.044715, %v1225_v39 }
 0x241   : > { %v1430_v55 = vmul.f32 %v1398_v29, %v2705_v11  ;;  %v1381_v61 = vadd.f32 1.0, %v1939_v59  ;;  %v1305_v10 = vmul.f32 0.7978846, %v1273_v28  ;;  %v1290_v31 = vadd.f32 %v1258_v48, %v2881_v54  ;;  %v1819_v15 = vpop.f32.mrb[6].mxu1 }
 0x242   : > { %v1429_v20 = vmul.f32 %v1397_v4, %v2717_v40  ;;  %v1414_v53 = vmul.f32 0.5, %v1382_v30  ;;  %1948 = vtanh.f32 %v1306_v50  ;;  %v1289_v33 = vadd.f32 %v1257_v12, %v2886_v27  ;;  %v1124_v14 = vpop.f32.mrb[7].mxu1 }
 0x243   : > { %v1526_v11 = vadd.f32 %v2720_v7, %v1430_v55  ;;  %v1413_v42 = vmul.f32 0.5, %v1381_v61  ;;  %1950 = vtanh.f32 %v1305_v10  ;;  %v1322_v48 = vmul.f32 0.7978846, %v1290_v31 }
 0x244   : > { %v1941_v37 = vpop.eup %1940  ;;  %v1525_v39 = vadd.f32 %v2708_v9, %v1429_v20  ;;  %v1446_v1 = vmul.f32 %v1414_v53, %v2751_v13  ;;  %v1321_v29 = vmul.f32 0.7978846, %v1289_v33  ;;  %v1180_v40 = vmul.f32 %v2901_v16, %v2901_v16 }
 0x245   : > { %v1943_v28 = vpop.eup %1942  ;;  %1558 = vst.msk [vmem:[%s2910_s8 + $0x8] sm:$0xff] %vm345_vm0, %v1526_v11  ;;  %v1445_v50 = vmul.f32 %v1413_v42, %v2767_v25  ;;  %v1368_v59 = vadd.f32 1.0, %v1941_v37  ;;  %1952 = vtanh.f32 %v1322_v48  ;;  %v2923_v10 = vadd.f32 %v2684_v57, %v1044_v62  ;;  %v1798_v7 = vpop.f32.mrb[8].mxu0 }
 0x246   : > { %1557 = vst.msk [vmem:[%s2910_s8] sm:$0xff] %vm345_vm0, %v1525_v39  ;;  %v1542_v9 = vadd.f32 %v2726_v34, %v1446_v1  ;;  %v1367_v13 = vadd.f32 1.0, %v1943_v28  ;;  %1954 = vtanh.f32 %v1321_v29  ;;  %v1212_v4 = vmul.f32 %v1180_v40, %v2901_v16  ;;  %v2929_v30 = vpop.f32.mrb[9].mxu0 }
 0x247   : > { %v1945_v12 = vpop.eup %1944  ;;  %v1541_v25 = vadd.f32 %v2723_v21, %v1445_v50  ;;  %v1400_v55 = vmul.f32 0.5, %v1368_v59  ;;  %v1179_v62 = vmul.f32 %v2923_v10, %v2923_v10  ;;  %v2935_v61 = vadd.f32 %v1819_v15, %v2684_v57 }
 0x248   : > { %v1947_v31 = vpop.eup %1946  ;;  %1574 = vst.msk [vmem:[%s2910_s8 + $0x88] sm:$0xff] %vm345_vm0, %v1542_v9  ;;  %v1399_v34 = vmul.f32 0.5, %v1367_v13  ;;  %v1384_v20 = vadd.f32 1.0, %v1945_v12  ;;  %v1244_v53 = vmul.f32 0.044715, %v1212_v4  ;;  %v2940_v33 = vadd.f32 %v2684_v57, %v1124_v14  ;;  %v2942_v11 = vpop.f32.mrb[8].mxu1 }
 0x249   : > { %1573 = vst.msk [vmem:[%s2910_s8 + $0x80] sm:$0xff] %vm345_vm0, %v1541_v25  ;;  %v1432_v21 = vmul.f32 %v1400_v55, %v2808_v52  ;;  %v1383_v42 = vadd.f32 1.0, %v1947_v31  ;;  %v1211_v48 = vmul.f32 %v1179_v62, %v2923_v10  ;;  %v1196_v15 = vmul.f32 %v2935_v61, %v2935_v61  ;;  %v1134_v37 = vpop.f32.mrb[9].mxu1 }
 0x24a   : > { %v1431_v39 = vmul.f32 %v1399_v34, %v2815_v23  ;;  %v1416_v1 = vmul.f32 0.5, %v1384_v20  ;;  %v1276_v14 = vadd.f32 %v1244_v53, %v2901_v16  ;;  %v1195_v29 = vmul.f32 %v2940_v33, %v2940_v33 }
 0x24b   : > { %v1528_v40 = vadd.f32 %v2754_v44, %v1432_v21  ;;  %v1415_v52 = vmul.f32 0.5, %v1383_v42  ;;  %v1243_v28 = vmul.f32 0.044715, %v1211_v48  ;;  %v1228_v50 = vmul.f32 %v1196_v15, %v2935_v61 }
 0x24c   : > { %v1949_v59 = vpop.eup %1948  ;;  %v1527_v9 = vadd.f32 %v2737_v3, %v1431_v39  ;;  %v1448_v13 = vmul.f32 %v1416_v1, %v2829_v63  ;;  %v1308_v4 = vmul.f32 0.7978846, %v1276_v14  ;;  %v1227_v23 = vmul.f32 %v1195_v29, %v2940_v33 }
 0x24d   : > { %v1951_v12 = vpop.eup %1950  ;;  %1560 = vst.msk [vmem:[%s2910_s8 + $0x18] sm:$0xff] %vm345_vm0, %v1528_v40  ;;  %v1447_v25 = vmul.f32 %v1415_v52, %v2837_v56  ;;  %v1370_v55 = vadd.f32 1.0, %v1949_v59  ;;  %v1275_v44 = vadd.f32 %v1243_v28, %v2923_v10  ;;  %v1260_v62 = vmul.f32 0.044715, %v1228_v50  ;;  %v1801_v31 = vpop.f32.mrb[10].mxu0 }
 0x24e   : > { %1559 = vst.msk [vmem:[%s2910_s8 + $0x10] sm:$0xff] %vm345_vm0, %v1527_v9  ;;  %v1544_v3 = vadd.f32 %v2757_v46, %v1448_v13  ;;  %v1369_v34 = vadd.f32 1.0, %v1951_v12  ;;  %1956 = vtanh.f32 %v1308_v4  ;;  %v1259_v63 = vmul.f32 0.044715, %v1227_v23  ;;  %v1064_v20 = vpop.f32.mrb[11].mxu0 }
 0x24f   : > { %v1953_v53 = vpop.eup %1952  ;;  %v1543_v21 = vadd.f32 %v2740_v26, %v1447_v25  ;;  %v1402_v42 = vmul.f32 0.5, %v1370_v55  ;;  %v1307_v56 = vmul.f32 0.7978846, %v1275_v44  ;;  %v1292_v48 = vadd.f32 %v1260_v62, %v2935_v61 }
 0x250   : > { %v1955_v15 = vpop.eup %1954  ;;  %1576 = vst.msk [vmem:[%s2910_s8 + $0x98] sm:$0xff] %vm345_vm0, %v1544_v3  ;;  %v1401_v39 = vmul.f32 0.5, %v1369_v34  ;;  %v1386_v1 = vadd.f32 1.0, %v1953_v53  ;;  %v1291_v14 = vadd.f32 %v1259_v63, %v2940_v33  ;;  %v2972_v46 = vadd.f32 %v1798_v7, %v2684_v57  ;;  %v1825_v29 = vpop.f32.mrb[10].mxu1 }
 0x251   : > { %1575 = vst.msk [vmem:[%s2910_s8 + $0x90] sm:$0xff] %vm345_vm0, %v1543_v21  ;;  %v1434_v40 = vmul.f32 %v1402_v42, %v2860_v2  ;;  %v1385_v26 = vadd.f32 1.0, %v1955_v15  ;;  %1958 = vtanh.f32 %v1307_v56  ;;  %v1324_v52 = vmul.f32 0.7978846, %v1292_v48  ;;  %v2977_v28 = vpop.f32.mrb[11].mxu1 }
 0x252   : > { %v1433_v50 = vmul.f32 %v1401_v39, %v2867_v49  ;;  %v1418_v59 = vmul.f32 0.5, %v1386_v1  ;;  %v1323_v9 = vmul.f32 0.7978846, %v1291_v14  ;;  %v1182_v7 = vmul.f32 %v2972_v46, %v2972_v46 }
 0x253   : > { %v1530_v13 = vadd.f32 %v2782_v19, %v1434_v40  ;;  %v1417_v4 = vmul.f32 0.5, %v1385_v26  ;;  %1960 = vtanh.f32 %v1324_v52  ;;  %v2985_v2 = vadd.f32 %v2684_v57, %v2929_v30 }
 0x254   : > { %v1529_v23 = vadd.f32 %v2770_v5, %v1433_v50  ;;  %v1450_v12 = vmul.f32 %v1418_v59, %v2881_v54  ;;  %1962 = vtanh.f32 %v1323_v9  ;;  %v1214_v49 = vmul.f32 %v1182_v7, %v2972_v46 }
 0x255   : > { %1562 = vst.msk [vmem:[%s2910_s8 + $0x28] sm:$0xff] %vm345_vm0, %v1530_v13  ;;  %v1449_v25 = vmul.f32 %v1417_v4, %v2886_v27  ;;  %v1181_v19 = vmul.f32 %v2985_v2, %v2985_v2  ;;  %v2997_v55 = vadd.f32 %v2942_v11, %v2684_v57  ;;  %v3000_v30 = vadd.f32 %v2684_v57, %v1134_v37  ;;  %v3002_v5 = vpop.f32.mrb[12].mxu0 }
 0x256   : > { %1561 = vst.msk [vmem:[%s2910_s8 + $0x20] sm:$0xff] %vm345_vm0, %v1529_v23  ;;  %v1546_v54 = vadd.f32 %v2785_v24, %v1450_v12  ;;  %v1246_v44 = vmul.f32 0.044715, %v1214_v49  ;;  %v3008_v27 = vadd.f32 %v1801_v31, %v2684_v57  ;;  %v3011_v62 = vadd.f32 %v2684_v57, %v1064_v20  ;;  %v3013_v3 = vpop.f32.mrb[13].mxu0 }
 0x257   : > { %v1545_v11 = vadd.f32 %v2773_v36, %v1449_v25  ;;  %v1213_v37 = vmul.f32 %v1181_v19, %v2985_v2  ;;  %v1198_v34 = vmul.f32 %v2997_v55, %v2997_v55  ;;  %v1197_v24 = vmul.f32 %v3000_v30, %v3000_v30 }
 0x258   : > { %v1957_v63 = vpop.eup %1956  ;;  %1578 = vst.msk [vmem:[%s2910_s8 + $0xa8] sm:$0xff] %vm345_vm0, %v1546_v54  ;;  %v1278_v31 = vadd.f32 %v1246_v44, %v2972_v46  ;;  %v1184_v20 = vmul.f32 %v3008_v27, %v3008_v27  ;;  %v1183_v53 = vmul.f32 %v3011_v62, %v3011_v62  ;;  %v3029_v36 = vadd.f32 %v1825_v29, %v2684_v57  ;;  %v3031_v21 = vpop.f32.mrb[12].mxu1 }
 0x259   : > { %1577 = vst.msk [vmem:[%s2910_s8 + $0xa0] sm:$0xff] %vm345_vm0, %v1545_v11  ;;  %v1372_v42 = vadd.f32 1.0, %v1957_v63  ;;  %v1245_v56 = vmul.f32 0.044715, %v1213_v37  ;;  %v1230_v48 = vmul.f32 %v1198_v34, %v2997_v55  ;;  %v1229_v15 = vmul.f32 %v1197_v24, %v3000_v30  ;;  %v1154_v39 = vpop.f32.mrb[13].mxu1 }
 0x25a   : > { %v1310_v1 = vmul.f32 0.7978846, %v1278_v31  ;;  %v1216_v14 = vmul.f32 %v1184_v20, %v3008_v27  ;;  %v1215_v40 = vmul.f32 %v1183_v53, %v3011_v62  ;;  %v1200_v29 = vmul.f32 %v3029_v36, %v3029_v36 }
 0x25b   : > { %v1959_v26 = vpop.eup %1958  ;;  %v1404_v52 = vmul.f32 0.5, %v1372_v42  ;;  %v1277_v50 = vadd.f32 %v1245_v56, %v2985_v2  ;;  %v1262_v59 = vmul.f32 0.044715, %v1230_v48  ;;  %v1261_v9 = vmul.f32 0.044715, %v1229_v15 }
 0x25c   : > { %v1371_v7 = vadd.f32 1.0, %v1959_v26  ;;  %1964 = vtanh.f32 %v1310_v1  ;;  %v1248_v13 = vmul.f32 0.044715, %v1216_v14  ;;  %v1247_v4 = vmul.f32 0.044715, %v1215_v40 }
 0x25d   : > { %v1961_v23 = vpop.eup %1960  ;;  %v1436_v12 = vmul.f32 %v1404_v52, %v2901_v16  ;;  %v1309_v49 = vmul.f32 0.7978846, %v1277_v50  ;;  %v1294_v25 = vadd.f32 %v1262_v59, %v2997_v55  ;;  %v1293_v19 = vadd.f32 %v1261_v9, %v3000_v30  ;;  %v1807_v54 = vpop.f32.mrb[14].mxu0 }
 0x25e   : > { %v1963_v44 = vpop.eup %1962  ;;  %v1403_v11 = vmul.f32 0.5, %v1371_v7  ;;  %v1388_v37 = vadd.f32 1.0, %v1961_v23  ;;  %v1280_v34 = vadd.f32 %v1248_v13, %v3008_v27  ;;  %v1279_v24 = vadd.f32 %v1247_v4, %v3011_v62  ;;  %v3047_v63 = vpop.f32.mrb[15].mxu0 }
 0x25f   : > { %v1532_v31 = vadd.f32 %v2803_v43, %v1436_v12  ;;  %v1387_v20 = vadd.f32 1.0, %v1963_v44  ;;  %1966 = vtanh.f32 %v1309_v49  ;;  %v1326_v16 = vmul.f32 0.7978846, %v1294_v25 }
 0x260   : > { %v1435_v53 = vmul.f32 %v1403_v11, %v2923_v10  ;;  %v1420_v42 = vmul.f32 0.5, %v1388_v37  ;;  %v1325_v56 = vmul.f32 0.7978846, %v1293_v19  ;;  %v1312_v48 = vmul.f32 0.7978846, %v1280_v34  ;;  %v3051_v15 = vpop.f32.mrb[14].mxu1 }
 0x261   : > { %1564 = vst.msk [vmem:[%s2910_s8 + $0x38] sm:$0xff] %vm345_vm0, %v1532_v31  ;;  %v1419_v1 = vmul.f32 0.5, %v1387_v20  ;;  %1968 = vtanh.f32 %v1326_v16  ;;  %v1311_v14 = vmul.f32 0.7978846, %v1279_v24  ;;  %v1232_v40 = vmul.f32 %v1200_v29, %v3029_v36  ;;  %v3056_v26 = vpop.f32.mrb[15].mxu1 }
 0x262   : > { %v1531_v43 = vadd.f32 %v2793_v0, %v1435_v53  ;;  %v1452_v52 = vmul.f32 %v1420_v42, %v2935_v61  ;;  %1970 = vtanh.f32 %v1325_v56  ;;  %v3062_v10 = vadd.f32 %v2684_v57, %v2977_v28 }
 0x263   : > { %v1451_v50 = vmul.f32 %v1419_v1, %v2940_v33  ;;  %1972 = vtanh.f32 %v1312_v48  ;;  %v1264_v59 = vmul.f32 0.044715, %v1232_v40  ;;  %v3067_v9 = vadd.f32 %v3002_v5, %v2684_v57 }
 0x264   : > { %1563 = vst.msk [vmem:[%s2910_s8 + $0x30] sm:$0xff] %vm345_vm0, %v1531_v43  ;;  %v1548_v0 = vadd.f32 %v2811_v35, %v1452_v52  ;;  %1974 = vtanh.f32 %v1311_v14  ;;  %v1199_v61 = vmul.f32 %v3062_v10, %v3062_v10  ;;  %v3076_v28 = vadd.f32 %v2684_v57, %v3013_v3 }
 0x265   : > { %v1547_v33 = vadd.f32 %v2796_v17, %v1451_v50  ;;  %v1296_v29 = vadd.f32 %v1264_v59, %v3029_v36  ;;  %v1186_v5 = vmul.f32 %v3067_v9, %v3067_v9  ;;  %v3084_v7 = vadd.f32 %v3031_v21, %v2684_v57 }
 0x266   : > { %v1965_v35 = vpop.eup %1964  ;;  %1580 = vst.msk [vmem:[%s2910_s8 + $0xb8] sm:$0xff] %vm345_vm0, %v1548_v0  ;;  %v1231_v13 = vmul.f32 %v1199_v61, %v3062_v10  ;;  %v1185_v3 = vmul.f32 %v3076_v28, %v3076_v28  ;;  %v3092_v4 = vadd.f32 %v2684_v57, %v1154_v39  ;;  %v3095_v17 = vadd.f32 %v1807_v54, %v2684_v57 }
 0x267   : > { %1579 = vst.msk [vmem:[%s2910_s8 + $0xb0] sm:$0xff] %vm345_vm0, %v1547_v33  ;;  %v1374_v23 = vadd.f32 1.0, %v1965_v35  ;;  %v1328_v12 = vmul.f32 0.7978846, %v1296_v29  ;;  %v1218_v21 = vmul.f32 %v1186_v5, %v3067_v9  ;;  %v1202_v49 = vmul.f32 %v3084_v7, %v3084_v7 }
 0x268   : > { %v1263_v25 = vmul.f32 0.044715, %v1231_v13  ;;  %v1217_v19 = vmul.f32 %v1185_v3, %v3076_v28  ;;  %v1201_v44 = vmul.f32 %v3092_v4, %v3092_v4  ;;  %v1188_v39 = vmul.f32 %v3095_v17, %v3095_v17 }
 0x269   : > { %v1967_v54 = vpop.eup %1966  ;;  %v1406_v11 = vmul.f32 0.5, %v1374_v23  ;;  %1976 = vtanh.f32 %v1328_v12  ;;  %v1250_v37 = vmul.f32 0.044715, %v1218_v21  ;;  %v1234_v34 = vmul.f32 %v1202_v49, %v3084_v7 }
 0x26a   : > { %v1373_v24 = vadd.f32 1.0, %v1967_v54  ;;  %v1295_v31 = vadd.f32 %v1263_v25, %v3062_v10  ;;  %v1249_v20 = vmul.f32 0.044715, %v1217_v19  ;;  %v1233_v16 = vmul.f32 %v1201_v44, %v3092_v4 }
 0x26b   : > { %v1969_v53 = vpop.eup %1968  ;;  %v1438_v42 = vmul.f32 %v1406_v11, %v2972_v46  ;;  %v1282_v56 = vadd.f32 %v1250_v37, %v3067_v9  ;;  %v1266_v48 = vmul.f32 0.044715, %v1234_v34  ;;  %v1220_v1 = vmul.f32 %v1188_v39, %v3095_v17 }
 0x26c   : > { %v1971_v14 = vpop.eup %1970  ;;  %v1405_v40 = vmul.f32 0.5, %v1373_v24  ;;  %v1390_v43 = vadd.f32 1.0, %v1969_v53  ;;  %v1327_v52 = vmul.f32 0.7978846, %v1295_v31  ;;  %v1281_v50 = vadd.f32 %v1249_v20, %v3076_v28 }
 0x26d   : > { %v1973_v59 = vpop.eup %1972  ;;  %v1534_v0 = vadd.f32 %v2851_v22, %v1438_v42  ;;  %v1389_v61 = vadd.f32 1.0, %v1971_v14  ;;  %v1314_v33 = vmul.f32 0.7978846, %v1282_v56  ;;  %v1298_v29 = vadd.f32 %v1266_v48, %v3084_v7  ;;  %v1487_v14 = vld [vmem:[%s3244_s1 + $0xd0] sm:$0xff] }
 0x26e   : > { %v1975_v46 = vpop.eup %1974  ;;  %v1437_v5 = vmul.f32 %v1405_v40, %v2985_v2  ;;  %v1422_v35 = vmul.f32 0.5, %v1390_v43  ;;  %v1376_v13 = vadd.f32 1.0, %v1973_v59  ;;  %1978 = vtanh.f32 %v1327_v52 }
 0x26f   : > { %1566 = vst.msk [vmem:[%s2910_s8 + $0x48] sm:$0xff] %vm345_vm0, %v1534_v0  ;;  %v1421_v3 = vmul.f32 0.5, %v1389_v61  ;;  %v1375_v23 = vadd.f32 1.0, %v1975_v46  ;;  %1980 = vtanh.f32 %v1314_v33  ;;  %v1313_v12 = vmul.f32 0.7978846, %v1281_v50 }
 0x270   : > { %v1533_v21 = vadd.f32 %v2818_v60, %v1437_v5  ;;  %v1454_v22 = vmul.f32 %v1422_v35, %v2997_v55  ;;  %v1408_v49 = vmul.f32 0.5, %v1376_v13  ;;  %v1330_v25 = vmul.f32 0.7978846, %v1298_v29 }
 0x271   : > { %v1453_v19 = vmul.f32 %v1421_v3, %v3000_v30  ;;  %v1407_v2 = vmul.f32 0.5, %v1375_v23  ;;  %1982 = vtanh.f32 %v1313_v12  ;;  %v1265_v44 = vmul.f32 0.044715, %v1233_v16  ;;  %v1473_v23 = vld [vmem:[%s3244_s1 + $0x60] sm:$0xff] }
 0x272   : > { %1565 = vst.msk [vmem:[%s2910_s8 + $0x40] sm:$0xff] %vm345_vm0, %v1533_v21  ;;  %v1550_v39 = vadd.f32 %v2863_v18, %v1454_v22  ;;  %v1440_v54 = vmul.f32 %v1408_v49, %v3008_v27  ;;  %1984 = vtanh.f32 %v1330_v25  ;;  %v1252_v11 = vmul.f32 0.044715, %v1220_v1 }
 0x273   : > { %v1977_v60 = vpop.eup %1976  ;;  %v1549_v55 = vadd.f32 %v2843_v8, %v1453_v19  ;;  %v1439_v37 = vmul.f32 %v1407_v2, %v3011_v62  ;;  %v1297_v30 = vadd.f32 %v1265_v44, %v3092_v4  ;;  %v3131_v34 = vadd.f32 %v2684_v57, %v3047_v63  ;;  %v1488_v8 = vld [vmem:[%s3244_s1 + $0xd8] sm:$0xff] }
 0x274   : > { %1582 = vst.msk [vmem:[%s2910_s8 + $0xc8] sm:$0xff] %vm345_vm0, %v1550_v39  ;;  %v1536_v18 = vadd.f32 %v2892_v47, %v1440_v54  ;;  %v1392_v27 = vadd.f32 1.0, %v1977_v60  ;;  %v1284_v24 = vadd.f32 %v1252_v11, %v3095_v17  ;;  %v3139_v31 = vadd.f32 %v3051_v15, %v2684_v57 }
 0x275   : > { %1581 = vst.msk [vmem:[%s2910_s8 + $0xc0] sm:$0xff] %vm345_vm0, %v1549_v55  ;;  %v1535_v62 = vadd.f32 %v2870_v51, %v1439_v37  ;;  %v1329_v63 = vmul.f32 0.7978846, %v1297_v30  ;;  %v1187_v20 = vmul.f32 %v3131_v34, %v3131_v34  ;;  %v3151_v47 = vadd.f32 %v2684_v57, %v3056_v26 }
 0x276   : > { %1568 = vst.msk [vmem:[%s2910_s8 + $0x58] sm:$0xff] %vm345_vm0, %v1536_v18  ;;  %v1424_v15 = vmul.f32 0.5, %v1392_v27  ;;  %v1316_v16 = vmul.f32 0.7978846, %v1284_v24  ;;  %v1204_v53 = vmul.f32 %v3139_v31, %v3139_v31  ;;  %v1520_v48 = vmul.f32 %v1488_v8, %v2623_v6  ;;  %v1474_v6 = vld [vmem:[%s3244_s1 + $0x68] sm:$0xff] }
 0x277   : > { %1567 = vst.msk [vmem:[%s2910_s8 + $0x50] sm:$0xff] %vm345_vm0, %v1535_v62  ;;  %1986 = vtanh.f32 %v1329_v63  ;;  %v1219_v51 = vmul.f32 %v1187_v20, %v3131_v34  ;;  %v1203_v42 = vmul.f32 %v3151_v47, %v3151_v47  ;;  %v1519_v5 = vmul.f32 %v1487_v14, %v2609_v41  ;;  %v1490_v41 = vld [vmem:[%s3244_s1 + $0xe8] sm:$0xff]  ;;  %v3258_v20 = vld [vmem:[#allocation4_spill] sm:$0xff] }
 0x278   : > { %v1979_v56 = vpop.eup %1978  ;;  %v1456_v57 = vmul.f32 %v1424_v15, %v3029_v36  ;;  %1988 = vtanh.f32 %v1316_v16  ;;  %v1236_v26 = vmul.f32 %v1204_v53, %v3139_v31  ;;  %v1506_v25 = vmul.f32 %v1474_v6, %v2641_v38  ;;  %v1491_v14 = vld [vmem:[%s3244_s1 + $0xf0] sm:$0xff] }
 0x279   : > { %v1981_v1 = vpop.eup %1980  ;;  %v1391_v40 = vadd.f32 1.0, %v1979_v56  ;;  %v1251_v43 = vmul.f32 0.044715, %v1219_v51  ;;  %v1235_v52 = vmul.f32 %v1203_v42, %v3151_v47  ;;  %v1505_v11 = vmul.f32 %v1473_v23, %v2627_v32  ;;  %v1489_v32 = vld [vmem:[%s3244_s1 + $0xe0] sm:$0xff] }
 0x27a   : > { %v1552_v50 = vadd.f32 %v1520_v48, %v1456_v57  ;;  %v1378_v59 = vadd.f32 1.0, %v1981_v1  ;;  %v1268_v0 = vmul.f32 0.044715, %v1236_v26  ;;  %v1522_v37 = vmul.f32 %v1490_v41, %v2651_v58  ;;  %v1476_v58 = vld [vmem:[%s3244_s1 + $0x78] sm:$0xff]  ;;  %v1475_v26 = vld [vmem:[%s3244_s1 + $0x70] sm:$0xff] }
 0x27b   : > { %v1983_v61 = vpop.eup %1982  ;;  %v1423_v36 = vmul.f32 0.5, %v1391_v40  ;;  %v1283_v33 = vadd.f32 %v1251_v43, %v3131_v34  ;;  %v1267_v29 = vmul.f32 0.044715, %v1235_v52  ;;  %v1521_v62 = vmul.f32 %v1489_v32, %v2637_v45  ;;  %v3259_v43 = vld [vmem:[#allocation2_spill] sm:$0xff] }
 0x27c   : > { %v1985_v46 = vpop.eup %1984  ;;  %1584 = vst.msk [vmem:[%s2910_s8 + $0xd8] sm:$0xff] %vm345_vm0, %v1552_v50  ;;  %v1410_v35 = vmul.f32 0.5, %v1378_v59  ;;  %v1377_v13 = vadd.f32 1.0, %v1983_v61  ;;  %v1300_v3 = vadd.f32 %v1268_v0, %v3139_v31  ;;  %v1508_v15 = vmul.f32 %v1476_v58, %v3258_v20  ;;  %v3260_v0 = vld [vmem:[#allocation5_spill] sm:$0xff] }
 0x27d   : > { %v1455_v12 = vmul.f32 %v1423_v36, %v3062_v10  ;;  %v1394_v21 = vadd.f32 1.0, %v1985_v46  ;;  %v1315_v22 = vmul.f32 0.7978846, %v1283_v33  ;;  %v1299_v49 = vadd.f32 %v1267_v29, %v3151_v47  ;;  %v3261_v36 = vld [vmem:[#allocation3_spill] sm:$0xff] }
 0x27e   : > { %v1442_v19 = vmul.f32 %v1410_v35, %v3067_v9  ;;  %v1409_v2 = vmul.f32 0.5, %v1377_v13  ;;  %v1332_v44 = vmul.f32 0.7978846, %v1300_v3  ;;  %v1507_v52 = vmul.f32 %v1475_v26, %v3259_v43 }
 0x27f   : > { %v1551_v39 = vadd.f32 %v1519_v5, %v1455_v12  ;;  %v1426_v54 = vmul.f32 0.5, %v1394_v21  ;;  %1990 = vtanh.f32 %v1315_v22  ;;  %v1331_v10 = vmul.f32 0.7978846, %v1299_v49 }
 0x280   : > { %v1538_v60 = vadd.f32 %v1506_v25, %v1442_v19  ;;  %v1441_v55 = vmul.f32 %v1409_v2, %v3076_v28  ;;  %1992 = vtanh.f32 %v1332_v44  ;;  %v1523_v33 = vmul.f32 %v1491_v14, %v3261_v36 }
 0x281   : > { %v1987_v38 = vpop.eup %1986  ;;  %1583 = vst.msk [vmem:[%s2910_s8 + $0xd0] sm:$0xff] %vm345_vm0, %v1551_v39  ;;  %v1458_v9 = vmul.f32 %v1426_v54, %v3084_v7  ;;  %1994 = vtanh.f32 %v1331_v10 }
 0x282   : > { %v1989_v30 = vpop.eup %1988  ;;  %1570 = vst.msk [vmem:[%s2910_s8 + $0x68] sm:$0xff] %vm345_vm0, %v1538_v60  ;;  %v1537_v18 = vadd.f32 %v1505_v11, %v1441_v55  ;;  %v1393_v27 = vadd.f32 1.0, %v1987_v38 }
 0x283   : > { %v1554_v28 = vadd.f32 %v1522_v37, %v1458_v9  ;;  %v1380_v24 = vadd.f32 1.0, %v1989_v30 }
 0x284   : > { %1569 = vst.msk [vmem:[%s2910_s8 + $0x60] sm:$0xff] %vm345_vm0, %v1537_v18  ;;  %v1425_v7 = vmul.f32 0.5, %v1393_v27 }
 0x285   : > { %1586 = vst.msk [vmem:[%s2910_s8 + $0xe8] sm:$0xff] %vm345_vm0, %v1554_v28  ;;  %v1412_v8 = vmul.f32 0.5, %v1380_v24 }
 0x286   : > { %v1457_v63 = vmul.f32 %v1425_v7, %v3092_v4  ;;  %v1492_v4 = vld [vmem:[%s3244_s1 + $0xf8] sm:$0xff] }
 0x287   : > { %v1444_v16 = vmul.f32 %v1412_v8, %v3095_v17  ;;  %v1524_v61 = vmul.f32 %v1492_v4, %v3260_v0 }
 0x288   : > { %v1553_v53 = vadd.f32 %v1521_v62, %v1457_v63 }
 0x289   : > { %v1991_v51 = vpop.eup %1990  ;;  %v1540_v42 = vadd.f32 %v1508_v15, %v1444_v16 }
 0x28a   : > { %v1993_v56 = vpop.eup %1992  ;;  %1585 = vst.msk [vmem:[%s2910_s8 + $0xe0] sm:$0xff] %vm345_vm0, %v1553_v53  ;;  %v1379_v48 = vadd.f32 1.0, %v1991_v51 }
 0x28b   : > { %v1995_v57 = vpop.eup %1994  ;;  %1572 = vst.msk [vmem:[%s2910_s8 + $0x78] sm:$0xff] %vm345_vm0, %v1540_v42  ;;  %v1396_v45 = vadd.f32 1.0, %v1993_v56 }
 0x28c   : > { %v1411_v17 = vmul.f32 0.5, %v1379_v48  ;;  %v1395_v1 = vadd.f32 1.0, %v1995_v57 }
 0x28d   : > { %v1428_v40 = vmul.f32 0.5, %v1396_v45 }
 0x28e   : > { %v1443_v50 = vmul.f32 %v1411_v17, %v3131_v34  ;;  %v1427_v59 = vmul.f32 0.5, %v1395_v1 }
 0x28f   : > { %v1460_v6 = vmul.f32 %v1428_v40, %v3139_v31 }
 0x290   : > { %v1539_v29 = vadd.f32 %v1507_v52, %v1443_v50  ;;  %v1459_v46 = vmul.f32 %v1427_v59, %v3151_v47 }
 0x291   : > { %v1556_v5 = vadd.f32 %v1524_v61, %v1460_v6 }
 0x292   : > { %1571 = vst.msk [vmem:[%s2910_s8 + $0x70] sm:$0xff] %vm345_vm0, %v1539_v29  ;;  %v1555_v35 = vadd.f32 %v1523_v33, %v1459_v46 }
 0x293   : > { %1588 = vst.msk [vmem:[%s2910_s8 + $0xf8] sm:$0xff] %vm345_vm0, %v1556_v5 }
 0x294   : > { %1587 = vst.msk [vmem:[%s2910_s8 + $0xf0] sm:$0xff] %vm345_vm0, %v1555_v35 }
 0x295 PF: > { %s16_s23 = sadd.s32 1, %s2018_s23   ;;  %s3262_s21 = smov %s2014_s22 }
 0x296   : > { %p13_p5 = scmp.ge.s32.totalorder %s16_s23, 4   ;;  %s3263_s22 = smov %s3265_s24 }
 0x298   :  { %15 = sbr.rel (!%p13_p5) target bundleno = 2 (0x2), region = 77 }

// kernel: ghpa_forward.3
= control target key start
LH: loop header
LB: loop body
LE: loop exit
PB: predicated region body
PF: predicated region fallthrough
CT: control target
= control target key end

     0   :  { %15 = vsyncpa [#allocation3], 0  ;;  %s14096_s0 = inlined_call_operand.vmem [shape: f32[2,20,20,32], index: 0, kind: input, shape index: {}]   ;;  %s14097_s1 = inlined_call_operand.vmem [shape: f32[9,32], index: 1, kind: input, shape index: {}]   ;;  %s14098_s2 = inlined_call_operand.vmem [shape: f32[1,32], index: 2, kind: input, shape index: {}]   ;;  %s14099_s3 = inlined_call_operand.vmem [shape: f32[1,32], index: 3, kind: input, shape index: {}]   ;;  %s14100_s4 = inlined_call_operand.vmem [shape: f32[1,32], index: 4, kind: input, shape index: {}]   ;;  %s14101_s5 = inlined_call_operand.vmem [shape: f32[18,18,1], index: 5, kind: input, shape index: {}]   ;;  %s14102_s6 = inlined_call_operand.vmem [shape: f32[9,32], index: 6, kind: input, shape index: {}]   ;;  %s14103_s7 = inlined_call_operand.vmem [shape: f32[1,32], index: 7, kind: input, shape index: {}]   ;;  %s14104_s8 = inlined_call_operand.vmem [shape: f32[32,32], index: 8, kind: input, shape index: {}]   ;;  %s14105_s9 = inlined_call_operand.vmem [shape: f32[1,32], index: 9, kind: input, shape index: {}]   ;;  %s14106_s10 = inlined_call_operand.hbm [shape: f32[2,16,16,32], index: 10, kind: output, shape index: {}]  }
   0x1   :  { %17 = vsyncpa [#allocation3 + $0x1], 0  ;;  %s8147_s13 = smov 0   ;;  %s8149_s14 = smov 0  }
   0x2   :  { %s8151_s15 = smov 0   ;;  %s8153_s16 = smov 0  }
   0x3 LB: > { %s8168_s17 = sadd.s32 4294967295, %s8086_s16   ;;  %s7311_s18 = sadd.s32 4294967294, %s8086_s16   ;;  %s8086_s16 = sphi %s8153_s16, %s15236_s16   ;;  %s8082_s15 = sphi %s8151_s15, %s15235_s15   ;;  %s8078_s14 = sphi %s8149_s14, %s15234_s14   ;;  %s8074_s13 = sphi %s8147_s13, %s15233_s13  }
   0x4   : > { %s8172_s19 = sadd.s32 1, %s8086_s16   ;;  %s245_s20 = sadd.s32 1, %s8082_s15 }
   0x5   : > { %s242_s21 = ssub.s32 %s8086_s16, %s8172_s19  ;;  %p255_p0 = scmp.ne.s32.totalorder %s8082_s15, %s8078_s14 }
   0x6   : > { %p243_p1 = scmp.eq.s32.totalorder %s242_s21, 0  ;;  %p256_p2 = scmp.eq.s32.totalorder %s8168_s17, 1 }
   0x7   : > { %p261_p3 = scmp.ne.s32.totalorder %s8078_s14, %s8074_s13  ;;  %p262_p4 = scmp.eq.s32.totalorder %s7311_s18, 1 }
   0x8   : > { %s8183_s22 = scalar_select %p243_p1, %s8082_s15, %s245_s20  }
   0x9   : > { %p8185_p5 = por %p256_p2, %p255_p0  ;;  %p8189_p6 = por %p262_p4, %p261_p3 }
   0xa   : > { %p7314_p7 = scmp.ge.s32.totalorder %s8086_s16, 1  ;;  %p315_p8 = scmp.lt.s32.totalorder %s8086_s16, 3 }
   0xc   : > { %p316_p9 = pnand %p7314_p7, %p315_p8 }
   0xe   : > { %319 = sbr.rel (%p316_p9) target bundleno = 1402 (0x57a), region = 60 }
  0x15   : > { %p353_p10 = scmp.lt.s32.totalorder %s8168_s17, 1  ;;  %v422_v0 = vlaneseq  ;;  %v418_v2 = vld [vmem:[%s14097_s1] sm:$0xff]  ;;  %v8238_v17 = vld [vmem:[%s14097_s1 + $0x8] ss:$0 sm:$0xff]  ;;  %vm2688_vm0 = vcmask 254976   ;;  %vm646_vm1 = vcmask 1046528  }
  0x16   : > { %vm957_vm2 = vcmask 1045504   ;;  %vm2681_vm3 = vcmask 261120   ;;  %s350_s21 = sand.u32 1, %s8078_s14  }
  0x17   : > { %s354_s25 = scalar_select %p353_p10, %s8168_s17, 1  ;;  %v8197_v1 = vshrl.u32 %v422_v0, 7 }
  0x19   : > { %14447 = vst [vmem:[#allocation5_spill] sm:$0xff] %v8197_v1  ;;  %s7792_s28 = smul.u32 480, %s354_s25  ;;  %v14114_v3 = vsub.s32 0, %v8197_v1  ;;  %v14113_v4 = vsub.s32 1, %v8197_v1  ;;  %v14112_v5 = vsub.s32 2, %v8197_v1  ;;  %v14108_v6 = vsub.s32 3, %v8197_v1 }
  0x1a   : > { %v14111_v7 = vsub.s32 4, %v8197_v1  ;;  %v14110_v8 = vsub.s32 5, %v8197_v1  ;;  %v14107_v9 = vsub.s32 6, %v8197_v1  ;;  %v14109_v10 = vsub.s32 7, %v8197_v1 }
  0x1b   : > { %s8213_s11 = scalar_lea.vmem %s14096_s0, %s7792_s28  ;;  %v8217_v11 = vrot.slane %v418_v2, %v14114_v3  ;;  %v8221_v12 = vrot.slane %v418_v2, %v14113_v4  ;;  %v8225_v13 = vrot.slane %v418_v2, %v14112_v5  ;;  %v8229_v14 = vrot.slane %v418_v2, %v14108_v6  ;;  %s7391_s28 = sshll.u32 %s8168_s17, 12 }
  0x1c   : > { %v363_v15 = vld [vmem:[%s8213_s11 + $0x28] sm:$0xf]  ;;  %v8233_v16 = vld [vmem:[%s8213_s11 + $0x40] sm:$0xf]  ;;  %v8242_v18 = vrot.slane %v418_v2, %v14111_v7  ;;  %v8246_v19 = vrot.slane %v418_v2, %v14110_v8  ;;  %v8250_v20 = vrot.slane %v418_v2, %v14107_v9  ;;  %v8254_v21 = vrot.slane %v418_v2, %v14109_v10  ;;  %v8257_v22 = vld [vmem:[%s8213_s11 + $0x58] sm:$0xf]  ;;  %s14044_s18 = scalar_lea.hbm %s14106_s10, %s7391_s28 }
  0x1d   : > { %v431_v23 = vmul.f32 %v8217_v11, %v363_v15  ;;  %v8261_v24 = vmul.f32 %v8221_v12, %v363_v15  ;;  %v8264_v25 = vmul.f32 %v8225_v13, %v363_v15  ;;  %v1165_v26 = vmul.f32 %v8229_v14, %v8233_v16  ;;  %v360_v27 = vld [vmem:[%s8213_s11 + $0x10] sm:$0xf]  ;;  %v8341_v62 = vld [vmem:[%s8213_s11 + $0x88] sm:$0xf]  ;;  %s14055_s17 = scalar_lea.sflag [#allocation3], %s350_s21 }
  0x1e   : > { %v8271_v28 = vmul.f32 %v8242_v18, %v8233_v16  ;;  %v8275_v29 = vmul.f32 %v8246_v19, %v8233_v16  ;;  %v1897_v30 = vmul.f32 %v8250_v20, %v8257_v22  ;;  %v8281_v31 = vmul.f32 %v8254_v21, %v8257_v22  ;;  %v8332_v59 = vld [vmem:[%s8213_s11 + $0x70] sm:$0xf] }
  0x1f   : > { %v14135_v32 = vrot.slane %v8261_v24, 1  ;;  %v14132_v33 = vrot.slane %v8264_v25, 2  ;;  %v8287_v34 = vmul.f32 %v8238_v17, %v8257_v22  ;;  %v428_v35 = vmul.f32 %v8217_v11, %v360_v27 }
  0x20   : > { %v14129_v36 = vrot.slane %v8271_v28, 1  ;;  %v14128_v37 = vrot.slane %v8275_v29, 2  ;;  %v14126_v38 = vrot.slane %v8281_v31, 1  ;;  %v8294_v39 = vmul.f32 %v8221_v12, %v360_v27 }
  0x21   : > { %v796_v40 = vadd.f32 %v14135_v32, %v431_v23  ;;  %v14125_v41 = vrot.slane %v8287_v34, 2  ;;  %v8300_v42 = vmul.f32 %v8225_v13, %v360_v27  ;;  %v1162_v43 = vmul.f32 %v8229_v14, %v363_v15 }
  0x22   : > { %v14122_v44 = vrot.slane %v8294_v39, 1  ;;  %v8305_v45 = vmul.f32 %v8242_v18, %v363_v15  ;;  %v8308_v46 = vmul.f32 %v8246_v19, %v363_v15  ;;  %v1894_v47 = vmul.f32 %v8250_v20, %v8233_v16 }
  0x23   : > { %v1107_v48 = vadd.f32 %v14132_v33, %v796_v40  ;;  %v14119_v49 = vrot.slane %v8300_v42, 2  ;;  %v8317_v50 = vmul.f32 %v8254_v21, %v8233_v16  ;;  %v8321_v51 = vmul.f32 %v8238_v17, %v8233_v16 }
  0x24   : > { %v793_v52 = vadd.f32 %v14122_v44, %v428_v35  ;;  %v14118_v53 = vrot.slane %v8305_v45, 1  ;;  %v14117_v54 = vrot.slane %v8308_v46, 2  ;;  %v437_v55 = vmul.f32 %v8217_v11, %v8257_v22 }
  0x25   : > { %v1219_v56 = vadd.f32 %v1165_v26, %v1107_v48  ;;  %v14124_v57 = vrot.slane %v8317_v50, 1  ;;  %v14130_v58 = vrot.slane %v8321_v51, 2  ;;  %v8336_v60 = vmul.f32 %v8221_v12, %v8257_v22 }
  0x26   : > { %v1104_v61 = vadd.f32 %v14119_v49, %v793_v52  ;;  %v8345_v63 = vmul.f32 %v8225_v13, %v8257_v22  ;;  %v1171_v0 = vmul.f32 %v8229_v14, %v8332_v59  ;;  %v8351_v2 = vmul.f32 %v8242_v18, %v8332_v59 }
  0x27   : > { %14448 = vst [vmem:[#allocation6_spill] sm:$0xff] %v8336_v60  ;;  %v1529_v15 = vadd.f32 %v14129_v36, %v1219_v56  ;;  %v14115_v23 = vrot.slane %v8336_v60, 1  ;;  %v8358_v26 = vmul.f32 %v8246_v19, %v8332_v59  ;;  %v1903_v27 = vmul.f32 %v8250_v20, %v8341_v62 }
  0x28   : > { %14449 = vst [vmem:[#allocation7_spill] sm:$0xff] %v8345_v63  ;;  %14450 = vst [vmem:[#allocation8_spill] sm:$0xff] %v8351_v2  ;;  %v1216_v35 = vadd.f32 %v1162_v43, %v1104_v61  ;;  %v14116_v40 = vrot.slane %v8345_v63, 2  ;;  %v14121_v48 = vrot.slane %v8351_v2, 1  ;;  %v8366_v52 = vmul.f32 %v8254_v21, %v8341_v62 }
  0x29   : > { %14451 = vst [vmem:[#allocation9_spill] sm:$0xff] %v8358_v26  ;;  %v1839_v56 = vadd.f32 %v14128_v37, %v1529_v15  ;;  %v802_v9 = vadd.f32 %v14115_v23, %v437_v55  ;;  %v14127_v6 = vrot.slane %v8358_v26, 2  ;;  %v8375_v10 = vmul.f32 %v8238_v17, %v8341_v62 }
  0x2a   : > { %14452 = vst [vmem:[#allocation10_spill] sm:$0xff] %v8366_v52  ;;  %v1526_v43 = vadd.f32 %v14118_v53, %v1216_v35  ;;  %v14134_v61 = vrot.slane %v8366_v52, 1  ;;  %v434_v8 = vmul.f32 %v8217_v11, %v8233_v16  ;;  %v8384_v15 = vmul.f32 %v8221_v12, %v8233_v16 }
  0x2b   : > { %14453 = vst [vmem:[#allocation11_spill] sm:$0xff] %v8375_v10  ;;  %v1951_v7 = vadd.f32 %v1897_v30, %v1839_v56  ;;  %v1113_v55 = vadd.f32 %v14116_v40, %v802_v9  ;;  %v14138_v5 = vrot.slane %v8375_v10, 2  ;;  %v8391_v4 = vmul.f32 %v8225_v13, %v8233_v16 }
  0x2c   : > { %v1836_v35 = vadd.f32 %v14117_v54, %v1526_v43  ;;  %v14120_v3 = vrot.slane %v8384_v15, 1  ;;  %v1168_v23 = vmul.f32 %v8229_v14, %v8257_v22  ;;  %v8400_v30 = vmul.f32 %v8242_v18, %v8257_v22  ;;  %v8412_v43 = vld [vmem:[%s14098_s2] ss:$0 sm:$0xff] }
  0x2d   : > { %v2261_v9 = vadd.f32 %v14126_v38, %v1951_v7  ;;  %v1225_v56 = vadd.f32 %v1171_v0, %v1113_v55  ;;  %v14123_v16 = vrot.slane %v8391_v4, 2  ;;  %v8407_v40 = vmul.f32 %v8246_v19, %v8257_v22  ;;  %v8455_v38 = vld [vmem:[%s8213_s11 + $0xb8] sm:$0xf] }
  0x2e   : > { %v1948_v54 = vadd.f32 %v1894_v47, %v1836_v35  ;;  %v799_v53 = vadd.f32 %v14120_v3, %v434_v8  ;;  %v14131_v49 = vrot.slane %v8400_v30, 1  ;;  %v1900_v7 = vmul.f32 %v8250_v20, %v8332_v59  ;;  %14459 = vst [vmem:[#allocation17_spill] sm:$0xff] %v8455_v38 }
  0x2f   : > { %v2571_v0 = vadd.f32 %v14125_v41, %v2261_v9  ;;  %v1535_v22 = vadd.f32 %v14121_v48, %v1225_v56  ;;  %v14136_v55 = vrot.slane %v8407_v40, 2  ;;  %v8426_v47 = vmul.f32 %v8254_v21, %v8332_v59  ;;  %v8437_v9 = vld [vmem:[%s8213_s11 + $0xa0] sm:$0xf] }
  0x30   : > { %v2258_v8 = vadd.f32 %v14124_v57, %v1948_v54  ;;  %v1110_v35 = vadd.f32 %v14123_v16, %v799_v53  ;;  %v8434_v3 = vmul.f32 %v8238_v17, %v8332_v59  ;;  %14456 = vst [vmem:[#allocation14_spill] sm:$0xff] %v8437_v9  ;;  %v443_v56 = vmul.f32 %v8217_v11, %v8341_v62 }
  0x31   : > { %14454 = vst [vmem:[#allocation12_spill] sm:$0xff] %v8426_v47  ;;  %v8442_v48 = vadd.f32 %v8412_v43, %v2571_v0  ;;  %v1845_v44 = vadd.f32 %v14127_v6, %v1535_v22  ;;  %v14139_v54 = vrot.slane %v8426_v47, 1  ;;  %v8449_v53 = vmul.f32 %v8221_v12, %v8341_v62 }
  0x32   : > { %14455 = vst [vmem:[#allocation13_spill] sm:$0xff] %v8434_v3  ;;  %v2568_v16 = vadd.f32 %v14130_v58, %v2258_v8  ;;  %v1222_v57 = vadd.f32 %v1168_v23, %v1110_v35  ;;  %v8459_v0 = vmul.f32 %v8225_v13, %v8341_v62  ;;  %v1177_v36 = vmul.f32 %v8229_v14, %v8437_v9 }
  0x33   : > { %14457 = vst [vmem:[#allocation15_spill] sm:$0xff] %v8442_v48  ;;  %14458 = vst [vmem:[#allocation16_spill] sm:$0xff] %v8449_v53  ;;  %v2698_v22 = vsel %vm2688_vm0, %v8442_v48, 0.0  ;;  %v1957_v6 = vadd.f32 %v1903_v27, %v1845_v44  ;;  %v14133_v37 = vrot.slane %v8449_v53, 1  ;;  %v8474_v58 = vmul.f32 %v8242_v18, %v8437_v9 }
  0x34   : > { %14460 = vst [vmem:[#allocation18_spill] sm:$0xff] %v8459_v0  ;;  %2699 = vadd.xlane.f32.xlu1 %v2698_v22  ;;  %v8467_v23 = vadd.f32 %v8412_v43, %v2568_v16  ;;  %v1532_v8 = vadd.f32 %v14131_v49, %v1222_v57  ;;  %v14137_v35 = vrot.slane %v8459_v0, 2  ;;  %v8482_v22 = vmul.f32 %v8246_v19, %v8437_v9 }
  0x35   : > { %14462 = vst [vmem:[#allocation20_spill] sm:$0xff] %v8474_v58  ;;  %v2267_v44 = vadd.f32 %v14134_v61, %v1957_v6  ;;  %v808_v27 = vadd.f32 %v14133_v37, %v443_v56  ;;  %v1909_v16 = vmul.f32 %v8250_v20, %v8455_v38  ;;  %v14143_v33 = vrot.slane %v8474_v58, 1 }
  0x36   : > { %14461 = vst [vmem:[#allocation19_spill] sm:$0xff] %v8467_v23  ;;  %14463 = vst [vmem:[#allocation21_spill] sm:$0xff] %v8482_v22  ;;  %v2689_v57 = vsel %vm2688_vm0, %v8467_v23, 0.0  ;;  %v1842_v49 = vadd.f32 %v14136_v55, %v1532_v8  ;;  %v8493_v6 = vmul.f32 %v8254_v21, %v8455_v38  ;;  %v8502_v32 = vmul.f32 %v8238_v17, %v8455_v38  ;;  %v8606_v38 = vld [vmem:[%s8213_s11 + $0x48] sm:$0xff] }
  0x37   : > { %2690 = vadd.xlane.f32.xlu0 %v2689_v57  ;;  %v2577_v56 = vadd.f32 %v14138_v5, %v2267_v44  ;;  %v1119_v37 = vadd.f32 %v14137_v35, %v808_v27  ;;  %v440_v41 = vmul.f32 %v8217_v11, %v8332_v59  ;;  %v8509_v57 = vmul.f32 %v8221_v12, %v8332_v59 }
  0x38   : > { %14464 = vst [vmem:[#allocation22_spill] sm:$0xff] %v8493_v6  ;;  %14465 = vst [vmem:[#allocation23_spill] sm:$0xff] %v8502_v32  ;;  %v1954_v8 = vadd.f32 %v1900_v7, %v1842_v49  ;;  %v8517_v49 = vmul.f32 %v8225_v13, %v8332_v59  ;;  %v1174_v55 = vmul.f32 %v8229_v14, %v8341_v62  ;;  %v14471_v35 = vrot.slane %v8434_v3, 2 }
  0x39   : > { %14466 = vst [vmem:[#allocation24_spill] sm:$0xff] %v8509_v57  ;;  %v8512_v44 = vadd.f32 %v8412_v43, %v2577_v56  ;;  %v1231_v27 = vadd.f32 %v1177_v36, %v1119_v37  ;;  %v14145_v5 = vrot.slane %v8509_v57, 1  ;;  %v8526_v56 = vmul.f32 %v8242_v18, %v8341_v62 }
  0x3a   : > { %14468 = vst [vmem:[#allocation26_spill] sm:$0xff] %v8517_v49  ;;  %v2264_v7 = vadd.f32 %v14139_v54, %v1954_v8  ;;  %v8535_v8 = vmul.f32 %v8246_v19, %v8341_v62  ;;  %v8538_v54 = vld [vmem:[%s8213_s11 + $0x18] sm:$0xff]  ;;  %v14472_v62 = vrot.slane %v8482_v22, 2 }
  0x3b   : > { %14467 = vst [vmem:[#allocation25_spill] sm:$0xff] %v8512_v44  ;;  %14469 = vst [vmem:[#allocation27_spill] sm:$0xff] %v8526_v56  ;;  %v2716_v36 = vsel %vm2688_vm0, %v8512_v44, 0.0  ;;  %v1541_v37 = vadd.f32 %v14143_v33, %v1231_v27  ;;  %v805_v1 = vadd.f32 %v14145_v5, %v440_v41  ;;  %v1906_v27 = vmul.f32 %v8250_v20, %v8437_v9  ;;  %v8548_v33 = vld [vmem:[%s8213_s11 + $0x20] sm:$0xff]  ;;  %v8567_v44 = vld [vmem:[%s8213_s11 + $0x30] sm:$0xff] }
  0x3c   : > { %14470 = vst [vmem:[#allocation28_spill] sm:$0xff] %v8535_v8  ;;  %2717 = vadd.xlane.f32.xlu1 %v2716_v36  ;;  %v2574_v61 = vadd.f32 %v14471_v35, %v2264_v7  ;;  %v8555_v36 = vmul.f32 %v8254_v21, %v8437_v9  ;;  %v8559_v41 = vmul.f32 %v8238_v17, %v8437_v9  ;;  %v14476_v7 = vrot.slane %v8517_v49, 2  ;;  %v8576_v9 = vld [vmem:[%s8213_s11 + $0x38] sm:$0xff]  ;;  %v8617_v49 = vld [vmem:[%s8213_s11 + $0x50] sm:$0xff] }
  0x3d   : > { %v1851_v59 = vadd.f32 %v14472_v62, %v1541_v37  ;;  %v429_v37 = vmul.f32 %v8217_v11, %v8538_v54  ;;  %v541_v62 = vmul.f32 %v8221_v12, %v8538_v54  ;;  %v852_v58 = vmul.f32 %v8225_v13, %v8538_v54 }
  0x3e   : > { %14473 = vst [vmem:[#allocation29_spill] sm:$0xff] %v8555_v36  ;;  %14474 = vst [vmem:[#allocation30_spill] sm:$0xff] %v8559_v41  ;;  %v8562_v35 = vadd.f32 %v8412_v43, %v2574_v61  ;;  %v1116_v5 = vadd.f32 %v14476_v7, %v805_v1  ;;  %v8580_v61 = vmul.f32 %v8221_v12, %v8548_v33 }
  0x3f   : > { %v1963_v48 = vadd.f32 %v1909_v16, %v1851_v59  ;;  %v652_v22 = vrot.slane %v541_v62, 1  ;;  %v14477_v16 = vrot.slane %v8493_v6, 1  ;;  %v8591_v23 = vmul.f32 %v8225_v13, %v8548_v33 }
  0x40   : > { %14475 = vst [vmem:[#allocation31_spill] sm:$0xff] %v8562_v35  ;;  %v2707_v1 = vsel %vm2688_vm0, %v8562_v35, 0.0  ;;  %v1228_v7 = vadd.f32 %v1174_v55, %v1116_v5  ;;  %v1163_v0 = vmul.f32 %v8229_v14, %v8567_v44  ;;  %v14478_v5 = vrot.slane %v8526_v56, 1 }
  0x41   : > { %2708 = vadd.xlane.f32.xlu0 %v2707_v1  ;;  %v2273_v59 = vadd.f32 %v14477_v16, %v1963_v48  ;;  %v963_v62 = vrot.slane %v852_v58, 2  ;;  %v1275_v35 = vmul.f32 %v8242_v18, %v8567_v44  ;;  %v8601_v1 = vmul.f32 %v8242_v18, %v8576_v9 }
  0x42   : > { %v1538_v55 = vadd.f32 %v14478_v5, %v1228_v7  ;;  %v14479_v48 = vrot.slane %v8502_v32, 2  ;;  %v14480_v6 = vrot.slane %v8580_v61, 1  ;;  %v14163_v56 = vrot.slane %v8591_v23, 2 }
  0x43   : > { %v1585_v58 = vmul.f32 %v8246_v19, %v8567_v44  ;;  %v14481_v7 = vrot.slane %v8535_v8, 2  ;;  %v1385_v10 = vrot.slane %v1275_v35, 1  ;;  %v1895_v35 = vmul.f32 %v8250_v20, %v8606_v38 }
  0x44   : > { %v2583_v16 = vadd.f32 %v14479_v48, %v2273_v59  ;;  %v654_v53 = vsel %vm646_vm1, %v652_v22, %v14480_v6  ;;  %v14162_v59 = vrot.slane %v8601_v1, 1  ;;  %v965_v22 = vsel %vm957_vm2, %v963_v62, %v14163_v56  ;;  %v8654_v56 = vld [vmem:[%s8213_s11 + $0x8] sm:$0xff] }
  0x45   : > { %v1848_v5 = vadd.f32 %v14481_v7, %v1538_v55  ;;  %v794_v57 = vadd.f32 %v654_v53, %v429_v37  ;;  %v8628_v6 = vmul.f32 %v8246_v19, %v8576_v9  ;;  %v1695_v55 = vrot.slane %v1585_v58, 2 }
  0x46   : > { %v8621_v48 = vadd.f32 %v8412_v43, %v2583_v16  ;;  %v1387_v53 = vsel %vm646_vm1, %v1385_v10, %v14162_v59  ;;  %v2007_v16 = vmul.f32 %v8254_v21, %v8606_v38  ;;  %v8642_v58 = vmul.f32 %v8254_v21, %v8617_v49  ;;  %v358_v59 = vld [vmem:[%s8213_s11] sm:$0xff] }
  0x47   : > { %v1960_v7 = vadd.f32 %v1906_v27, %v1848_v5  ;;  %v1105_v32 = vadd.f32 %v965_v22, %v794_v57  ;;  %v14170_v62 = vrot.slane %v8628_v6, 2  ;;  %v14483_v57 = vrot.slane %v8555_v36, 1 }
  0x48   : > { %14482 = vst [vmem:[#allocation32_spill] sm:$0xff] %v8621_v48  ;;  %v2734_v37 = vsel %vm2688_vm0, %v8621_v48, 0.0  ;;  %v2317_v5 = vmul.f32 %v8238_v17, %v8606_v38  ;;  %v8650_v22 = vmul.f32 %v8238_v17, %v8617_v49  ;;  %v2117_v8 = vrot.slane %v2007_v16, 1 }
  0x49   : > { %2735 = vadd.xlane.f32.xlu1 %v2734_v37  ;;  %v2270_v27 = vadd.f32 %v14483_v57, %v1960_v7  ;;  %v1217_v10 = vadd.f32 %v1163_v0, %v1105_v32  ;;  %v1697_v48 = vsel %vm957_vm2, %v1695_v55, %v14170_v62  ;;  %v14171_v37 = vrot.slane %v8642_v58, 1 }
  0x4a   : > { %v426_v7 = vmul.f32 %v8217_v11, %v358_v59  ;;  %v14484_v32 = vrot.slane %v8559_v41, 2  ;;  %v2427_v36 = vrot.slane %v2317_v5, 2  ;;  %v2428_v52 = vrot.slane %v8650_v22, 2 }
  0x4b   : > { %v1527_v57 = vadd.f32 %v1387_v53, %v1217_v10  ;;  %v2119_v26 = vsel %vm646_vm1, %v2117_v8, %v14171_v37  ;;  %v538_v2 = vmul.f32 %v8221_v12, %v358_v59  ;;  %v539_v55 = vmul.f32 %v8221_v12, %v8654_v56 }
  0x4c   : > { %v2580_v0 = vadd.f32 %v14484_v32, %v2270_v27  ;;  %v849_v16 = vmul.f32 %v8225_v13, %v358_v59  ;;  %v2429_v53 = vsel %vm957_vm2, %v2427_v36, %v2428_v52  ;;  %v850_v10 = vmul.f32 %v8225_v13, %v8654_v56 }
  0x4d   : > { %v1837_v27 = vadd.f32 %v1697_v48, %v1527_v57  ;;  %v647_v5 = vrot.slane %v538_v2, 1  ;;  %v648_v22 = vrot.slane %v539_v55, 1  ;;  %v1160_v32 = vmul.f32 %v8229_v14, %v8538_v54 }
  0x4e   : > { %v8672_v62 = vadd.f32 %v8412_v43, %v2580_v0  ;;  %v958_v8 = vrot.slane %v849_v16, 2  ;;  %v959_v59 = vrot.slane %v850_v10, 2  ;;  %v1272_v0 = vmul.f32 %v8242_v18, %v8538_v54 }
  0x4f   : > { %v1949_v41 = vadd.f32 %v1895_v35, %v1837_v27  ;;  %v649_v36 = vsel %vm646_vm1, %v647_v5, %v648_v22  ;;  %v1273_v48 = vmul.f32 %v8242_v18, %v8548_v33  ;;  %v1582_v2 = vmul.f32 %v8246_v19, %v8538_v54 }
  0x50   : > { %14485 = vst [vmem:[#allocation33_spill] sm:$0xff] %v8672_v62  ;;  %v2725_v37 = vsel %vm2688_vm0, %v8672_v62, 0.0  ;;  %v1583_v57 = vmul.f32 %v8246_v19, %v8548_v33  ;;  %v791_v16 = vadd.f32 %v649_v36, %v426_v7  ;;  %v960_v35 = vsel %vm957_vm2, %v958_v8, %v959_v59 }
  0x51   : > { %2726 = vadd.xlane.f32.xlu0 %v2725_v37  ;;  %v2259_v55 = vadd.f32 %v2119_v26, %v1949_v41  ;;  %v1380_v27 = vrot.slane %v1272_v0, 1  ;;  %v1381_v10 = vrot.slane %v1273_v48, 1  ;;  %v1690_v62 = vrot.slane %v1582_v2, 2 }
  0x52   : > { %v1691_v63 = vrot.slane %v1583_v57, 2  ;;  %v1892_v37 = vmul.f32 %v8250_v20, %v8567_v44  ;;  %v1102_v60 = vadd.f32 %v960_v35, %v791_v16  ;;  %v2004_v3 = vmul.f32 %v8254_v21, %v8567_v44 }
  0x53   : > { %v2569_v5 = vadd.f32 %v2429_v53, %v2259_v55  ;;  %v2005_v54 = vmul.f32 %v8254_v21, %v8576_v9  ;;  %v1382_v26 = vsel %vm646_vm1, %v1380_v27, %v1381_v10  ;;  %v2314_v7 = vmul.f32 %v8238_v17, %v8567_v44 }
  0x54   : > { %v1692_v41 = vsel %vm957_vm2, %v1690_v62, %v1691_v63  ;;  %v2315_v8 = vmul.f32 %v8238_v17, %v8576_v9  ;;  %v1214_v53 = vadd.f32 %v1160_v32, %v1102_v60  ;;  %v2112_v36 = vrot.slane %v2004_v3, 1 }
  0x55   : > { %v8704_v0 = vadd.f32 %v8412_v43, %v2569_v5  ;;  %v2113_v48 = vrot.slane %v2005_v54, 1  ;;  %v2422_v2 = vrot.slane %v2314_v7, 2  ;;  %v430_v55 = vmul.f32 %v8217_v11, %v8548_v33 }
  0x56   : > { %v2423_v57 = vrot.slane %v2315_v8, 2  ;;  %v14487_v16 = vrot.slane %v8261_v24, 1  ;;  %v14488_v62 = vrot.slane %v8580_v61, 1  ;;  %v1524_v47 = vadd.f32 %v1382_v26, %v1214_v53 }
  0x57   : > { %14486 = vst [vmem:[#allocation34_spill] sm:$0xff] %v8704_v0  ;;  %v2692_v27 = vsel %vm2681_vm3, %v8704_v0, 0.0  ;;  %v2114_v5 = vsel %vm646_vm1, %v2112_v36, %v2113_v48  ;;  %v14489_v3 = vrot.slane %v8264_v25, 2  ;;  %v14490_v60 = vrot.slane %v8591_v23, 2 }
  0x58   : > { %v656_v35 = vsel %vm646_vm1, %v14488_v62, %v14487_v16  ;;  %2693 = vadd.xlane.f32.xlu1 %v2692_v27  ;;  %v2424_v54 = vsel %vm957_vm2, %v2422_v2, %v2423_v57  ;;  %v1164_v61 = vmul.f32 %v8229_v14, %v8576_v9  ;;  %v14491_v7 = vrot.slane %v8271_v28, 1 }
  0x59   : > { %v967_v32 = vsel %vm957_vm2, %v14490_v60, %v14489_v3  ;;  %v795_v24 = vadd.f32 %v656_v35, %v430_v55  ;;  %v14492_v8 = vrot.slane %v8601_v1, 1  ;;  %v1834_v53 = vadd.f32 %v1692_v41, %v1524_v47 }
  0x5a   : > { %v14493_v25 = vrot.slane %v8275_v29, 2  ;;  %v14494_v23 = vrot.slane %v8628_v6, 2  ;;  %v1896_v2 = vmul.f32 %v8250_v20, %v8617_v49  ;;  %v14495_v55 = vrot.slane %v8281_v31, 1 }
  0x5b   : > { %v1389_v26 = vsel %vm646_vm1, %v14492_v8, %v14491_v7  ;;  %v14496_v16 = vrot.slane %v8642_v58, 1  ;;  %v1106_v62 = vadd.f32 %v967_v32, %v795_v24  ;;  %v14497_v1 = vrot.slane %v8287_v34, 2  ;;  %v8783_v7 = vld [vmem:[%s8213_s11 + $0x68] sm:$0xff] }
  0x5c   : > { %v1699_v36 = vsel %vm957_vm2, %v14494_v23, %v14493_v25  ;;  %v427_v29 = vmul.f32 %v8217_v11, %v8654_v56  ;;  %v14498_v6 = vrot.slane %v8294_v39, 1  ;;  %v1946_v35 = vadd.f32 %v1892_v37, %v1834_v53 }
  0x5d   : > { %v2121_v28 = vsel %vm646_vm1, %v14496_v16, %v14495_v55  ;;  %v2431_v47 = vsel %vm957_vm2, %v2428_v52, %v14497_v1  ;;  %v14499_v27 = vrot.slane %v8300_v42, 2  ;;  %v1161_v58 = vmul.f32 %v8229_v14, %v8548_v33 }
  0x5e   : > { %v651_v41 = vsel %vm646_vm1, %v648_v22, %v14498_v6  ;;  %v14500_v3 = vrot.slane %v8305_v45, 1  ;;  %v1218_v52 = vadd.f32 %v1164_v61, %v1106_v62  ;;  %v14501_v56 = vrot.slane %v8308_v46, 2 }
  0x5f   : > { %v962_v31 = vsel %vm957_vm2, %v959_v59, %v14499_v27  ;;  %v792_v60 = vadd.f32 %v651_v41, %v427_v29  ;;  %v1893_v22 = vmul.f32 %v8250_v20, %v8576_v9  ;;  %v2256_v42 = vadd.f32 %v2114_v5, %v1946_v35 }
  0x60   : > { %v1384_v34 = vsel %vm646_vm1, %v1381_v10, %v14500_v3  ;;  %v1694_v39 = vsel %vm957_vm2, %v1691_v63, %v14501_v56  ;;  %v14502_v59 = vrot.slane %v8317_v50, 1  ;;  %v14503_v33 = vrot.slane %v8321_v51, 2 }
  0x61   : > { %v433_v10 = vmul.f32 %v8217_v11, %v8576_v9  ;;  %v1528_v32 = vadd.f32 %v1389_v26, %v1218_v52  ;;  %v1103_v46 = vadd.f32 %v962_v31, %v792_v60  ;;  %v545_v63 = vmul.f32 %v8221_v12, %v8576_v9 }
  0x62   : > { %v2116_v37 = vsel %vm646_vm1, %v2113_v48, %v14502_v59  ;;  %v2426_v45 = vsel %vm957_vm2, %v2423_v57, %v14503_v33  ;;  %v856_v24 = vmul.f32 %v8225_v13, %v8576_v9  ;;  %v2566_v5 = vadd.f32 %v2424_v54, %v2256_v42 }
  0x63   : > { %v1167_v50 = vmul.f32 %v8229_v14, %v8617_v49  ;;  %v1279_v51 = vmul.f32 %v8242_v18, %v8617_v49  ;;  %v8780_v48 = vmul.f32 %v8246_v19, %v8617_v49  ;;  %v1838_v57 = vadd.f32 %v1699_v36, %v1528_v32 }
  0x64   : > { %v1215_v61 = vadd.f32 %v1161_v58, %v1103_v46  ;;  %v658_v8 = vrot.slane %v545_v63, 1  ;;  %v969_v26 = vrot.slane %v856_v24, 2  ;;  %v8786_v53 = vadd.f32 %v8412_v43, %v2566_v5  ;;  %v14509_v46 = vld [vmem:[#allocation12_spill] sm:$0xff] }
  0x65   : > { %v1391_v9 = vrot.slane %v1279_v51, 1  ;;  %v1701_v54 = vrot.slane %v8780_v48, 2  ;;  %v1899_v25 = vmul.f32 %v8250_v20, %v8783_v7  ;;  %v1950_v23 = vadd.f32 %v1896_v2, %v1838_v57 }
  0x66   : > { %v1525_v55 = vadd.f32 %v1384_v34, %v1215_v61  ;;  %v14504_v16 = vrot.slane %v8384_v15, 1  ;;  %v14505_v62 = vrot.slane %v8391_v4, 2  ;;  %v2682_v29 = vsel %vm2681_vm3, %v8786_v53, 0.0  ;;  %v8833_v61 = vld [vmem:[%s8213_s11 + $0x60] sm:$0xff] }
  0x67   : > { %v14506_v41 = vrot.slane %v8400_v30, 1  ;;  %v14507_v27 = vrot.slane %v8407_v40, 2  ;;  %2683 = vadd.xlane.f32.xlu0 %v2682_v29  ;;  %v2260_v15 = vadd.f32 %v2121_v28, %v1950_v23  ;;  %v2011_v4 = vmul.f32 %v8254_v21, %v8783_v7 }
  0x68   : > { %v661_v36 = vsel %vm646_vm1, %v658_v8, %v14504_v16  ;;  %v972_v1 = vsel %vm957_vm2, %v969_v26, %v14505_v62  ;;  %v1835_v31 = vadd.f32 %v1694_v39, %v1525_v55  ;;  %v2321_v58 = vmul.f32 %v8238_v17, %v8783_v7 }
  0x69   : > { %v798_v6 = vadd.f32 %v661_v36, %v433_v10  ;;  %v1394_v35 = vsel %vm646_vm1, %v1391_v9, %v14506_v41  ;;  %v1704_v2 = vsel %vm957_vm2, %v1701_v54, %v14507_v27  ;;  %v432_v34 = vmul.f32 %v8217_v11, %v8567_v44 }
  0x6a   : > { %v544_v30 = vmul.f32 %v8221_v12, %v8567_v44  ;;  %v855_v40 = vmul.f32 %v8225_v13, %v8567_v44  ;;  %v2570_v52 = vadd.f32 %v2431_v47, %v2260_v15  ;;  %v1947_v60 = vadd.f32 %v1893_v22, %v1835_v31  ;;  %v14511_v44 = vld [vmem:[#allocation13_spill] sm:$0xff] }
  0x6b   : > { %v1109_v3 = vadd.f32 %v972_v1, %v798_v6  ;;  %v2123_v28 = vrot.slane %v2011_v4, 1  ;;  %v2433_v56 = vrot.slane %v2321_v58, 2  ;;  %v1166_v33 = vmul.f32 %v8229_v14, %v8606_v38 }
  0x6c   : > { %v657_v42 = vrot.slane %v544_v30, 1  ;;  %v968_v59 = vrot.slane %v855_v40, 2  ;;  %v8818_v10 = vadd.f32 %v8412_v43, %v2570_v52  ;;  %v2257_v32 = vadd.f32 %v2116_v37, %v1947_v60 }
  0x6d   : > { %v1221_v39 = vadd.f32 %v1167_v50, %v1109_v3  ;;  %v14510_v63 = vrot.slane %v14509_v46, 1  ;;  %v14512_v47 = vrot.slane %v14511_v44, 2  ;;  %v1278_v48 = vmul.f32 %v8242_v18, %v8606_v38 }
  0x6e   : > { %14508 = vst [vmem:[#allocation35_spill] sm:$0xff] %v8818_v10  ;;  %v659_v50 = vsel %vm646_vm1, %v657_v42, %v658_v8  ;;  %v970_v51 = vsel %vm957_vm2, %v968_v59, %v969_v26  ;;  %v2695_v57 = vsel %vm2681_vm3, %v8818_v10, 0.0  ;;  %v2567_v37 = vadd.f32 %v2426_v45, %v2257_v32 }
  0x6f   : > { %v2126_v24 = vsel %vm646_vm1, %v2123_v28, %v14510_v63  ;;  %v2436_v22 = vsel %vm957_vm2, %v2433_v56, %v14512_v47  ;;  %v1531_v5 = vadd.f32 %v1394_v35, %v1221_v39  ;;  %v797_v23 = vadd.f32 %v659_v50, %v432_v34  ;;  %2696 = vadd.xlane.f32.xlu1 %v2695_v57  ;;  %v8878_v50 = vld [vmem:[%s8213_s11 + $0x78] sm:$0xff] }
  0x70   : > { %v1588_v55 = vmul.f32 %v8246_v19, %v8606_v38  ;;  %v1390_v36 = vrot.slane %v1278_v48, 1  ;;  %v1898_v8 = vmul.f32 %v8250_v20, %v8833_v61  ;;  %v2010_v26 = vmul.f32 %v8254_v21, %v8833_v61 }
  0x71   : > { %v1841_v16 = vadd.f32 %v1704_v2, %v1531_v5  ;;  %v8842_v62 = vadd.f32 %v8412_v43, %v2567_v37  ;;  %v1108_v1 = vadd.f32 %v970_v51, %v797_v23  ;;  %v2320_v29 = vmul.f32 %v8238_v17, %v8833_v61  ;;  %v8883_v23 = vld [vmem:[%s8213_s11 + $0x80] sm:$0xff] }
  0x72   : > { %v1700_v45 = vrot.slane %v1588_v55, 2  ;;  %v1392_v41 = vsel %vm646_vm1, %v1390_v36, %v1391_v9  ;;  %v2122_v35 = vrot.slane %v2010_v26, 1  ;;  %v435_v27 = vmul.f32 %v8217_v11, %v8606_v38 }
  0x73   : > { %14513 = vst [vmem:[#allocation12_spill] sm:$0xff] %v8842_v62  ;;  %v1953_v6 = vadd.f32 %v1899_v25, %v1841_v16  ;;  %v2685_v2 = vsel %vm2681_vm3, %v8842_v62, 0.0  ;;  %v1220_v15 = vadd.f32 %v1166_v33, %v1108_v1  ;;  %v2432_v4 = vrot.slane %v2320_v29, 2 }
  0x74   : > { %v1702_v31 = vsel %vm957_vm2, %v1700_v45, %v1701_v54  ;;  %2686 = vadd.xlane.f32.xlu0 %v2685_v2  ;;  %v2124_v3 = vsel %vm646_vm1, %v2122_v35, %v2123_v28  ;;  %v547_v25 = vmul.f32 %v8221_v12, %v8606_v38  ;;  %v548_v9 = vmul.f32 %v8221_v12, %v8617_v49 }
  0x75   : > { %v2263_v58 = vadd.f32 %v2126_v24, %v1953_v6  ;;  %v1530_v34 = vadd.f32 %v1392_v41, %v1220_v15  ;;  %v2434_v30 = vsel %vm957_vm2, %v2432_v4, %v2433_v56  ;;  %v858_v40 = vmul.f32 %v8225_v13, %v8606_v38 }
  0x76   : > { %v859_v54 = vmul.f32 %v8225_v13, %v8617_v49  ;;  %v662_v60 = vrot.slane %v547_v25, 1  ;;  %v663_v39 = vrot.slane %v548_v9, 1  ;;  %v1169_v28 = vmul.f32 %v8229_v14, %v8833_v61  ;;  %v14516_v25 = vld [vmem:[#allocation6_spill] sm:$0xff] }
  0x77   : > { %v2573_v52 = vadd.f32 %v2436_v22, %v2263_v58  ;;  %v1840_v42 = vadd.f32 %v1702_v31, %v1530_v34  ;;  %v973_v59 = vrot.slane %v858_v40, 2  ;;  %v1281_v32 = vmul.f32 %v8242_v18, %v8833_v61 }
  0x78   : > { %v974_v33 = vrot.slane %v859_v54, 2  ;;  %v664_v38 = vsel %vm646_vm1, %v662_v60, %v663_v39  ;;  %v1282_v46 = vmul.f32 %v8242_v18, %v8783_v7  ;;  %v1591_v63 = vmul.f32 %v8246_v19, %v8833_v61  ;;  %v14518_v54 = vld [vmem:[#allocation7_spill] sm:$0xff] }
  0x79   : > { %v8867_v56 = vadd.f32 %v8412_v43, %v2573_v52  ;;  %v1952_v24 = vadd.f32 %v1898_v8, %v1840_v42  ;;  %v800_v44 = vadd.f32 %v664_v38, %v435_v27  ;;  %v1395_v22 = vrot.slane %v1281_v32, 1  ;;  %v14520_v32 = vld [vmem:[#allocation8_spill] sm:$0xff] }
  0x7a   : > { %v975_v47 = vsel %vm957_vm2, %v973_v59, %v974_v33  ;;  %v1396_v51 = vrot.slane %v1282_v46, 1  ;;  %v1592_v48 = vmul.f32 %v8246_v19, %v8783_v7  ;;  %v1705_v57 = vrot.slane %v1591_v63, 2  ;;  %v14522_v63 = vld [vmem:[#allocation9_spill] sm:$0xff] }
  0x7b   : > { %14514 = vst [vmem:[#allocation13_spill] sm:$0xff] %v8867_v56  ;;  %v2704_v5 = vsel %vm2681_vm3, %v8867_v56, 0.0  ;;  %v2262_v37 = vadd.f32 %v2124_v3, %v1952_v24  ;;  %v1111_v55 = vadd.f32 %v975_v47, %v800_v44  ;;  %v1901_v16 = vmul.f32 %v8250_v20, %v8878_v50  ;;  %v14524_v47 = vld [vmem:[#allocation10_spill] sm:$0xff] }
  0x7c   : > { %2705 = vadd.xlane.f32.xlu1 %v2704_v5  ;;  %v2013_v36 = vmul.f32 %v8254_v21, %v8878_v50  ;;  %v1397_v8 = vsel %vm646_vm1, %v1395_v22, %v1396_v51  ;;  %v1706_v26 = vrot.slane %v1592_v48, 2  ;;  %v2014_v1 = vmul.f32 %v8254_v21, %v8883_v23 }
  0x7d   : > { %v2323_v45 = vmul.f32 %v8238_v17, %v8878_v50  ;;  %v2572_v29 = vadd.f32 %v2434_v30, %v2262_v37  ;;  %v1223_v6 = vadd.f32 %v1169_v28, %v1111_v55  ;;  %v2324_v35 = vmul.f32 %v8238_v17, %v8883_v23 }
  0x7e   : > { %v2127_v41 = vrot.slane %v2013_v36, 1  ;;  %v1707_v27 = vsel %vm957_vm2, %v1705_v57, %v1706_v26  ;;  %v2128_v2 = vrot.slane %v2014_v1, 1  ;;  %v436_v31 = vmul.f32 %v8217_v11, %v8617_v49  ;;  %v14526_v57 = vld [vmem:[#allocation11_spill] sm:$0xff] }
  0x7f   : > { %v2437_v15 = vrot.slane %v2323_v45, 2  ;;  %v8900_v4 = vadd.f32 %v8412_v43, %v2572_v29  ;;  %v1533_v58 = vadd.f32 %v1397_v8, %v1223_v6  ;;  %v2438_v3 = vrot.slane %v2324_v35, 2 }
  0x80   : > { %v14517_v9 = vrot.slane %v14516_v25, 1  ;;  %v2129_v30 = vsel %vm646_vm1, %v2127_v41, %v2128_v2  ;;  %v14519_v52 = vrot.slane %v14518_v54, 2  ;;  %v1170_v49 = vmul.f32 %v8229_v14, %v8783_v7  ;;  %v14530_v54 = vld [vmem:[#allocation26_spill] sm:$0xff] }
  0x81   : > { %14515 = vst [vmem:[#allocation36_spill] sm:$0xff] %v8900_v4  ;;  %v2701_v28 = vsel %vm2681_vm3, %v8900_v4, 0.0  ;;  %v1843_v42 = vadd.f32 %v1707_v27, %v1533_v58  ;;  %v2439_v59 = vsel %vm957_vm2, %v2437_v15, %v2438_v3  ;;  %v14521_v38 = vrot.slane %v14520_v32, 1  ;;  %v14528_v58 = vld [vmem:[#allocation24_spill] sm:$0xff] }
  0x82   : > { %v666_v34 = vsel %vm646_vm1, %v663_v39, %v14517_v9  ;;  %v977_v60 = vsel %vm957_vm2, %v974_v33, %v14519_v52  ;;  %2702 = vadd.xlane.f32.xlu0 %v2701_v28  ;;  %v14523_v24 = vrot.slane %v14522_v63, 2  ;;  %v1902_v44 = vmul.f32 %v8250_v20, %v8883_v23  ;;  %v14535_v32 = vld [vmem:[#allocation28_spill] sm:$0xff] }
  0x83   : > { %v801_v40 = vadd.f32 %v666_v34, %v436_v31  ;;  %v1399_v39 = vsel %vm646_vm1, %v1396_v51, %v14521_v38  ;;  %v14525_v22 = vrot.slane %v14524_v47, 1  ;;  %v1955_v48 = vadd.f32 %v1901_v16, %v1843_v42 }
  0x84   : > { %v1709_v33 = vsel %vm957_vm2, %v1706_v26, %v14523_v24  ;;  %v14527_v37 = vrot.slane %v14526_v57, 2  ;;  %v439_v51 = vmul.f32 %v8217_v11, %v8783_v7  ;;  %v551_v36 = vmul.f32 %v8221_v12, %v8783_v7  ;;  %v8933_v26 = vld [vmem:[%s8213_s11 + $0x98] sm:$0xff]  ;;  %v14537_v57 = vld [vmem:[#allocation29_spill] sm:$0xff] }
  0x85   : > { %v1112_v46 = vadd.f32 %v977_v60, %v801_v40  ;;  %v2131_v5 = vsel %vm646_vm1, %v2128_v2, %v14525_v22  ;;  %v862_v1 = vmul.f32 %v8225_v13, %v8783_v7  ;;  %v1173_v45 = vmul.f32 %v8229_v14, %v8883_v23 }
  0x86   : > { %v2441_v55 = vsel %vm957_vm2, %v2438_v3, %v14527_v37  ;;  %v1285_v16 = vmul.f32 %v8242_v18, %v8883_v23  ;;  %v2265_v29 = vadd.f32 %v2129_v30, %v1955_v48  ;;  %v668_v6 = vrot.slane %v551_v36, 1  ;;  %v14539_v36 = vld [vmem:[#allocation30_spill] sm:$0xff] }
  0x87   : > { %v1224_v8 = vadd.f32 %v1170_v49, %v1112_v46  ;;  %v1595_v41 = vmul.f32 %v8246_v19, %v8883_v23  ;;  %v1905_v35 = vmul.f32 %v8250_v20, %v8933_v26  ;;  %v979_v2 = vrot.slane %v862_v1, 2  ;;  %v14532_v49 = vld [vmem:[#allocation27_spill] sm:$0xff] }
  0x88   : > { %v1401_v15 = vrot.slane %v1285_v16, 1  ;;  %v2017_v7 = vmul.f32 %v8254_v21, %v8933_v26  ;;  %v2575_v31 = vadd.f32 %v2439_v59, %v2265_v29  ;;  %v14529_v3 = vrot.slane %v14528_v58, 1 }
  0x89   : > { %v1534_v27 = vadd.f32 %v1399_v39, %v1224_v8  ;;  %v1711_v9 = vrot.slane %v1595_v41, 2  ;;  %v2327_v34 = vmul.f32 %v8238_v17, %v8933_v26  ;;  %v14531_v52 = vrot.slane %v14530_v54, 2  ;;  %v8979_v41 = vld [vmem:[%s8213_s11 + $0x90] sm:$0xff] }
  0x8a   : > { %v671_v25 = vsel %vm646_vm1, %v668_v6, %v14529_v3  ;;  %v14533_v28 = vrot.slane %v14532_v49, 1  ;;  %v8959_v59 = vadd.f32 %v8412_v43, %v2575_v31  ;;  %v14536_v38 = vrot.slane %v14535_v32, 2 }
  0x8b   : > { %v1844_v30 = vadd.f32 %v1709_v33, %v1534_v27  ;;  %v804_v40 = vadd.f32 %v671_v25, %v439_v51  ;;  %v982_v60 = vsel %vm957_vm2, %v979_v2, %v14531_v52  ;;  %v2133_v46 = vrot.slane %v2017_v7, 1 }
  0x8c   : > { %v1404_v42 = vsel %vm646_vm1, %v1401_v15, %v14533_v28  ;;  %14534 = vst [vmem:[#allocation6_spill] sm:$0xff] %v8959_v59  ;;  %v1714_v39 = vsel %vm957_vm2, %v1711_v9, %v14536_v38  ;;  %v2443_v63 = vrot.slane %v2327_v34, 2  ;;  %v438_v47 = vmul.f32 %v8217_v11, %v8833_v61 }
  0x8d   : > { %v1956_v24 = vadd.f32 %v1902_v44, %v1844_v30  ;;  %v1115_v33 = vadd.f32 %v982_v60, %v804_v40  ;;  %v550_v22 = vmul.f32 %v8221_v12, %v8833_v61  ;;  %v2710_v48 = vsel %vm2681_vm3, %v8959_v59, 0.0 }
  0x8e   : > { %v14538_v37 = vrot.slane %v14537_v57, 1  ;;  %v14540_v8 = vrot.slane %v14539_v36, 2  ;;  %v861_v44 = vmul.f32 %v8225_v13, %v8833_v61  ;;  %2711 = vadd.xlane.f32.xlu1 %v2710_v48  ;;  %v1172_v7 = vmul.f32 %v8229_v14, %v8878_v50 }
  0x8f   : > { %v2266_v16 = vadd.f32 %v2131_v5, %v1956_v24  ;;  %v1227_v29 = vadd.f32 %v1173_v45, %v1115_v33  ;;  %v667_v27 = vrot.slane %v550_v22, 1  ;;  %v1284_v58 = vmul.f32 %v8242_v18, %v8878_v50 }
  0x90   : > { %v2136_v51 = vsel %vm646_vm1, %v2133_v46, %v14538_v37  ;;  %v2446_v1 = vsel %vm957_vm2, %v2443_v63, %v14540_v8  ;;  %v978_v31 = vrot.slane %v861_v44, 2  ;;  %v1594_v3 = vmul.f32 %v8246_v19, %v8878_v50 }
  0x91   : > { %v1904_v25 = vmul.f32 %v8250_v20, %v8979_v41  ;;  %v2576_v61 = vadd.f32 %v2441_v55, %v2266_v16  ;;  %v1537_v34 = vadd.f32 %v1404_v42, %v1227_v29  ;;  %v669_v5 = vsel %vm646_vm1, %v667_v27, %v668_v6 }
  0x92   : > { %v2016_v45 = vmul.f32 %v8254_v21, %v8979_v41  ;;  %v803_v30 = vadd.f32 %v669_v5, %v438_v47  ;;  %v980_v40 = vsel %vm957_vm2, %v978_v31, %v979_v2  ;;  %v1400_v54 = vrot.slane %v1284_v58, 1 }
  0x93   : > { %v1710_v52 = vrot.slane %v1594_v3, 2  ;;  %v8994_v60 = vadd.f32 %v8412_v43, %v2576_v61  ;;  %v1847_v49 = vadd.f32 %v1714_v39, %v1537_v34  ;;  %v2326_v32 = vmul.f32 %v8238_v17, %v8979_v41  ;;  %v9030_v34 = vld [vmem:[%s8213_s11 + $0xa8] sm:$0xff] }
  0x94   : > { %v2132_v28 = vrot.slane %v2016_v45, 1  ;;  %v1114_v55 = vadd.f32 %v980_v40, %v803_v30  ;;  %v1402_v42 = vsel %vm646_vm1, %v1400_v54, %v1401_v15  ;;  %v441_v38 = vmul.f32 %v8217_v11, %v8878_v50  ;;  %v9035_v54 = vld [vmem:[%s8213_s11 + $0xb0] sm:$0xff] }
  0x95   : > { %14541 = vst [vmem:[#allocation7_spill] sm:$0xff] %v8994_v60  ;;  %v1712_v6 = vsel %vm957_vm2, %v1710_v52, %v1711_v9  ;;  %v2713_v2 = vsel %vm2681_vm3, %v8994_v60, 0.0  ;;  %v1959_v24 = vadd.f32 %v1905_v35, %v1847_v49  ;;  %v2442_v47 = vrot.slane %v2326_v32, 2 }
  0x96   : > { %v2134_v33 = vsel %vm646_vm1, %v2132_v28, %v2133_v46  ;;  %2714 = vadd.xlane.f32.xlu0 %v2713_v2  ;;  %v1226_v39 = vadd.f32 %v1172_v7, %v1114_v55  ;;  %v553_v17 = vmul.f32 %v8221_v12, %v8878_v50  ;;  %v554_v15 = vmul.f32 %v8221_v12, %v8883_v23  ;;  %v9048_v2 = vld [vmem:[%s14097_s1 + $0x8] ss:$0 sm:$0xff] }
  0x97   : > { %v864_v9 = vmul.f32 %v8225_v13, %v8878_v50  ;;  %v2269_v22 = vadd.f32 %v2136_v51, %v1959_v24  ;;  %v2444_v48 = vsel %vm957_vm2, %v2442_v47, %v2443_v63  ;;  %v865_v35 = vmul.f32 %v8225_v13, %v8883_v23 }
  0x98   : > { %v1175_v46 = vmul.f32 %v8229_v14, %v8979_v41  ;;  %v1536_v57 = vadd.f32 %v1402_v42, %v1226_v39  ;;  %v672_v37 = vrot.slane %v553_v17, 1  ;;  %v673_v36 = vrot.slane %v554_v15, 1  ;;  %v14543_v15 = vld [vmem:[#allocation16_spill] sm:$0xff] }
  0x99   : > { %v983_v8 = vrot.slane %v864_v9, 2  ;;  %v2579_v44 = vadd.f32 %v2446_v1, %v2269_v22  ;;  %v984_v16 = vrot.slane %v865_v35, 2  ;;  %v1287_v29 = vmul.f32 %v8242_v18, %v8979_v41 }
  0x9a   : > { %v1288_v50 = vmul.f32 %v8242_v18, %v8933_v26  ;;  %v1846_v63 = vadd.f32 %v1712_v6, %v1536_v57  ;;  %v674_v51 = vsel %vm646_vm1, %v672_v37, %v673_v36  ;;  %v1597_v27 = vmul.f32 %v8246_v19, %v8979_v41  ;;  %v14545_v37 = vld [vmem:[#allocation18_spill] sm:$0xff] }
  0x9b   : > { %v1598_v7 = vmul.f32 %v8246_v19, %v8933_v26  ;;  %v9026_v31 = vadd.f32 %v8412_v43, %v2579_v44  ;;  %v806_v1 = vadd.f32 %v674_v51, %v441_v38  ;;  %v985_v58 = vsel %vm957_vm2, %v983_v8, %v984_v16 }
  0x9c   : > { %v1405_v3 = vrot.slane %v1287_v29, 1  ;;  %v1958_v61 = vadd.f32 %v1904_v25, %v1846_v63  ;;  %v1406_v5 = vrot.slane %v1288_v50, 1  ;;  %v1715_v45 = vrot.slane %v1597_v27, 2 }
  0x9d   : > { %14542 = vst [vmem:[#allocation8_spill] sm:$0xff] %v9026_v31  ;;  %v1716_v30 = vrot.slane %v1598_v7, 2  ;;  %v2722_v40 = vsel %vm2681_vm3, %v9026_v31, 0.0  ;;  %v1117_v52 = vadd.f32 %v985_v58, %v806_v1  ;;  %v1907_v49 = vmul.f32 %v8250_v20, %v9030_v34  ;;  %v14550_v1 = vld [vmem:[#allocation21_spill] sm:$0xff] }
  0x9e   : > { %v2019_v28 = vmul.f32 %v8254_v21, %v9030_v34  ;;  %2723 = vadd.xlane.f32.xlu1 %v2722_v40  ;;  %v2268_v32 = vadd.f32 %v2134_v33, %v1958_v61  ;;  %v1407_v25 = vsel %vm646_vm1, %v1405_v3, %v1406_v5  ;;  %v2020_v42 = vmul.f32 %v8254_v21, %v9035_v54  ;;  %v14552_v40 = vld [vmem:[#allocation22_spill] sm:$0xff] }
  0x9f   : > { %v1717_v55 = vsel %vm957_vm2, %v1715_v45, %v1716_v30  ;;  %v1229_v6 = vadd.f32 %v1175_v46, %v1117_v52  ;;  %v2329_v24 = vmul.f32 %v9048_v2, %v9030_v34  ;;  %v2330_v33 = vmul.f32 %v9048_v2, %v9035_v54 }
  0xa0   : > { %v2137_v38 = vrot.slane %v2019_v28, 1  ;;  %v2578_v47 = vadd.f32 %v2444_v48, %v2268_v32  ;;  %v2138_v39 = vrot.slane %v2020_v42, 1  ;;  %v442_v17 = vmul.f32 %v8217_v11, %v8883_v23 }
  0xa1   : > { %v14544_v9 = vrot.slane %v14543_v15, 1  ;;  %v1539_v35 = vadd.f32 %v1407_v25, %v1229_v6  ;;  %v2447_v46 = vrot.slane %v2329_v24, 2  ;;  %v2448_v57 = vrot.slane %v2330_v33, 2  ;;  %v14554_v25 = vld [vmem:[#allocation23_spill] sm:$0xff] }
  0xa2   : > { %v14546_v8 = vrot.slane %v14545_v37, 2  ;;  %v9063_v29 = vadd.f32 %v8412_v43, %v2578_v47  ;;  %v2139_v48 = vsel %vm646_vm1, %v2137_v38, %v2138_v39  ;;  %v1176_v23 = vmul.f32 %v8229_v14, %v8933_v26  ;;  %v14556_v38 = vld [vmem:[#allocation14_spill] sm:$0xff] }
  0xa3   : > { %v676_v22 = vsel %vm646_vm1, %v673_v36, %v14544_v9  ;;  %v1849_v63 = vadd.f32 %v1717_v55, %v1539_v35  ;;  %v2449_v51 = vsel %vm957_vm2, %v2447_v46, %v2448_v57  ;;  %v14548_v36 = vld [vmem:[#allocation20_spill] sm:$0xff]  ;;  %v14551_v58 = vrot.slane %v14550_v1, 2 }
  0xa4   : > { %v987_v44 = vsel %vm957_vm2, %v984_v16, %v14546_v8  ;;  %14547 = vst [vmem:[#allocation9_spill] sm:$0xff] %v9063_v29  ;;  %v807_v50 = vadd.f32 %v676_v22, %v442_v17  ;;  %v14549_v27 = vrot.slane %v14548_v36, 1  ;;  %v2719_v3 = vsel %vm2681_vm3, %v9063_v29, 0.0 }
  0xa5   : > { %v1719_v16 = vsel %vm957_vm2, %v1716_v30, %v14551_v58  ;;  %v1908_v45 = vmul.f32 %v8250_v20, %v9035_v54  ;;  %v14553_v52 = vrot.slane %v14552_v40, 1  ;;  %2720 = vadd.xlane.f32.xlu0 %v2719_v3  ;;  %v1961_v32 = vadd.f32 %v1907_v49, %v1849_v63 }
  0xa6   : > { %v1409_v7 = vsel %vm646_vm1, %v1406_v5, %v14549_v27  ;;  %v1118_v61 = vadd.f32 %v987_v44, %v807_v50  ;;  %v14555_v55 = vrot.slane %v14554_v25, 2  ;;  %v445_v30 = vmul.f32 %v8217_v11, %v8933_v26  ;;  %v9123_v50 = vld [vmem:[%s8213_s11 + $0xd0] sm:$0xf]  ;;  %v9139_v27 = vld [vmem:[%s8213_s11 + $0xc8] sm:$0xff] }
  0xa7   : > { %v2141_v28 = vsel %vm646_vm1, %v2138_v39, %v14553_v52  ;;  %v9089_v42 = vmul.f32 %v8221_v12, %v8933_v26  ;;  %v9093_v24 = vmul.f32 %v8221_v12, %v14556_v38  ;;  %v9097_v49 = vmul.f32 %v8225_v13, %v8933_v26 }
  0xa8   : > { %v2451_v5 = vsel %vm957_vm2, %v2448_v57, %v14555_v55  ;;  %v1230_v6 = vadd.f32 %v1176_v23, %v1118_v61  ;;  %v9101_v33 = vmul.f32 %v8225_v13, %v14556_v38  ;;  %v2271_v47 = vadd.f32 %v2139_v48, %v1961_v32  ;;  %v14557_v57 = vld [vmem:[#allocation17_spill] sm:$0xff] }
  0xa9   : > { %v678_v39 = vrot.slane %v9089_v42, 1  ;;  %v1179_v17 = vmul.f32 %v8229_v14, %v9035_v54  ;;  %v9108_v15 = vmul.f32 %v8242_v18, %v9035_v54  ;;  %v680_v22 = vrot.slane %v9093_v24, 1 }
  0xaa   : > { %v1540_v9 = vadd.f32 %v1409_v7, %v1230_v6  ;;  %v989_v26 = vrot.slane %v9097_v49, 2  ;;  %v14186_v35 = vrot.slane %v9101_v33, 2  ;;  %v2581_v46 = vadd.f32 %v2449_v51, %v2271_v47 }
  0xab   : > { %v9115_v37 = vmul.f32 %v8242_v18, %v14557_v57  ;;  %v1411_v8 = vrot.slane %v9108_v15, 1  ;;  %v9120_v44 = vmul.f32 %v8246_v19, %v9035_v54  ;;  %v681_v23 = vsel %vm646_vm1, %v678_v39, %v680_v22 }
  0xac   : > { %v1850_v48 = vadd.f32 %v1719_v16, %v1540_v9  ;;  %v992_v63 = vsel %vm957_vm2, %v989_v26, %v14186_v35  ;;  %v9133_v51 = vmul.f32 %v8246_v19, %v14557_v57  ;;  %v9136_v36 = vadd.f32 %v8412_v43, %v2581_v46 }
  0xad   : > { %v810_v7 = vadd.f32 %v681_v23, %v445_v30  ;;  %v14185_v1 = vrot.slane %v9115_v37, 1  ;;  %v1721_v58 = vrot.slane %v9120_v44, 2  ;;  %v1911_v61 = vmul.f32 %v8250_v20, %v9139_v27 }
  0xae   : > { %14558 = vst [vmem:[#allocation10_spill] sm:$0xff] %v9136_v36  ;;  %v1962_v16 = vadd.f32 %v1908_v45, %v1850_v48  ;;  %v14180_v3 = vrot.slane %v9133_v51, 2  ;;  %v2023_v40 = vmul.f32 %v8254_v21, %v9139_v27  ;;  %v2728_v43 = vsel %vm2681_vm3, %v9136_v36, 0.0 }
  0xaf   : > { %v1121_v52 = vadd.f32 %v992_v63, %v810_v7  ;;  %v1414_v32 = vsel %vm646_vm1, %v1411_v8, %v14185_v1  ;;  %v9155_v25 = vmul.f32 %v8254_v21, %v9123_v50  ;;  %2729 = vadd.xlane.f32.xlu1 %v2728_v43  ;;  %v2333_v42 = vmul.f32 %v9048_v2, %v9139_v27  ;;  %v9188_v63 = vld [vmem:[%s8213_s11 + $0xc0] sm:$0xff] }
  0xb0   : > { %v2272_v45 = vadd.f32 %v2141_v28, %v1962_v16  ;;  %v1724_v55 = vsel %vm957_vm2, %v1721_v58, %v14180_v3  ;;  %v2143_v30 = vrot.slane %v2023_v40, 1  ;;  %v9165_v49 = vmul.f32 %v9048_v2, %v9123_v50 }
  0xb1   : > { %v1233_v6 = vadd.f32 %v1179_v17, %v1121_v52  ;;  %v14179_v38 = vrot.slane %v9155_v25, 1  ;;  %v444_v47 = vmul.f32 %v8217_v11, %v8979_v41  ;;  %v2453_v15 = vrot.slane %v2333_v42, 2 }
  0xb2   : > { %v2582_v28 = vadd.f32 %v2451_v5, %v2272_v45  ;;  %v556_v9 = vmul.f32 %v8221_v12, %v8979_v41  ;;  %v867_v46 = vmul.f32 %v8225_v13, %v8979_v41  ;;  %v14178_v44 = vrot.slane %v9165_v49, 2  ;;  %v9182_v5 = vld [vmem:[%s14098_s2] ss:$0 sm:$0xff] }
  0xb3   : > { %v1543_v57 = vadd.f32 %v1414_v32, %v1233_v6  ;;  %v2146_v17 = vsel %vm646_vm1, %v2143_v30, %v14179_v38  ;;  %v1178_v48 = vmul.f32 %v8229_v14, %v9030_v34  ;;  %v1290_v16 = vmul.f32 %v8242_v18, %v9030_v34 }
  0xb4   : > { %v9185_v23 = vadd.f32 %v9182_v5, %v2582_v28  ;;  %v677_v41 = vrot.slane %v556_v9, 1  ;;  %v988_v7 = vrot.slane %v867_v46, 2  ;;  %v2456_v43 = vsel %vm957_vm2, %v2453_v15, %v14178_v44 }
  0xb5   : > { %v1853_v40 = vadd.f32 %v1724_v55, %v1543_v57  ;;  %v1600_v52 = vmul.f32 %v8246_v19, %v9030_v34  ;;  %v1910_v32 = vmul.f32 %v8250_v20, %v9188_v63  ;;  %v1410_v28 = vrot.slane %v1290_v16, 1 }
  0xb6   : > { %14559 = vst [vmem:[#allocation11_spill] sm:$0xff] %v9185_v23  ;;  %v2731_v45 = vsel %vm2681_vm3, %v9185_v23, 0.0  ;;  %v679_v42 = vsel %vm646_vm1, %v677_v41, %v678_v39  ;;  %v990_v6 = vsel %vm957_vm2, %v988_v7, %v989_v26  ;;  %v2022_v57 = vmul.f32 %v8254_v21, %v9188_v63 }
  0xb7   : > { %2732 = vadd.xlane.f32.xlu0 %v2731_v45  ;;  %v1965_v55 = vadd.f32 %v1911_v61, %v1853_v40  ;;  %v809_v9 = vadd.f32 %v679_v42, %v444_v47  ;;  %v1720_v46 = vrot.slane %v1600_v52, 2  ;;  %v1412_v44 = vsel %vm646_vm1, %v1410_v28, %v1411_v8 }
  0xb8   : > { %v2332_v38 = vmul.f32 %v9048_v2, %v9188_v63  ;;  %v447_v3 = vmul.f32 %v8217_v11, %v9030_v34  ;;  %v559_v39 = vmul.f32 %v8221_v12, %v9030_v34  ;;  %v2142_v47 = vrot.slane %v2022_v57, 1 }
  0xb9   : > { %v2275_v26 = vadd.f32 %v2146_v17, %v1965_v55  ;;  %v1120_v41 = vadd.f32 %v990_v6, %v809_v9  ;;  %v1722_v61 = vsel %vm957_vm2, %v1720_v46, %v1721_v58  ;;  %v9215_v16 = vmul.f32 %v8221_v12, %v9035_v54 }
  0xba   : > { %v2452_v7 = vrot.slane %v2332_v38, 2  ;;  %v682_v8 = vrot.slane %v559_v39, 1  ;;  %v870_v40 = vmul.f32 %v8225_v13, %v9030_v34  ;;  %v2144_v42 = vsel %vm646_vm1, %v2142_v47, %v2143_v30 }
  0xbb   : > { %v2585_v52 = vadd.f32 %v2456_v43, %v2275_v26  ;;  %v1232_v45 = vadd.f32 %v1178_v48, %v1120_v41  ;;  %v9222_v17 = vmul.f32 %v8225_v13, %v9035_v54  ;;  %v14181_v38 = vrot.slane %v9215_v16, 1  ;;  %v9235_v43 = vld [vmem:[%s8213_s11 + $0xd8] sm:$0xff]  ;;  %v9253_v26 = vld [vmem:[%s8213_s11 + $0xe0] sm:$0xff] }
  0xbc   : > { %v2454_v58 = vsel %vm957_vm2, %v2452_v7, %v2453_v15  ;;  %v993_v6 = vrot.slane %v870_v40, 2  ;;  %v1181_v28 = vmul.f32 %v8229_v14, %v9188_v63  ;;  %v1293_v30 = vmul.f32 %v8242_v18, %v9188_v63 }
  0xbd   : > { %v9229_v55 = vadd.f32 %v9182_v5, %v2585_v52  ;;  %v1542_v34 = vadd.f32 %v1412_v44, %v1232_v45  ;;  %v14184_v48 = vrot.slane %v9222_v17, 2  ;;  %v684_v15 = vsel %vm646_vm1, %v682_v8, %v14181_v38 }
  0xbe   : > { %v9242_v9 = vmul.f32 %v8242_v18, %v9139_v27  ;;  %v1603_v46 = vmul.f32 %v8246_v19, %v9188_v63  ;;  %v9248_v44 = vmul.f32 %v8246_v19, %v9139_v27  ;;  %v812_v41 = vadd.f32 %v684_v15, %v447_v3 }
  0xbf   : > { %14560 = vst [vmem:[#allocation24_spill] sm:$0xff] %v9229_v55  ;;  %v2740_v57 = vsel %vm2681_vm3, %v9229_v55, 0.0  ;;  %v1852_v39 = vadd.f32 %v1722_v61, %v1542_v34  ;;  %v995_v47 = vsel %vm957_vm2, %v993_v6, %v14184_v48  ;;  %v1415_v7 = vrot.slane %v1293_v30, 1 }
  0xc0   : > { %2741 = vadd.xlane.f32.xlu1 %v2740_v57  ;;  %v14183_v8 = vrot.slane %v9242_v9, 1  ;;  %v1725_v40 = vrot.slane %v1603_v46, 2  ;;  %v14182_v52 = vrot.slane %v9248_v44, 2  ;;  %v1123_v38 = vadd.f32 %v995_v47, %v812_v41 }
  0xc1   : > { %v1964_v45 = vadd.f32 %v1910_v32, %v1852_v39  ;;  %v1913_v61 = vmul.f32 %v8250_v20, %v9235_v43  ;;  %v2025_v3 = vmul.f32 %v8254_v21, %v9235_v43  ;;  %v9272_v30 = vmul.f32 %v8254_v21, %v9253_v26 }
  0xc2   : > { %v1417_v6 = vsel %vm646_vm1, %v1415_v7, %v14183_v8  ;;  %v1727_v34 = vsel %vm957_vm2, %v1725_v40, %v14182_v52  ;;  %v2335_v32 = vmul.f32 %v9048_v2, %v9235_v43  ;;  %v1235_v46 = vadd.f32 %v1181_v28, %v1123_v38  ;;  %v8011_v7 = vld [vmem:[%s8213_s11 + $0xa0] sm:$0xf]  ;;  %v8012_v52 = vld [vmem:[%s8213_s11 + $0xb8] sm:$0xf] }
  0xc3   : > { %v2274_v15 = vadd.f32 %v2144_v42, %v1964_v45  ;;  %v2147_v57 = vrot.slane %v2025_v3, 1  ;;  %v2336_v39 = vmul.f32 %v9048_v2, %v9253_v26  ;;  %v2148_v41 = vrot.slane %v9272_v30, 1 }
  0xc4   : > { %v2457_v47 = vrot.slane %v2335_v32, 2  ;;  %v446_v40 = vmul.f32 %v8011_v7, %v8217_v11  ;;  %v1180_v8 = vmul.f32 %v8012_v52, %v8229_v14  ;;  %v1545_v1 = vadd.f32 %v1417_v6, %v1235_v46  ;;  %v9295_v6 = vld [vmem:[%s8213_s11 + $0xe8] sm:$0xf] }
  0xc5   : > { %v2584_v48 = vadd.f32 %v2454_v58, %v2274_v15  ;;  %v2458_v35 = vrot.slane %v2336_v39, 2  ;;  %v1912_v42 = vmul.f32 %v8250_v20, %v9123_v50  ;;  %v2149_v38 = vsel %vm646_vm1, %v2147_v57, %v2148_v41 }
  0xc6   : > { %v811_v28 = vadd.f32 %v680_v22, %v446_v40  ;;  %v449_v45 = vmul.f32 %v8012_v52, %v8217_v11  ;;  %v561_v3 = vmul.f32 %v8012_v52, %v8221_v12  ;;  %v1855_v32 = vadd.f32 %v1727_v34, %v1545_v1 }
  0xc7   : > { %v9291_v30 = vadd.f32 %v9182_v5, %v2584_v48  ;;  %v2459_v58 = vsel %vm957_vm2, %v2457_v47, %v2458_v35  ;;  %v872_v15 = vmul.f32 %v8012_v52, %v8225_v13  ;;  %v14562_v46 = vrot.slane %v9101_v33, 2 }
  0xc8   : > { %v685_v39 = vrot.slane %v561_v3, 1  ;;  %v1183_v24 = vmul.f32 %v8229_v14, %v9123_v50  ;;  %v1295_v22 = vmul.f32 %v8242_v18, %v9123_v50  ;;  %v1967_v1 = vadd.f32 %v1913_v61, %v1855_v32 }
  0xc9   : > { %14561 = vst [vmem:[#allocation26_spill] sm:$0xff] %v9291_v30  ;;  %v1122_v57 = vadd.f32 %v14562_v46, %v811_v28  ;;  %v2737_v48 = vsel %vm2681_vm3, %v9291_v30, 0.0  ;;  %v996_v34 = vrot.slane %v872_v15, 2  ;;  %v1605_v47 = vmul.f32 %v8246_v19, %v9123_v50 }
  0xca   : > { %2738 = vadd.xlane.f32.xlu0 %v2737_v48  ;;  %v814_v7 = vadd.f32 %v685_v39, %v449_v45  ;;  %v1418_v33 = vrot.slane %v1295_v22, 1  ;;  %v1915_v40 = vmul.f32 %v8250_v20, %v9295_v6  ;;  %v2277_v28 = vadd.f32 %v2149_v38, %v1967_v1 }
  0xcb   : > { %v1234_v52 = vadd.f32 %v1180_v8, %v1122_v57  ;;  %v1728_v3 = vrot.slane %v1605_v47, 2  ;;  %v2027_v46 = vmul.f32 %v8254_v21, %v9295_v6  ;;  %v2337_v55 = vmul.f32 %v9048_v2, %v9295_v6 }
  0xcc   : > { %v14563_v61 = vrot.slane %v9115_v37, 1  ;;  %v1125_v15 = vadd.f32 %v996_v34, %v814_v7  ;;  %v448_v8 = vmul.f32 %v8217_v11, %v9035_v54  ;;  %v14564_v45 = vrot.slane %v9215_v16, 1 }
  0xcd   : > { %v2587_v22 = vadd.f32 %v2459_v58, %v2277_v28  ;;  %v2150_v38 = vrot.slane %v2027_v46, 1  ;;  %v2460_v48 = vrot.slane %v2337_v55, 2  ;;  %v14565_v1 = vrot.slane %v9222_v17, 2 }
  0xce   : > { %v1544_v32 = vadd.f32 %v14563_v61, %v1234_v52  ;;  %v686_v57 = vsel %vm646_vm1, %v14564_v45, %v685_v39  ;;  %v14566_v36 = vrot.slane %v9133_v51, 2  ;;  %v1237_v37 = vadd.f32 %v1183_v24, %v1125_v15 }
  0xcf   : > { %v997_v47 = vsel %vm957_vm2, %v14565_v1, %v996_v34  ;;  %v813_v52 = vadd.f32 %v686_v57, %v448_v8  ;;  %v1182_v7 = vmul.f32 %v8229_v14, %v9139_v27  ;;  %v9329_v54 = vadd.f32 %v9182_v5, %v2587_v22 }
  0xd0   : > { %v1854_v30 = vadd.f32 %v14566_v36, %v1544_v32  ;;  %v14568_v16 = vrot.slane %v9242_v9, 1  ;;  %v14569_v55 = vrot.slane %v9248_v44, 2  ;;  %v1914_v51 = vmul.f32 %v8250_v20, %v9253_v26 }
  0xd1   : > { %14567 = vst [vmem:[#allocation27_spill] sm:$0xff] %v9329_v54  ;;  %v1547_v39 = vadd.f32 %v1418_v33, %v1237_v37  ;;  %v1124_v24 = vadd.f32 %v997_v47, %v813_v52  ;;  %v2151_v34 = vsel %vm646_vm1, %v2148_v41, %v2150_v38  ;;  %v2746_v28 = vsel %vm2681_vm3, %v9329_v54, 0.0 }
  0xd2   : > { %v1419_v58 = vsel %vm646_vm1, %v14568_v16, %v1418_v33  ;;  %v1729_v17 = vsel %vm957_vm2, %v14569_v55, %v1728_v3  ;;  %v1966_v36 = vadd.f32 %v1912_v42, %v1854_v30  ;;  %v2461_v46 = vsel %vm957_vm2, %v2458_v35, %v2460_v48  ;;  %2747 = vadd.xlane.f32.xlu1 %v2746_v28  ;;  %v9400_v28 = vld [vmem:[%s8213_s11 + $0x100] sm:$0xf] }
  0xd3   : > { %v451_v9 = vmul.f32 %v8217_v11, %v9139_v27  ;;  %v9347_v44 = vmul.f32 %v8221_v12, %v9139_v27  ;;  %v14570_v61 = vrot.slane %v9155_v25, 1  ;;  %v1857_v30 = vadd.f32 %v1728_v3, %v1547_v39 }
  0xd4   : > { %v1236_v33 = vadd.f32 %v1182_v7, %v1124_v24  ;;  %v9353_v41 = vmul.f32 %v8221_v12, %v9123_v50  ;;  %v9358_v35 = vmul.f32 %v8225_v13, %v9139_v27  ;;  %v9362_v15 = vmul.f32 %v8225_v13, %v9123_v50  ;;  %v9397_v24 = vld [vmem:[%s8213_s11 + $0xf8] sm:$0xff] }
  0xd5   : > { %v2276_v42 = vadd.f32 %v14570_v61, %v1966_v36  ;;  %v688_v32 = vrot.slane %v9347_v44, 1  ;;  %v1185_v25 = vmul.f32 %v8229_v14, %v9253_v26  ;;  %v14571_v3 = vrot.slane %v9165_v49, 2 }
  0xd6   : > { %v1969_v45 = vadd.f32 %v1915_v40, %v1857_v30  ;;  %v1546_v57 = vadd.f32 %v1419_v58, %v1236_v33  ;;  %v14195_v22 = vrot.slane %v9353_v41, 1  ;;  %v999_v1 = vrot.slane %v9358_v35, 2 }
  0xd7   : > { %v2586_v8 = vadd.f32 %v14571_v3, %v2276_v42  ;;  %v14193_v27 = vrot.slane %v9362_v15, 2  ;;  %v9373_v47 = vmul.f32 %v8242_v18, %v9253_v26  ;;  %v9377_v37 = vmul.f32 %v8242_v18, %v9295_v6 }
  0xd8   : > { %v2279_v40 = vadd.f32 %v2150_v38, %v1969_v45  ;;  %v1856_v52 = vadd.f32 %v1729_v17, %v1546_v57  ;;  %v691_v7 = vsel %vm646_vm1, %v688_v32, %v14195_v22  ;;  %v9409_v30 = vmul.f32 %v8246_v19, %v9295_v6 }
  0xd9   : > { %v9380_v49 = vadd.f32 %v9182_v5, %v2586_v8  ;;  %v816_v16 = vadd.f32 %v691_v7, %v451_v9  ;;  %v1002_v58 = vsel %vm957_vm2, %v999_v1, %v14193_v27  ;;  %v1421_v55 = vrot.slane %v9373_v47, 1 }
  0xda   : > { %v14192_v36 = vrot.slane %v9377_v37, 1  ;;  %v2589_v17 = vadd.f32 %v2460_v48, %v2279_v40  ;;  %v1968_v39 = vadd.f32 %v1914_v51, %v1856_v52  ;;  %v1607_v9 = vmul.f32 %v8246_v19, %v9253_v26 }
  0xdb   : > { %v2743_v38 = vsel %vm2688_vm0, %v9380_v49, 0.0  ;;  %v1127_v61 = vadd.f32 %v1002_v58, %v816_v16  ;;  %v1917_v48 = vmul.f32 %v8250_v20, %v9397_v24  ;;  %v2029_v8 = vmul.f32 %v8254_v21, %v9397_v24 }
  0xdc   : > { %2744 = vadd.xlane.f32.xlu0 %v2743_v38  ;;  %v1424_v42 = vsel %vm646_vm1, %v1421_v55, %v14192_v36  ;;  %v9414_v51 = vadd.f32 %v9182_v5, %v2589_v17  ;;  %v2278_v33 = vadd.f32 %v2151_v34, %v1968_v39  ;;  %v1731_v3 = vrot.slane %v1607_v9, 2 }
  0xdd   : > { %v1239_v45 = vadd.f32 %v1185_v25, %v1127_v61  ;;  %v14191_v57 = vrot.slane %v9409_v30, 2  ;;  %v9421_v47 = vmul.f32 %v8254_v21, %v9400_v28  ;;  %v2339_v40 = vmul.f32 %v9048_v2, %v9397_v24 }
  0xde   : > { %v2752_v52 = vsel %vm2688_vm0, %v9414_v51, 0.0  ;;  %v2588_v7 = vadd.f32 %v2461_v46, %v2278_v33  ;;  %v2153_v16 = vrot.slane %v2029_v8, 1  ;;  %v9429_v34 = vmul.f32 %v9048_v2, %v9400_v28 }
  0xdf   : > { %2753 = vadd.xlane.f32.xlu1 %v2752_v52  ;;  %v1549_v25 = vadd.f32 %v1424_v42, %v1239_v45  ;;  %v1734_v58 = vsel %vm957_vm2, %v1731_v3, %v14191_v57  ;;  %v14190_v38 = vrot.slane %v9421_v47, 1  ;;  %v2463_v17 = vrot.slane %v2339_v40, 2 }
  0xe0   : > { %v9436_v39 = vadd.f32 %v9182_v5, %v2588_v7  ;;  %v14194_v46 = vrot.slane %v9429_v34, 2  ;;  %v450_v9 = vmul.f32 %v8217_v11, %v9188_v63  ;;  %v562_v61 = vmul.f32 %v8221_v12, %v9188_v63  ;;  %v9456_v7 = vld [vmem:[%s8213_s11 + $0xf0] sm:$0xff] }
  0xe1   : > { %v1859_v33 = vadd.f32 %v1734_v58, %v1549_v25  ;;  %v2156_v42 = vsel %vm646_vm1, %v2153_v16, %v14190_v38  ;;  %v873_v8 = vmul.f32 %v8225_v13, %v9188_v63  ;;  %v1184_v45 = vmul.f32 %v8229_v14, %v9235_v43 }
  0xe2   : > { %14572 = vst [vmem:[#allocation28_spill] sm:$0xff] %v9436_v39  ;;  %v2749_v40 = vsel %vm2681_vm3, %v9436_v39, 0.0  ;;  %v2466_v52 = vsel %vm957_vm2, %v2463_v17, %v14194_v46  ;;  %v687_v25 = vrot.slane %v562_v61, 1  ;;  %v1296_v58 = vmul.f32 %v8242_v18, %v9235_v43 }
  0xe3   : > { %2750 = vadd.xlane.f32.xlu0 %v2749_v40  ;;  %v1971_v38 = vadd.f32 %v1917_v48, %v1859_v33  ;;  %v998_v57 = vrot.slane %v873_v8, 2  ;;  %v1606_v63 = vmul.f32 %v8246_v19, %v9235_v43  ;;  %v1916_v36 = vmul.f32 %v8250_v20, %v9456_v7 }
  0xe4   : > { %v689_v27 = vsel %vm646_vm1, %v687_v25, %v688_v32  ;;  %v1420_v46 = vrot.slane %v1296_v58, 1  ;;  %v2028_v61 = vmul.f32 %v8254_v21, %v9456_v7  ;;  %v2338_v22 = vmul.f32 %v9048_v2, %v9456_v7 }
  0xe5   : > { %v2281_v40 = vadd.f32 %v2156_v42, %v1971_v38  ;;  %v815_v48 = vadd.f32 %v689_v27, %v450_v9  ;;  %v1000_v33 = vsel %vm957_vm2, %v998_v57, %v999_v1  ;;  %v1730_v8 = vrot.slane %v1606_v63, 2 }
  0xe6   : > { %v1422_v54 = vsel %vm646_vm1, %v1420_v46, %v1421_v55  ;;  %v2152_v39 = vrot.slane %v2028_v61, 1  ;;  %v2462_v44 = vrot.slane %v2338_v22, 2  ;;  %v453_v32 = vmul.f32 %v8217_v11, %v9235_v43  ;;  %v9511_v61 = vld [vmem:[%s8213_s11 + $0x110] sm:$0xff] }
  0xe7   : > { %v2591_v25 = vadd.f32 %v2466_v52, %v2281_v40  ;;  %v1126_v58 = vadd.f32 %v1000_v33, %v815_v48  ;;  %v1732_v31 = vsel %vm957_vm2, %v1730_v8, %v1731_v3  ;;  %v565_v27 = vmul.f32 %v8221_v12, %v9235_v43  ;;  %v9503_v52 = vld [vmem:[%s8213_s11 + $0x108] sm:$0xff] }
  0xe8   : > { %v2154_v35 = vsel %vm646_vm1, %v2152_v39, %v2153_v16  ;;  %v2464_v1 = vsel %vm957_vm2, %v2462_v44, %v2463_v17  ;;  %v9484_v55 = vmul.f32 %v8221_v12, %v9253_v26  ;;  %v876_v22 = vmul.f32 %v8225_v13, %v9235_v43 }
  0xe9   : > { %v9489_v57 = vadd.f32 %v9182_v5, %v2591_v25  ;;  %v1238_v3 = vadd.f32 %v1184_v45, %v1126_v58  ;;  %v692_v38 = vrot.slane %v565_v27, 1  ;;  %v9493_v46 = vmul.f32 %v8225_v13, %v9253_v26 }
  0xea   : > { %v14200_v16 = vrot.slane %v9484_v55, 1  ;;  %v1003_v17 = vrot.slane %v876_v22, 2  ;;  %v1187_v39 = vmul.f32 %v8229_v14, %v9456_v7  ;;  %v1299_v9 = vmul.f32 %v8242_v18, %v9456_v7 }
  0xeb   : > { %14573 = vst [vmem:[#allocation29_spill] sm:$0xff] %v9489_v57  ;;  %v2758_v43 = vsel %vm2681_vm3, %v9489_v57, 0.0  ;;  %v1548_v42 = vadd.f32 %v1422_v54, %v1238_v3  ;;  %v14199_v45 = vrot.slane %v9493_v46, 2  ;;  %v9508_v63 = vmul.f32 %v8242_v18, %v9397_v24 }
  0xec   : > { %2759 = vadd.xlane.f32.xlu1 %v2758_v43  ;;  %v694_v40 = vsel %vm646_vm1, %v692_v38, %v14200_v16  ;;  %v1425_v48 = vrot.slane %v1299_v9, 1  ;;  %v1609_v33 = vmul.f32 %v8246_v19, %v9456_v7  ;;  %v9520_v54 = vmul.f32 %v8246_v19, %v9397_v24 }
  0xed   : > { %v1858_v8 = vadd.f32 %v1732_v31, %v1548_v42  ;;  %v818_v44 = vadd.f32 %v694_v40, %v453_v32  ;;  %v1005_v25 = vsel %vm957_vm2, %v1003_v17, %v14199_v45  ;;  %v1426_v58 = vrot.slane %v9508_v63, 1 }
  0xee   : > { %v1735_v27 = vrot.slane %v1609_v33, 2  ;;  %v1736_v22 = vrot.slane %v9520_v54, 2  ;;  %v1919_v3 = vmul.f32 %v8250_v20, %v9503_v52  ;;  %v2031_v38 = vmul.f32 %v8254_v21, %v9503_v52 }
  0xef   : > { %v1970_v9 = vadd.f32 %v1916_v36, %v1858_v8  ;;  %v1129_v43 = vadd.f32 %v1005_v25, %v818_v44  ;;  %v1427_v31 = vsel %vm646_vm1, %v1425_v48, %v1426_v58  ;;  %v2032_v32 = vmul.f32 %v8254_v21, %v9511_v61 }
  0xf0   : > { %v1737_v17 = vsel %vm957_vm2, %v1735_v27, %v1736_v22  ;;  %v2157_v42 = vrot.slane %v2031_v38, 1  ;;  %v2341_v63 = vmul.f32 %v9048_v2, %v9503_v52  ;;  %v2342_v40 = vmul.f32 %v9048_v2, %v9511_v61 }
  0xf1   : > { %v2280_v33 = vadd.f32 %v2154_v35, %v1970_v9  ;;  %v1241_v54 = vadd.f32 %v1187_v39, %v1129_v43  ;;  %v2158_v45 = vrot.slane %v2032_v32, 1  ;;  %v452_v36 = vmul.f32 %v8217_v11, %v9123_v50 }
  0xf2   : > { %v2467_v8 = vrot.slane %v2341_v63, 2  ;;  %v2468_v48 = vrot.slane %v2342_v40, 2  ;;  %v1186_v44 = vmul.f32 %v8229_v14, %v9295_v6  ;;  %v1918_v25 = vmul.f32 %v8250_v20, %v9400_v28  ;;  %v9563_v40 = vld [vmem:[%s8213_s11 + $0x118] sm:$0xf] }
  0xf3   : > { %v2590_v27 = vadd.f32 %v2464_v1, %v2280_v33  ;;  %v1551_v38 = vadd.f32 %v1427_v31, %v1241_v54  ;;  %v2159_v16 = vsel %vm646_vm1, %v2157_v42, %v2158_v45  ;;  %v14574_v35 = vrot.slane %v9353_v41, 1 }
  0xf4   : > { %v2469_v9 = vsel %vm957_vm2, %v2467_v8, %v2468_v48  ;;  %v455_v50 = vmul.f32 %v8217_v11, %v9295_v6  ;;  %v567_v43 = vmul.f32 %v8221_v12, %v9295_v6  ;;  %v878_v32 = vmul.f32 %v8225_v13, %v9295_v6 }
  0xf5   : > { %v817_v39 = vadd.f32 %v14574_v35, %v452_v36  ;;  %v9556_v63 = vadd.f32 %v9182_v5, %v2590_v27  ;;  %v1861_v1 = vadd.f32 %v1737_v17, %v1551_v38  ;;  %v14576_v31 = vrot.slane %v9362_v15, 2 }
  0xf6   : > { %v1189_v41 = vmul.f32 %v8229_v14, %v9400_v28  ;;  %v695_v33 = vrot.slane %v567_v43, 1  ;;  %v1006_v54 = vrot.slane %v878_v32, 2  ;;  %v1301_v36 = vmul.f32 %v8242_v18, %v9400_v28 }
  0xf7   : > { %14575 = vst [vmem:[#allocation30_spill] sm:$0xff] %v9556_v63  ;;  %v1128_v42 = vadd.f32 %v14576_v31, %v817_v39  ;;  %v1611_v6 = vmul.f32 %v8246_v19, %v9400_v28  ;;  %v2755_v8 = vsel %vm2681_vm3, %v9556_v63, 0.0  ;;  %v1973_v17 = vadd.f32 %v1919_v3, %v1861_v1 }
  0xf8   : > { %v1921_v15 = vmul.f32 %v8250_v20, %v9563_v40  ;;  %2756 = vadd.xlane.f32.xlu0 %v2755_v8  ;;  %v820_v38 = vadd.f32 %v695_v33, %v455_v50  ;;  %v1428_v35 = vrot.slane %v1301_v36, 1  ;;  %v2033_v43 = vmul.f32 %v8254_v21, %v9563_v40 }
  0xf9   : > { %v1240_v27 = vadd.f32 %v1186_v44, %v1128_v42  ;;  %v1738_v39 = vrot.slane %v1611_v6, 2  ;;  %v2283_v32 = vadd.f32 %v2159_v16, %v1973_v17  ;;  %v14577_v31 = vrot.slane %v9377_v37, 1 }
  0xfa   : > { %v2343_v23 = vmul.f32 %v9048_v2, %v9563_v40  ;;  %v454_v3 = vmul.f32 %v8217_v11, %v9253_v26  ;;  %v1131_v44 = vadd.f32 %v1006_v54, %v820_v38  ;;  %v2160_v1 = vrot.slane %v2033_v43, 1 }
  0xfb   : > { %v1550_v57 = vadd.f32 %v14577_v31, %v1240_v27  ;;  %v14578_v42 = vrot.slane %v9484_v55, 1  ;;  %v14579_v36 = vrot.slane %v9493_v46, 2  ;;  %v2593_v16 = vadd.f32 %v2469_v9, %v2283_v32 }
  0xfc   : > { %v14580_v37 = vrot.slane %v9409_v30, 2  ;;  %v2470_v17 = vrot.slane %v2343_v23, 2  ;;  %v1243_v31 = vadd.f32 %v1189_v41, %v1131_v44  ;;  %v1188_v26 = vmul.f32 %v8229_v14, %v9397_v24 }
  0xfd   : > { %v696_v50 = vsel %vm646_vm1, %v14578_v42, %v695_v33  ;;  %v1007_v6 = vsel %vm957_vm2, %v14579_v36, %v1006_v54  ;;  %v1429_v38 = vsel %vm646_vm1, %v1426_v58, %v1428_v35  ;;  %v1739_v55 = vsel %vm957_vm2, %v1736_v22, %v1738_v39 }
  0xfe   : > { %v1860_v8 = vadd.f32 %v14580_v37, %v1550_v57  ;;  %v819_v27 = vadd.f32 %v696_v50, %v454_v3  ;;  %v9594_v33 = vadd.f32 %v9182_v5, %v2593_v16  ;;  %v1920_v9 = vmul.f32 %v8250_v20, %v9511_v61 }
  0xff   : > { %v1553_v30 = vadd.f32 %v1428_v35, %v1243_v31  ;;  %v2161_v23 = vsel %vm646_vm1, %v2158_v45, %v2160_v1  ;;  %v2471_v57 = vsel %vm957_vm2, %v2468_v48, %v2470_v17  ;;  %v457_v41 = vmul.f32 %v8217_v11, %v9397_v24 }
 0x100   : > { %14581 = vst [vmem:[#allocation16_spill] sm:$0xff] %v9594_v33  ;;  %v1972_v46 = vadd.f32 %v1918_v25, %v1860_v8  ;;  %v1130_v43 = vadd.f32 %v1007_v6, %v819_v27  ;;  %v2764_v58 = vsel %vm2681_vm3, %v9594_v33, 0.0  ;;  %v14582_v22 = vrot.slane %v9421_v47, 1 }
 0x101   : > { %v9608_v25 = vmul.f32 %v8221_v12, %v9397_v24  ;;  %2765 = vadd.xlane.f32.xlu1 %v2764_v58  ;;  %v1863_v35 = vadd.f32 %v1738_v39, %v1553_v30  ;;  %v9612_v45 = vmul.f32 %v8221_v12, %v9400_v28  ;;  %v9616_v48 = vmul.f32 %v8225_v13, %v9397_v24 }
 0x102   : > { %v2282_v54 = vadd.f32 %v14582_v22, %v1972_v46  ;;  %v1242_v32 = vadd.f32 %v1188_v26, %v1130_v43  ;;  %v9620_v3 = vmul.f32 %v8225_v13, %v9400_v28  ;;  %v14583_v47 = vrot.slane %v9429_v34, 2  ;;  %v9654_v43 = vld [vmem:[%s8213_s11 + $0x130] sm:$0xf]  ;;  %v9658_v22 = vld [vmem:[%s8213_s11 + $0x128] sm:$0xff] }
 0x103   : > { %v698_v50 = vrot.slane %v9608_v25, 1  ;;  %v1191_v39 = vmul.f32 %v8229_v14, %v9511_v61  ;;  %v1975_v36 = vadd.f32 %v1921_v15, %v1863_v35  ;;  %v14207_v6 = vrot.slane %v9612_v45, 1 }
 0x104   : > { %v2592_v44 = vadd.f32 %v14583_v47, %v2282_v54  ;;  %v1552_v42 = vadd.f32 %v1429_v38, %v1242_v32  ;;  %v1009_v24 = vrot.slane %v9616_v48, 2  ;;  %v14206_v16 = vrot.slane %v9620_v3, 2 }
 0x105   : > { %v9635_v8 = vmul.f32 %v8242_v18, %v9511_v61  ;;  %v9639_v27 = vmul.f32 %v8242_v18, %v9563_v40  ;;  %v2285_v15 = vadd.f32 %v2160_v1, %v1975_v36  ;;  %v701_v31 = vsel %vm646_vm1, %v698_v50, %v14207_v6 }
 0x106   : > { %v9631_v37 = vadd.f32 %v9182_v5, %v2592_v44  ;;  %v1862_v34 = vadd.f32 %v1739_v55, %v1552_v42  ;;  %v1012_v26 = vsel %vm957_vm2, %v1009_v24, %v14206_v16  ;;  %v1613_v38 = vmul.f32 %v8246_v19, %v9511_v61 }
 0x107   : > { %v822_v1 = vadd.f32 %v701_v31, %v457_v41  ;;  %v1431_v30 = vrot.slane %v9635_v8, 1  ;;  %v2595_v58 = vadd.f32 %v2470_v17, %v2285_v15  ;;  %v14205_v54 = vrot.slane %v9639_v27, 1 }
 0x108   : > { %14584 = vst [vmem:[#allocation18_spill] sm:$0xff] %v9631_v37  ;;  %v2761_v55 = vsel %vm2688_vm0, %v9631_v37, 0.0  ;;  %v1974_v46 = vadd.f32 %v1920_v9, %v1862_v34  ;;  %v9663_v32 = vmul.f32 %v8246_v19, %v9563_v40  ;;  %v1741_v35 = vrot.slane %v1613_v38, 2 }
 0x109   : > { %2762 = vadd.xlane.f32.xlu0 %v2761_v55  ;;  %v1133_v47 = vadd.f32 %v1012_v26, %v822_v1  ;;  %v1923_v9 = vmul.f32 %v8250_v20, %v9658_v22  ;;  %v2035_v41 = vmul.f32 %v8254_v21, %v9658_v22  ;;  %v9670_v44 = vadd.f32 %v9182_v5, %v2595_v58 }
 0x10a   : > { %v2284_v48 = vadd.f32 %v2161_v23, %v1974_v46  ;;  %v1434_v17 = vsel %vm646_vm1, %v1431_v30, %v14205_v54  ;;  %v14204_v42 = vrot.slane %v9663_v32, 2  ;;  %v9678_v36 = vmul.f32 %v8254_v21, %v9654_v43 }
 0x10b   : > { %14585 = vst [vmem:[#allocation20_spill] sm:$0xff] %v9670_v44  ;;  %v1245_v34 = vadd.f32 %v1191_v39, %v1133_v47  ;;  %v2163_v8 = vrot.slane %v2035_v41, 1  ;;  %v2345_v15 = vmul.f32 %v9048_v2, %v9658_v22  ;;  %v2770_v31 = vsel %vm2688_vm0, %v9670_v44, 0.0 }
 0x10c   : > { %v2594_v23 = vadd.f32 %v2471_v57, %v2284_v48  ;;  %v1744_v26 = vsel %vm957_vm2, %v1741_v35, %v14204_v42  ;;  %v14203_v38 = vrot.slane %v9678_v36, 1  ;;  %v9690_v55 = vmul.f32 %v9048_v2, %v9654_v43  ;;  %2771 = vadd.xlane.f32.xlu1 %v2770_v31 }
 0x10d   : > { %v1555_v39 = vadd.f32 %v1434_v17, %v1245_v34  ;;  %v2473_v46 = vrot.slane %v2345_v15, 2  ;;  %v456_v1 = vmul.f32 %v8217_v11, %v9456_v7  ;;  %v568_v47 = vmul.f32 %v8221_v12, %v9456_v7 }
 0x10e   : > { %v9693_v57 = vadd.f32 %v9182_v5, %v2594_v23  ;;  %v2166_v58 = vsel %vm646_vm1, %v2163_v8, %v14203_v38  ;;  %v14208_v48 = vrot.slane %v9690_v55, 2  ;;  %v879_v41 = vmul.f32 %v8225_v13, %v9456_v7  ;;  %v9715_v38 = vld [vmem:[%s8213_s11 + $0x120] sm:$0xff] }
 0x10f   : > { %v1865_v17 = vadd.f32 %v1744_v26, %v1555_v39  ;;  %v1190_v34 = vmul.f32 %v8229_v14, %v9503_v52  ;;  %v1302_v15 = vmul.f32 %v8242_v18, %v9503_v52  ;;  %v697_v42 = vrot.slane %v568_v47, 1 }
 0x110   : > { %14586 = vst [vmem:[#allocation21_spill] sm:$0xff] %v9693_v57  ;;  %v2767_v23 = vsel %vm2681_vm3, %v9693_v57, 0.0  ;;  %v2476_v31 = vsel %vm957_vm2, %v2473_v46, %v14208_v48  ;;  %v1008_v54 = vrot.slane %v879_v41, 2  ;;  %v1612_v7 = vmul.f32 %v8246_v19, %v9503_v52 }
 0x111   : > { %2768 = vadd.xlane.f32.xlu0 %v2767_v23  ;;  %v1977_v16 = vadd.f32 %v1923_v9, %v1865_v17  ;;  %v1430_v26 = vrot.slane %v1302_v15, 1  ;;  %v1922_v39 = vmul.f32 %v8250_v20, %v9715_v38  ;;  %v2034_v6 = vmul.f32 %v8254_v21, %v9715_v38 }
 0x112   : > { %v699_v23 = vsel %vm646_vm1, %v697_v42, %v698_v50  ;;  %v1010_v48 = vsel %vm957_vm2, %v1008_v54, %v1009_v24  ;;  %v1740_v44 = vrot.slane %v1612_v7, 2  ;;  %v2344_v47 = vmul.f32 %v9048_v2, %v9715_v38  ;;  %v9766_v7 = vld [vmem:[%s8213_s11 + $0x140] sm:$0xff] }
 0x113   : > { %v2287_v41 = vadd.f32 %v2166_v58, %v1977_v16  ;;  %v821_v33 = vadd.f32 %v699_v23, %v456_v1  ;;  %v1432_v9 = vsel %vm646_vm1, %v1430_v26, %v1431_v30  ;;  %v2162_v17 = vrot.slane %v2034_v6, 1  ;;  %v9754_v58 = vld [vmem:[%s8213_s11 + $0x138] sm:$0xff] }
 0x114   : > { %v1742_v15 = vsel %vm957_vm2, %v1740_v44, %v1741_v35  ;;  %v2472_v37 = vrot.slane %v2344_v47, 2  ;;  %v459_v25 = vmul.f32 %v8217_v11, %v9503_v52  ;;  %v571_v50 = vmul.f32 %v8221_v12, %v9503_v52 }
 0x115   : > { %v2597_v24 = vadd.f32 %v2476_v31, %v2287_v41  ;;  %v1132_v54 = vadd.f32 %v1010_v48, %v821_v33  ;;  %v2164_v42 = vsel %vm646_vm1, %v2162_v17, %v2163_v8  ;;  %v9738_v2 = vmul.f32 %v8221_v12, %v9511_v61 }
 0x116   : > { %v2474_v6 = vsel %vm957_vm2, %v2472_v37, %v2473_v46  ;;  %v702_v16 = vrot.slane %v571_v50, 1  ;;  %v882_v30 = vmul.f32 %v8225_v13, %v9503_v52  ;;  %v9745_v35 = vmul.f32 %v8225_v13, %v9511_v61 }
 0x117   : > { %v9748_v44 = vadd.f32 %v9182_v5, %v2597_v24  ;;  %v1244_v33 = vadd.f32 %v1190_v34, %v1132_v54  ;;  %v14214_v8 = vrot.slane %v9738_v2, 1  ;;  %v1193_v1 = vmul.f32 %v8229_v14, %v9715_v38 }
 0x118   : > { %v1013_v37 = vrot.slane %v882_v30, 2  ;;  %v14213_v46 = vrot.slane %v9745_v35, 2  ;;  %v1305_v52 = vmul.f32 %v8242_v18, %v9715_v38  ;;  %v9761_v48 = vmul.f32 %v8242_v18, %v9658_v22 }
 0x119   : > { %14587 = vst [vmem:[#allocation22_spill] sm:$0xff] %v9748_v44  ;;  %v2776_v34 = vsel %vm2681_vm3, %v9748_v44, 0.0  ;;  %v1554_v31 = vadd.f32 %v1432_v9, %v1244_v33  ;;  %v704_v26 = vsel %vm646_vm1, %v702_v16, %v14214_v8  ;;  %v1615_v23 = vmul.f32 %v8246_v19, %v9715_v38 }
 0x11a   : > { %2777 = vadd.xlane.f32.xlu1 %v2776_v34  ;;  %v824_v47 = vadd.f32 %v704_v26, %v459_v25  ;;  %v1015_v41 = vsel %vm957_vm2, %v1013_v37, %v14213_v46  ;;  %v1435_v17 = vrot.slane %v1305_v52, 1  ;;  %v14212_v50 = vrot.slane %v9761_v48, 1  ;;  %v9796_v34 = vld [vmem:[%s14097_s1 + $0x8] ss:$0 sm:$0xff] }
 0x11b   : > { %v1864_v24 = vadd.f32 %v1742_v15, %v1554_v31  ;;  %v9779_v9 = vmul.f32 %v8246_v19, %v9658_v22  ;;  %v1745_v54 = vrot.slane %v1615_v23, 2  ;;  %v1925_v16 = vmul.f32 %v8250_v20, %v9754_v58 }
 0x11c   : > { %v1135_v30 = vadd.f32 %v1015_v41, %v824_v47  ;;  %v1437_v25 = vsel %vm646_vm1, %v1435_v17, %v14212_v50  ;;  %v2037_v33 = vmul.f32 %v8254_v21, %v9754_v58  ;;  %v9790_v37 = vmul.f32 %v8254_v21, %v9766_v7 }
 0x11d   : > { %v1976_v15 = vadd.f32 %v1922_v39, %v1864_v24  ;;  %v1746_v52 = vrot.slane %v9779_v9, 2  ;;  %v2347_v31 = vmul.f32 %v9796_v34, %v9754_v58  ;;  %v2348_v26 = vmul.f32 %v9796_v34, %v9766_v7 }
 0x11e   : > { %v1247_v23 = vadd.f32 %v1193_v1, %v1135_v30  ;;  %v2167_v47 = vrot.slane %v2037_v33, 1  ;;  %v2168_v41 = vrot.slane %v9790_v37, 1  ;;  %v458_v39 = vmul.f32 %v8217_v11, %v9400_v28 }
 0x11f   : > { %v2286_v17 = vadd.f32 %v2164_v42, %v1976_v15  ;;  %v1747_v24 = vsel %vm957_vm2, %v1745_v54, %v1746_v52  ;;  %v2477_v9 = vrot.slane %v2347_v31, 2  ;;  %v2478_v50 = vrot.slane %v2348_v26, 2  ;;  %v9832_v26 = vld [vmem:[%s8213_s11 + $0x148] sm:$0xf] }
 0x120   : > { %v1557_v46 = vadd.f32 %v1437_v25, %v1247_v23  ;;  %v2169_v8 = vsel %vm646_vm1, %v2167_v47, %v2168_v41  ;;  %v14588_v44 = vrot.slane %v9612_v45, 1  ;;  %v1192_v1 = vmul.f32 %v8229_v14, %v9563_v40 }
 0x121   : > { %v2596_v30 = vadd.f32 %v2474_v6, %v2286_v17  ;;  %v2479_v33 = vsel %vm957_vm2, %v2477_v9, %v2478_v50  ;;  %v1924_v28 = vmul.f32 %v8250_v20, %v9654_v43  ;;  %v461_v42 = vmul.f32 %v8217_v11, %v9563_v40 }
 0x122   : > { %v823_v63 = vadd.f32 %v14588_v44, %v458_v39  ;;  %v1867_v54 = vadd.f32 %v1747_v24, %v1557_v46  ;;  %v14589_v25 = vrot.slane %v9620_v3, 2  ;;  %v573_v45 = vmul.f32 %v8221_v12, %v9563_v40 }
 0x123   : > { %v884_v44 = vmul.f32 %v8225_v13, %v9563_v40  ;;  %v9823_v6 = vadd.f32 %v9182_v5, %v2596_v30  ;;  %v1195_v15 = vmul.f32 %v8229_v14, %v9654_v43  ;;  %v1307_v31 = vmul.f32 %v8242_v18, %v9654_v43 }
 0x124   : > { %v1134_v37 = vadd.f32 %v14589_v25, %v823_v63  ;;  %v1617_v46 = vmul.f32 %v8246_v19, %v9654_v43  ;;  %v1979_v3 = vadd.f32 %v1925_v16, %v1867_v54  ;;  %v705_v23 = vrot.slane %v573_v45, 1 }
 0x125   : > { %14590 = vst [vmem:[#allocation23_spill] sm:$0xff] %v9823_v6  ;;  %v1016_v47 = vrot.slane %v884_v44, 2  ;;  %v2773_v40 = vsel %vm2681_vm3, %v9823_v6, 0.0  ;;  %v1438_v39 = vrot.slane %v1307_v31, 1  ;;  %v1927_v24 = vmul.f32 %v8250_v20, %v9832_v26 }
 0x126   : > { %v1246_v63 = vadd.f32 %v1192_v1, %v1134_v37  ;;  %v1748_v17 = vrot.slane %v1617_v46, 2  ;;  %2774 = vadd.xlane.f32.xlu0 %v2773_v40  ;;  %v2289_v9 = vadd.f32 %v2169_v8, %v1979_v3  ;;  %v14591_v30 = vrot.slane %v9639_v27, 1 }
 0x127   : > { %v826_v57 = vadd.f32 %v705_v23, %v461_v42  ;;  %v2039_v16 = vmul.f32 %v8254_v21, %v9832_v26  ;;  %v2349_v1 = vmul.f32 %v9796_v34, %v9832_v26  ;;  %v460_v54 = vmul.f32 %v8217_v11, %v9511_v61 }
 0x128   : > { %v1556_v25 = vadd.f32 %v14591_v30, %v1246_v63  ;;  %v14592_v37 = vrot.slane %v9738_v2, 1  ;;  %v14593_v44 = vrot.slane %v9745_v35, 2  ;;  %v2599_v27 = vadd.f32 %v2479_v33, %v2289_v9 }
 0x129   : > { %v14594_v42 = vrot.slane %v9663_v32, 2  ;;  %v1137_v46 = vadd.f32 %v1016_v47, %v826_v57  ;;  %v2170_v3 = vrot.slane %v2039_v16, 1  ;;  %v2480_v63 = vrot.slane %v2349_v1, 2 }
 0x12a   : > { %v706_v45 = vsel %vm646_vm1, %v14592_v37, %v705_v23  ;;  %v1017_v8 = vsel %vm957_vm2, %v14593_v44, %v1016_v47  ;;  %v1194_v30 = vmul.f32 %v8229_v14, %v9658_v22  ;;  %v14595_v61 = vrot.slane %v9761_v48, 1 }
 0x12b   : > { %v1866_v31 = vadd.f32 %v14594_v42, %v1556_v25  ;;  %v825_v40 = vadd.f32 %v706_v45, %v460_v54  ;;  %v9860_v23 = vadd.f32 %v9182_v5, %v2599_v27  ;;  %v1249_v37 = vadd.f32 %v1195_v15, %v1137_v46 }
 0x12c   : > { %v1439_v2 = vsel %vm646_vm1, %v14595_v61, %v1438_v39  ;;  %v1749_v33 = vsel %vm957_vm2, %v1746_v52, %v1748_v17  ;;  %v1926_v57 = vmul.f32 %v8250_v20, %v9766_v7  ;;  %v2171_v47 = vsel %vm646_vm1, %v2168_v41, %v2170_v3 }
 0x12d   : > { %14596 = vst [vmem:[#allocation14_spill] sm:$0xff] %v9860_v23  ;;  %v1978_v35 = vadd.f32 %v1924_v28, %v1866_v31  ;;  %v1136_v32 = vadd.f32 %v1017_v8, %v825_v40  ;;  %v2481_v9 = vsel %vm957_vm2, %v2478_v50, %v2480_v63  ;;  %v2782_v48 = vsel %vm2681_vm3, %v9860_v23, 0.0 }
 0x12e   : > { %v14597_v25 = vrot.slane %v9678_v36, 1  ;;  %v1559_v5 = vadd.f32 %v1438_v39, %v1249_v37  ;;  %v463_v28 = vmul.f32 %v8217_v11, %v9658_v22  ;;  %2783 = vadd.xlane.f32.xlu1 %v2782_v48  ;;  %v9875_v15 = vmul.f32 %v8221_v12, %v9658_v22  ;;  %v9930_v48 = vld [vmem:[%s8213_s11 + $0x158] sm:$0xff] }
 0x12f   : > { %v1248_v52 = vadd.f32 %v1194_v30, %v1136_v32  ;;  %v9879_v41 = vmul.f32 %v8221_v12, %v9654_v43  ;;  %v9883_v50 = vmul.f32 %v8225_v13, %v9658_v22  ;;  %v14598_v36 = vrot.slane %v9690_v55, 2  ;;  %v9899_v22 = vld [vmem:[%s14098_s2] ss:$0 sm:$0xff] }
 0x130   : > { %v2288_v16 = vadd.f32 %v14597_v25, %v1978_v35  ;;  %v1869_v1 = vadd.f32 %v1748_v17, %v1559_v5  ;;  %v9889_v54 = vmul.f32 %v8225_v13, %v9654_v43  ;;  %v1197_v45 = vmul.f32 %v8229_v14, %v9766_v7  ;;  %v9933_v25 = vld [vmem:[%s8213_s11 + $0x160] sm:$0xf] }
 0x131   : > { %v1558_v44 = vadd.f32 %v1439_v2, %v1248_v52  ;;  %v708_v8 = vrot.slane %v9875_v15, 1  ;;  %v14222_v27 = vrot.slane %v9879_v41, 1  ;;  %v14224_v42 = vrot.slane %v9883_v50, 2 }
 0x132   : > { %v2598_v39 = vadd.f32 %v14598_v36, %v2288_v16  ;;  %v1981_v17 = vadd.f32 %v1927_v24, %v1869_v1  ;;  %v14221_v31 = vrot.slane %v9889_v54, 2  ;;  %v9907_v46 = vmul.f32 %v8242_v18, %v9766_v7 }
 0x133   : > { %v1868_v40 = vadd.f32 %v1749_v33, %v1558_v44  ;;  %v711_v30 = vsel %vm646_vm1, %v708_v8, %v14222_v27  ;;  %v9916_v61 = vmul.f32 %v8242_v18, %v9832_v26  ;;  %v9920_v24 = vmul.f32 %v8246_v19, %v9766_v7 }
 0x134   : > { %v9902_v55 = vadd.f32 %v9899_v22, %v2598_v39  ;;  %v2291_v35 = vadd.f32 %v2170_v3, %v1981_v17  ;;  %v828_v37 = vadd.f32 %v711_v30, %v463_v28  ;;  %v1022_v33 = vsel %vm957_vm2, %v14224_v42, %v14221_v31 }
 0x135   : > { %v1980_v32 = vadd.f32 %v1926_v57, %v1868_v40  ;;  %v1441_v16 = vrot.slane %v9907_v46, 1  ;;  %v14220_v5 = vrot.slane %v9916_v61, 1  ;;  %v9939_v3 = vmul.f32 %v8246_v19, %v9832_v26 }
 0x136   : > { %14599 = vst [vmem:[#allocation17_spill] sm:$0xff] %v9902_v55  ;;  %v2779_v2 = vsel %vm2688_vm0, %v9902_v55, 0.0  ;;  %v2601_v28 = vadd.f32 %v2480_v63, %v2291_v35  ;;  %v1139_v52 = vadd.f32 %v1022_v33, %v828_v37  ;;  %v1751_v36 = vrot.slane %v9920_v24, 2 }
 0x137   : > { %2780 = vadd.xlane.f32.xlu0 %v2779_v2  ;;  %v1929_v39 = vmul.f32 %v8250_v20, %v9930_v48  ;;  %v2290_v57 = vadd.f32 %v2171_v47, %v1980_v32  ;;  %v1444_v1 = vsel %vm646_vm1, %v1441_v16, %v14220_v5  ;;  %v14218_v44 = vrot.slane %v9939_v3, 2 }
 0x138   : > { %v2041_v17 = vmul.f32 %v8254_v21, %v9930_v48  ;;  %v9951_v46 = vadd.f32 %v9899_v22, %v2601_v28  ;;  %v1251_v63 = vadd.f32 %v1197_v45, %v1139_v52  ;;  %v9955_v40 = vmul.f32 %v8254_v21, %v9933_v25 }
 0x139   : > { %v2351_v47 = vmul.f32 %v9796_v34, %v9930_v48  ;;  %v2600_v30 = vadd.f32 %v2481_v9, %v2290_v57  ;;  %v1754_v24 = vsel %vm957_vm2, %v1751_v36, %v14218_v44  ;;  %v9964_v35 = vmul.f32 %v9796_v34, %v9933_v25  ;;  %v9990_v44 = vld [vmem:[%s8213_s11 + $0x150] sm:$0xff] }
 0x13a   : > { %14600 = vst [vmem:[#allocation37_spill] sm:$0xff] %v9951_v46  ;;  %v2173_v2 = vrot.slane %v2041_v17, 1  ;;  %v2788_v45 = vsel %vm2688_vm0, %v9951_v46, 0.0  ;;  %v1561_v37 = vadd.f32 %v1444_v1, %v1251_v63  ;;  %v14219_v33 = vrot.slane %v9955_v40, 1 }
 0x13b   : > { %v2483_v32 = vrot.slane %v2351_v47, 2  ;;  %2789 = vadd.xlane.f32.xlu1 %v2788_v45  ;;  %v9970_v9 = vadd.f32 %v9899_v22, %v2600_v30  ;;  %v14223_v28 = vrot.slane %v9964_v35, 2  ;;  %v462_v52 = vmul.f32 %v8217_v11, %v9715_v38 }
 0x13c   : > { %v574_v57 = vmul.f32 %v8221_v12, %v9715_v38  ;;  %v1871_v17 = vadd.f32 %v1754_v24, %v1561_v37  ;;  %v2176_v1 = vsel %vm646_vm1, %v2173_v2, %v14219_v33  ;;  %v885_v63 = vmul.f32 %v8225_v13, %v9715_v38 }
 0x13d   : > { %14601 = vst [vmem:[#allocation38_spill] sm:$0xff] %v9970_v9  ;;  %v1196_v47 = vmul.f32 %v8229_v14, %v9754_v58  ;;  %v2785_v30 = vsel %vm2681_vm3, %v9970_v9, 0.0  ;;  %v2486_v45 = vsel %vm957_vm2, %v2483_v32, %v14223_v28  ;;  %v1308_v37 = vmul.f32 %v8242_v18, %v9754_v58 }
 0x13e   : > { %v707_v24 = vrot.slane %v574_v57, 1  ;;  %2786 = vadd.xlane.f32.xlu0 %v2785_v30  ;;  %v1983_v33 = vadd.f32 %v1929_v39, %v1871_v17  ;;  %v1018_v5 = vrot.slane %v885_v63, 2  ;;  %v1618_v38 = vmul.f32 %v8246_v19, %v9754_v58 }
 0x13f   : > { %v1928_v31 = vmul.f32 %v8250_v20, %v9990_v44  ;;  %v1440_v28 = vrot.slane %v1308_v37, 1  ;;  %v2040_v57 = vmul.f32 %v8254_v21, %v9990_v44  ;;  %v2350_v42 = vmul.f32 %v9796_v34, %v9990_v44 }
 0x140   : > { %v709_v27 = vsel %vm646_vm1, %v707_v24, %v708_v8  ;;  %v2293_v30 = vadd.f32 %v2176_v1, %v1983_v33  ;;  %v14602_v17 = vrot.slane %v9883_v50, 2  ;;  %v1750_v46 = vrot.slane %v1618_v38, 2 }
 0x141   : > { %v827_v39 = vadd.f32 %v709_v27, %v462_v52  ;;  %v1442_v23 = vsel %vm646_vm1, %v1440_v28, %v1441_v16  ;;  %v2172_v6 = vrot.slane %v2040_v57, 1  ;;  %v2482_v15 = vrot.slane %v2350_v42, 2  ;;  %v10045_v57 = vld [vmem:[%s8213_s11 + $0x170] sm:$0xff] }
 0x142   : > { %v1020_v63 = vsel %vm957_vm2, %v1018_v5, %v14602_v17  ;;  %v465_v8 = vmul.f32 %v8217_v11, %v9754_v58  ;;  %v2603_v24 = vadd.f32 %v2486_v45, %v2293_v30  ;;  %v1752_v9 = vsel %vm957_vm2, %v1750_v46, %v1751_v36  ;;  %v10037_v45 = vld [vmem:[%s8213_s11 + $0x168] sm:$0xff] }
 0x143   : > { %v1138_v37 = vadd.f32 %v1020_v63, %v827_v39  ;;  %v577_v27 = vmul.f32 %v8221_v12, %v9754_v58  ;;  %v2174_v50 = vsel %vm646_vm1, %v2172_v6, %v2173_v2  ;;  %v2484_v5 = vsel %vm957_vm2, %v2482_v15, %v2483_v32 }
 0x144   : > { %v10018_v16 = vmul.f32 %v8221_v12, %v9766_v7  ;;  %v888_v42 = vmul.f32 %v8225_v13, %v9754_v58  ;;  %v10023_v33 = vadd.f32 %v9899_v22, %v2603_v24  ;;  %v10027_v28 = vmul.f32 %v8225_v13, %v9766_v7 }
 0x145   : > { %v1250_v36 = vadd.f32 %v1196_v47, %v1138_v37  ;;  %v712_v46 = vrot.slane %v577_v27, 1  ;;  %v1199_v32 = vmul.f32 %v8229_v14, %v9990_v44  ;;  %v1311_v52 = vmul.f32 %v8242_v18, %v9990_v44 }
 0x146   : > { %14603 = vst [vmem:[#allocation39_spill] sm:$0xff] %v10023_v33  ;;  %v14230_v6 = vrot.slane %v10018_v16, 1  ;;  %v1023_v2 = vrot.slane %v888_v42, 2  ;;  %v2794_v58 = vsel %vm2681_vm3, %v10023_v33, 0.0  ;;  %v14229_v47 = vrot.slane %v10027_v28, 2 }
 0x147   : > { %v1560_v1 = vadd.f32 %v1442_v23, %v1250_v36  ;;  %v10042_v38 = vmul.f32 %v8242_v18, %v9930_v48  ;;  %2795 = vadd.xlane.f32.xlu1 %v2794_v58  ;;  %v1445_v39 = vrot.slane %v1311_v52, 1  ;;  %v1621_v17 = vmul.f32 %v8246_v19, %v9990_v44 }
 0x148   : > { %v714_v30 = vsel %vm646_vm1, %v712_v46, %v14230_v6  ;;  %v10054_v23 = vmul.f32 %v8246_v19, %v9930_v48  ;;  %v1025_v24 = vsel %vm957_vm2, %v1023_v2, %v14229_v47  ;;  %v1931_v36 = vmul.f32 %v8250_v20, %v10037_v45 }
 0x149   : > { %v1870_v63 = vadd.f32 %v1752_v9, %v1560_v1  ;;  %v830_v15 = vadd.f32 %v714_v30, %v465_v8  ;;  %v1446_v37 = vrot.slane %v10042_v38, 1  ;;  %v1755_v27 = vrot.slane %v1621_v17, 2 }
 0x14a   : > { %v1756_v42 = vrot.slane %v10054_v23, 2  ;;  %v2043_v46 = vmul.f32 %v8254_v21, %v10037_v45  ;;  %v2044_v8 = vmul.f32 %v8254_v21, %v10045_v57  ;;  %v2353_v38 = vmul.f32 %v9796_v34, %v10037_v45 }
 0x14b   : > { %v1982_v52 = vadd.f32 %v1928_v31, %v1870_v63  ;;  %v1141_v58 = vadd.f32 %v1025_v24, %v830_v15  ;;  %v1447_v9 = vsel %vm646_vm1, %v1445_v39, %v1446_v37  ;;  %v2354_v30 = vmul.f32 %v9796_v34, %v10045_v57 }
 0x14c   : > { %v1757_v2 = vsel %vm957_vm2, %v1755_v27, %v1756_v42  ;;  %v2177_v1 = vrot.slane %v2043_v46, 1  ;;  %v2178_v47 = vrot.slane %v2044_v8, 1  ;;  %v464_v31 = vmul.f32 %v8217_v11, %v9654_v43 }
 0x14d   : > { %v2292_v17 = vadd.f32 %v2174_v50, %v1982_v52  ;;  %v1253_v23 = vadd.f32 %v1199_v32, %v1141_v58  ;;  %v2487_v63 = vrot.slane %v2353_v38, 2  ;;  %v2488_v39 = vrot.slane %v2354_v30, 2  ;;  %v10097_v30 = vld [vmem:[%s8213_s11 + $0x178] sm:$0xf] }
 0x14e   : > { %v1198_v15 = vmul.f32 %v8229_v14, %v9832_v26  ;;  %v1930_v24 = vmul.f32 %v8250_v20, %v9933_v25  ;;  %v2179_v6 = vsel %vm646_vm1, %v2177_v1, %v2178_v47  ;;  %v14604_v50 = vrot.slane %v9879_v41, 1 }
 0x14f   : > { %v2602_v27 = vadd.f32 %v2484_v5, %v2292_v17  ;;  %v1563_v46 = vadd.f32 %v1447_v9, %v1253_v23  ;;  %v2489_v52 = vsel %vm957_vm2, %v2487_v63, %v2488_v39  ;;  %v467_v43 = vmul.f32 %v8217_v11, %v9832_v26 }
 0x150   : > { %v829_v32 = vadd.f32 %v14604_v50, %v464_v31  ;;  %v579_v58 = vmul.f32 %v8221_v12, %v9832_v26  ;;  %v890_v8 = vmul.f32 %v8225_v13, %v9832_v26  ;;  %v14606_v9 = vrot.slane %v9889_v54, 2 }
 0x151   : > { %v10090_v38 = vadd.f32 %v9899_v22, %v2602_v27  ;;  %v1873_v5 = vadd.f32 %v1757_v2, %v1563_v46  ;;  %v1201_v41 = vmul.f32 %v8229_v14, %v9933_v25  ;;  %v1313_v31 = vmul.f32 %v8242_v18, %v9933_v25 }
 0x152   : > { %v1140_v1 = vadd.f32 %v14606_v9, %v829_v32  ;;  %v715_v17 = vrot.slane %v579_v58, 1  ;;  %v1026_v23 = vrot.slane %v890_v8, 2  ;;  %v1623_v26 = vmul.f32 %v8246_v19, %v9933_v25 }
 0x153   : > { %14605 = vst [vmem:[#allocation40_spill] sm:$0xff] %v10090_v38  ;;  %v2791_v63 = vsel %vm2681_vm3, %v10090_v38, 0.0  ;;  %v1985_v2 = vadd.f32 %v1931_v36, %v1873_v5  ;;  %v1933_v54 = vmul.f32 %v8250_v20, %v10097_v30  ;;  %v1448_v50 = vrot.slane %v1313_v31, 1 }
 0x154   : > { %v1252_v27 = vadd.f32 %v1198_v15, %v1140_v1  ;;  %2792 = vadd.xlane.f32.xlu0 %v2791_v63  ;;  %v832_v46 = vadd.f32 %v715_v17, %v467_v43  ;;  %v1758_v32 = vrot.slane %v1623_v26, 2  ;;  %v2045_v58 = vmul.f32 %v8254_v21, %v10097_v30 }
 0x155   : > { %v2295_v8 = vadd.f32 %v2179_v6, %v1985_v2  ;;  %v14607_v9 = vrot.slane %v9916_v61, 1  ;;  %v2355_v55 = vmul.f32 %v9796_v34, %v10097_v30  ;;  %v466_v36 = vmul.f32 %v8217_v11, %v9766_v7 }
 0x156   : > { %v1143_v15 = vadd.f32 %v1026_v23, %v832_v46  ;;  %v2180_v5 = vrot.slane %v2045_v58, 1  ;;  %v14608_v1 = vrot.slane %v10018_v16, 1  ;;  %v14609_v31 = vrot.slane %v10027_v28, 2 }
 0x157   : > { %v1562_v33 = vadd.f32 %v14607_v9, %v1252_v27  ;;  %v2605_v6 = vadd.f32 %v2489_v52, %v2295_v8  ;;  %v14610_v61 = vrot.slane %v9939_v3, 2  ;;  %v2490_v2 = vrot.slane %v2355_v55, 2 }
 0x158   : > { %v716_v43 = vsel %vm646_vm1, %v14608_v1, %v715_v17  ;;  %v1027_v26 = vsel %vm957_vm2, %v14609_v31, %v1026_v23  ;;  %v1255_v9 = vadd.f32 %v1201_v41, %v1143_v15  ;;  %v1200_v7 = vmul.f32 %v8229_v14, %v9930_v48 }
 0x159   : > { %v1872_v63 = vadd.f32 %v14610_v61, %v1562_v33  ;;  %v831_v27 = vadd.f32 %v716_v43, %v466_v36  ;;  %v1449_v46 = vsel %vm646_vm1, %v1446_v37, %v1448_v50  ;;  %v1759_v16 = vsel %vm957_vm2, %v1756_v42, %v1758_v32 }
 0x15a   : > { %v10128_v17 = vadd.f32 %v9899_v22, %v2605_v6  ;;  %v1932_v52 = vmul.f32 %v8250_v20, %v10045_v57  ;;  %v1565_v3 = vadd.f32 %v1448_v50, %v1255_v9  ;;  %v2181_v55 = vsel %vm646_vm1, %v2178_v47, %v2180_v5 }
 0x15b   : > { %v1984_v28 = vadd.f32 %v1930_v24, %v1872_v63  ;;  %v1142_v58 = vadd.f32 %v1027_v26, %v831_v27  ;;  %v2491_v33 = vsel %vm957_vm2, %v2488_v39, %v2490_v2  ;;  %v469_v41 = vmul.f32 %v8217_v11, %v9930_v48 }
 0x15c   : > { %14611 = vst [vmem:[#allocation41_spill] sm:$0xff] %v10128_v17  ;;  %v2800_v37 = vsel %vm2681_vm3, %v10128_v17, 0.0  ;;  %v14612_v42 = vrot.slane %v9955_v40, 1  ;;  %v10142_v24 = vmul.f32 %v8221_v12, %v9930_v48  ;;  %v1875_v50 = vadd.f32 %v1758_v32, %v1565_v3 }
 0x15d   : > { %v1254_v8 = vadd.f32 %v1200_v7, %v1142_v58  ;;  %2801 = vadd.xlane.f32.xlu1 %v2800_v37  ;;  %v10146_v47 = vmul.f32 %v8221_v12, %v9933_v25  ;;  %v10150_v39 = vmul.f32 %v8225_v13, %v9930_v48  ;;  %v10154_v36 = vmul.f32 %v8225_v13, %v9933_v25  ;;  %v10188_v58 = vld [vmem:[%s8213_s11 + $0x190] sm:$0xf] }
 0x15e   : > { %v2294_v23 = vadd.f32 %v14612_v42, %v1984_v28  ;;  %v14613_v40 = vrot.slane %v9964_v35, 2  ;;  %v718_v43 = vrot.slane %v10142_v24, 1  ;;  %v1203_v32 = vmul.f32 %v8229_v14, %v10045_v57  ;;  %v10192_v42 = vld [vmem:[%s8213_s11 + $0x188] sm:$0xff] }
 0x15f   : > { %v1564_v1 = vadd.f32 %v1449_v46, %v1254_v8  ;;  %v1987_v31 = vadd.f32 %v1933_v54, %v1875_v50  ;;  %v14237_v26 = vrot.slane %v10146_v47, 1  ;;  %v1029_v48 = vrot.slane %v10150_v39, 2 }
 0x160   : > { %v2604_v15 = vadd.f32 %v14613_v40, %v2294_v23  ;;  %v14236_v6 = vrot.slane %v10154_v36, 2  ;;  %v10169_v63 = vmul.f32 %v8242_v18, %v10045_v57  ;;  %v10173_v27 = vmul.f32 %v8242_v18, %v10097_v30 }
 0x161   : > { %v1874_v35 = vadd.f32 %v1759_v16, %v1564_v1  ;;  %v2297_v54 = vadd.f32 %v2180_v5, %v1987_v31  ;;  %v721_v9 = vsel %vm646_vm1, %v718_v43, %v14237_v26  ;;  %v1625_v46 = vmul.f32 %v8246_v19, %v10045_v57 }
 0x162   : > { %v10165_v61 = vadd.f32 %v9899_v22, %v2604_v15  ;;  %v1032_v7 = vsel %vm957_vm2, %v1029_v48, %v14236_v6  ;;  %v834_v5 = vadd.f32 %v721_v9, %v469_v41  ;;  %v1451_v3 = vrot.slane %v10169_v63, 1 }
 0x163   : > { %v1986_v28 = vadd.f32 %v1932_v52, %v1874_v35  ;;  %v2607_v37 = vadd.f32 %v2490_v2, %v2297_v54  ;;  %v14235_v23 = vrot.slane %v10173_v27, 1  ;;  %v10197_v8 = vmul.f32 %v8246_v19, %v10097_v30 }
 0x164   : > { %14614 = vst [vmem:[#allocation42_spill] sm:$0xff] %v10165_v61  ;;  %v2797_v16 = vsel %vm2688_vm0, %v10165_v61, 0.0  ;;  %v1761_v50 = vrot.slane %v1625_v46, 2  ;;  %v1145_v40 = vadd.f32 %v1032_v7, %v834_v5  ;;  %v1935_v52 = vmul.f32 %v8250_v20, %v10192_v42 }
 0x165   : > { %2798 = vadd.xlane.f32.xlu0 %v2797_v16  ;;  %v2296_v39 = vadd.f32 %v2181_v55, %v1986_v28  ;;  %v2047_v41 = vmul.f32 %v8254_v21, %v10192_v42  ;;  %v10204_v15 = vadd.f32 %v9899_v22, %v2607_v37  ;;  %v1454_v2 = vsel %vm646_vm1, %v1451_v3, %v14235_v23 }
 0x166   : > { %v14234_v1 = vrot.slane %v10197_v8, 2  ;;  %v10212_v31 = vmul.f32 %v8254_v21, %v10188_v58  ;;  %v1257_v35 = vadd.f32 %v1203_v32, %v1145_v40  ;;  %v2357_v54 = vmul.f32 %v9796_v34, %v10192_v42 }
 0x167   : > { %14615 = vst [vmem:[#allocation43_spill] sm:$0xff] %v10204_v15  ;;  %v2606_v55 = vadd.f32 %v2491_v33, %v2296_v39  ;;  %v2183_v63 = vrot.slane %v2047_v41, 1  ;;  %v2806_v9 = vsel %vm2688_vm0, %v10204_v15, 0.0  ;;  %v10224_v16 = vmul.f32 %v9796_v34, %v10188_v58 }
 0x168   : > { %v1764_v7 = vsel %vm957_vm2, %v1761_v50, %v14234_v1  ;;  %v14233_v46 = vrot.slane %v10212_v31, 1  ;;  %2807 = vadd.xlane.f32.xlu1 %v2806_v9  ;;  %v1567_v32 = vadd.f32 %v1454_v2, %v1257_v35  ;;  %v2493_v28 = vrot.slane %v2357_v54, 2 }
 0x169   : > { %v10227_v33 = vadd.f32 %v9899_v22, %v2606_v55  ;;  %v468_v5 = vmul.f32 %v8217_v11, %v9990_v44  ;;  %v14238_v39 = vrot.slane %v10224_v16, 2  ;;  %v580_v40 = vmul.f32 %v8221_v12, %v9990_v44 }
 0x16a   : > { %v2186_v37 = vsel %vm646_vm1, %v2183_v63, %v14233_v46  ;;  %v891_v41 = vmul.f32 %v8225_v13, %v9990_v44  ;;  %v1877_v2 = vadd.f32 %v1764_v7, %v1567_v32  ;;  %v1202_v35 = vmul.f32 %v8229_v14, %v10037_v45  ;;  %v10249_v46 = vld [vmem:[%s8213_s11 + $0x180] sm:$0xff] }
 0x16b   : > { %14616 = vst [vmem:[#allocation44_spill] sm:$0xff] %v10227_v33  ;;  %v2803_v55 = vsel %vm2681_vm3, %v10227_v33, 0.0  ;;  %v1314_v54 = vmul.f32 %v8242_v18, %v10037_v45  ;;  %v2496_v9 = vsel %vm957_vm2, %v2493_v28, %v14238_v39  ;;  %v717_v1 = vrot.slane %v580_v40, 1 }
 0x16c   : > { %2804 = vadd.xlane.f32.xlu0 %v2803_v55  ;;  %v1028_v23 = vrot.slane %v891_v41, 2  ;;  %v1624_v44 = vmul.f32 %v8246_v19, %v10037_v45  ;;  %v1989_v6 = vadd.f32 %v1935_v52, %v1877_v2  ;;  %v1934_v32 = vmul.f32 %v8250_v20, %v10249_v46 }
 0x16d   : > { %v1450_v7 = vrot.slane %v1314_v54, 1  ;;  %v2046_v26 = vmul.f32 %v8254_v21, %v10249_v46  ;;  %v719_v55 = vsel %vm646_vm1, %v717_v1, %v718_v43  ;;  %v2356_v40 = vmul.f32 %v9796_v34, %v10249_v46 }
 0x16e   : > { %v1030_v39 = vsel %vm957_vm2, %v1028_v23, %v1029_v48  ;;  %v1760_v15 = vrot.slane %v1624_v44, 2  ;;  %v2299_v41 = vadd.f32 %v2186_v37, %v1989_v6  ;;  %v833_v17 = vadd.f32 %v719_v55, %v468_v5 }
 0x16f   : > { %v1452_v52 = vsel %vm646_vm1, %v1450_v7, %v1451_v3  ;;  %v2182_v2 = vrot.slane %v2046_v26, 1  ;;  %v2492_v38 = vrot.slane %v2356_v40, 2  ;;  %v471_v24 = vmul.f32 %v8217_v11, %v10037_v45  ;;  %v10300_v7 = vld [vmem:[%s8213_s11 + $0x1a0] sm:$0xff] }
 0x170   : > { %v1762_v54 = vsel %vm957_vm2, %v1760_v15, %v1761_v50  ;;  %v583_v43 = vmul.f32 %v8221_v12, %v10037_v45  ;;  %v2609_v48 = vadd.f32 %v2496_v9, %v2299_v41  ;;  %v1144_v23 = vadd.f32 %v1030_v39, %v833_v17  ;;  %v10288_v39 = vld [vmem:[%s8213_s11 + $0x198] sm:$0xff] }
 0x171   : > { %v2184_v1 = vsel %vm646_vm1, %v2182_v2, %v2183_v63  ;;  %v10272_v6 = vmul.f32 %v8221_v12, %v10045_v57  ;;  %v2494_v26 = vsel %vm957_vm2, %v2492_v38, %v2493_v28  ;;  %v894_v50 = vmul.f32 %v8225_v13, %v10037_v45 }
 0x172   : > { %v722_v3 = vrot.slane %v583_v43, 1  ;;  %v10279_v15 = vmul.f32 %v8225_v13, %v10045_v57  ;;  %v10282_v5 = vadd.f32 %v9899_v22, %v2609_v48  ;;  %v1256_v17 = vadd.f32 %v1202_v35, %v1144_v23 }
 0x173   : > { %v14244_v63 = vrot.slane %v10272_v6, 1  ;;  %v1205_v37 = vmul.f32 %v8229_v14, %v10249_v46  ;;  %v1033_v38 = vrot.slane %v894_v50, 2  ;;  %v1317_v45 = vmul.f32 %v8242_v18, %v10249_v46 }
 0x174   : > { %14617 = vst [vmem:[#allocation45_spill] sm:$0xff] %v10282_v5  ;;  %v14243_v28 = vrot.slane %v10279_v15, 2  ;;  %v10295_v9 = vmul.f32 %v8242_v18, %v10192_v42  ;;  %v2812_v35 = vsel %vm2681_vm3, %v10282_v5, 0.0  ;;  %v1566_v44 = vadd.f32 %v1452_v52, %v1256_v17 }
 0x175   : > { %v724_v55 = vsel %vm646_vm1, %v722_v3, %v14244_v63  ;;  %v1627_v40 = vmul.f32 %v8246_v19, %v10249_v46  ;;  %2813 = vadd.xlane.f32.xlu1 %v2812_v35  ;;  %v1455_v43 = vrot.slane %v1317_v45, 1  ;;  %v10313_v52 = vmul.f32 %v8246_v19, %v10192_v42 }
 0x176   : > { %v836_v41 = vadd.f32 %v724_v55, %v471_v24  ;;  %v1035_v2 = vsel %vm957_vm2, %v1033_v38, %v14243_v28  ;;  %v14242_v48 = vrot.slane %v10295_v9, 1  ;;  %v1876_v23 = vadd.f32 %v1762_v54, %v1566_v44 }
 0x177   : > { %v1765_v50 = vrot.slane %v1627_v40, 2  ;;  %v1937_v3 = vmul.f32 %v8250_v20, %v10288_v39  ;;  %v2049_v38 = vmul.f32 %v8254_v21, %v10288_v39  ;;  %v10324_v45 = vmul.f32 %v8254_v21, %v10300_v7 }
 0x178   : > { %v1147_v17 = vadd.f32 %v1035_v2, %v836_v41  ;;  %v1457_v24 = vsel %vm646_vm1, %v1455_v43, %v14242_v48  ;;  %v1988_v54 = vadd.f32 %v1934_v32, %v1876_v23  ;;  %v1766_v35 = vrot.slane %v10313_v52, 2 }
 0x179   : > { %v2359_v44 = vmul.f32 %v9796_v34, %v10288_v39  ;;  %v2360_v55 = vmul.f32 %v9796_v34, %v10300_v7  ;;  %v2187_v41 = vrot.slane %v2049_v38, 1  ;;  %v2188_v2 = vrot.slane %v10324_v45, 1 }
 0x17a   : > { %v1259_v40 = vadd.f32 %v1205_v37, %v1147_v17  ;;  %v470_v43 = vmul.f32 %v8217_v11, %v9933_v25  ;;  %v2298_v48 = vadd.f32 %v2184_v1, %v1988_v54  ;;  %v1767_v28 = vsel %vm957_vm2, %v1765_v50, %v1766_v35  ;;  %v10361_v54 = vld [vmem:[%s8213_s11 + $0x1a8] sm:$0xf] }
 0x17b   : > { %v2497_v63 = vrot.slane %v2359_v44, 2  ;;  %v2498_v32 = vrot.slane %v2360_v55, 2  ;;  %v2189_v52 = vsel %vm646_vm1, %v2187_v41, %v2188_v2  ;;  %v14618_v5 = vrot.slane %v10146_v47, 1 }
 0x17c   : > { %v1569_v23 = vadd.f32 %v1457_v24, %v1259_v40  ;;  %v1204_v37 = vmul.f32 %v8229_v14, %v10097_v30  ;;  %v2608_v17 = vadd.f32 %v2494_v26, %v2298_v48  ;;  %v1936_v25 = vmul.f32 %v8250_v20, %v10188_v58 }
 0x17d   : > { %v835_v33 = vadd.f32 %v14618_v5, %v470_v43  ;;  %v2499_v38 = vsel %vm957_vm2, %v2497_v63, %v2498_v32  ;;  %v473_v1 = vmul.f32 %v8217_v11, %v10097_v30  ;;  %v14619_v24 = vrot.slane %v10154_v36, 2 }
 0x17e   : > { %v1879_v50 = vadd.f32 %v1767_v28, %v1569_v23  ;;  %v585_v47 = vmul.f32 %v8221_v12, %v10097_v30  ;;  %v896_v5 = vmul.f32 %v8225_v13, %v10097_v30  ;;  %v10352_v26 = vadd.f32 %v9899_v22, %v2608_v17 }
 0x17f   : > { %v1146_v45 = vadd.f32 %v14619_v24, %v835_v33  ;;  %v1207_v63 = vmul.f32 %v8229_v14, %v10188_v58  ;;  %v1319_v48 = vmul.f32 %v8242_v18, %v10188_v58  ;;  %v1629_v28 = vmul.f32 %v8246_v19, %v10188_v58 }
 0x180   : > { %14620 = vst [vmem:[#allocation46_spill] sm:$0xff] %v10352_v26  ;;  %v1991_v36 = vadd.f32 %v1937_v3, %v1879_v50  ;;  %v725_v44 = vrot.slane %v585_v47, 1  ;;  %v1036_v55 = vrot.slane %v896_v5, 2  ;;  %v2809_v30 = vsel %vm2681_vm3, %v10352_v26, 0.0 }
 0x181   : > { %v1258_v33 = vadd.f32 %v1204_v37, %v1146_v45  ;;  %v1458_v40 = vrot.slane %v1319_v48, 1  ;;  %v1768_v41 = vrot.slane %v1629_v28, 2  ;;  %v1939_v43 = vmul.f32 %v8250_v20, %v10361_v54  ;;  %2810 = vadd.xlane.f32.xlu0 %v2809_v30  ;;  %v10371_v37 = vpop.xlane.xlu1 %2699 }
 0x182   : > { %v2301_v23 = vadd.f32 %v2189_v52, %v1991_v36  ;;  %v14621_v17 = vrot.slane %v10173_v27, 1  ;;  %v838_v61 = vadd.f32 %v725_v44, %v473_v1  ;;  %v2051_v3 = vmul.f32 %v8254_v21, %v10361_v54 }
 0x183   : > { %v2361_v50 = vmul.f32 %v9796_v34, %v10361_v54  ;;  %v472_v45 = vmul.f32 %v8217_v11, %v10045_v57  ;;  %v14622_v47 = vrot.slane %v10272_v6, 1  ;;  %v14623_v52 = vrot.slane %v10279_v15, 2 }
 0x184   : > { %v1568_v24 = vadd.f32 %v14621_v17, %v1258_v33  ;;  %v2611_v1 = vadd.f32 %v2499_v38, %v2301_v23  ;;  %v14624_v48 = vrot.slane %v10197_v8, 2  ;;  %v1149_v36 = vadd.f32 %v1036_v55, %v838_v61  ;;  %v10394_v8 = vpop.xlane.xlu0 %2690 }
 0x185   : > { %v726_v5 = vsel %vm646_vm1, %v14622_v47, %v725_v44  ;;  %v1037_v27 = vsel %vm957_vm2, %v14623_v52, %v1036_v55  ;;  %v2190_v33 = vrot.slane %v2051_v3, 1  ;;  %v2500_v30 = vrot.slane %v2361_v50, 2 }
 0x186   : > { %v1878_v28 = vadd.f32 %v14624_v48, %v1568_v24  ;;  %v837_v17 = vadd.f32 %v726_v5, %v472_v45  ;;  %v1206_v26 = vmul.f32 %v8229_v14, %v10192_v42  ;;  %v14625_v57 = vrot.slane %v10295_v9, 1 }
 0x187   : > { %v10391_v44 = vadd.f32 %v9899_v22, %v2611_v1  ;;  %v1261_v47 = vadd.f32 %v1207_v63, %v1149_v36  ;;  %v1769_v38 = vsel %vm957_vm2, %v1766_v35, %v1768_v41  ;;  %v1938_v55 = vmul.f32 %v8250_v20, %v10300_v7  ;;  %v10406_v63 = vpop.xlane.xlu1 %2717 }
 0x188   : > { %v1459_v6 = vsel %vm646_vm1, %v14625_v57, %v1458_v40  ;;  %v1990_v15 = vadd.f32 %v1936_v25, %v1878_v28  ;;  %v1148_v61 = vadd.f32 %v1037_v27, %v837_v17  ;;  %v2191_v23 = vsel %vm646_vm1, %v2188_v2, %v2190_v33  ;;  %v10439_v57 = vpop.xlane.xlu0 %2708 }
 0x189   : > { %14626 = vst [vmem:[#allocation47_spill] sm:$0xff] %v10391_v44  ;;  %v2501_v24 = vsel %vm957_vm2, %v2498_v32, %v2500_v30  ;;  %v2818_v9 = vsel %vm2681_vm3, %v10391_v44, 0.0  ;;  %v14627_v3 = vrot.slane %v10212_v31, 1  ;;  %v1571_v25 = vadd.f32 %v1458_v40, %v1261_v47 }
 0x18a   : > { %v475_v35 = vmul.f32 %v8217_v11, %v10192_v42  ;;  %2819 = vadd.xlane.f32.xlu1 %v2818_v9  ;;  %v1260_v45 = vadd.f32 %v1206_v26, %v1148_v61  ;;  %v10410_v5 = vmul.f32 %v8221_v12, %v10192_v42  ;;  %v10414_v2 = vmul.f32 %v8221_v12, %v10188_v58 }
 0x18b   : > { %v2300_v50 = vadd.f32 %v14627_v3, %v1990_v15  ;;  %v10418_v31 = vmul.f32 %v8225_v13, %v10192_v42  ;;  %v14628_v32 = vrot.slane %v10224_v16, 2  ;;  %v1881_v52 = vadd.f32 %v1768_v41, %v1571_v25 }
 0x18c   : > { %v10424_v27 = vmul.f32 %v8225_v13, %v10188_v58  ;;  %v1209_v26 = vmul.f32 %v8229_v14, %v10300_v7  ;;  %v1570_v1 = vadd.f32 %v1459_v6, %v1260_v45  ;;  %v14254_v48 = vrot.slane %v10410_v5, 1  ;;  %v10464_v45 = vld [vmem:[%s8213_s11 + $0x1b8] sm:$0xff] }
 0x18d   : > { %v2610_v40 = vadd.f32 %v14628_v32, %v2300_v50  ;;  %v14251_v28 = vrot.slane %v10414_v2, 1  ;;  %v14252_v36 = vrot.slane %v10418_v31, 2  ;;  %v1993_v16 = vadd.f32 %v1939_v43, %v1881_v52  ;;  %v10461_v50 = vpop.xlane.xlu1 %2735  ;;  %v10467_v32 = vld [vmem:[%s8213_s11 + $0x1c0] sm:$0xf] }
 0x18e   : > { %v14249_v41 = vrot.slane %v10424_v27, 2  ;;  %v10437_v17 = vmul.f32 %v8242_v18, %v10300_v7  ;;  %v1880_v6 = vadd.f32 %v1769_v38, %v1570_v1  ;;  %v10448_v47 = vmul.f32 %v8242_v18, %v10361_v54 }
 0x18f   : > { %v10432_v42 = vadd.f32 %v9899_v22, %v2610_v40  ;;  %v731_v15 = vsel %vm646_vm1, %v14254_v48, %v14251_v28  ;;  %v10452_v43 = vmul.f32 %v8246_v19, %v10300_v7  ;;  %v2303_v9 = vadd.f32 %v2190_v33, %v1993_v16 }
 0x190   : > { %v840_v3 = vadd.f32 %v731_v15, %v475_v35  ;;  %v1042_v38 = vsel %vm957_vm2, %v14252_v36, %v14249_v41  ;;  %v1992_v25 = vadd.f32 %v1938_v55, %v1880_v6  ;;  %v1461_v40 = vrot.slane %v10437_v17, 1 }
 0x191   : > { %14629 = vst [vmem:[#allocation48_spill] sm:$0xff] %v10432_v42  ;;  %v2815_v61 = vsel %vm2688_vm0, %v10432_v42, 0.0  ;;  %v14250_v52 = vrot.slane %v10448_v47, 1  ;;  %v10473_v33 = vmul.f32 %v8246_v19, %v10361_v54  ;;  %v2613_v35 = vadd.f32 %v2500_v30, %v2303_v9  ;;  %v10497_v9 = vpop.xlane.xlu0 %2726  ;;  %v10511_v36 = vpop.xlane.xlu1 %2693 }
 0x192   : > { %2816 = vadd.xlane.f32.xlu0 %v2815_v61  ;;  %v1151_v1 = vadd.f32 %v1042_v38, %v840_v3  ;;  %v1771_v16 = vrot.slane %v10452_v43, 2  ;;  %v1941_v15 = vmul.f32 %v8250_v20, %v10464_v45  ;;  %v2302_v55 = vadd.f32 %v2191_v23, %v1992_v25 }
 0x193   : > { %v1464_v6 = vsel %vm646_vm1, %v1461_v40, %v14250_v52  ;;  %v14253_v17 = vrot.slane %v10473_v33, 2  ;;  %v10484_v61 = vmul.f32 %v8254_v21, %v10464_v45  ;;  %v10487_v41 = vadd.f32 %v9899_v22, %v2613_v35 }
 0x194   : > { %v1263_v30 = vadd.f32 %v1209_v26, %v1151_v1  ;;  %v10491_v43 = vmul.f32 %v8254_v21, %v10467_v32  ;;  %v10495_v23 = vmul.f32 %v9796_v34, %v10464_v45  ;;  %v2612_v3 = vadd.f32 %v2501_v24, %v2302_v55 }
 0x195   : > { %14630 = vst [vmem:[#allocation49_spill] sm:$0xff] %v10487_v41  ;;  %v1774_v38 = vsel %vm957_vm2, %v1771_v16, %v14253_v17  ;;  %v14256_v25 = vrot.slane %v10484_v61, 1  ;;  %v10505_v26 = vmul.f32 %v9796_v34, %v10467_v32  ;;  %v2824_v35 = vsel %vm2688_vm0, %v10487_v41, 0.0  ;;  %v412_v41 = vld [vmem:[%s8213_s11 + $0x1b0] sm:$0xff] }
 0x196   : > { %v1573_v1 = vadd.f32 %v1464_v6, %v1263_v30  ;;  %v14255_v52 = vrot.slane %v10491_v43, 1  ;;  %2825 = vadd.xlane.f32.xlu1 %v2824_v35  ;;  %v10514_v24 = vadd.f32 %v9899_v22, %v2612_v3  ;;  %v586_v34 = vmul.f32 %v8221_v12, %v10249_v46 }
 0x197   : > { %v14262_v55 = vrot.slane %v10505_v26, 2  ;;  %v474_v30 = vmul.f32 %v8217_v11, %v10249_v46  ;;  %v897_v35 = vmul.f32 %v8225_v13, %v10249_v46  ;;  %v1208_v28 = vmul.f32 %v8229_v14, %v10288_v39 }
 0x198   : > { %14631 = vst [vmem:[#allocation50_spill] sm:$0xff] %v10514_v24  ;;  %v1883_v17 = vadd.f32 %v1774_v38, %v1573_v1  ;;  %v2196_v6 = vsel %vm646_vm1, %v14256_v25, %v14255_v52  ;;  %v2821_v3 = vsel %vm2681_vm3, %v10514_v24, 0.0  ;;  %v727_v48 = vrot.slane %v586_v34, 1  ;;  %v10542_v34 = vpop.xlane.xlu0 %2683 }
 0x199   : > { %v1320_v38 = vmul.f32 %v8242_v18, %v10288_v39  ;;  %2822 = vadd.xlane.f32.xlu0 %v2821_v3  ;;  %v14632_v52 = vrot.slane %v10495_v23, 2  ;;  %v1038_v46 = vrot.slane %v897_v35, 2  ;;  %v1630_v24 = vmul.f32 %v8246_v19, %v10288_v39 }
 0x19a   : > { %v1995_v1 = vadd.f32 %v1941_v15, %v1883_v17  ;;  %v14633_v42 = vrot.slane %v10410_v5, 1  ;;  %v2052_v15 = vmul.f32 %v8254_v21, %v412_v41  ;;  %v10551_v17 = vld [vmem:[%s14097_s1 + $0x8] ss:$0 sm:$0xff]  ;;  %v10557_v5 = vpop.xlane.xlu1 %2696  ;;  %v589_v62 = vmul.f32 %v8221_v12, %v10288_v39 }
 0x19b   : > { %v2506_v25 = vsel %vm957_vm2, %v14632_v52, %v14262_v55  ;;  %v1460_v59 = vrot.slane %v1320_v38, 1  ;;  %v2362_v52 = vmul.f32 %v10551_v17, %v412_v41  ;;  %v14634_v55 = vrot.slane %v10418_v31, 2  ;;  %14635 = vst [vmem:[#allocation51_spill] sm:$0xff] %v10557_v5 }
 0x19c   : > { %v729_v44 = vsel %vm646_vm1, %v727_v48, %v14633_v42  ;;  %v2305_v35 = vadd.f32 %v2196_v6, %v1995_v1  ;;  %v1770_v56 = vrot.slane %v1630_v24, 2  ;;  %v1940_v42 = vmul.f32 %v8250_v20, %v412_v41 }
 0x19d   : > { %v839_v3 = vadd.f32 %v729_v44, %v474_v30  ;;  %v1040_v29 = vsel %vm957_vm2, %v1038_v46, %v14634_v55  ;;  %v1462_v48 = vsel %vm646_vm1, %v1460_v59, %v1461_v40  ;;  %v2192_v38 = vrot.slane %v2052_v15, 1  ;;  %v415_v46 = vld [vmem:[%s8213_s11 + $0x1c8] sm:$0xff]  ;;  %v10595_v15 = vld [vmem:[%s8213_s11 + $0x1d0] sm:$0xff] }
 0x19e   : > { %v2615_v60 = vadd.f32 %v2506_v25, %v2305_v35  ;;  %v2502_v4 = vrot.slane %v2362_v52, 2  ;;  %v1772_v44 = vsel %vm957_vm2, %v1770_v56, %v1771_v16  ;;  %v477_v31 = vmul.f32 %v8217_v11, %v10288_v39  ;;  %v10579_v56 = vpop.xlane.xlu0 %2686 }
 0x19f   : > { %v1150_v10 = vadd.f32 %v1040_v29, %v839_v3  ;;  %v10568_v24 = vmul.f32 %v8221_v12, %v10300_v7  ;;  %v900_v59 = vmul.f32 %v8225_v13, %v10288_v39  ;;  %v732_v25 = vrot.slane %v589_v62, 1 }
 0x1a0   : > { %v10573_v40 = vadd.f32 %v9899_v22, %v2615_v60  ;;  %v10577_v55 = vmul.f32 %v8225_v13, %v10300_v7  ;;  %v1211_v30 = vmul.f32 %v8229_v14, %v412_v41  ;;  %v1323_v1 = vmul.f32 %v8242_v18, %v412_v41 }
 0x1a1   : > { %v1262_v29 = vadd.f32 %v1208_v28, %v1150_v10  ;;  %v14270_v16 = vrot.slane %v10568_v24, 1  ;;  %v1043_v6 = vrot.slane %v900_v59, 2  ;;  %v10590_v62 = vmul.f32 %v8242_v18, %v10464_v45  ;;  %v10592_v28 = vpop.xlane.xlu1 %2705 }
 0x1a2   : > { %14636 = vst [vmem:[#allocation52_spill] sm:$0xff] %v10573_v40  ;;  %v2830_v60 = vsel %vm2681_vm3, %v10573_v40, 0.0  ;;  %v1044_v10 = vrot.slane %v10577_v55, 2  ;;  %14637 = vst [vmem:[#allocation53_spill] sm:$0xff] %v10592_v28  ;;  %v1465_v35 = vrot.slane %v1323_v1, 1  ;;  %v1633_v3 = vmul.f32 %v8246_v19, %v412_v41 }
 0x1a3   : > { %v1572_v39 = vadd.f32 %v1462_v48, %v1262_v29  ;;  %2831 = vadd.xlane.f32.xlu1 %v2830_v60  ;;  %v734_v52 = vsel %vm646_vm1, %v732_v25, %v14270_v16  ;;  %v10603_v48 = vmul.f32 %v8246_v19, %v10464_v45  ;;  %v1466_v40 = vrot.slane %v10590_v62, 1 }
 0x1a4   : > { %v842_v29 = vadd.f32 %v734_v52, %v477_v31  ;;  %v1045_v55 = vsel %vm957_vm2, %v1043_v6, %v1044_v10  ;;  %v14638_v60 = vrot.slane %v10484_v61, 1  ;;  %v1775_v5 = vrot.slane %v1633_v3, 2  ;;  %v10619_v6 = vpop.xlane.xlu0 %2702 }
 0x1a5   : > { %v1882_v59 = vadd.f32 %v1772_v44, %v1572_v39  ;;  %v1776_v25 = vrot.slane %v10603_v48, 2  ;;  %v2055_v1 = vmul.f32 %v8254_v21, %v415_v46  ;;  %v14639_v16 = vrot.slane %v10495_v23, 2  ;;  %v10630_v52 = vpop.xlane.xlu1 %2711 }
 0x1a6   : > { %v2194_v28 = vsel %vm646_vm1, %v2192_v38, %v14638_v60  ;;  %v1153_v44 = vadd.f32 %v1045_v55, %v842_v29  ;;  %v10617_v31 = vmul.f32 %v8254_v21, %v10595_v15  ;;  %v1467_v61 = vsel %vm646_vm1, %v1465_v35, %v1466_v40 }
 0x1a7   : > { %v1994_v41 = vadd.f32 %v1940_v42, %v1882_v59  ;;  %v2504_v0 = vsel %vm957_vm2, %v2502_v4, %v14639_v16  ;;  %v2197_v38 = vrot.slane %v2055_v1, 1  ;;  %v2365_v39 = vmul.f32 %v10551_v17, %v415_v46 }
 0x1a8   : > { %v10625_v62 = vmul.f32 %v10551_v17, %v10595_v15  ;;  %v1265_v23 = vadd.f32 %v1211_v30, %v1153_v44  ;;  %v2198_v4 = vrot.slane %v10617_v31, 1  ;;  %v476_v16 = vmul.f32 %v8217_v11, %v10188_v58 }
 0x1a9   : > { %v2304_v42 = vadd.f32 %v2194_v28, %v1994_v41  ;;  %v1777_v35 = vsel %vm957_vm2, %v1775_v5, %v1776_v25  ;;  %v1943_v3 = vmul.f32 %v8250_v20, %v415_v46  ;;  %v2507_v59 = vrot.slane %v2365_v39, 2 }
 0x1aa   : > { %v1575_v55 = vadd.f32 %v1467_v61, %v1265_v23  ;;  %v14640_v60 = vrot.slane %v10414_v2, 1  ;;  %v1210_v30 = vmul.f32 %v8229_v14, %v10361_v54  ;;  %v2199_v58 = vsel %vm646_vm1, %v2197_v38, %v2198_v4  ;;  %v10655_v38 = vpop.xlane.xlu0 %2714 }
 0x1ab   : > { %v2614_v29 = vadd.f32 %v2504_v0, %v2304_v42  ;;  %v2508_v1 = vrot.slane %v10625_v62, 2  ;;  %v591_v5 = vmul.f32 %v8221_v12, %v10361_v54  ;;  %v902_v0 = vmul.f32 %v8225_v13, %v10361_v54 }
 0x1ac   : > { %v841_v28 = vadd.f32 %v14640_v60, %v476_v16  ;;  %v1885_v2 = vadd.f32 %v1777_v35, %v1575_v55  ;;  %v14641_v41 = vrot.slane %v10424_v27, 2  ;;  %v478_v61 = vmul.f32 %v8217_v11, %v10300_v7  ;;  %v417_v16 = vld [vmem:[%s8213_s11 + $0x1d8] sm:$0xf]  ;;  %v10666_v7 = vpop.xlane.xlu1 %2723  ;;  %s7315_s11 = sshll.u32 %s350_s21, 8 }
 0x1ad   : > { %v10649_v46 = vadd.f32 %v9899_v22, %v2614_v29  ;;  %v735_v39 = vrot.slane %v591_v5, 1  ;;  %v1046_v62 = vrot.slane %v902_v0, 2  ;;  %v1325_v12 = vmul.f32 %v8242_v18, %v10467_v32  ;;  %s13909_s27 = scalar_lea.vmem [#allocation2], %s7315_s11  ;;  %s8089_s11 = smov [#allocation2]  }
 0x1ae   : > { %v1152_v44 = vadd.f32 %v14641_v41, %v841_v28  ;;  %v1635_v13 = vmul.f32 %v8246_v19, %v10467_v32  ;;  %v1997_v42 = vadd.f32 %v1943_v3, %v1885_v2  ;;  %v1942_v27 = vmul.f32 %v8250_v20, %v10467_v32  ;;  %s7249_s29 = sshll.u32 %s13909_s27, 4  ;;  %s8028_s25 = sshll.u32 %s8089_s11, 4  ;;  %s14046_s29 = int_to_ptr.vmem [resolvable:$true] %s7249_s29  ;;  %s8029_s25 = int_to_ptr.vmem [resolvable:$false] %s8028_s25 }
 0x1af   : > { %v2827_v22 = vsel %vm2681_vm3, %v10649_v46, 0.0  ;;  %v2509_v35 = vsel %vm957_vm2, %v2507_v59, %v2508_v1  ;;  %v14642_v29 = vrot.slane %v10568_v24, 1  ;;  %v1047_v19 = vsel %vm957_vm2, %v1044_v10, %v1046_v62  ;;  %s8024_s20 = scalar_lea.vmem %s14046_s29, 4096  ;;  %s8030_s26 = scalar_lea.vmem %s8029_s25, 8192 }
 0x1b0   : > { %v1264_v23 = vadd.f32 %v1210_v30, %v1152_v44  ;;  %2828 = vadd.xlane.f32.xlu0 %v2827_v22  ;;  %v1468_v55 = vrot.slane %v1325_v12, 1  ;;  %v2307_v60 = vadd.f32 %v2199_v58, %v1997_v42  ;;  %v14643_v3 = vrot.slane %v10448_v47, 1  ;;  %v10680_v22 = vpop.xlane.xlu0 %2720  ;;  %p8025_p11 = scmp.ne.s32.totalorder %s14046_s29, %s8024_s20  ;;  %p8031_p0 = scmp.lt.s32.totalorder %s14046_s29, %s8029_s25 }
 0x1b1   : > { %v736_v18 = vsel %vm646_vm1, %v14642_v29, %v735_v39  ;;  %v1212_v5 = vmul.f32 %v8229_v14, %v10464_v45  ;;  %v1778_v0 = vrot.slane %v1635_v13, 2  ;;  %v2057_v2 = vmul.f32 %v8254_v21, %v417_v16  ;;  %v8016_v45 = vld [vmem:[%s14098_s2] ss:$0 sm:$0xff]  ;;  %p8032_p1 = scmp.lt.s32.totalorder %s8030_s26, %s8024_s20 }
 0x1b2   : > { %v1574_v28 = vadd.f32 %v14643_v3, %v1264_v23  ;;  %v843_v30 = vadd.f32 %v736_v18, %v478_v61  ;;  %v2617_v41 = vadd.f32 %v2509_v35, %v2307_v60  ;;  %v14644_v59 = vrot.slane %v10473_v33, 2  ;;  %v10691_v33 = vpop.xlane.xlu1 %2729  ;;  %p8026_p12 = pnand %p8025_p11, %p8185_p5 }
 0x1b3   : > { %v1469_v10 = vsel %vm646_vm1, %v1466_v40, %v1468_v55  ;;  %v2367_v58 = vmul.f32 %v10551_v17, %v417_v16  ;;  %v479_v47 = vmul.f32 %v8217_v11, %v10361_v54  ;;  %v1779_v13 = vsel %vm957_vm2, %v1776_v25, %v1778_v0  ;;  %p8033_p2 = por %p8032_p1, %p8031_p0 }
 0x1b4   : > { %v1884_v24 = vadd.f32 %v14644_v59, %v1574_v28  ;;  %v1154_v44 = vadd.f32 %v1047_v19, %v843_v30  ;;  %v10689_v61 = vadd.f32 %v8016_v45, %v2617_v41  ;;  %v2200_v40 = vrot.slane %v2057_v2, 1  ;;  %p8027_p13 = pneg %p8026_p12 }
 0x1b5   : > { %v844_v42 = vadd.f32 %v735_v39, %v479_v47  ;;  %v1213_v17 = vmul.f32 %v8229_v14, %v10467_v32  ;;  %v14645_v54 = vrot.slane %v10491_v43, 1  ;;  %v2510_v29 = vrot.slane %v2367_v58, 2  ;;  %v10707_v14 = vpop.xlane.xlu0 %2732 }
 0x1b6   : > { %v1996_v21 = vadd.f32 %v1942_v27, %v1884_v24  ;;  %v1266_v12 = vadd.f32 %v1212_v5, %v1154_v44  ;;  %v2836_v11 = vsel %vm2681_vm3, %v10689_v61, 0.0  ;;  %v1944_v27 = vmul.f32 %v8250_v20, %v10595_v15  ;;  %v10714_v15 = vpop.xlane.xlu1 %2741  ;;  %v14647_v5 = vld [vmem:[#allocation19_spill] sm:$0xff]  ;;  %p8034_p3 = pnand %p8033_p2, %p8027_p13 }
 0x1b7   : > { %2837 = vadd.xlane.f32.xlu1 %v2836_v11  ;;  %v1155_v48 = vadd.f32 %v1046_v62, %v844_v42  ;;  %v14646_v25 = vrot.slane %v10505_v26, 2  ;;  %v2848_v19 = vmul.f32 0.03125, %v10394_v8  ;;  %v2201_v32 = vsel %vm646_vm1, %v2198_v4, %v2200_v40  ;;  %v14650_v42 = vld [vmem:[#allocation33_spill] sm:$0xff] }
 0x1b8   : > { %v2306_v23 = vadd.f32 %v14645_v54, %v1996_v21  ;;  %v1576_v35 = vadd.f32 %v1469_v10, %v1266_v12  ;;  %v2511_v62 = vsel %vm957_vm2, %v2508_v1, %v2510_v29  ;;  %v1945_v26 = vmul.f32 %v8250_v20, %v417_v16  ;;  %v14648_v20 = vld [vmem:[#allocation31_spill] sm:$0xff] }
 0x1b9   : > { %v1267_v43 = vadd.f32 %v1213_v17, %v1155_v48  ;;  %v10721_v2 = vsub.f32 %v14647_v5, %v2848_v19  ;;  %v2854_v31 = vmul.f32 0.03125, %v10439_v57  ;;  %v2851_v4 = vmul.f32 0.03125, %v10371_v37  ;;  %v10725_v24 = vpop.xlane.xlu0 %2738  ;;  %v14649_v57 = vld [vmem:[#allocation15_spill] sm:$0xff]  ;;  %v14652_v48 = vld [vmem:[#allocation32_spill] sm:$0xff] }
 0x1ba   : > { %v2616_v18 = vadd.f32 %v14646_v25, %v2306_v23  ;;  %v1886_v39 = vadd.f32 %v1779_v13, %v1576_v35  ;;  %v2860_v44 = vmul.f32 0.03125, %v10497_v9  ;;  %v10735_v58 = vpop.xlane.xlu1 %2747  ;;  %v2863_v13 = vmul.f32 0.03125, %v10461_v50 }
 0x1bb   : > { %v1577_v28 = vadd.f32 %v1468_v55, %v1267_v43  ;;  %v10730_v16 = vsub.f32 %v14648_v20, %v2854_v31  ;;  %v2956_v10 = vmul.f32 %v10721_v2, %v10721_v2  ;;  %v10738_v47 = vsub.f32 %v14649_v57, %v2851_v4  ;;  %v14653_v20 = vld [vmem:[#allocation34_spill] sm:$0xff]  ;;  %v14655_v57 = vld [vmem:[#allocation12_spill] sm:$0xff] }
 0x1bc   : > { %v10712_v60 = vadd.f32 %v8016_v45, %v2616_v18  ;;  %v1998_v3 = vadd.f32 %v1944_v27, %v1886_v39  ;;  %v10745_v9 = vsub.f32 %v14650_v42, %v2860_v44  ;;  %v10760_v25 = vsub.f32 %v14652_v48, %v2863_v13  ;;  %v14654_v44 = vld [vmem:[#allocation51_spill] sm:$0xff] }
 0x1bd   : > { %v1887_v41 = vadd.f32 %v1778_v0, %v1577_v28  ;;  %v2857_v0 = vmul.f32 0.03125, %v10406_v63  ;;  %v3014_v17 = vsel %vm2688_vm0, %v2956_v10, 0.0  ;;  %v2962_v11 = vmul.f32 %v10730_v16, %v10730_v16  ;;  %v2745_v54 = vpop.xlane.xlu0 %2744 }
 0x1be   : > { %v2833_v8 = vsel %vm2688_vm0, %v10712_v60, 0.0  ;;  %v2308_v30 = vadd.f32 %v2201_v32, %v1998_v3  ;;  %v2959_v35 = vmul.f32 %v10738_v47, %v10738_v47  ;;  %v2754_v27 = vpop.xlane.xlu1 %2753  ;;  %v2846_v3 = vmul.f32 0.03125, %v10542_v34 }
 0x1bf   : > { %2834 = vadd.xlane.f32.xlu0 %v2833_v8  ;;  %v1999_v1 = vadd.f32 %v1945_v26, %v1887_v41  ;;  %v3032_v18 = vsel %vm2688_vm0, %v2962_v11, 0.0  ;;  %v2869_v43 = vmul.f32 0.03125, %v2754_v27  ;;  %v2849_v5 = vmul.f32 0.03125, %v10511_v36  ;;  %v14657_v11 = vld [vmem:[#allocation35_spill] sm:$0xff] }
 0x1c0   : > { %v2618_v59 = vadd.f32 %v2511_v62, %v2308_v30  ;;  %v3023_v39 = vsel %vm2688_vm0, %v2959_v35, 0.0  ;;  %v2971_v30 = vmul.f32 %v10760_v25, %v10760_v25  ;;  %v10785_v34 = vsub.f32 %v8786_v53, %v2846_v3 }
 0x1c1   : > { %v2309_v37 = vadd.f32 %v2200_v40, %v1999_v1  ;;  %v14651_v40 = vld [vmem:[#allocation25_spill] sm:$0xff]  ;;  %v10772_v62 = vpop.xlane.xlu0 %2750  ;;  %v2847_v31 = vmul.f32 0.03125, %v10579_v56  ;;  %v10797_v36 = vsub.f32 %v14653_v20, %v2849_v5  ;;  %v2852_v53 = vmul.f32 0.03125, %v10619_v6 }
 0x1c2   : > { %v10727_v55 = vadd.f32 %v8016_v45, %v2618_v59  ;;  %v10753_v63 = vsub.f32 %v14651_v40, %v2857_v0  ;;  %v10788_v4 = vpop.xlane.xlu1 %2759  ;;  %v3059_v59 = vsel %vm2688_vm0, %v2971_v30, 0.0  ;;  %v2954_v56 = vmul.f32 %v10785_v34, %v10785_v34  ;;  %v14658_v40 = vld [vmem:[#allocation53_spill] sm:$0xff] }
 0x1c3   : > { %v2619_v12 = vadd.f32 %v2510_v29, %v2309_v37  ;;  %v2866_v29 = vmul.f32 0.03125, %v2745_v54  ;;  %v2850_v10 = vmul.f32 0.03125, %v14654_v44  ;;  %v10804_v37 = vsub.f32 %v14655_v57, %v2847_v31  ;;  %v14661_v30 = vld [vmem:[#allocation9_spill] sm:$0xff] }
 0x1c4   : > { %v2839_v21 = vsel %vm2681_vm3, %v10727_v55, 0.0  ;;  %v2965_v19 = vmul.f32 %v10753_v63, %v10753_v63  ;;  %v2856_v42 = vmul.f32 0.03125, %v10655_v38  ;;  %v3008_v6 = vsel %vm2681_vm3, %v2954_v56, 0.0 }
 0x1c5   : > { %2840 = vadd.xlane.f32.xlu0 %v2839_v21  ;;  %v10750_v23 = vadd.f32 %v8016_v45, %v2619_v12  ;;  %v2968_v45 = vmul.f32 %v10745_v9, %v10745_v9  ;;  %v10769_v32 = vsub.f32 %v9380_v49, %v2866_v29  ;;  %v10781_v49 = vsub.f32 %v9414_v51, %v2869_v43  ;;  %v10794_v51 = vpop.xlane.xlu0 %2756  ;;  %v14656_v12 = vld [vmem:[#allocation36_spill] sm:$0xff]  ;;  %v14659_v29 = vld [vmem:[#allocation7_spill] sm:$0xff] }
 0x1c6   : > { %v3041_v8 = vsel %vm2688_vm0, %v2965_v19, 0.0  ;;  %v10807_v21 = vpop.xlane.xlu1 %2765  ;;  %v10810_v13 = vsub.f32 %v14656_v12, %v2852_v53  ;;  %v10817_v54 = vsub.f32 %v14657_v11, %v2850_v10  ;;  %v2853_v35 = vmul.f32 0.03125, %v14658_v40  ;;  %v14664_v12 = vld [vmem:[#allocation8_spill] sm:$0xff] }
 0x1c7   : > { %v2842_v50 = vsel %vm2688_vm0, %v10750_v23, 0.0  ;;  %v3050_v28 = vsel %vm2688_vm0, %v2968_v45, 0.0  ;;  %v2974_v26 = vmul.f32 %v10769_v32, %v10769_v32  ;;  %v2977_v1 = vmul.f32 %v10781_v49, %v10781_v49 }
 0x1c8   : > { %2843 = vadd.xlane.f32.xlu1 %v2842_v50  ;;  %v2955_v27 = vmul.f32 %v10804_v37, %v10804_v37  ;;  %v10825_v48 = vsub.f32 %v14659_v29, %v2856_v42  ;;  %v2858_v38 = vmul.f32 0.03125, %v10680_v22  ;;  %v2960_v45 = vmul.f32 %v10810_v13, %v10810_v13 }
 0x1c9   : > { %3015 = vadd.xlane.f32.xlu0 %v3014_v17  ;;  %v3068_v41 = vsel %vm2688_vm0, %v2974_v26, 0.0  ;;  %v3077_v0 = vsel %vm2688_vm0, %v2977_v1, 0.0  ;;  %v2957_v17 = vmul.f32 %v10797_v36, %v10797_v36  ;;  %v10822_v50 = vpop.xlane.xlu0 %2762  ;;  %v2855_v43 = vmul.f32 0.03125, %v10630_v52 }
 0x1ca   : > { %v3011_v3 = vsel %vm2681_vm3, %v2955_v27, 0.0  ;;  %v10838_v26 = vpop.xlane.xlu1 %2771  ;;  %v2859_v22 = vmul.f32 0.03125, %v10666_v7  ;;  %v10842_v5 = vsub.f32 %v14661_v30, %v2858_v38  ;;  %v2862_v31 = vmul.f32 0.03125, %v10707_v14  ;;  %v14663_v14 = vld [vmem:[#allocation11_spill] sm:$0xff] }
 0x1cb   : > { %v2964_v52 = vmul.f32 %v10825_v48, %v10825_v48  ;;  %v8088_v53 = vmov 0   ;;  %v2864_v10 = vmul.f32 0.03125, %v10725_v24  ;;  %v2868_v24 = vmul.f32 0.03125, %v10772_v62 }
 0x1cc   : > { %3024 = vadd.xlane.f32.xlu1 %v3023_v39  ;;  %v14660_v39 = vld [vmem:[#allocation13_spill] sm:$0xff]  ;;  %7835 = vset.pattern.permute.xlu0 %v8088_v53  ;;  %v10855_v44 = vsub.f32 %v14663_v14, %v2862_v31  ;;  %v10862_v42 = vsub.f32 %v14664_v12, %v2859_v22  ;;  %v2871_v22 = vmul.f32 0.03125, %v10788_v4  ;;  %v14673_v12 = vld [vmem:[#allocation27_spill] sm:$0xff] }
 0x1cd   : > { %3033 = vadd.xlane.f32.xlu0 %v3032_v18  ;;  %v3017_v18 = vsel %vm2681_vm3, %v2957_v17, 0.0  ;;  %v10832_v19 = vsub.f32 %v14660_v39, %v2853_v35  ;;  %7836 = vset.pattern.permute.xlu1 %v8088_v53  ;;  %v3038_v57 = vsel %vm2681_vm3, %v2964_v52, 0.0  ;;  %v14665_v35 = vld [vmem:[#allocation26_spill] sm:$0xff]  ;;  %v14671_v53 = vld [vmem:[#allocation29_spill] sm:$0xff] }
 0x1ce   : > { %v2778_v56 = vpop.xlane.xlu1 %2777  ;;  %v10872_v27 = vsub.f32 %v14665_v35, %v2864_v10  ;;  %v2970_v38 = vmul.f32 %v10855_v44, %v10855_v44  ;;  %v10901_v14 = vsub.f32 %v14671_v53, %v2871_v22 }
 0x1cf   : > { %v2961_v7 = vmul.f32 %v10832_v19, %v10832_v19 }
 0x1d0   : > { %3042 = vadd.xlane.f32.xlu1 %v3041_v8  ;;  %v2769_v8 = vpop.xlane.xlu0 %2768  ;;  %v3056_v31 = vsel %vm2681_vm3, %v2970_v38, 0.0  ;;  %14672 = vst [vmem:[#allocation15_spill] sm:$0xff] %v10901_v14  ;;  %v2979_v38 = vmul.f32 %v10901_v14, %v10901_v14 }
 0x1d1   : > { %3051 = vadd.xlane.f32.xlu0 %v3050_v28  ;;  %v2958_v28 = vmul.f32 %v10817_v54, %v10817_v54  ;;  %v3029_v17 = vsel %vm2681_vm3, %v2961_v7, 0.0  ;;  %v2874_v10 = vmul.f32 0.03125, %v2769_v8  ;;  %v14675_v8 = vld [vmem:[#allocation21_spill] sm:$0xff] }
 0x1d2   : > { %v10884_v62 = vpop.xlane.xlu1 %2783 }
 0x1d3   : > { %v3020_v20 = vsel %vm2681_vm3, %v2958_v28, 0.0 }
 0x1d4   : > { %3060 = vadd.xlane.f32.xlu1 %v3059_v59  ;;  %v14662_v59 = vld [vmem:[#allocation6_spill] sm:$0xff]  ;;  %v10868_v40 = vpop.xlane.xlu0 %2774 }
 0x1d5   : > { %3069 = vadd.xlane.f32.xlu0 %v3068_v41  ;;  %v3026_v41 = vsel %vm2681_vm3, %v2960_v45, 0.0  ;;  %v10849_v1 = vsub.f32 %v14662_v59, %v2855_v43  ;;  %v2865_v45 = vmul.f32 0.03125, %v10714_v15  ;;  %v2967_v43 = vmul.f32 %v10862_v42, %v10862_v42 }
 0x1d6   : > { %v2972_v15 = vmul.f32 %v10872_v27, %v10872_v27  ;;  %v2867_v59 = vmul.f32 0.03125, %v10735_v58 }
 0x1d7   : > { %v2963_v11 = vmul.f32 %v10849_v1, %v10849_v1 }
 0x1d8   : > { %3078 = vadd.xlane.f32.xlu1 %v3077_v0  ;;  %v2966_v0 = vmul.f32 %v10842_v5, %v10842_v5  ;;  %v2781_v30 = vpop.xlane.xlu0 %2780  ;;  %v3062_v58 = vsel %vm2681_vm3, %v2972_v15, 0.0 }
 0x1d9   : > { %3009 = vadd.xlane.f32.xlu0 %v3008_v6  ;;  %v2861_v6 = vmul.f32 0.03125, %v10691_v33  ;;  %v14666_v33 = vld [vmem:[#allocation10_spill] sm:$0xff]  ;;  %v3035_v39 = vsel %vm2681_vm3, %v2963_v11, 0.0 }
 0x1da   : > { %v3044_v29 = vsel %vm2681_vm3, %v2966_v0, 0.0  ;;  %v10906_v0 = vpop.xlane.xlu1 %2789 }
 0x1dc   : > { %3012 = vadd.xlane.f32.xlu1 %v3011_v3  ;;  %v14667_v3 = vld [vmem:[#allocation28_spill] sm:$0xff] }
 0x1dd   : > { %3018 = vadd.xlane.f32.xlu0 %v3017_v18  ;;  %v10878_v18 = vsub.f32 %v14666_v33, %v2861_v6  ;;  %v10887_v28 = vsub.f32 %v14667_v3, %v2868_v24  ;;  %v10910_v6 = vsub.f32 %v14673_v12, %v2867_v59  ;;  %v2787_v24 = vpop.xlane.xlu0 %2786  ;;  %v14677_v33 = vld [vmem:[#allocation30_spill] sm:$0xff]  ;;  %v2878_v59 = vmul.f32 0.03125, %v2781_v30 }
 0x1de   : > { %v2796_v22 = vpop.xlane.xlu1 %2795 }
 0x1df   : > { %14668 = vst [vmem:[#allocation19_spill] sm:$0xff] %v10887_v28  ;;  %v2969_v7 = vmul.f32 %v10878_v18, %v10878_v18  ;;  %v2976_v4 = vmul.f32 %v10887_v28, %v10887_v28  ;;  %14674 = vst [vmem:[#allocation33_spill] sm:$0xff] %v10910_v6  ;;  %v2975_v3 = vmul.f32 %v10910_v6, %v10910_v6  ;;  %v14728_v6 = vld [vmem:[#allocation5_spill] sm:$0xff] }
 0x1e0   : > { %3021 = vadd.xlane.f32.xlu1 %v3020_v20  ;;  %v3047_v20 = vsel %vm2681_vm3, %v2967_v43, 0.0  ;;  %v14729_v14 = vsub.s32 0, %v14728_v6  ;;  %v14734_v28 = vsub.s32 4, %v14728_v6 }
 0x1e1   : > { %3027 = vadd.xlane.f32.xlu0 %v3026_v41  ;;  %v14669_v41 = vld [vmem:[#allocation24_spill] sm:$0xff]  ;;  %v3074_v35 = vsel %vm2681_vm3, %v2976_v4, 0.0  ;;  %v2793_v4 = vpop.xlane.xlu0 %2792 }
 0x1e2   : > { %v10894_v52 = vsub.f32 %v14669_v41, %v2865_v45 }
 0x1e4   : > { %3030 = vadd.xlane.f32.xlu1 %v3029_v17  ;;  %14670 = vst [vmem:[#allocation31_spill] sm:$0xff] %v10894_v52  ;;  %v3053_v17 = vsel %vm2681_vm3, %v2969_v7, 0.0  ;;  %v2973_v11 = vmul.f32 %v10894_v52, %v10894_v52 }
 0x1e5   : > { %3039 = vadd.xlane.f32.xlu0 %v3038_v57  ;;  %v2870_v57 = vmul.f32 0.03125, %v10794_v51  ;;  %v2877_v51 = vmul.f32 0.03125, %v2778_v56  ;;  %v3083_v56 = vsel %vm2681_vm3, %v2979_v38, 0.0 }
 0x1e6   : > { %v3065_v43 = vsel %vm2681_vm3, %v2973_v11, 0.0 }
 0x1e7   : > { %v10922_v45 = vsub.f32 %v14677_v33, %v2870_v57 }
 0x1e8   : > { %3036 = vadd.xlane.f32.xlu1 %v3035_v39  ;;  %v2872_v39 = vmul.f32 0.03125, %v10822_v50  ;;  %v14681_v50 = vld [vmem:[#allocation18_spill] sm:$0xff] }
 0x1e9   : > { %3045 = vadd.xlane.f32.xlu0 %v3044_v29  ;;  %v10917_v29 = vsub.f32 %v14675_v8, %v2874_v10  ;;  %14678 = vst [vmem:[#allocation32_spill] sm:$0xff] %v10922_v45  ;;  %v2978_v53 = vmul.f32 %v10922_v45, %v10922_v45  ;;  %v3071_v10 = vsel %vm2681_vm3, %v2975_v3, 0.0  ;;  %v3539_v45 = vld [vmem:[%s14101_s5 + $0xf8] sm:$0xff] }
 0x1ea   : > { %v10936_v7 = vsub.f32 %v14681_v50, %v2872_v39  ;;  %v2802_v38 = vpop.xlane.xlu1 %2801 }
 0x1eb   : > { %14676 = vst [vmem:[#allocation25_spill] sm:$0xff] %v10917_v29  ;;  %v2982_v41 = vmul.f32 %v10917_v29, %v10917_v29  ;;  %v3080_v8 = vsel %vm2681_vm3, %v2978_v53, 0.0  ;;  %v14691_v53 = vld [vmem:[#allocation39_spill] sm:$0xff] }
 0x1ec   : > { %3048 = vadd.xlane.f32.xlu1 %v3047_v20  ;;  %v2873_v20 = vmul.f32 0.03125, %v10807_v21  ;;  %14682 = vst [vmem:[#allocation51_spill] sm:$0xff] %v10936_v7  ;;  %v2880_v21 = vmul.f32 0.03125, %v2787_v24  ;;  %v2883_v24 = vmul.f32 0.03125, %v2796_v22 }
 0x1ed   : > { %3057 = vadd.xlane.f32.xlu0 %v3056_v31  ;;  %v14679_v31 = vld [vmem:[#allocation22_spill] sm:$0xff]  ;;  %v3092_v57 = vsel %vm2681_vm3, %v2982_v41, 0.0  ;;  %v2876_v41 = vmul.f32 0.03125, %v10868_v40  ;;  %v2879_v40 = vmul.f32 0.03125, %v10884_v62  ;;  %v2881_v62 = vmul.f32 0.03125, %v10906_v0 }
 0x1ee   : > { %v10929_v15 = vsub.f32 %v14679_v31, %v2877_v51  ;;  %v2980_v51 = vmul.f32 %v10936_v7, %v10936_v7  ;;  %v2882_v0 = vmul.f32 0.03125, %v2793_v4 }
 0x1f0   : > { %3054 = vadd.xlane.f32.xlu1 %v3053_v17  ;;  %14680 = vst [vmem:[#allocation34_spill] sm:$0xff] %v10929_v15  ;;  %v2985_v30 = vmul.f32 %v10929_v15, %v10929_v15  ;;  %v14685_v17 = vld [vmem:[#allocation16_spill] sm:$0xff] }
 0x1f1   : > { %3063 = vadd.xlane.f32.xlu0 %v3062_v58  ;;  %v14683_v58 = vld [vmem:[#allocation17_spill] sm:$0xff]  ;;  %v10948_v11 = vsub.f32 %v14685_v17, %v2873_v20 }
 0x1f2   : > { %v10943_v12 = vsub.f32 %v14683_v58, %v2878_v59  ;;  %v2799_v33 = vpop.xlane.xlu0 %2798  ;;  %v3101_v39 = vsel %vm2681_vm3, %v2985_v30, 0.0  ;;  %v3086_v59 = vsel %vm2688_vm0, %v2980_v51, 0.0  ;;  %v14693_v30 = vld [vmem:[#allocation23_spill] sm:$0xff] }
 0x1f3   : > { %14686 = vst [vmem:[#allocation36_spill] sm:$0xff] %v10948_v11  ;;  %v2981_v20 = vmul.f32 %v10948_v11, %v10948_v11  ;;  %v2884_v58 = vmul.f32 0.03125, %v2799_v33 }
 0x1f4   : > { %3066 = vadd.xlane.f32.xlu1 %v3065_v43  ;;  %14684 = vst [vmem:[#allocation12_spill] sm:$0xff] %v10943_v12  ;;  %v14687_v43 = vld [vmem:[#allocation38_spill] sm:$0xff]  ;;  %v2986_v31 = vmul.f32 %v10943_v12, %v10943_v12  ;;  %v3522_v12 = vld [vmem:[%s14101_s5 + $0x70] sm:$0x3] }
 0x1f5   : > { %3075 = vadd.xlane.f32.xlu0 %v3074_v35  ;;  %v2875_v35 = vmul.f32 0.03125, %v10838_v26  ;;  %v10956_v3 = vsub.f32 %v14687_v43, %v2880_v21  ;;  %v2808_v50 = vpop.xlane.xlu1 %2807  ;;  %v10974_v21 = vsub.f32 %v14693_v30, %v2876_v41  ;;  %v3089_v17 = vsel %vm2681_vm3, %v2981_v20, 0.0 }
 0x1f6   : > { %v3104_v22 = vsel %vm2688_vm0, %v2986_v31, 0.0  ;;  %v14697_v31 = vld [vmem:[#allocation14_spill] sm:$0xff] }
 0x1f7   : > { %14688 = vst [vmem:[#allocation35_spill] sm:$0xff] %v10956_v3  ;;  %14694 = vst [vmem:[#allocation13_spill] sm:$0xff] %v10974_v21 }
 0x1f8   : > { %3072 = vadd.xlane.f32.xlu1 %v3071_v10  ;;  %v10968_v10 = vsub.f32 %v14691_v53, %v2883_v24 }
 0x1f9   : > { %3084 = vadd.xlane.f32.xlu0 %v3083_v56  ;;  %v14689_v56 = vld [vmem:[#allocation20_spill] sm:$0xff] }
 0x1fa   : > { %v10961_v26 = vsub.f32 %v14689_v56, %v2875_v35  ;;  %14692 = vst [vmem:[#allocation7_spill] sm:$0xff] %v10968_v10  ;;  %v2991_v33 = vmul.f32 %v10968_v10, %v10968_v10  ;;  %v10987_v56 = vsub.f32 %v14697_v31, %v2879_v40  ;;  %v14701_v40 = vld [vmem:[#allocation37_spill] sm:$0xff]  ;;  %v14705_v31 = vld [vmem:[#allocation40_spill] sm:$0xff] }
 0x1fc   : > { %3081 = vadd.xlane.f32.xlu1 %v3080_v8  ;;  %14690 = vst [vmem:[#allocation53_spill] sm:$0xff] %v10961_v26  ;;  %v2983_v35 = vmul.f32 %v10961_v26, %v10961_v26  ;;  %v2805_v8 = vpop.xlane.xlu0 %2804  ;;  %14698 = vst [vmem:[#allocation6_spill] sm:$0xff] %v10987_v56  ;;  %v3119_v53 = vsel %vm2681_vm3, %v2991_v33, 0.0 }
 0x1fd   : > { %3093 = vadd.xlane.f32.xlu0 %v3092_v57  ;;  %v2988_v57 = vmul.f32 %v10956_v3, %v10956_v3  ;;  %v2886_v24 = vmul.f32 0.03125, %v2805_v8  ;;  %v2987_v8 = vmul.f32 %v10987_v56, %v10987_v56 }
 0x1fe   : > { %v3095_v41 = vsel %vm2688_vm0, %v2983_v35, 0.0 }
 0x1ff   : > { %v3110_v51 = vsel %vm2681_vm3, %v2988_v57, 0.0  ;;  %v3107_v4 = vsel %vm2681_vm3, %v2987_v8, 0.0  ;;  %v14709_v8 = vld [vmem:[#allocation43_spill] sm:$0xff] }
 0x200   : > { %3087 = vadd.xlane.f32.xlu1 %v3086_v59  ;;  %v2984_v59 = vmul.f32 %v10974_v21, %v10974_v21  ;;  %v3535_v21 = vld [vmem:[%s14101_s5 + $0xd8] sm:$0xff] }
 0x201   : > { %3102 = vadd.xlane.f32.xlu0 %v3101_v39  ;;  %v14695_v39 = vld [vmem:[#allocation42_spill] sm:$0xff] }
 0x202   : > { %v10982_v43 = vsub.f32 %v14695_v39, %v2884_v58  ;;  %v2814_v20 = vpop.xlane.xlu1 %2813  ;;  %v3098_v35 = vsel %vm2681_vm3, %v2984_v59, 0.0 }
 0x203   : > { %v2889_v58 = vmul.f32 0.03125, %v2814_v20 }
 0x204   : > { %3090 = vadd.xlane.f32.xlu1 %v3089_v17  ;;  %14696 = vst [vmem:[#allocation9_spill] sm:$0xff] %v10982_v43  ;;  %v2992_v30 = vmul.f32 %v10982_v43, %v10982_v43  ;;  %v11000_v17 = vsub.f32 %v14701_v40, %v2881_v62  ;;  %v2885_v62 = vmul.f32 0.03125, %v2802_v38  ;;  %v3526_v43 = vld [vmem:[%s14101_s5 + $0x90] sm:$0xff] }
 0x205   : > { %3105 = vadd.xlane.f32.xlu0 %v3104_v22  ;;  %v14699_v22 = vld [vmem:[#allocation44_spill] sm:$0xff] }
 0x206   : > { %v10995_v57 = vsub.f32 %v14699_v22, %v2886_v24  ;;  %14702 = vst [vmem:[#allocation8_spill] sm:$0xff] %v11000_v17  ;;  %v3122_v33 = vsel %vm2688_vm0, %v2992_v30, 0.0  ;;  %v2989_v59 = vmul.f32 %v11000_v17, %v11000_v17  ;;  %v14707_v22 = vld [vmem:[#allocation41_spill] sm:$0xff]  ;;  %v2887_v30 = vmul.f32 0.03125, %v2808_v50 }
 0x207   : > { %v3532_v17 = vld [vmem:[%s14101_s5 + $0xc0] sm:$0xff] }
 0x208   : > { %3096 = vadd.xlane.f32.xlu1 %v3095_v41  ;;  %14700 = vst [vmem:[#allocation11_spill] sm:$0xff] %v10995_v57  ;;  %v2994_v24 = vmul.f32 %v10995_v57, %v10995_v57  ;;  %v11012_v41 = vsub.f32 %v14705_v31, %v2882_v0  ;;  %v3113_v40 = vsel %vm2688_vm0, %v2989_v59, 0.0 }
 0x209   : > { %3111 = vadd.xlane.f32.xlu0 %v3110_v51  ;;  %v14703_v51 = vld [vmem:[#allocation45_spill] sm:$0xff] }
 0x20a   : > { %v11006_v39 = vsub.f32 %v14703_v51, %v2889_v58  ;;  %14706 = vst [vmem:[#allocation10_spill] sm:$0xff] %v11012_v41  ;;  %v3128_v20 = vsel %vm2681_vm3, %v2994_v24, 0.0  ;;  %v11021_v58 = vsub.f32 %v14707_v22, %v2885_v62  ;;  %v2990_v38 = vmul.f32 %v11012_v41, %v11012_v41  ;;  %v14711_v62 = vld [vmem:[#allocation46_spill] sm:$0xff]  ;;  %v14713_v22 = vld [vmem:[#allocation47_spill] sm:$0xff] }
 0x20b   : > { %v11028_v51 = vsub.f32 %v14709_v8, %v2887_v30  ;;  %v14715_v8 = vld [vmem:[#allocation48_spill] sm:$0xff]  ;;  %v3525_v41 = vld [vmem:[%s14101_s5 + $0x88] sm:$0x3] }
 0x20c   : > { %3099 = vadd.xlane.f32.xlu1 %v3098_v35  ;;  %14704 = vst [vmem:[#allocation26_spill] sm:$0xff] %v11006_v39  ;;  %14708 = vst [vmem:[#allocation28_spill] sm:$0xff] %v11021_v58  ;;  %v3116_v24 = vsel %vm2681_vm3, %v2990_v38, 0.0  ;;  %v2993_v31 = vmul.f32 %v11021_v58, %v11021_v58 }
 0x20d   : > { %3120 = vadd.xlane.f32.xlu0 %v3119_v53  ;;  %v2997_v53 = vmul.f32 %v11006_v39, %v11006_v39  ;;  %14710 = vst [vmem:[#allocation24_spill] sm:$0xff] %v11028_v51  ;;  %v3531_v39 = vld [vmem:[%s14101_s5 + $0xb8] sm:$0x3] }
 0x20e   : > { %v2811_v0 = vpop.xlane.xlu0 %2810 }
 0x20f   : > { %v3137_v35 = vsel %vm2681_vm3, %v2997_v53, 0.0  ;;  %v2995_v53 = vmul.f32 %v11028_v51, %v11028_v51  ;;  %v3529_v51 = vld [vmem:[%s14101_s5 + $0xa8] sm:$0xff] }
 0x210   : > { %3108 = vadd.xlane.f32.xlu1 %v3107_v4 }
 0x211   : > { %3123 = vadd.xlane.f32.xlu0 %v3122_v33  ;;  %v2888_v33 = vmul.f32 0.03125, %v2811_v0 }
 0x213   : > { %v11034_v4 = vsub.f32 %v14711_v62, %v2888_v33 }
 0x214   : > { %3114 = vadd.xlane.f32.xlu1 %v3113_v40  ;;  %v3131_v40 = vsel %vm2688_vm0, %v2995_v53, 0.0 }
 0x215   : > { %3129 = vadd.xlane.f32.xlu0 %v3128_v20  ;;  %14712 = vst [vmem:[#allocation29_spill] sm:$0xff] %v11034_v4  ;;  %v3125_v20 = vsel %vm2681_vm3, %v2993_v31, 0.0  ;;  %v2996_v38 = vmul.f32 %v11034_v4, %v11034_v4 }
 0x217   : > { %v2820_v50 = vpop.xlane.xlu1 %2819 }
 0x218   : > { %3117 = vadd.xlane.f32.xlu1 %v3116_v24  ;;  %v2891_v59 = vmul.f32 0.03125, %v2820_v50  ;;  %v3134_v24 = vsel %vm2681_vm3, %v2996_v38, 0.0 }
 0x219   : > { %3138 = vadd.xlane.f32.xlu0 %v3137_v35 }
 0x21a   : > { %v11040_v30 = vsub.f32 %v14713_v22, %v2891_v59  ;;  %v14717_v22 = vld [vmem:[#allocation49_spill] sm:$0xff] }
 0x21c   : > { %3126 = vadd.xlane.f32.xlu1 %v3125_v20  ;;  %14714 = vst [vmem:[#allocation27_spill] sm:$0xff] %v11040_v30  ;;  %v2999_v31 = vmul.f32 %v11040_v30, %v11040_v30 }
 0x21e   : > { %v3143_v53 = vsel %vm2681_vm3, %v2999_v31, 0.0 }
 0x21f   : > { %v2817_v0 = vpop.xlane.xlu0 %2816 }
 0x220   : > { %v2890_v35 = vmul.f32 0.03125, %v2817_v0  ;;  %3132 = vadd.xlane.f32.xlu1 %v3131_v40 }
 0x222   : > { %v11046_v33 = vsub.f32 %v14715_v8, %v2890_v35  ;;  %v14719_v8 = vld [vmem:[#allocation50_spill] sm:$0xff] }
 0x223   : > { %v2826_v62 = vpop.xlane.xlu1 %2825 }
 0x224   : > { %14716 = vst [vmem:[#allocation21_spill] sm:$0xff] %v11046_v33  ;;  %v2998_v50 = vmul.f32 %v11046_v33, %v11046_v33  ;;  %3135 = vadd.xlane.f32.xlu1 %v3134_v24  ;;  %v2893_v59 = vmul.f32 0.03125, %v2826_v62 }
 0x226   : > { %v3140_v20 = vsel %vm2688_vm0, %v2998_v50, 0.0  ;;  %v11056_v40 = vsub.f32 %v14717_v22, %v2893_v59  ;;  %v2823_v0 = vpop.xlane.xlu0 %2822 }
 0x227   : > { %3141 = vadd.xlane.f32.xlu0 %v3140_v20  ;;  %v2892_v35 = vmul.f32 0.03125, %v2823_v0  ;;  %v14721_v20 = vld [vmem:[#allocation52_spill] sm:$0xff] }
 0x228   : > { %14718 = vst [vmem:[#allocation30_spill] sm:$0xff] %v11056_v40  ;;  %3144 = vadd.xlane.f32.xlu1 %v3143_v53  ;;  %v3001_v38 = vmul.f32 %v11056_v40, %v11056_v40 }
 0x229   : > { %v11061_v4 = vsub.f32 %v14719_v8, %v2892_v35 }
 0x22a   : > { %v3149_v24 = vsel %vm2688_vm0, %v3001_v38, 0.0 }
 0x22b   : > { %14720 = vst [vmem:[#allocation22_spill] sm:$0xff] %v11061_v4  ;;  %v3000_v50 = vmul.f32 %v11061_v4, %v11061_v4  ;;  %v3509_v4 = vld [vmem:[%s14101_s5 + $0x8] sm:$0xff] }
 0x22c   : > { %3150 = vadd.xlane.f32.xlu1 %v3149_v24 }
 0x22d   : > { %v3146_v31 = vsel %vm2681_vm3, %v3000_v50, 0.0 }
 0x22e   : > { %3147 = vadd.xlane.f32.xlu0 %v3146_v31 }
 0x230   : > { %v2832_v62 = vpop.xlane.xlu1 %2831 }
 0x231   : > { %v2895_v59 = vmul.f32 0.03125, %v2832_v62 }
 0x233   : > { %v11068_v22 = vsub.f32 %v14721_v20, %v2895_v59 }
 0x235   : > { %14722 = vst [vmem:[#allocation18_spill] sm:$0xff] %v11068_v22  ;;  %v3003_v53 = vmul.f32 %v11068_v22, %v11068_v22  ;;  %v3523_v22 = vld [vmem:[%s14101_s5 + $0x78] sm:$0xff] }
 0x237   : > { %v3155_v0 = vsel %vm2681_vm3, %v3003_v53, 0.0 }
 0x238   : > { %3156 = vadd.xlane.f32.xlu1 %v3155_v0 }
 0x23d   : > { %v2829_v35 = vpop.xlane.xlu0 %2828 }
 0x23e   : > { %v2894_v38 = vmul.f32 0.03125, %v2829_v35 }
 0x240   : > { %v11074_v8 = vsub.f32 %v10649_v46, %v2894_v38 }
 0x242   : > { %14723 = vst [vmem:[#allocation17_spill] sm:$0xff] %v11074_v8  ;;  %v3002_v24 = vmul.f32 %v11074_v8, %v11074_v8 }
 0x244   : > { %v3152_v50 = vsel %vm2681_vm3, %v3002_v24, 0.0  ;;  %v2838_v31 = vpop.xlane.xlu1 %2837 }
 0x245   : > { %3153 = vadd.xlane.f32.xlu0 %v3152_v50  ;;  %v2897_v62 = vmul.f32 0.03125, %v2838_v31 }
 0x247   : > { %v11080_v59 = vsub.f32 %v10689_v61, %v2897_v62 }
 0x249   : > { %14724 = vst [vmem:[#allocation16_spill] sm:$0xff] %v11080_v59  ;;  %v3005_v20 = vmul.f32 %v11080_v59, %v11080_v59 }
 0x24b   : > { %v3161_v0 = vsel %vm2681_vm3, %v3005_v20, 0.0 }
 0x24c   : > { %v2835_v53 = vpop.xlane.xlu0 %2834  ;;  %3162 = vadd.xlane.f32.xlu0 %v3161_v0 }
 0x24d   : > { %v2896_v35 = vmul.f32 0.03125, %v2835_v53 }
 0x24f   : > { %v11086_v46 = vsub.f32 %v10712_v60, %v2896_v35 }
 0x251   : > { %14725 = vst [vmem:[#allocation38_spill] sm:$0xff] %v11086_v46  ;;  %v3004_v38 = vmul.f32 %v11086_v46, %v11086_v46 }
 0x252   : > { %v2841_v24 = vpop.xlane.xlu0 %2840 }
 0x253   : > { %v2898_v50 = vmul.f32 0.03125, %v2841_v24  ;;  %v3158_v31 = vsel %vm2688_vm0, %v3004_v38, 0.0 }
 0x254   : > { %3159 = vadd.xlane.f32.xlu1 %v3158_v31 }
 0x255   : > { %v11092_v61 = vsub.f32 %v10727_v55, %v2898_v50  ;;  %v2844_v8 = vpop.xlane.xlu1 %2843 }
 0x256   : > { %v11094_v62 = vpop.xlane.xlu0 %3015  ;;  %v2899_v53 = vmul.f32 0.03125, %v2844_v8 }
 0x257   : > { %14726 = vst [vmem:[#allocation20_spill] sm:$0xff] %v11092_v61  ;;  %v3006_v20 = vmul.f32 %v11092_v61, %v11092_v61 }
 0x258   : > { %v11100_v0 = vsub.f32 %v10750_v23, %v2899_v53  ;;  %v3508_v23 = vld [vmem:[%s14101_s5] sm:$0xff]  ;;  %v3514_v53 = vld [vmem:[%s14101_s5 + $0x30] sm:$0xff] }
 0x259   : > { %v3164_v60 = vsel %vm2681_vm3, %v3006_v20, 0.0  ;;  %v11104_v38 = vpop.xlane.xlu1 %3024 }
 0x25a   : > { %14727 = vst [vmem:[#allocation39_spill] sm:$0xff] %v11100_v0  ;;  %3165 = vadd.xlane.f32.xlu1 %v3164_v60  ;;  %v11102_v35 = vpop.xlane.xlu0 %3033  ;;  %v3007_v55 = vmul.f32 %v11100_v0, %v11100_v0  ;;  %v3520_v0 = vld [vmem:[%s14101_s5 + $0x60] sm:$0xff] }
 0x25b   : > { %v3178_v3 = vmul.f32 0.03125, %v11102_v35 }
 0x25c   : > { %v3167_v24 = vsel %vm2688_vm0, %v3007_v55, 0.0 }
 0x25d   : > { %v11111_v31 = vpop.xlane.xlu1 %3042 }
 0x25e   : > { %v11109_v50 = vpop.xlane.xlu0 %3051  ;;  %3168 = vadd.xlane.f32.xlu1 %v3167_v24  ;;  %v3517_v24 = vld [vmem:[%s14101_s5 + $0x48] sm:$0xff]  ;;  %v3181_v7 = vmul.f32 0.03125, %v11111_v31 }
 0x25f   : > { %v3184_v26 = vmul.f32 0.03125, %v11109_v50  ;;  %v3524_v50 = vld [vmem:[%s14101_s5 + $0x80] sm:$0xff] }
 0x261   : > { %v11118_v20 = vpop.xlane.xlu1 %3060 }
 0x262   : > { %v11116_v8 = vpop.xlane.xlu0 %3069  ;;  %3564 = vperm.xlu0 %7835, %v3508_v23   ;;  %v3519_v23 = vld [vmem:[%s14101_s5 + $0x58] sm:$0x3]  ;;  %v3187_v15 = vmul.f32 0.03125, %v11118_v20 }
 0x264   : > { %v3241_v29 = vadd.f32 1e-06, %v3187_v15 }
 0x265   : > { %v11125_v55 = vpop.xlane.xlu1 %3078 }
 0x266   : > { %v11123_v60 = vpop.xlane.xlu0 %3009  ;;  %3594 = vperm.xlu0 %7835, %v3514_v53  }
 0x267   : > { %v3170_v31 = vmul.f32 0.03125, %v11123_v60 }
 0x269   : > { %v11132_v46 = vpop.xlane.xlu1 %3012  ;;  %v3224_v60 = vadd.f32 1e-06, %v3170_v31  ;;  %v3543_v31 = vld [vmem:[%s14101_s5 + $0x118] sm:$0x3] }
 0x26a   : > { %v11130_v61 = vpop.xlane.xlu0 %3018  ;;  %3609 = vperm.xlu0 %7835, %v3517_v24   ;;  %v3511_v24 = vld [vmem:[%s14101_s5 + $0x18] sm:$0xff] }
 0x26b   : > { %v3173_v20 = vmul.f32 0.03125, %v11130_v61 }
 0x26d   : > { %v11142_v53 = vpop.xlane.xlu1 %3021  ;;  %v3227_v61 = vadd.f32 1e-06, %v3173_v20 }
 0x26e   : > { %v11140_v33 = vpop.xlane.xlu0 %3027  ;;  %3619 = vperm.xlu0 %7835, %v3519_v23  }
 0x26f   : > { %3569 = vperm.xlu1 %7836, %v3509_v4   ;;  %v3512_v4 = vld [vmem:[%s14101_s5 + $0x20] sm:$0xff]  ;;  %v3176_v15 = vmul.f32 0.03125, %v11140_v33 }
 0x271   : > { %v11150_v59 = vpop.xlane.xlu1 %3030 }
 0x272   : > { %3624 = vperm.xlu0 %7835, %v3520_v0   ;;  %v11152_v57 = vpop.xlane.xlu0 %3039  ;;  %v3510_v0 = vld [vmem:[%s14101_s5 + $0x10] sm:$0x3] }
 0x273   : > { %3579 = vperm.xlu1 %7836, %v3511_v24  }
 0x275   : > { %v11160_v23 = vpop.xlane.xlu1 %3036 }
 0x276   : > { %3639 = vperm.xlu0 %7835, %v3523_v22   ;;  %v11168_v24 = vpop.xlane.xlu0 %3045  ;;  %v3513_v22 = vld [vmem:[%s14101_s5 + $0x28] sm:$0x3] }
 0x277   : > { %3584 = vperm.xlu1 %7836, %v3512_v4  }
 0x279   : > { %v11170_v40 = vpop.xlane.xlu1 %3048 }
 0x27a   : > { %3649 = vperm.xlu0 %7835, %v3525_v41   ;;  %v11180_v30 = vpop.xlane.xlu0 %3057  ;;  %v3515_v41 = vld [vmem:[%s14101_s5 + $0x38] sm:$0xff] }
 0x27b   : > { %3574 = vperm.xlu1 %7836, %v3510_v0  }
 0x27d   : > { %v11178_v4 = vpop.xlane.xlu1 %3054 }
 0x27e   : > { %3654 = vperm.xlu0 %7835, %v3526_v43   ;;  %v3516_v43 = vld [vmem:[%s14101_s5 + $0x40] sm:$0x3] }
 0x27f   : > { %3589 = vperm.xlu1 %7836, %v3513_v22   ;;  %v11196_v22 = vpop.xlane.xlu0 %3063 }
 0x281   : > { %v11188_v0 = vpop.xlane.xlu1 %3066 }
 0x282   : > { %3669 = vperm.xlu0 %7835, %v3529_v51   ;;  %v3518_v51 = vld [vmem:[%s14101_s5 + $0x50] sm:$0xff] }
 0x283   : > { %3599 = vperm.xlu1 %7836, %v3515_v41   ;;  %v11208_v56 = vpop.xlane.xlu0 %3075 }
 0x285   : > { %v11198_v58 = vpop.xlane.xlu1 %3072 }
 0x286   : > { %3679 = vperm.xlu0 %7835, %v3531_v39   ;;  %v3521_v39 = vld [vmem:[%s14101_s5 + $0x68] sm:$0xff] }
 0x287   : > { %3604 = vperm.xlu1 %7836, %v3516_v43   ;;  %v3172_v43 = vmul.f32 0.03125, %v11094_v62  ;;  %v11228_v11 = vpop.xlane.xlu0 %3084 }
 0x289   : > { %v11206_v41 = vpop.xlane.xlu1 %3081  ;;  %v3226_v62 = vadd.f32 1e-06, %v3172_v43  ;;  %v3238_v43 = vadd.f32 1e-06, %v3184_v26  ;;  %v3540_v26 = vld [vmem:[%s14101_s5 + $0x100] sm:$0x3] }
 0x28a   : > { %3684 = vperm.xlu0 %7835, %v3532_v17   ;;  %v3175_v17 = vmul.f32 0.03125, %v11104_v38  ;;  %v3190_v38 = vmul.f32 0.03125, %v11116_v8  ;;  %v3193_v8 = vmul.f32 0.03125, %v11125_v55 }
 0x28b   : > { %3614 = vperm.xlu1 %7836, %v3518_v51   ;;  %v3537_v51 = vld [vmem:[%s14101_s5 + $0xe8] sm:$0x3]  ;;  %7837 = vrsqrt.f32 %v3226_v62 }
 0x28c   : > { %v3247_v55 = vadd.f32 1e-06, %v3193_v8 }
 0x28d   : > { %v11217_v10 = vpop.xlane.xlu1 %3087 }
 0x28e   : > { %3699 = vperm.xlu0 %7835, %v3535_v21   ;;  %v3232_v21 = vadd.f32 1e-06, %v3178_v3  ;;  %v3235_v3 = vadd.f32 1e-06, %v3181_v7  ;;  %v3527_v7 = vld [vmem:[%s14101_s5 + $0x98] sm:$0xff] }
 0x28f   : > { %3629 = vperm.xlu1 %7836, %v3521_v39   ;;  %v3229_v39 = vadd.f32 1e-06, %v3175_v17  ;;  %v11246_v17 = vpop.xlane.xlu0 %3093 }
 0x290   : > { %7839 = vrsqrt.f32 %v3232_v21  ;;  %v3542_v21 = vld [vmem:[%s14101_s5 + $0x110] sm:$0xff] }
 0x291   : > { %v11231_v35 = vpop.xlane.xlu1 %3090  ;;  %7841 = vrsqrt.f32 %v3229_v39 }
 0x292   : > { %3709 = vperm.xlu0 %7835, %v3537_v51   ;;  %7843 = vrsqrt.f32 %v3238_v43  ;;  %v3230_v43 = vadd.f32 1e-06, %v3176_v15 }
 0x293   : > { %3634 = vperm.xlu1 %7836, %v3522_v12   ;;  %v3244_v12 = vadd.f32 1e-06, %v3190_v38  ;;  %7845 = vrsqrt.f32 %v3235_v3  ;;  %v3528_v38 = vld [vmem:[%s14101_s5 + $0xa0] sm:$0x3]  ;;  %v11264_v39 = vpop.xlane.xlu0 %3102  ;;  %v3530_v3 = vld [vmem:[%s14101_s5 + $0xb0] sm:$0xff] }
 0x295   : > { %v11243_v51 = vpop.xlane.xlu1 %3096  ;;  %7847 = vrsqrt.f32 %v3244_v12  ;;  %v7838_v33 = vpop.eup %7837  ;;  %v3180_v12 = vmul.f32 0.03125, %v11152_v57  ;;  %v3545_v57 = vld [vmem:[%s14101_s5 + $0x128] sm:$0xff] }
 0x296   : > { %3719 = vperm.xlu0 %7835, %v3539_v45   ;;  %v3171_v45 = vmul.f32 0.03125, %v11132_v46  ;;  %7849 = vrsqrt.f32 %v3241_v29  ;;  %v3174_v29 = vmul.f32 0.03125, %v11142_v53 }
 0x297   : > { %3644 = vperm.xlu1 %7836, %v3524_v50   ;;  %7851 = vrsqrt.f32 %v3224_v60 }
 0x298   : > { %7853 = vrsqrt.f32 %v3247_v55  ;;  %v3225_v46 = vadd.f32 1e-06, %v3171_v45  ;;  %v3228_v60 = vadd.f32 1e-06, %v3174_v29  ;;  %v11279_v55 = vpop.xlane.xlu0 %3105  ;;  %v11284_v45 = vld [vmem:[%s14102_s6] sm:$0xff] }
 0x299   : > { %v11254_v62 = vpop.xlane.xlu1 %3099  ;;  %7855 = vrsqrt.f32 %v3227_v61  ;;  %v11304_v52 = vrot.slane %v11284_v45, %v14729_v14  ;;  %v11320_v14 = vrot.slane %v11284_v45, %v14734_v28 }
 0x29a   : > { %3724 = vperm.xlu0 %7835, %v3540_v26   ;;  %v7840_v8 = vpop.eup %7839  ;;  %v3177_v26 = vmul.f32 0.03125, %v11150_v59  ;;  %7857 = vrsqrt.f32 %v3225_v46  ;;  %v3533_v59 = vld [vmem:[%s14101_s5 + $0xc8] sm:$0xff] }
 0x29b   : > { %3659 = vperm.xlu1 %7836, %v3527_v7   ;;  %v7842_v20 = vpop.eup %7841  ;;  %7859 = vrsqrt.f32 %v3230_v43  ;;  %v3340_v46 = vmul.f32 %v7840_v8, %v10730_v16  ;;  %v11299_v43 = vld [vmem:[%s14099_s3] ss:$0 sm:$0xff]  ;;  %14730 = vst [vmem:[#allocation23_spill] sm:$0xff] %v11304_v52  ;;  %v14733_v8 = vsub.s32 2, %v14728_v6  ;;  %14735 = vst [vmem:[#allocation14_spill] sm:$0xff] %v11320_v14 }
 0x29c   : > { %v7844_v53 = vpop.eup %7843  ;;  %v3337_v16 = vmul.f32 %v7842_v20, %v10738_v47  ;;  %7861 = vrsqrt.f32 %v3228_v60  ;;  %v3547_v47 = vld [vmem:[%s14101_s5 + $0x138] sm:$0xff]  ;;  %v3534_v20 = vld [vmem:[%s14101_s5 + $0xd0] sm:$0x3] }
 0x29d   : > { %v11266_v50 = vpop.xlane.xlu1 %3108  ;;  %v7846_v61 = vpop.eup %7845  ;;  %v3346_v52 = vmul.f32 %v7844_v53, %v10745_v9  ;;  %v14738_v9 = vsub.s32 7, %v14728_v6 }
 0x29e   : > { %3734 = vperm.xlu0 %7835, %v3542_v21   ;;  %v3234_v21 = vadd.f32 1e-06, %v3180_v12  ;;  %v14731_v12 = vsub.s32 1, %v14728_v6  ;;  %v3343_v60 = vmul.f32 %v7846_v61, %v10753_v63  ;;  %v3401_v63 = vmul.f32 %v11299_v43, %v3340_v46  ;;  %v11349_v61 = vld [vmem:[%s14100_s4] ss:$0 sm:$0xff] }
 0x29f   : > { %3664 = vperm.xlu1 %7836, %v3528_v38   ;;  %v7848_v15 = vpop.eup %7847  ;;  %v3334_v38 = vmul.f32 %v7838_v33, %v10721_v2  ;;  %v11339_v53 = vrot.slane %v11284_v45, %v14738_v9  ;;  %v3398_v9 = vmul.f32 %v11299_v43, %v3337_v16  ;;  %v3407_v46 = vmul.f32 %v11299_v43, %v3346_v52 }
 0x2a0   : > { %v7850_v29 = vpop.eup %7849  ;;  %v11309_v2 = vrot.slane %v11284_v45, %v14731_v12  ;;  %7863 = vrsqrt.f32 %v3234_v21  ;;  %v3352_v21 = vmul.f32 %v7848_v15, %v10769_v32  ;;  %v3404_v32 = vmul.f32 %v11299_v43, %v3343_v60 }
 0x2a1   : > { %v11277_v7 = vpop.xlane.xlu1 %3114  ;;  %v7852_v33 = vpop.eup %7851  ;;  %v3395_v14 = vmul.f32 %v11299_v43, %v3334_v38  ;;  %v14739_v15 = vsub.s32 3, %v14728_v6  ;;  %v3186_v16 = vmul.f32 0.03125, %v11180_v30 }
 0x2a2   : > { %3739 = vperm.xlu0 %7835, %v3543_v31   ;;  %v3231_v31 = vadd.f32 1e-06, %v3177_v26  ;;  %14732 = vst [vmem:[#allocation42_spill] sm:$0xff] %v11309_v2  ;;  %v11315_v26 = vrot.slane %v11284_v45, %v14733_v8  ;;  %v7854_v12 = vpop.eup %7853  ;;  %v3182_v2 = vmul.f32 0.03125, %v11168_v24  ;;  %v11342_v8 = vpop.xlane.xlu0 %3111 }
 0x2a3   : > { %3674 = vperm.xlu1 %7836, %v3530_v3   ;;  %v7856_v24 = vpop.eup %7855  ;;  %v3355_v38 = vmul.f32 %v7854_v12, %v10781_v49  ;;  %v11377_v12 = vadd.f32 %v11349_v61, %v3401_v63  ;;  %v11391_v63 = vadd.f32 %v11349_v61, %v3407_v46 }
 0x2a4   : > { %7865 = vrsqrt.f32 %v3231_v31  ;;  %v3236_v31 = vadd.f32 1e-06, %v3182_v2  ;;  %v3335_v49 = vmul.f32 %v7856_v24, %v10797_v36  ;;  %v7858_v52 = vpop.eup %7857  ;;  %v3413_v36 = vmul.f32 %v11299_v43, %v3352_v21 }
 0x2a5   : > { %v11294_v3 = vpop.xlane.xlu1 %3117  ;;  %14740 = vst [vmem:[#allocation37_spill] sm:$0xff] %v11377_v12  ;;  %v3188_v24 = vmul.f32 0.03125, %v11196_v22  ;;  %14741 = vst [vmem:[#allocation45_spill] sm:$0xff] %v11391_v63  ;;  %v3538_v22 = vld [vmem:[%s14101_s5 + $0xf0] sm:$0xff] }
 0x2a6   : > { %3749 = vperm.xlu0 %7835, %v3545_v57   ;;  %v14736_v57 = vsub.s32 5, %v14728_v6  ;;  %v11386_v30 = vpop.xlane.xlu0 %3120  ;;  %7867 = vrsqrt.f32 %v3236_v31 }
 0x2a7   : > { %3689 = vperm.xlu1 %7836, %v3533_v59   ;;  %v3179_v59 = vmul.f32 0.03125, %v11160_v23  ;;  %v3332_v23 = vmul.f32 %v7852_v33, %v10785_v34  ;;  %v11369_v34 = vrot.slane %v11284_v45, %v14739_v15  ;;  %v11374_v33 = vadd.f32 %v11349_v61, %v3395_v14 }
 0x2a8   : > { %v11334_v28 = vrot.slane %v11284_v45, %v14736_v57  ;;  %v3349_v57 = vmul.f32 %v7850_v29, %v10760_v25  ;;  %v3536_v25 = vld [vmem:[%s14101_s5 + $0xe0] sm:$0xff]  ;;  %v11382_v15 = vadd.f32 %v11349_v61, %v3398_v9  ;;  %v3396_v9 = vmul.f32 %v11299_v43, %v3335_v49 }
 0x2a9   : > { %v11363_v29 = vpop.xlane.xlu1 %3126  ;;  %v3233_v2 = vadd.f32 1e-06, %v3179_v59  ;;  %v3393_v14 = vmul.f32 %v11299_v43, %v3332_v23  ;;  %v3416_v59 = vmul.f32 %v11299_v43, %v3355_v38  ;;  %v3240_v23 = vadd.f32 1e-06, %v3186_v16  ;;  %v3553_v16 = vld [vmem:[%s14101_s5 + $0x168] sm:$0xff] }
 0x2aa   : > { %14737 = vst [vmem:[#allocation44_spill] sm:$0xff] %v11334_v28  ;;  %3759 = vperm.xlu0 %7835, %v3547_v47   ;;  %v3549_v28 = vld [vmem:[%s14101_s5 + $0x148] sm:$0x3]  ;;  %v7860_v47 = vpop.eup %7859  ;;  %v3410_v60 = vmul.f32 %v11299_v43, %v3349_v57  ;;  %v3333_v57 = vmul.f32 %v7858_v52, %v10804_v37  ;;  %v3185_v38 = vmul.f32 0.03125, %v11178_v4  ;;  %v3242_v49 = vadd.f32 1e-06, %v3188_v24 }
 0x2ab   : > { %3694 = vperm.xlu1 %7836, %v3534_v20   ;;  %v3183_v20 = vmul.f32 0.03125, %v11170_v40  ;;  %v3551_v40 = vld [vmem:[%s14101_s5 + $0x158] sm:$0xff]  ;;  %v7862_v21 = vpop.eup %7861  ;;  %7869 = vrsqrt.f32 %v3233_v2  ;;  %v3338_v46 = vmul.f32 %v7860_v47, %v10810_v13  ;;  %v3189_v52 = vmul.f32 0.03125, %v11188_v0  ;;  %v3541_v47 = vld [vmem:[%s14101_s5 + $0x108] sm:$0xff] }
 0x2ac   : > { %v11410_v12 = vadd.f32 %v11349_v61, %v3410_v60  ;;  %v7864_v37 = vpop.eup %7863  ;;  %v11417_v4 = vadd.f32 %v11349_v61, %v3393_v14  ;;  %v11420_v13 = vadd.f32 %v11349_v61, %v3416_v59  ;;  %v3195_v2 = vmul.f32 0.03125, %v11228_v11  ;;  %v11435_v11 = vpop.xlane.xlu0 %3123 }
 0x2ad   : > { %v3237_v31 = vadd.f32 1e-06, %v3183_v20  ;;  %v11407_v63 = vpop.xlane.xlu1 %3132  ;;  %v3394_v0 = vmul.f32 %v11299_v43, %v3333_v57  ;;  %v11431_v20 = vadd.f32 %v11349_v61, %v3396_v9  ;;  %v3336_v60 = vmul.f32 %v7862_v21, %v10817_v54 }
 0x2ae   : > { %3769 = vperm.xlu0 %7835, %v3549_v28   ;;  %v11400_v28 = vadd.f32 %v11349_v61, %v3404_v32  ;;  %v11413_v32 = vadd.f32 %v11349_v61, %v3413_v36  ;;  %7871 = vrsqrt.f32 %v3240_v23  ;;  %v3239_v36 = vadd.f32 1e-06, %v3185_v38  ;;  %v3555_v23 = vld [vmem:[%s14101_s5 + $0x178] sm:$0x3] }
 0x2af   : > { %3704 = vperm.xlu1 %7836, %v3536_v25   ;;  %v3192_v25 = vmul.f32 0.03125, %v11208_v56  ;;  %v7866_v56 = vpop.eup %7865  ;;  %v3191_v24 = vmul.f32 0.03125, %v11198_v58  ;;  %v3399_v14 = vmul.f32 %v11299_v43, %v3338_v46  ;;  %7873 = vrsqrt.f32 %v3237_v31 }
 0x2b0   : > { %14742 = vst [vmem:[#allocation40_spill] sm:$0xff] %v11413_v32  ;;  %7875 = vrsqrt.f32 %v3242_v49  ;;  %v3243_v57 = vadd.f32 1e-06, %v3189_v52  ;;  %v3194_v9 = vmul.f32 0.03125, %v11206_v41  ;;  %v3339_v54 = vmul.f32 %v7866_v56, %v10832_v19  ;;  %v7868_v31 = vpop.eup %7867 }
 0x2b1   : > { %v3246_v59 = vadd.f32 1e-06, %v3192_v25  ;;  %v3249_v21 = vadd.f32 1e-06, %v3195_v2  ;;  %v3201_v58 = vmul.f32 0.03125, %v11264_v39  ;;  %v11452_v38 = vadd.f32 %v11349_v61, %v3394_v0 }
 0x2b2   : > { %3779 = vperm.xlu0 %7835, %v3551_v40   ;;  %v3198_v40 = vmul.f32 0.03125, %v11246_v17  ;;  %v3544_v17 = vld [vmem:[%s14101_s5 + $0x120] sm:$0xff]  ;;  %v3397_v41 = vmul.f32 %v11299_v43, %v3336_v60  ;;  %7877 = vrsqrt.f32 %v3239_v36  ;;  %v3245_v19 = vadd.f32 1e-06, %v3191_v24  ;;  %v3546_v60 = vld [vmem:[%s14101_s5 + $0x130] sm:$0x3] }
 0x2b3   : > { %3714 = vperm.xlu1 %7836, %v3538_v22   ;;  %v3342_v22 = vmul.f32 %v7864_v37, %v10825_v48  ;;  %v11449_v48 = vpop.xlane.xlu1 %3135  ;;  %v3196_v46 = vmul.f32 0.03125, %v11217_v10  ;;  %v11457_v39 = vadd.f32 %v11349_v61, %v3399_v14  ;;  %7879 = vrsqrt.f32 %v3246_v59 }
 0x2b4   : > { %v3252_v25 = vadd.f32 1e-06, %v3198_v40  ;;  %v3202_v37 = vmul.f32 0.03125, %v11279_v55  ;;  %7881 = vrsqrt.f32 %v3243_v57  ;;  %v3248_v56 = vadd.f32 1e-06, %v3194_v9  ;;  %v3557_v55 = vld [vmem:[%s14101_s5 + $0x188] sm:$0xff] }
 0x2b5   : > { %v3403_v49 = vmul.f32 %v11299_v43, %v3342_v22  ;;  %v7870_v52 = vpop.eup %7869  ;;  %v3197_v2 = vmul.f32 0.03125, %v11231_v35  ;;  %v3400_v10 = vmul.f32 %v11299_v43, %v3339_v54  ;;  %7883 = vrsqrt.f32 %v3249_v21 }
 0x2b6   : > { %3789 = vperm.xlu0 %7835, %v3553_v16   ;;  %v11462_v16 = vpop.xlane.xlu0 %3129  ;;  %v3204_v0 = vmul.f32 0.03125, %v11342_v8  ;;  %v11473_v35 = vadd.f32 %v11349_v61, %v3397_v41  ;;  %7885 = vrsqrt.f32 %v3245_v19  ;;  %v3250_v36 = vadd.f32 1e-06, %v3196_v46 }
 0x2b7   : > { %3729 = vperm.xlu1 %7836, %v3541_v47   ;;  %v3255_v47 = vadd.f32 1e-06, %v3201_v58  ;;  %v3199_v24 = vmul.f32 0.03125, %v11243_v51  ;;  %v3344_v14 = vmul.f32 %v7868_v31, %v10842_v5  ;;  %7887 = vrsqrt.f32 %v3252_v25  ;;  %v11478_v40 = vpop.xlane.xlu1 %3144  ;;  %v5881_v5 = vld [vmem:[%s14104_s8] sm:$0xff] }
 0x2b8   : > { %v3256_v59 = vadd.f32 1e-06, %v3202_v37  ;;  %v3207_v8 = vmul.f32 0.03125, %v11386_v30  ;;  %v3341_v22 = vmul.f32 %v7870_v52, %v10849_v1  ;;  %v7872_v57 = vpop.eup %7871  ;;  %7889 = vrsqrt.f32 %v3248_v56  ;;  %v5882_v30 = vld [vmem:[%s14104_s8 + $0x8] sm:$0xff] }
 0x2b9   : > { %v3251_v9 = vadd.f32 1e-06, %v3197_v2  ;;  %v11482_v54 = vadd.f32 %v11349_v61, %v3400_v10  ;;  %v11485_v51 = vadd.f32 %v11349_v61, %v3403_v49  ;;  %v7874_v1 = vpop.eup %7873  ;;  %7891 = vrsqrt.f32 %v3255_v47 }
 0x2ba   : > { %3799 = vperm.xlu0 %7835, %v3555_v23   ;;  %v3258_v21 = vadd.f32 1e-06, %v3204_v0  ;;  %v3200_v58 = vmul.f32 0.03125, %v11254_v62  ;;  %v3559_v23 = vld [vmem:[%s14101_s5 + $0x198] sm:$0xff]  ;;  %v11500_v41 = vpack.c.bf16 %v5882_v30, %v5881_v5  ;;  %v7876_v19 = vpop.eup %7875  ;;  %7893 = vrsqrt.f32 %v3250_v36  ;;  %v3139_v25 = vpop.xlane.xlu0 %3138  ;;  %v3552_v5 = vld [vmem:[%s14101_s5 + $0x160] sm:$0x3] }
 0x2bb   : > { %3744 = vperm.xlu1 %7836, %v3544_v17   ;;  %v3548_v17 = vld [vmem:[%s14101_s5 + $0x140] sm:$0xff]  ;;  %v3253_v46 = vadd.f32 1e-06, %v3199_v24  ;;  %v3208_v31 = vmul.f32 0.03125, %v11435_v11  ;;  %v3405_v37 = vmul.f32 %v11299_v43, %v3344_v14  ;;  %7895 = vrsqrt.f32 %v3256_v59  ;;  %v3151_v36 = vpop.xlane.xlu1 %3150 }
 0x2bc   : > { %14743 = vst [vmem:[#allocation41_spill] sm:$0xff] %v11500_v41  ;;  %v3261_v62 = vadd.f32 1e-06, %v3207_v8  ;;  %v3203_v49 = vmul.f32 0.03125, %v11266_v50  ;;  %v3402_v52 = vmul.f32 %v11299_v43, %v3341_v22  ;;  %7665 = vmatprep.subr.bf16.mxu0 %v11500_v41  ;;  %7673 = vmatprep.subr.bf16.mxu1 %v11500_v41  ;;  %v7878_v56 = vpop.eup %7877  ;;  %7897 = vrsqrt.f32 %v3251_v9  ;;  %v3561_v50 = vld [vmem:[%s14101_s5 + $0x1a8] sm:$0x3] }
 0x2bd   : > { %v3205_v2 = vmul.f32 0.03125, %v11277_v7  ;;  %v3345_v11 = vmul.f32 %v7874_v1, %v10862_v42  ;;  %v3348_v10 = vmul.f32 %v7872_v57, %v10855_v44  ;;  %v7880_v47 = vpop.eup %7879  ;;  %7899 = vrsqrt.f32 %v3258_v21  ;;  %7667 = vmatpush3.bf16.msra.mxu0 %v11500_v41  ;;  %7675 = vmatpush3.bf16.msra.mxu1 %v11500_v41 }
 0x2be   : > { %3809 = vperm.xlu0 %7835, %v3557_v55   ;;  %v3254_v0 = vadd.f32 1e-06, %v3200_v58  ;;  %v3550_v55 = vld [vmem:[%s14101_s5 + $0x150] sm:$0xff]  ;;  %v3350_v7 = vmul.f32 %v7876_v19, %v10872_v27  ;;  %v7882_v44 = vpop.eup %7881  ;;  %7901 = vrsqrt.f32 %v3253_v46  ;;  %v3262_v42 = vadd.f32 1e-06, %v3208_v31 }
 0x2bf   : > { %3754 = vperm.xlu1 %7836, %v3546_v60   ;;  %v3213_v60 = vmul.f32 0.03125, %v3139_v25  ;;  %v3206_v24 = vmul.f32 0.03125, %v11294_v3  ;;  %v11522_v14 = vadd.f32 %v11349_v61, %v3405_v37  ;;  %v7884_v59 = vpop.eup %7883  ;;  %7903 = vrsqrt.f32 %v3261_v62 }
 0x2c0   : > { %v3257_v8 = vadd.f32 1e-06, %v3203_v49  ;;  %v3209_v22 = vmul.f32 0.03125, %v11363_v29  ;;  %v3347_v57 = vmul.f32 %v7878_v56, %v10878_v18  ;;  %v7886_v27 = vpop.eup %7885  ;;  %v3259_v9 = vadd.f32 1e-06, %v3205_v2  ;;  %v14745_v56 = vld [vmem:[#allocation19_spill] sm:$0xff] }
 0x2c1   : > { %v3211_v3 = vmul.f32 0.03125, %v11407_v63  ;;  %v3406_v30 = vmul.f32 %v11299_v43, %v3345_v11  ;;  %v3409_v1 = vmul.f32 %v11299_v43, %v3348_v10  ;;  %v7888_v21 = vpop.eup %7887  ;;  %7905 = vrsqrt.f32 %v3254_v0 }
 0x2c2   : > { %3819 = vperm.xlu0 %7835, %v3559_v23   ;;  %v3267_v58 = vadd.f32 1e-06, %v3213_v60  ;;  %v3215_v29 = vmul.f32 0.03125, %v11478_v40  ;;  %v3411_v18 = vmul.f32 %v11299_v43, %v3350_v7  ;;  %v5883_v23 = vld [vmem:[%s14104_s8 + $0x10] sm:$0xff]  ;;  %v7890_v63 = vpop.eup %7889  ;;  %7907 = vrsqrt.f32 %v3262_v42  ;;  %v11542_v40 = vpop.xlane.xlu0 %3141 }
 0x2c3   : > { %3764 = vperm.xlu1 %7836, %v3548_v17   ;;  %v5884_v17 = vld [vmem:[%s14104_s8 + $0x18] sm:$0xff]  ;;  %v3260_v19 = vadd.f32 1e-06, %v3206_v24  ;;  %v3217_v46 = vmul.f32 0.03125, %v3151_v36  ;;  %v7892_v25 = vpop.eup %7891  ;;  %7909 = vrsqrt.f32 %v3257_v8  ;;  %v3263_v37 = vadd.f32 1e-06, %v3209_v22 }
 0x2c4   : > { %v11540_v31 = vpack.c.bf16 %v5884_v17, %v5883_v23  ;;  %v3408_v49 = vmul.f32 %v11299_v43, %v3347_v57  ;;  %v3354_v2 = vmul.f32 %v7880_v47, %v14745_v56  ;;  %v7894_v11 = vpop.eup %7893  ;;  %7911 = vrsqrt.f32 %v3259_v9  ;;  %v3554_v36 = vld [vmem:[%s14101_s5 + $0x170] sm:$0xff] }
 0x2c5   : > { %v3157_v62 = vpop.xlane.xlu1 %3156  ;;  %v3265_v10 = vadd.f32 1e-06, %v3211_v3  ;;  %v11547_v0 = vadd.f32 %v11349_v61, %v3402_v52  ;;  %v7896_v60 = vpop.eup %7895  ;;  %7913 = vrsqrt.f32 %v3267_v58  ;;  %v3269_v7 = vadd.f32 1e-06, %v3215_v29  ;;  %v14747_v42 = vld [vmem:[#allocation15_spill] sm:$0xff]  ;;  %v14749_v29 = vld [vmem:[#allocation25_spill] sm:$0xff] }
 0x2c6   : > { %3829 = vperm.xlu0 %7835, %v3561_v50   ;;  %14744 = vst [vmem:[#allocation43_spill] sm:$0xff] %v11540_v31  ;;  %v14746_v50 = vld [vmem:[#allocation31_spill] sm:$0xff]  ;;  %7669 = vmatprep.subr.bf16.mxu0 %v11540_v31  ;;  %v11555_v47 = vadd.f32 %v11349_v61, %v3409_v1  ;;  %v3357_v24 = vmul.f32 %v7884_v59, %v14747_v42  ;;  %v7898_v52 = vpop.eup %7897  ;;  %7915 = vrsqrt.f32 %v3260_v19  ;;  %v3219_v8 = vmul.f32 0.03125, %v3157_v62  ;;  %v11576_v19 = vpop.xlane.xlu0 %3147  ;;  %v14751_v62 = vld [vmem:[#allocation34_spill] sm:$0xff]  ;;  %v14754_v42 = vld [vmem:[#allocation53_spill] sm:$0xff] }
 0x2c7   : > { %3774 = vperm.xlu1 %7836, %v3550_v55   ;;  %v3351_v55 = vmul.f32 %v7882_v44, %v14746_v50  ;;  %7671 = vmatpush3.bf16.msra.mxu0 %v11540_v31  ;;  %v3271_v44 = vadd.f32 1e-06, %v3217_v46  ;;  %v11561_v22 = vadd.f32 %v11349_v61, %v3406_v30  ;;  %v7900_v57 = vpop.eup %7899  ;;  %7917 = vrsqrt.f32 %v3263_v37  ;;  %v14748_v30 = vld [vmem:[#allocation33_spill] sm:$0xff]  ;;  %v14750_v46 = vld [vmem:[#allocation32_spill] sm:$0xff] }
 0x2c8   : > { %7677 = vmatprep.subr.bf16.mxu1 %v11540_v31  ;;  %7681 = vmatprep.subr.bf16.mxu0 %v11500_v41  ;;  %v11566_v9 = vadd.f32 %v11349_v61, %v3408_v49  ;;  %v11569_v59 = vadd.f32 %v11349_v61, %v3411_v18  ;;  %v7902_v3 = vpop.eup %7901  ;;  %7919 = vrsqrt.f32 %v3265_v10  ;;  %v3353_v1 = vmul.f32 %v7886_v27, %v14748_v30  ;;  %v3556_v18 = vld [vmem:[%s14101_s5 + $0x180] sm:$0xff]  ;;  %v14752_v10 = vld [vmem:[#allocation51_spill] sm:$0xff] }
 0x2c9   : > { %7679 = vmatpush3.bf16.msra.mxu1 %v11540_v31  ;;  %v3412_v58 = vmul.f32 %v11299_v43, %v3351_v55  ;;  %v3360_v23 = vmul.f32 %v7888_v21, %v14749_v29  ;;  %v7904_v17 = vpop.eup %7903  ;;  %7921 = vrsqrt.f32 %v3269_v7  ;;  %v3356_v37 = vmul.f32 %v7890_v63, %v14750_v46  ;;  %v14753_v55 = vld [vmem:[#allocation36_spill] sm:$0xff]  ;;  %v14756_v7 = vld [vmem:[#allocation35_spill] sm:$0xff] }
 0x2ca   : > { %7689 = vmatprep.subr.bf16.mxu1 %v11500_v41  ;;  %v3363_v49 = vmul.f32 %v7892_v25, %v14751_v62  ;;  %v3418_v56 = vmul.f32 %v11299_v43, %v3357_v24  ;;  %v3210_v27 = vmul.f32 0.03125, %v11462_v16  ;;  %7923 = vrsqrt.f32 %v3271_v44  ;;  %v14755_v29 = vld [vmem:[#allocation12_spill] sm:$0xff]  ;;  %v14758_v16 = vld [vmem:[#allocation7_spill] sm:$0xff] }
 0x2cb   : > { %3784 = vperm.xlu1 %7836, %v3552_v5   ;;  %v3415_v5 = vmul.f32 %v11299_v43, %v3354_v2  ;;  %v3273_v2 = vadd.f32 1e-06, %v3219_v8  ;;  %v3358_v21 = vmul.f32 %v7894_v11, %v14752_v10  ;;  %v7906_v50 = vpop.eup %7905  ;;  %v3361_v30 = vmul.f32 %v7902_v3, %v14754_v42 }
 0x2cc   : > { %v3364_v31 = vmul.f32 %v7896_v60, %v14755_v29  ;;  %v3366_v41 = vmul.f32 %v7900_v57, %v14756_v7  ;;  %v7908_v63 = vpop.eup %7907  ;;  %v3414_v25 = vmul.f32 %v11299_v43, %v3353_v1  ;;  %v3369_v44 = vmul.f32 %v7904_v17, %v14758_v16  ;;  %v14760_v17 = vld [vmem:[#allocation13_spill] sm:$0xff]  ;;  %v14763_v7 = vld [vmem:[#allocation8_spill] sm:$0xff] }
 0x2cd   : > { %v11592_v24 = vadd.f32 %v11349_v61, %v3415_v5  ;;  %v3421_v11 = vmul.f32 %v11299_v43, %v3360_v23  ;;  %v7910_v8 = vpop.eup %7909  ;;  %v3417_v60 = vmul.f32 %v11299_v43, %v3356_v37  ;;  %v3424_v57 = vmul.f32 %v11299_v43, %v3363_v49 }
 0x2ce   : > { %v11602_v3 = vadd.f32 %v11349_v61, %v3412_v58  ;;  %v11605_v1 = vadd.f32 %v11349_v61, %v3418_v56  ;;  %v7912_v5 = vpop.eup %7911  ;;  %7925 = vrsqrt.f32 %v3273_v2  ;;  %v3419_v23 = vmul.f32 %v11299_v43, %v3358_v21  ;;  %v14762_v21 = vld [vmem:[#allocation6_spill] sm:$0xff] }
 0x2cf   : > { %3794 = vperm.xlu1 %7836, %v3554_v36   ;;  %v3359_v36 = vmul.f32 %v7898_v52, %v14753_v55  ;;  %14757 = vst [vmem:[#allocation46_spill] sm:$0xff] %v11592_v24  ;;  %v3558_v52 = vld [vmem:[%s14101_s5 + $0x190] sm:$0x3]  ;;  %v3362_v46 = vmul.f32 %v7906_v50, %v14760_v17  ;;  %v7914_v62 = vpop.eup %7913  ;;  %v3422_v37 = vmul.f32 %v11299_v43, %v3361_v30  ;;  %v14771_v24 = vld [vmem:[#allocation9_spill] sm:$0xff] }
 0x2d0   : > { %14759 = vst [vmem:[#allocation47_spill] sm:$0xff] %v11605_v1  ;;  %v3425_v49 = vmul.f32 %v11299_v43, %v3364_v31  ;;  %v3427_v58 = vmul.f32 %v11299_v43, %v3366_v41  ;;  %v7916_v42 = vpop.eup %7915  ;;  %v11614_v56 = vadd.f32 %v11349_v61, %v3414_v25  ;;  %v11618_v2 = vadd.f32 %v11349_v61, %v3421_v11  ;;  %v3560_v31 = vld [vmem:[%s14101_s5 + $0x1a0] sm:$0xff] }
 0x2d1   : > { %v3420_v55 = vmul.f32 %v11299_v43, %v3359_v36  ;;  %v3365_v50 = vmul.f32 %v7910_v8, %v14762_v21  ;;  %v7918_v29 = vpop.eup %7917  ;;  %v3212_v36 = vmul.f32 0.03125, %v11449_v48  ;;  %v11626_v41 = vadd.f32 %v11349_v61, %v3417_v60 }
 0x2d2   : > { %v3154_v10 = vpop.xlane.xlu0 %3153  ;;  %14761 = vst [vmem:[#allocation48_spill] sm:$0xff] %v11618_v2  ;;  %v11629_v30 = vadd.f32 %v11349_v61, %v3424_v57  ;;  %v3367_v25 = vmul.f32 %v7912_v5, %v14763_v7  ;;  %v7920_v16 = vpop.eup %7919  ;;  %v11634_v11 = vadd.f32 %v11349_v61, %v3419_v23  ;;  %v3423_v48 = vmul.f32 %v11299_v43, %v3362_v46  ;;  %v14766_v23 = vld [vmem:[#allocation28_spill] sm:$0xff]  ;;  %v14767_v46 = vld [vmem:[#allocation26_spill] sm:$0xff] }
 0x2d3   : > { %3804 = vperm.xlu1 %7836, %v3556_v18   ;;  %v3264_v18 = vadd.f32 1e-06, %v3210_v27  ;;  %v3430_v27 = vmul.f32 %v11299_v43, %v3369_v44  ;;  %v3214_v44 = vmul.f32 0.03125, %v11542_v40  ;;  %v7922_v8 = vpop.eup %7921  ;;  %v11641_v60 = vadd.f32 %v11349_v61, %v3422_v37 }
 0x2d4   : > { %14764 = vst [vmem:[#allocation49_spill] sm:$0xff] %v11634_v11  ;;  %v11644_v57 = vadd.f32 %v11349_v61, %v3425_v49  ;;  %v11647_v5 = vadd.f32 %v11349_v61, %v3427_v58  ;;  %v3371_v17 = vmul.f32 %v7918_v29, %v14766_v23  ;;  %v3375_v21 = vmul.f32 %v7914_v62, %v14767_v46  ;;  %v14768_v11 = vld [vmem:[#allocation24_spill] sm:$0xff]  ;;  %v14775_v46 = vld [vmem:[#allocation10_spill] sm:$0xff] }
 0x2d5   : > { %7927 = vrsqrt.f32 %v3264_v18  ;;  %v7924_v18 = vpop.eup %7923  ;;  %v11650_v40 = vadd.f32 %v11349_v61, %v3430_v27  ;;  %v3216_v37 = vmul.f32 0.03125, %v11576_v19  ;;  %v3266_v7 = vadd.f32 1e-06, %v3212_v36  ;;  %v14770_v27 = vld [vmem:[#allocation27_spill] sm:$0xff]  ;;  %v14774_v19 = vld [vmem:[#allocation30_spill] sm:$0xff] }
 0x2d6   : > { %v3428_v49 = vmul.f32 %v11299_v43, %v3367_v25  ;;  %v3373_v58 = vmul.f32 %v7920_v16, %v14768_v11  ;;  %v3268_v1 = vadd.f32 1e-06, %v3214_v44  ;;  %v3370_v29 = vmul.f32 %v7908_v63, %v14771_v24 }
 0x2d7   : > { %3814 = vperm.xlu1 %7836, %v3558_v52   ;;  %v11638_v52 = vadd.f32 %v11349_v61, %v3420_v55  ;;  %14765 = vst [vmem:[#allocation50_spill] sm:$0xff] %v11650_v40  ;;  %v3426_v55 = vmul.f32 %v11299_v43, %v3365_v50  ;;  %v3377_v40 = vmul.f32 %v7922_v8, %v14770_v27  ;;  %v3218_v23 = vmul.f32 0.03125, %v3154_v10 }
 0x2d8   : > { %v14772_v62 = vsub.s32 6, %v14728_v6  ;;  %v3379_v36 = vmul.f32 %v7924_v18, %v14774_v19  ;;  %v3368_v25 = vmul.f32 %v7916_v42, %v14775_v46  ;;  %v7926_v32 = vpop.eup %7925  ;;  %v3432_v44 = vmul.f32 %v11299_v43, %v3371_v17 }
 0x2d9   : > { %v3163_v2 = vpop.xlane.xlu0 %3162  ;;  %v3436_v11 = vmul.f32 %v11299_v43, %v3375_v21  ;;  %v3270_v63 = vadd.f32 1e-06, %v3216_v37  ;;  %7929 = vrsqrt.f32 %v3266_v7  ;;  %v11676_v6 = vadd.f32 %v11349_v61, %v3428_v49 }
 0x2da   : > { %v11666_v50 = vrot.slane %v11284_v45, %v14772_v62  ;;  %v3221_v16 = vmul.f32 0.03125, %v3163_v2  ;;  %v3434_v45 = vmul.f32 %v11299_v43, %v3373_v58  ;;  %7931 = vrsqrt.f32 %v3268_v1  ;;  %v14778_v62 = vld [vmem:[#allocation42_spill] sm:$0xff] }
 0x2db   : > { %3824 = vperm.xlu1 %7836, %v3560_v31   ;;  %v11659_v31 = vadd.f32 %v11349_v61, %v3423_v48  ;;  %v11673_v48 = vadd.f32 %v11349_v61, %v3426_v55  ;;  %v3438_v42 = vmul.f32 %v11299_v43, %v3377_v40  ;;  %v3431_v2 = vmul.f32 %v11299_v43, %v3370_v29  ;;  %v14777_v55 = vld [vmem:[#allocation18_spill] sm:$0xff] }
 0x2dc   : > { %14773 = vst [vmem:[#allocation5_spill] sm:$0xff] %v11666_v50  ;;  %v3272_v8 = vadd.f32 1e-06, %v3218_v23  ;;  %v3440_v17 = vmul.f32 %v11299_v43, %v3379_v36  ;;  %v3429_v21 = vmul.f32 %v11299_v43, %v3368_v25  ;;  %v3381_v37 = vmul.f32 %v7926_v32, %v14777_v55 }
 0x2dd   : > { %14769 = vst [vmem:[#allocation52_spill] sm:$0xff] %v11659_v31  ;;  %14776 = vst [vmem:[#allocation19_spill] sm:$0xff] %v11673_v48  ;;  %v3275_v27 = vadd.f32 1e-06, %v3221_v16  ;;  %v11686_v58 = vadd.f32 %v11349_v61, %v3432_v44  ;;  %v11689_v1 = vadd.f32 %v11349_v61, %v3436_v11  ;;  %7933 = vrsqrt.f32 %v3270_v63  ;;  %v11710_v16 = vld [vmem:[%s14102_s6 + $0x8] ss:$0 sm:$0xff] }
 0x2de   : > { %v11692_v29 = vadd.f32 %v11349_v61, %v3434_v45  ;;  %v3442_v23 = vmul.f32 %v11299_v43, %v3381_v37  ;;  %v11705_v36 = vadd.f32 %v11349_v61, %v3431_v2  ;;  %7935 = vrsqrt.f32 %v3272_v8  ;;  %v14783_v63 = vld [vmem:[#allocation11_spill] sm:$0xff] }
 0x2df   : > { %v7928_v7 = vpop.eup %7927  ;;  %v11713_v44 = vadd.f32 %v11349_v61, %v3440_v17  ;;  %v11716_v11 = vadd.f32 %v11349_v61, %v3429_v21  ;;  %7937 = vrsqrt.f32 %v3275_v27  ;;  %v14784_v45 = vld [vmem:[#allocation23_spill] sm:$0xff] }
 0x2e0   : > { %14780 = vst [vmem:[#allocation15_spill] sm:$0xff] %v11705_v36  ;;  %v11726_v17 = vadd.f32 %v11349_v61, %v3442_v23  ;;  %v14790_v23 = vld [vmem:[#allocation14_spill] sm:$0xff] }
 0x2e1   : > { %v3160_v24 = vpop.xlane.xlu1 %3159  ;;  %v3565_v18 = vpop.permute.xlu0 %3564  ;;  %14781 = vst [vmem:[#allocation33_spill] sm:$0xff] %v11713_v44  ;;  %14782 = vst [vmem:[#allocation25_spill] sm:$0xff] %v11716_v11 }
 0x2e2   : > { %v3220_v10 = vmul.f32 0.03125, %v3160_v24  ;;  %v3832_v49 = vmul.f32 %v3565_v18, %v11417_v4  ;;  %v11702_v4 = vadd.f32 %v11349_v61, %v3438_v42  ;;  %v3372_v24 = vmul.f32 %v7928_v7, %v14783_v63  ;;  %14785 = vst [vmem:[#allocation32_spill] sm:$0xff] %v11726_v17 }
 0x2e4   : > { %v3274_v40 = vadd.f32 1e-06, %v3220_v10  ;;  %v11696_v19 = vmul.f32 %v14778_v62, %v3832_v49  ;;  %v11699_v32 = vmul.f32 %v11315_v26, %v3832_v49  ;;  %14779 = vst [vmem:[#allocation31_spill] sm:$0xff] %v11702_v4  ;;  %v11720_v10 = vmul.f32 %v14784_v45, %v3832_v49 }
 0x2e5   : > { %v3595_v46 = vpop.permute.xlu0 %3594  ;;  %v11735_v7 = vmul.f32 %v11299_v43, %v3372_v24 }
 0x2e6   : > { %v3838_v42 = vmul.f32 %v3595_v46, %v11457_v39  ;;  %7939 = vrsqrt.f32 %v3274_v40  ;;  %v11737_v39 = vpop.eup %7929 }
 0x2e7   : > { %v3166_v25 = vpop.xlane.xlu1 %3165  ;;  %14788 = vst [vmem:[#allocation36_spill] sm:$0xff] %v11737_v39 }
 0x2e8   : > { %v3222_v2 = vmul.f32 0.03125, %v3166_v25  ;;  %v11729_v21 = vmul.f32 %v11339_v53, %v3838_v42  ;;  %v11732_v37 = vmul.f32 %v11710_v16, %v3838_v42  ;;  %v11740_v49 = vmul.f32 %v11666_v50, %v3838_v42  ;;  %v14792_v25 = vld [vmem:[#allocation44_spill] sm:$0xff] }
 0x2e9   : > { %v3610_v27 = vpop.permute.xlu0 %3609  ;;  %v11743_v40 = vmul.f32 %v11369_v34, %v3838_v42  ;;  %v11746_v46 = vmul.f32 %v14790_v23, %v3838_v42  ;;  %v11749_v63 = vmul.f32 %v14792_v25, %v3838_v42  ;;  %v11758_v8 = vmul.f32 %v14784_v45, %v3838_v42 }
 0x2ea   : > { %v3276_v55 = vadd.f32 1e-06, %v3222_v2  ;;  %14786 = vst [vmem:[#allocation34_spill] sm:$0xff] %v11729_v21  ;;  %14787 = vst [vmem:[#allocation51_spill] sm:$0xff] %v11732_v37  ;;  %v11751_v2 = vpop.eup %7931  ;;  %v11754_v43 = vmul.f32 %v3610_v27, %v11547_v0  ;;  %v11763_v11 = vmul.f32 %v14778_v62, %v3838_v42  ;;  %v11775_v27 = vmul.f32 %v11315_v26, %v3838_v42 }
 0x2eb   : > { %14789 = vst [vmem:[#allocation53_spill] sm:$0xff] %v11743_v40  ;;  %14791 = vst [vmem:[#allocation12_spill] sm:$0xff] %v11746_v46  ;;  %v3169_v24 = vpop.xlane.xlu1 %3168  ;;  %v14814_v37 = vrot.slane %v11696_v19, 1 }
 0x2ec   : > { %14793 = vst [vmem:[#allocation35_spill] sm:$0xff] %v11749_v63  ;;  %14794 = vst [vmem:[#allocation7_spill] sm:$0xff] %v11751_v2  ;;  %7941 = vrsqrt.f32 %v3276_v55  ;;  %v3223_v39 = vmul.f32 0.03125, %v3169_v24  ;;  %v11768_v0 = vmul.f32 %v11339_v53, %v11754_v43  ;;  %v11772_v55 = vmul.f32 %v11710_v16, %v11754_v43  ;;  %v11777_v24 = vpop.eup %7933 }
 0x2ed   : > { %14795 = vst [vmem:[#allocation13_spill] sm:$0xff] %v11754_v43  ;;  %14796 = vst [vmem:[#allocation6_spill] sm:$0xff] %v11758_v8  ;;  %v3620_v18 = vpop.permute.xlu0 %3619  ;;  %v11781_v17 = vmul.f32 %v11666_v50, %v11754_v43  ;;  %v11786_v8 = vmul.f32 %v14790_v23, %v11754_v43 }
 0x2ee   : > { %14797 = vst [vmem:[#allocation8_spill] sm:$0xff] %v11763_v11  ;;  %14798 = vst [vmem:[#allocation28_spill] sm:$0xff] %v11768_v0  ;;  %v3277_v36 = vadd.f32 1e-06, %v3223_v39  ;;  %v3843_v44 = vmul.f32 %v3620_v18, %v11400_v28  ;;  %v11793_v39 = vmul.f32 %v11369_v34, %v11754_v43  ;;  %v11801_v11 = vmul.f32 %v14792_v25, %v11754_v43 }
 0x2ef   : > { %14799 = vst [vmem:[#allocation26_spill] sm:$0xff] %v11772_v55  ;;  %14800 = vst [vmem:[#allocation24_spill] sm:$0xff] %v11775_v27  ;;  %v3570_v63 = vpop.permute.xlu1 %3569 }
 0x2f0   : > { %14801 = vst [vmem:[#allocation27_spill] sm:$0xff] %v11777_v24  ;;  %14802 = vst [vmem:[#allocation9_spill] sm:$0xff] %v11781_v17  ;;  %v11795_v24 = vpop.eup %7935  ;;  %7943 = vrsqrt.f32 %v3277_v36  ;;  %v3833_v2 = vmul.f32 %v3570_v63, %v11452_v38  ;;  %v11804_v18 = vmul.f32 %v14778_v62, %v3843_v44  ;;  %v11807_v48 = vmul.f32 %v11315_v26, %v3843_v44 }
 0x2f1   : > { %14803 = vst [vmem:[#allocation30_spill] sm:$0xff] %v11786_v8  ;;  %14804 = vst [vmem:[#allocation10_spill] sm:$0xff] %v11793_v39  ;;  %v7938_v28 = vpop.eup %7937  ;;  %v11810_v42 = vmul.f32 %v14790_v23, %v3843_v44  ;;  %v11813_v36 = vmul.f32 %v14792_v25, %v3843_v44  ;;  %v11818_v63 = vmul.f32 %v11339_v53, %v3843_v44  ;;  %v3625_v43 = vpop.permute.xlu0 %3624  ;;  %v14815_v8 = vld [vmem:[#allocation16_spill] sm:$0xff] }
 0x2f2   : > { %14805 = vst [vmem:[#allocation18_spill] sm:$0xff] %v11795_v24  ;;  %14806 = vst [vmem:[#allocation42_spill] sm:$0xff] %v11801_v11  ;;  %v11815_v38 = vpop.eup %7939  ;;  %v11821_v17 = vmul.f32 %v11710_v16, %v3843_v44  ;;  %v11824_v24 = vmul.f32 %v14778_v62, %v3833_v2  ;;  %v11837_v46 = vmul.f32 %v11315_v26, %v3833_v2 }
 0x2f3   : > { %14807 = vst [vmem:[#allocation11_spill] sm:$0xff] %v11810_v42  ;;  %14808 = vst [vmem:[#allocation23_spill] sm:$0xff] %v11813_v36  ;;  %v3580_v40 = vpop.permute.xlu1 %3579  ;;  %v11843_v55 = vmul.f32 %v3625_v43, %v11522_v14  ;;  %v11858_v14 = vadd.f32 %v11349_v61, %v11735_v7 }
 0x2f4   : > { %14809 = vst [vmem:[#allocation14_spill] sm:$0xff] %v11815_v38  ;;  %14810 = vst [vmem:[#allocation44_spill] sm:$0xff] %v11818_v63  ;;  %v11831_v38 = vmul.f32 %v14784_v45, %v3833_v2  ;;  %v14326_v21 = vrot.slane %v11824_v24, 1  ;;  %v3835_v0 = vmul.f32 %v3580_v40, %v11431_v20  ;;  %v4299_v2 = vrot.slane %v11837_v46, 2 }
 0x2f5   : > { %14811 = vst [vmem:[#allocation54_spill] sm:$0xff] %v11821_v17  ;;  %14813 = vst [vmem:[#allocation56_spill] sm:$0xff] %v11843_v55  ;;  %v3640_v36 = vpop.permute.xlu0 %3639  ;;  %v14818_v46 = vrot.slane %v11699_v32, 2  ;;  %v14829_v11 = vrot.slane %v11824_v24, 1 }
 0x2f6   : > { %v11839_v39 = vpop.eup %7941  ;;  %v4056_v44 = vsel %vm646_vm1, %v14814_v37, %v14326_v21  ;;  %14817 = vst [vmem:[#allocation57_spill] sm:$0xff] %v11858_v14  ;;  %v3892_v40 = vmul.f32 %v14784_v45, %v3835_v0  ;;  %v3961_v43 = vmul.f32 %v14778_v62, %v3835_v0  ;;  %v11864_v19 = vmul.f32 %v11315_v26, %v3835_v0 }
 0x2f7   : > { %14812 = vst [vmem:[#allocation55_spill] sm:$0xff] %v11839_v39  ;;  %v11854_v39 = vmul.f32 %v7938_v28, %v14815_v8  ;;  %v4166_v20 = vadd.f32 %v4056_v44, %v11720_v10  ;;  %v3585_v37 = vpop.permute.xlu1 %3584  ;;  %v4300_v42 = vsel %vm957_vm2, %v14818_v46, %v4299_v2  ;;  %v4446_v8 = vmul.f32 %v11369_v34, %v3835_v0 }
 0x2f8   : > { %v11871_v28 = vmul.f32 %v14790_v23, %v3835_v0  ;;  %v11874_v61 = vmul.f32 %v14792_v25, %v3835_v0  ;;  %v4059_v7 = vrot.slane %v3961_v43, 1  ;;  %v4303_v44 = vrot.slane %v11864_v19, 2 }
 0x2f9   : > { %14816 = vst [vmem:[#allocation16_spill] sm:$0xff] %v11854_v39  ;;  %v4410_v10 = vadd.f32 %v4300_v42, %v4166_v20  ;;  %v11878_v27 = vmul.f32 %v3640_v36, %v11566_v9  ;;  %v3836_v14 = vmul.f32 %v3585_v37, %v11473_v35  ;;  %v3650_v39 = vpop.permute.xlu0 %3649  ;;  %v11887_v0 = vmul.f32 %v11666_v50, %v11843_v55 }
 0x2fa   : > { %v11880_v21 = vpop.eup %7943  ;;  %v3849_v20 = vmul.f32 %v3650_v39, %v11410_v12  ;;  %v11894_v9 = vmul.f32 %v11339_v53, %v11843_v55  ;;  %v11898_v36 = vmul.f32 %v11710_v16, %v11843_v55 }
 0x2fb   : > { %14819 = vst [vmem:[#allocation58_spill] sm:$0xff] %v11878_v27  ;;  %14820 = vst [vmem:[#allocation59_spill] sm:$0xff] %v11880_v21  ;;  %v11889_v42 = vadd.f32 %v4446_v8, %v4410_v10  ;;  %v3575_v43 = vpop.permute.xlu1 %3574  ;;  %v4447_v35 = vmul.f32 %v11369_v34, %v3836_v14  ;;  %v3893_v37 = vmul.f32 %v14784_v45, %v3836_v14 }
 0x2fc   : > { %14821 = vst [vmem:[#allocation60_spill] sm:$0xff] %v11887_v0  ;;  %14822 = vst [vmem:[#allocation61_spill] sm:$0xff] %v11894_v9  ;;  %v3834_v19 = vmul.f32 %v3575_v43, %v11374_v33  ;;  %v3962_v8 = vmul.f32 %v14778_v62, %v3836_v14  ;;  %v11905_v10 = vmul.f32 %v14778_v62, %v3849_v20 }
 0x2fd   : > { %14823 = vst [vmem:[#allocation62_spill] sm:$0xff] %v11898_v36  ;;  %v11908_v12 = vmul.f32 %v11315_v26, %v3849_v20  ;;  %v11911_v39 = vmul.f32 %v14790_v23, %v3849_v20  ;;  %v11914_v46 = vmul.f32 %v14792_v25, %v3849_v20  ;;  %v11917_v32 = vmul.f32 %v11339_v53, %v3849_v20  ;;  %v3655_v27 = vpop.permute.xlu0 %3654 }
 0x2fe   : > { %v11920_v33 = vmul.f32 %v11710_v16, %v3849_v20  ;;  %v3960_v43 = vmul.f32 %v14778_v62, %v3834_v19  ;;  %v4204_v21 = vmul.f32 %v11315_v26, %v3834_v19  ;;  %v11931_v31 = vmul.f32 %v3655_v27, %v11569_v59 }
 0x2ff   : > { %14824 = vst [vmem:[#allocation63_spill] sm:$0xff] %v11911_v39  ;;  %14825 = vst [vmem:[#allocation64_spill] sm:$0xff] %v11914_v46  ;;  %v3590_v9 = vpop.permute.xlu1 %3589  ;;  %v4060_v19 = vrot.slane %v3962_v8, 1  ;;  %v4206_v50 = vmul.f32 %v11315_v26, %v3836_v14  ;;  %v11935_v55 = vmul.f32 %v14790_v23, %v3836_v14  ;;  %v11942_v17 = vmul.f32 %v14792_v25, %v3836_v14 }
 0x300   : > { %14826 = vst [vmem:[#allocation65_spill] sm:$0xff] %v11917_v32  ;;  %14827 = vst [vmem:[#allocation66_spill] sm:$0xff] %v11920_v33  ;;  %v4057_v20 = vrot.slane %v3960_v43, 1  ;;  %v4301_v4 = vrot.slane %v4204_v21, 2  ;;  %v3837_v21 = vmul.f32 %v3590_v9, %v11382_v15 }
 0x301   : > { %14828 = vst [vmem:[#allocation67_spill] sm:$0xff] %v11931_v31  ;;  %v3670_v43 = vpop.permute.xlu0 %3669  ;;  %v4304_v27 = vrot.slane %v4206_v50, 2  ;;  %v4611_v8 = vrot.slane %v11935_v55, 1  ;;  %v4061_v63 = vsel %vm646_vm1, %v4059_v7, %v4060_v19 }
 0x302   : > { %v4058_v36 = vsel %vm646_vm1, %v14829_v11, %v4057_v20  ;;  %v4302_v0 = vsel %vm957_vm2, %v4299_v2, %v4301_v4  ;;  %v3963_v11 = vmul.f32 %v14778_v62, %v3837_v21  ;;  %v11950_v20 = vadd.f32 %v4061_v63, %v3892_v40 }
 0x303   : > { %v4167_v59 = vadd.f32 %v4058_v36, %v11831_v38  ;;  %v3600_v46 = vpop.permute.xlu1 %3599  ;;  %v4207_v4 = vmul.f32 %v11315_v26, %v3837_v21  ;;  %v11954_v15 = vsel %vm957_vm2, %v4303_v44, %v4304_v27  ;;  %v4516_v38 = vmul.f32 %v14790_v23, %v3837_v21 }
 0x304   : > { %v4760_v50 = vmul.f32 %v14792_v25, %v3837_v21  ;;  %v4062_v55 = vrot.slane %v3963_v11, 1  ;;  %v11959_v7 = vmul.f32 %v3670_v43, %v11614_v56  ;;  %v11962_v9 = vmul.f32 %v3600_v46, %v11482_v54 }
 0x305   : > { %v4411_v2 = vadd.f32 %v4302_v0, %v4167_v59  ;;  %v4306_v14 = vrot.slane %v4207_v4, 2  ;;  %v3680_v63 = vpop.permute.xlu0 %3679  ;;  %v4613_v36 = vrot.slane %v4516_v38, 1 }
 0x306   : > { %14830 = vst [vmem:[#allocation68_spill] sm:$0xff] %v11959_v7  ;;  %v4857_v24 = vrot.slane %v4760_v50, 2  ;;  %v3855_v0 = vmul.f32 %v3680_v63, %v11420_v13  ;;  %v4063_v59 = vsel %vm646_vm1, %v4060_v19, %v4062_v55  ;;  %v3895_v21 = vmul.f32 %v14784_v45, %v11962_v9 }
 0x307   : > { %v4479_v40 = vadd.f32 %v4447_v35, %v4411_v2  ;;  %v3605_v44 = vpop.permute.xlu1 %3604  ;;  %v4307_v39 = vsel %vm957_vm2, %v4304_v27, %v4306_v14  ;;  %v11971_v56 = vmul.f32 %v14778_v62, %v11962_v9  ;;  %v4169_v54 = vadd.f32 %v4063_v59, %v3893_v37 }
 0x308   : > { %v4614_v46 = vsel %vm646_vm1, %v4611_v8, %v4613_v36  ;;  %v14832_v35 = vrot.slane %v11942_v17, 2  ;;  %v11978_v13 = vmul.f32 %v14778_v62, %v3855_v0  ;;  %v11981_v27 = vmul.f32 %v11315_v26, %v3855_v0 }
 0x309   : > { %14831 = vst [vmem:[#allocation69_spill] sm:$0xff] %v11971_v56  ;;  %v4723_v19 = vadd.f32 %v4614_v46, %v4479_v40  ;;  %v11984_v11 = vmul.f32 %v14790_v23, %v3855_v0  ;;  %v11987_v4 = vmul.f32 %v14792_v25, %v3855_v0  ;;  %v3685_v37 = vpop.permute.xlu0 %3684  ;;  %v4413_v2 = vadd.f32 %v4307_v39, %v4169_v54 }
 0x30a   : > { %v4858_v43 = vsel %vm957_vm2, %v14832_v35, %v4857_v24  ;;  %v11991_v50 = vmul.f32 %v11339_v53, %v3855_v0  ;;  %v11994_v24 = vmul.f32 %v11710_v16, %v3855_v0  ;;  %v12006_v46 = vmul.f32 %v11315_v26, %v11962_v9 }
 0x30b   : > { %14833 = vst [vmem:[#allocation70_spill] sm:$0xff] %v11984_v11  ;;  %14834 = vst [vmem:[#allocation71_spill] sm:$0xff] %v11987_v4  ;;  %v3615_v55 = vpop.permute.xlu1 %3614  ;;  %v11996_v14 = vadd.f32 %v4858_v43, %v4723_v19  ;;  %v4449_v0 = vmul.f32 %v11369_v34, %v11962_v9  ;;  %v12012_v35 = vmul.f32 %v14790_v23, %v11962_v9  ;;  %v14838_v43 = vld [vmem:[#allocation37_spill] sm:$0xff]  ;;  %v14841_v54 = vrot.slane %v11871_v28, 1 }
 0x30c   : > { %14835 = vst [vmem:[#allocation72_spill] sm:$0xff] %v11991_v50  ;;  %14836 = vst [vmem:[#allocation73_spill] sm:$0xff] %v11994_v24  ;;  %v3840_v19 = vmul.f32 %v3605_v44, %v14838_v43  ;;  %v12016_v36 = vmul.f32 %v3685_v37, %v11626_v41  ;;  %v12020_v59 = vmul.f32 %v3615_v55, %v11485_v51 }
 0x30d   : > { %14837 = vst [vmem:[#allocation74_spill] sm:$0xff] %v12006_v46  ;;  %v3700_v40 = vpop.permute.xlu0 %3699  ;;  %v12028_v4 = vsel %vm646_vm1, %v14841_v54, %v4611_v8  ;;  %v4481_v11 = vadd.f32 %v4449_v0, %v4413_v2  ;;  %v14848_v44 = vrot.slane %v12012_v35, 1 }
 0x30e   : > { %14839 = vst [vmem:[#allocation37_spill] sm:$0xff] %v12016_v36  ;;  %v12023_v63 = vmul.f32 %v3700_v40, %v11638_v52  ;;  %v3966_v41 = vmul.f32 %v14778_v62, %v3840_v19  ;;  %v4210_v37 = vmul.f32 %v11315_v26, %v3840_v19  ;;  %v4519_v43 = vmul.f32 %v14790_v23, %v3840_v19 }
 0x30f   : > { %v3630_v38 = vpop.permute.xlu1 %3629  ;;  %v12035_v51 = vmul.f32 %v14792_v25, %v3840_v19  ;;  %v12038_v52 = vmul.f32 %v11339_v53, %v3840_v19  ;;  %v12041_v28 = vmul.f32 %v11710_v16, %v3840_v19  ;;  %v3897_v54 = vmul.f32 %v14784_v45, %v12020_v59 }
 0x310   : > { %14840 = vst [vmem:[#allocation75_spill] sm:$0xff] %v12023_v63  ;;  %v4067_v8 = vrot.slane %v3966_v41, 1  ;;  %v4311_v55 = vrot.slane %v4210_v37, 2  ;;  %v12044_v2 = vmul.f32 %v3630_v38, %v11561_v22  ;;  %v4618_v0 = vrot.slane %v4519_v43, 1 }
 0x311   : > { %14842 = vst [vmem:[#allocation76_spill] sm:$0xff] %v12035_v51  ;;  %14843 = vst [vmem:[#allocation77_spill] sm:$0xff] %v12038_v52  ;;  %v3710_v40 = vpop.permute.xlu0 %3709  ;;  %v14846_v19 = vrot.slane %v11971_v56, 1  ;;  %v14847_v37 = vrot.slane %v12006_v46, 2  ;;  %v12122_v33 = vmul.f32 %v11315_v26, %v12020_v59 }
 0x312   : > { %14844 = vst [vmem:[#allocation78_spill] sm:$0xff] %v12041_v28  ;;  %14845 = vst [vmem:[#allocation79_spill] sm:$0xff] %v12044_v2  ;;  %v3861_v38 = vmul.f32 %v3710_v40, %v11641_v60  ;;  %v3899_v43 = vmul.f32 %v14784_v45, %v12044_v2  ;;  %v4619_v39 = vsel %vm646_vm1, %v14848_v44, %v4618_v0 }
 0x313   : > { %v3635_v36 = vpop.permute.xlu1 %3634  ;;  %v4068_v41 = vsel %vm646_vm1, %v14846_v19, %v4067_v8  ;;  %v4312_v22 = vsel %vm957_vm2, %v14847_v37, %v4311_v55  ;;  %v12065_v63 = vmul.f32 %v14778_v62, %v12044_v2  ;;  %v12069_v8 = vmul.f32 %v11315_v26, %v12044_v2  ;;  %v14861_v37 = vld [vmem:[#allocation45_spill] sm:$0xff] }
 0x314   : > { %v4171_v24 = vadd.f32 %v4068_v41, %v3895_v21  ;;  %v12071_v19 = vadd.f32 %v4619_v39, %v4481_v11  ;;  %v12074_v60 = vmul.f32 %v14778_v62, %v3861_v38  ;;  %v12077_v55 = vmul.f32 %v11315_v26, %v3861_v38 }
 0x315   : > { %14849 = vst [vmem:[#allocation80_spill] sm:$0xff] %v12065_v63  ;;  %14850 = vst [vmem:[#allocation81_spill] sm:$0xff] %v12069_v8  ;;  %v12080_v21 = vmul.f32 %v14790_v23, %v3861_v38  ;;  %v12085_v40 = vmul.f32 %v14792_v25, %v3861_v38  ;;  %v12088_v0 = vmul.f32 %v11339_v53, %v3861_v38  ;;  %v3720_v7 = vpop.permute.xlu0 %3719  ;;  %v14867_v52 = vrot.slane %v12065_v63, 1 }
 0x316   : > { %14851 = vst [vmem:[#allocation82_spill] sm:$0xff] %v12071_v19  ;;  %14852 = vst [vmem:[#allocation83_spill] sm:$0xff] %v12074_v60  ;;  %v12082_v44 = vadd.f32 %v4312_v22, %v4171_v24  ;;  %v12091_v11 = vmul.f32 %v11710_v16, %v3861_v38  ;;  %v4453_v38 = vmul.f32 %v11369_v34, %v12044_v2 }
 0x317   : > { %14853 = vst [vmem:[#allocation84_spill] sm:$0xff] %v12077_v55  ;;  %14854 = vst [vmem:[#allocation85_spill] sm:$0xff] %v12080_v21  ;;  %v3645_v32 = vpop.permute.xlu1 %3644  ;;  %v12105_v41 = vmul.f32 %v14790_v23, %v12044_v2  ;;  %v12109_v39 = vmul.f32 %v14792_v25, %v12044_v2  ;;  %v12113_v24 = vmul.f32 %v11339_v53, %v12044_v2 }
 0x318   : > { %14855 = vst [vmem:[#allocation86_spill] sm:$0xff] %v12082_v44  ;;  %14856 = vst [vmem:[#allocation87_spill] sm:$0xff] %v12085_v40  ;;  %v3846_v31 = vmul.f32 %v3635_v36, %v14861_v37  ;;  %v12118_v22 = vmul.f32 %v14778_v62, %v12020_v59  ;;  %v12125_v50 = vmul.f32 %v3720_v7, %v11629_v30  ;;  %v14866_v44 = vrot.slane %v11807_v48, 2 }
 0x319   : > { %14857 = vst [vmem:[#allocation88_spill] sm:$0xff] %v12088_v0  ;;  %14858 = vst [vmem:[#allocation89_spill] sm:$0xff] %v12091_v11  ;;  %v12131_v21 = vmul.f32 %v3645_v32, %v11555_v47  ;;  %v14361_v0 = vrot.slane %v12122_v33, 2  ;;  %v14865_v47 = vrot.slane %v11804_v18, 1  ;;  %v3725_v56 = vpop.permute.xlu0 %3724 }
 0x31a   : > { %14859 = vst [vmem:[#allocation90_spill] sm:$0xff] %v12105_v41  ;;  %14860 = vst [vmem:[#allocation91_spill] sm:$0xff] %v12109_v39  ;;  %v3972_v36 = vmul.f32 %v14778_v62, %v3846_v31  ;;  %v14362_v37 = vrot.slane %v12118_v22, 1  ;;  %v4216_v11 = vmul.f32 %v11315_v26, %v3846_v31  ;;  %v4525_v30 = vmul.f32 %v14790_v23, %v3846_v31 }
 0x31b   : > { %14862 = vst [vmem:[#allocation45_spill] sm:$0xff] %v12118_v22  ;;  %14863 = vst [vmem:[#allocation92_spill] sm:$0xff] %v12125_v50  ;;  %v4769_v7 = vmul.f32 %v14792_v25, %v3846_v31  ;;  %v5078_v55 = vmul.f32 %v11339_v53, %v3846_v31  ;;  %v12141_v60 = vmul.f32 %v11710_v16, %v3846_v31  ;;  %v14868_v22 = vrot.slane %v12069_v8, 2 }
 0x31c   : > { %14864 = vst [vmem:[#allocation93_spill] sm:$0xff] %v12131_v21  ;;  %v4073_v32 = vsel %vm646_vm1, %v14362_v37, %v14865_v47  ;;  %v4077_v40 = vrot.slane %v3972_v36, 1  ;;  %v4317_v2 = vsel %vm957_vm2, %v14361_v0, %v14866_v44  ;;  %v4321_v46 = vrot.slane %v4216_v11, 2 }
 0x31d   : > { %v4173_v19 = vadd.f32 %v4073_v32, %v3897_v54  ;;  %v4628_v51 = vrot.slane %v4525_v30, 1  ;;  %v4872_v28 = vrot.slane %v4769_v7, 2  ;;  %v5179_v31 = vrot.slane %v5078_v55, 1 }
 0x31e   : > { %v4078_v18 = vsel %vm646_vm1, %v14867_v52, %v4077_v40  ;;  %v4322_v36 = vsel %vm957_vm2, %v14868_v22, %v4321_v46  ;;  %v3911_v47 = vmul.f32 %v14784_v45, %v12125_v50  ;;  %v14869_v54 = vrot.slane %v12105_v41, 1 }
 0x31f   : > { %v4175_v44 = vadd.f32 %v4078_v18, %v3899_v43  ;;  %v4417_v11 = vadd.f32 %v4317_v2, %v4173_v19  ;;  %v14870_v55 = vrot.slane %v12109_v39, 2  ;;  %v14871_v52 = vrot.slane %v12113_v24, 1  ;;  %v3660_v43 = vpop.permute.xlu1 %3659 }
 0x320   : > { %v4629_v30 = vsel %vm646_vm1, %v14869_v54, %v4628_v51  ;;  %v12175_v46 = vmul.f32 %v14778_v62, %v12125_v50  ;;  %v12179_v2 = vmul.f32 %v11315_v26, %v12125_v50  ;;  %v12183_v51 = vmul.f32 %v14790_v23, %v12125_v50 }
 0x321   : > { %v4873_v7 = vsel %vm957_vm2, %v14870_v55, %v4872_v28  ;;  %v12171_v40 = vsel %vm646_vm1, %v14871_v52, %v5179_v31  ;;  %v12185_v19 = vadd.f32 %v4322_v36, %v4175_v44  ;;  %v4485_v28 = vadd.f32 %v4453_v38, %v4417_v11  ;;  %v3735_v52 = vpop.permute.xlu0 %3734 }
 0x322   : > { %14872 = vst [vmem:[#allocation94_spill] sm:$0xff] %v12175_v46  ;;  %14873 = vst [vmem:[#allocation95_spill] sm:$0xff] %v12179_v2  ;;  %v12189_v22 = vmul.f32 %v14792_v25, %v12125_v50  ;;  %v12193_v32 = vmul.f32 %v11339_v53, %v12125_v50  ;;  %v3864_v55 = vmul.f32 %v3725_v56, %v11644_v57 }
 0x323   : > { %14874 = vst [vmem:[#allocation96_spill] sm:$0xff] %v12183_v51  ;;  %14875 = vst [vmem:[#allocation97_spill] sm:$0xff] %v12185_v19  ;;  %v4729_v36 = vadd.f32 %v4629_v30, %v4485_v28  ;;  %v12202_v11 = vmul.f32 %v3660_v43, %v11602_v3  ;;  %v12215_v30 = vmul.f32 %v3735_v52, %v11647_v5  ;;  %v3665_v38 = vpop.permute.xlu1 %3664 }
 0x324   : > { %14876 = vst [vmem:[#allocation98_spill] sm:$0xff] %v12189_v22  ;;  %14877 = vst [vmem:[#allocation99_spill] sm:$0xff] %v12193_v32  ;;  %v3990_v0 = vmul.f32 %v14778_v62, %v3864_v55  ;;  %v4234_v37 = vmul.f32 %v11315_v26, %v3864_v55  ;;  %v4543_v48 = vmul.f32 %v14790_v23, %v3864_v55  ;;  %v14887_v52 = vrot.slane %v12189_v22, 2 }
 0x325   : > { %14878 = vst [vmem:[#allocation100_spill] sm:$0xff] %v12202_v11  ;;  %v4787_v18 = vmul.f32 %v14792_v25, %v3864_v55  ;;  %v12208_v54 = vadd.f32 %v4873_v7, %v4729_v36  ;;  %v5096_v57 = vmul.f32 %v11339_v53, %v3864_v55  ;;  %v12212_v56 = vmul.f32 %v11710_v16, %v3864_v55 }
 0x326   : > { %14881 = vst [vmem:[#allocation103_spill] sm:$0xff] %v12215_v30  ;;  %v4107_v3 = vrot.slane %v3990_v0, 1  ;;  %v4351_v43 = vrot.slane %v4234_v37, 2  ;;  %v4658_v28 = vrot.slane %v4543_v48, 1  ;;  %v3903_v7 = vmul.f32 %v14784_v45, %v12202_v11 }
 0x327   : > { %14879 = vst [vmem:[#allocation101_spill] sm:$0xff] %v12208_v54  ;;  %14880 = vst [vmem:[#allocation102_spill] sm:$0xff] %v12212_v56  ;;  %v4902_v44 = vrot.slane %v4787_v18, 2  ;;  %v5209_v31 = vrot.slane %v5096_v57, 1  ;;  %v12222_v36 = vmul.f32 %v14778_v62, %v12202_v11  ;;  %v14883_v55 = vrot.slane %v12175_v46, 1  ;;  %v3675_v22 = vpop.permute.xlu1 %3674 }
 0x328   : > { %v14884_v0 = vrot.slane %v12179_v2, 2  ;;  %v14885_v48 = vrot.slane %v12183_v51, 1  ;;  %v14889_v56 = vrot.slane %v12193_v32, 1  ;;  %v12273_v2 = vmul.f32 %v14778_v62, %v12131_v21 }
 0x329   : > { %14882 = vst [vmem:[#allocation104_spill] sm:$0xff] %v12222_v36  ;;  %v4108_v5 = vsel %vm646_vm1, %v14883_v55, %v4107_v3  ;;  %v12238_v57 = vsel %vm957_vm2, %v14887_v52, %v4902_v44  ;;  %v12254_v55 = vmul.f32 %v14790_v23, %v12202_v11 }
 0x32a   : > { %v4352_v37 = vsel %vm957_vm2, %v14884_v0, %v4351_v43  ;;  %v12233_v18 = vsel %vm646_vm1, %v14885_v48, %v4658_v28  ;;  %14888 = vst [vmem:[#allocation106_spill] sm:$0xff] %v12238_v57  ;;  %v4187_v50 = vadd.f32 %v4108_v5, %v3911_v47  ;;  %v12243_v46 = vsel %vm646_vm1, %v14889_v56, %v5209_v31  ;;  %v14894_v5 = vld [vmem:[#allocation40_spill] sm:$0xff] }
 0x32b   : > { %14886 = vst [vmem:[#allocation105_spill] sm:$0xff] %v12233_v18  ;;  %14890 = vst [vmem:[#allocation107_spill] sm:$0xff] %v12243_v46  ;;  %v12248_v43 = vmul.f32 %v11315_v26, %v12202_v11  ;;  %v4457_v28 = vmul.f32 %v11369_v34, %v12202_v11  ;;  %v12258_v47 = vmul.f32 %v14792_v25, %v12202_v11  ;;  %v3740_v18 = vpop.permute.xlu0 %3739  ;;  %v14379_v3 = vrot.slane %v12273_v2, 1 }
 0x32c   : > { %14892 = vst [vmem:[#allocation109_spill] sm:$0xff] %v12254_v55  ;;  %v12262_v31 = vmul.f32 %v11339_v53, %v12202_v11  ;;  %v4431_v44 = vadd.f32 %v4352_v37, %v4187_v50  ;;  %v3852_v0 = vmul.f32 %v3665_v38, %v14894_v5  ;;  %v3901_v48 = vmul.f32 %v14784_v45, %v12131_v21 }
 0x32d   : > { %14891 = vst [vmem:[#allocation108_spill] sm:$0xff] %v12248_v43  ;;  %14893 = vst [vmem:[#allocation110_spill] sm:$0xff] %v12258_v47  ;;  %v12278_v38 = vmul.f32 %v11315_v26, %v12131_v21  ;;  %v14896_v11 = vrot.slane %v11905_v10, 1  ;;  %v14897_v21 = vrot.slane %v12222_v36, 1  ;;  %v14899_v10 = vrot.slane %v12248_v43, 2  ;;  %v14909_v43 = vld [vmem:[#allocation46_spill] sm:$0xff] }
 0x32e   : > { %v3978_v50 = vmul.f32 %v14778_v62, %v3852_v0  ;;  %v4222_v37 = vmul.f32 %v11315_v26, %v3852_v0  ;;  %v4531_v5 = vmul.f32 %v14790_v23, %v3852_v0  ;;  %v4775_v57 = vmul.f32 %v14792_v25, %v3852_v0 }
 0x32f   : > { %14895 = vst [vmem:[#allocation40_spill] sm:$0xff] %v12278_v38  ;;  %v5084_v52 = vmul.f32 %v11339_v53, %v3852_v0  ;;  %v12286_v56 = vmul.f32 %v11710_v16, %v3852_v0  ;;  %v14380_v46 = vrot.slane %v12278_v38, 2  ;;  %v4083_v8 = vsel %vm646_vm1, %v14379_v3, %v14896_v11 }
 0x330   : > { %v4087_v51 = vrot.slane %v3978_v50, 1  ;;  %v4331_v32 = vrot.slane %v4222_v37, 2  ;;  %v4638_v19 = vrot.slane %v4531_v5, 1  ;;  %v4882_v63 = vrot.slane %v4775_v57, 2 }
 0x331   : > { %v5189_v54 = vrot.slane %v5084_v52, 1  ;;  %v4177_v41 = vadd.f32 %v4083_v8, %v3901_v48  ;;  %v14898_v50 = vrot.slane %v11908_v12, 2  ;;  %v14900_v57 = vrot.slane %v12254_v55, 1  ;;  %v3690_v48 = vpop.permute.xlu1 %3689 }
 0x332   : > { %v4088_v0 = vsel %vm646_vm1, %v14897_v21, %v4087_v51  ;;  %v4332_v5 = vsel %vm957_vm2, %v14899_v10, %v4331_v32  ;;  %v14901_v3 = vrot.slane %v12258_v47, 2  ;;  %v14902_v8 = vrot.slane %v12262_v31, 1  ;;  %v3750_v51 = vpop.permute.xlu0 %3749 }
 0x333   : > { %v4327_v37 = vsel %vm957_vm2, %v14380_v46, %v14898_v50  ;;  %v4179_v11 = vadd.f32 %v4088_v0, %v3903_v7  ;;  %v4639_v52 = vsel %vm646_vm1, %v14900_v57, %v4638_v19  ;;  %v3913_v32 = vmul.f32 %v14784_v45, %v12215_v30 }
 0x334   : > { %v4883_v21 = vsel %vm957_vm2, %v14901_v3, %v4882_v63  ;;  %v12315_v12 = vsel %vm646_vm1, %v14902_v8, %v5189_v54  ;;  %v4421_v50 = vadd.f32 %v4327_v37, %v4177_v41  ;;  %v12321_v7 = vmul.f32 %v14778_v62, %v12215_v30 }
 0x335   : > { %v12325_v19 = vmul.f32 %v11315_v26, %v12215_v30  ;;  %v12327_v63 = vadd.f32 %v4332_v5, %v4179_v11  ;;  %v4467_v54 = vmul.f32 %v11369_v34, %v12215_v30  ;;  %v12333_v3 = vmul.f32 %v14790_v23, %v12215_v30  ;;  %v3695_v57 = vpop.permute.xlu1 %3694 }
 0x336   : > { %14903 = vst [vmem:[#allocation111_spill] sm:$0xff] %v12321_v7  ;;  %v12337_v41 = vmul.f32 %v14792_v25, %v12215_v30  ;;  %v4489_v0 = vadd.f32 %v4457_v28, %v4421_v50  ;;  %v12343_v5 = vmul.f32 %v11339_v53, %v12215_v30  ;;  %v3867_v46 = vmul.f32 %v3740_v18, %v11676_v6  ;;  %v14910_v50 = vld [vmem:[#allocation50_spill] sm:$0xff]  ;;  %v3760_v8 = vpop.permute.xlu0 %3759 }
 0x337   : > { %14904 = vst [vmem:[#allocation112_spill] sm:$0xff] %v12325_v19  ;;  %14905 = vst [vmem:[#allocation113_spill] sm:$0xff] %v12327_v63  ;;  %v4499_v11 = vadd.f32 %v4467_v54, %v4431_v44  ;;  %v12350_v28 = vmul.f32 %v3675_v22, %v14909_v43  ;;  %v12353_v37 = vmul.f32 %v3750_v51, %v14910_v50  ;;  %v14914_v43 = vld [vmem:[#allocation47_spill] sm:$0xff]  ;;  %v14918_v38 = vrot.slane %v12325_v19, 2 }
 0x338   : > { %14906 = vst [vmem:[#allocation114_spill] sm:$0xff] %v12333_v3  ;;  %14907 = vst [vmem:[#allocation115_spill] sm:$0xff] %v12337_v41  ;;  %v4733_v39 = vadd.f32 %v4639_v52, %v4489_v0  ;;  %v3993_v10 = vmul.f32 %v14778_v62, %v3867_v46  ;;  %v4237_v30 = vmul.f32 %v11315_v26, %v3867_v46  ;;  %v14929_v19 = vrot.slane %v11981_v27, 2 }
 0x339   : > { %14908 = vst [vmem:[#allocation116_spill] sm:$0xff] %v12343_v5  ;;  %14911 = vst [vmem:[#allocation46_spill] sm:$0xff] %v12353_v37  ;;  %v4546_v44 = vmul.f32 %v14790_v23, %v3867_v46  ;;  %v4790_v54 = vmul.f32 %v14792_v25, %v3867_v46  ;;  %v5099_v18 = vmul.f32 %v11339_v53, %v3867_v46 }
 0x33a   : > { %v12359_v6 = vadd.f32 %v4883_v21, %v4733_v39  ;;  %v12363_v22 = vmul.f32 %v11710_v16, %v3867_v46  ;;  %v12366_v52 = vmul.f32 %v3690_v48, %v14914_v43  ;;  %v4112_v51 = vrot.slane %v3993_v10, 1  ;;  %v14916_v39 = vld [vmem:[#allocation49_spill] sm:$0xff] }
 0x33b   : > { %v4356_v0 = vrot.slane %v4237_v30, 2  ;;  %v4663_v50 = vrot.slane %v4546_v44, 1  ;;  %v4907_v63 = vrot.slane %v4790_v54, 2  ;;  %v5214_v36 = vrot.slane %v5099_v18, 1 }
 0x33c   : > { %14912 = vst [vmem:[#allocation50_spill] sm:$0xff] %v12359_v6  ;;  %14913 = vst [vmem:[#allocation117_spill] sm:$0xff] %v12363_v22  ;;  %v12370_v55 = vmul.f32 %v3760_v8, %v11686_v58  ;;  %v3858_v21 = vmul.f32 %v3695_v57, %v14916_v39  ;;  %v14917_v6 = vrot.slane %v12321_v7, 1  ;;  %v14919_v30 = vrot.slane %v12333_v3, 1 }
 0x33d   : > { %v4357_v48 = vsel %vm957_vm2, %v14918_v38, %v4356_v0  ;;  %v14920_v44 = vrot.slane %v12337_v41, 2  ;;  %v14921_v57 = vrot.slane %v12343_v5, 1  ;;  %v3907_v38 = vmul.f32 %v14784_v45, %v12366_v52 }
 0x33e   : > { %14915 = vst [vmem:[#allocation47_spill] sm:$0xff] %v12370_v55  ;;  %v4113_v46 = vsel %vm646_vm1, %v14917_v6, %v4112_v51  ;;  %v4664_v10 = vsel %vm646_vm1, %v14919_v30, %v4663_v50  ;;  %v3905_v6 = vmul.f32 %v14784_v45, %v12350_v28  ;;  %v12396_v43 = vmul.f32 %v14778_v62, %v12350_v28  ;;  %v3770_v50 = vpop.permute.xlu0 %3769 }
 0x33f   : > { %v4908_v54 = vsel %vm957_vm2, %v14920_v44, %v4907_v63  ;;  %v4189_v58 = vadd.f32 %v4113_v46, %v3913_v32  ;;  %v4743_v8 = vadd.f32 %v4664_v10, %v4499_v11  ;;  %v12388_v18 = vsel %vm646_vm1, %v14921_v57, %v5214_v36 }
 0x340   : > { %14922 = vst [vmem:[#allocation49_spill] sm:$0xff] %v12388_v18  ;;  %v12400_v63 = vmul.f32 %v14778_v62, %v12366_v52  ;;  %v3984_v32 = vmul.f32 %v14778_v62, %v3858_v21  ;;  %v12409_v51 = vmul.f32 %v11315_v26, %v12350_v28  ;;  %v12413_v0 = vmul.f32 %v11315_v26, %v12366_v52 }
 0x341   : > { %v12403_v11 = vadd.f32 %v4357_v48, %v4189_v58  ;;  %v12405_v36 = vadd.f32 %v4908_v54, %v4743_v8  ;;  %v14391_v39 = vrot.slane %v12396_v43, 1  ;;  %v4228_v10 = vmul.f32 %v11315_v26, %v3858_v21 }
 0x342   : > { %14923 = vst [vmem:[#allocation118_spill] sm:$0xff] %v12400_v63  ;;  %14925 = vst [vmem:[#allocation120_spill] sm:$0xff] %v12409_v51  ;;  %v14392_v46 = vrot.slane %v12400_v63, 1  ;;  %v4097_v30 = vrot.slane %v3984_v32, 1  ;;  %v4461_v54 = vmul.f32 %v11369_v34, %v12366_v52  ;;  %v12424_v58 = vmul.f32 %v14790_v23, %v12366_v52 }
 0x343   : > { %14924 = vst [vmem:[#allocation119_spill] sm:$0xff] %v12405_v36  ;;  %14926 = vst [vmem:[#allocation121_spill] sm:$0xff] %v12413_v0  ;;  %v14928_v8 = vrot.slane %v11978_v13, 1  ;;  %v4341_v47 = vrot.slane %v4228_v10, 2  ;;  %v4537_v44 = vmul.f32 %v14790_v23, %v3858_v21  ;;  %v14930_v7 = vrot.slane %v12409_v51, 2  ;;  %v15001_v51 = vld [vmem:[#allocation32_spill] sm:$0xff] }
 0x344   : > { %14927 = vst [vmem:[#allocation122_spill] sm:$0xff] %v12424_v58  ;;  %v4098_v32 = vsel %vm646_vm1, %v14392_v46, %v4097_v30  ;;  %v14395_v13 = vrot.slane %v12424_v58, 1  ;;  %v14931_v18 = vrot.slane %v12413_v0, 2  ;;  %v12446_v30 = vmul.f32 %v14792_v25, %v12366_v52 }
 0x345   : > { %v4093_v57 = vsel %vm646_vm1, %v14391_v39, %v14928_v8  ;;  %v4183_v55 = vadd.f32 %v4098_v32, %v3907_v38  ;;  %v4337_v36 = vsel %vm957_vm2, %v14930_v7, %v14929_v19  ;;  %v4648_v39 = vrot.slane %v4537_v44, 1  ;;  %v3705_v38 = vpop.permute.xlu1 %3704 }
 0x346   : > { %v4181_v48 = vadd.f32 %v4093_v57, %v3905_v6  ;;  %v4342_v8 = vsel %vm957_vm2, %v14931_v18, %v4341_v47  ;;  %14932 = vst [vmem:[#allocation123_spill] sm:$0xff] %v12446_v30  ;;  %v4781_v6 = vmul.f32 %v14792_v25, %v3858_v21  ;;  %v12453_v7 = vmul.f32 %v11339_v53, %v12366_v52  ;;  %v3780_v57 = vpop.permute.xlu0 %3779 }
 0x347   : > { %v12449_v27 = vadd.f32 %v4342_v8, %v4183_v55  ;;  %v5090_v19 = vmul.f32 %v11339_v53, %v3858_v21  ;;  %v4649_v47 = vsel %vm646_vm1, %v14395_v13, %v4648_v39  ;;  %v14394_v18 = vrot.slane %v12446_v30, 2  ;;  %v14999_v30 = vld [vmem:[#allocation25_spill] sm:$0xff] }
 0x348   : > { %v4425_v10 = vadd.f32 %v4337_v36, %v4181_v48  ;;  %v4892_v44 = vrot.slane %v4781_v6, 2  ;;  %v12461_v32 = vmul.f32 %v11710_v16, %v3858_v21  ;;  %v14396_v55 = vrot.slane %v12453_v7, 1 }
 0x349   : > { %14933 = vst [vmem:[#allocation124_spill] sm:$0xff] %v12449_v27  ;;  %v5199_v48 = vrot.slane %v5090_v19, 1  ;;  %v3873_v8 = vmul.f32 %v3770_v50, %v11692_v29  ;;  %v4722_v39 = vadd.f32 %v12028_v4, %v11889_v42  ;;  %v14934_v6 = vrot.slane %v11942_v17, 2 }
 0x34a   : > { %v4493_v36 = vadd.f32 %v4461_v54, %v4425_v10  ;;  %v4893_v46 = vsel %vm957_vm2, %v14394_v18, %v4892_v44  ;;  %v14935_v21 = vrot.slane %v11874_v61, 2  ;;  %v14945_v18 = vld [vmem:[#allocation52_spill] sm:$0xff] }
 0x34b   : > { %v12479_v29 = vsel %vm646_vm1, %v14396_v55, %v5199_v48  ;;  %v12482_v50 = vmul.f32 %v14778_v62, %v3873_v8  ;;  %v12485_v19 = vmul.f32 %v11315_v26, %v3873_v8  ;;  %v12488_v42 = vmul.f32 %v14790_v23, %v3873_v8  ;;  %v14947_v55 = vld [vmem:[#allocation31_spill] sm:$0xff] }
 0x34c   : > { %v4856_v54 = vsel %vm957_vm2, %v14935_v21, %v14934_v6  ;;  %v4737_v10 = vadd.f32 %v4649_v47, %v4493_v36  ;;  %v12491_v17 = vmul.f32 %v14792_v25, %v3873_v8  ;;  %v12494_v61 = vmul.f32 %v11339_v53, %v3873_v8  ;;  %v3715_v47 = vpop.permute.xlu1 %3714  ;;  %v3790_v21 = vpop.permute.xlu0 %3789  ;;  %v14941_v36 = vld [vmem:[#allocation48_spill] sm:$0xff] }
 0x34d   : > { %14936 = vst [vmem:[#allocation125_spill] sm:$0xff] %v12488_v42  ;;  %v12497_v4 = vmul.f32 %v11710_v16, %v3873_v8  ;;  %v4966_v6 = vadd.f32 %v4856_v54, %v4722_v39  ;;  %v12513_v48 = vmul.f32 %v3705_v38, %v14941_v36  ;;  %v12516_v39 = vmul.f32 %v3780_v57, %v11689_v1  ;;  %v14944_v54 = vld [vmem:[#allocation5_spill] sm:$0xff]  ;;  %v14949_v36 = vld [vmem:[#allocation12_spill] sm:$0xff] }
 0x34e   : > { %14937 = vst [vmem:[#allocation126_spill] sm:$0xff] %v12491_v17  ;;  %14938 = vst [vmem:[#allocation127_spill] sm:$0xff] %v12494_v61  ;;  %v12499_v44 = vadd.f32 %v4893_v46, %v4737_v10  ;;  %v5071_v46 = vmul.f32 %v11339_v53, %v11962_v9  ;;  %v5315_v10 = vmul.f32 %v11710_v16, %v11962_v9  ;;  %v14948_v38 = vrot.slane %v12012_v35, 1  ;;  %v14953_v35 = vld [vmem:[#allocation51_spill] sm:$0xff] }
 0x34f   : > { %14939 = vst [vmem:[#allocation128_spill] sm:$0xff] %v12497_v4  ;;  %v5034_v8 = vadd.f32 %v11740_v49, %v4966_v6  ;;  %14942 = vst [vmem:[#allocation48_spill] sm:$0xff] %v12513_v48  ;;  %v5003_v13 = vmul.f32 %v14944_v54, %v11962_v9  ;;  %v12521_v41 = vmul.f32 %v3715_v47, %v14945_v18  ;;  %v14950_v4 = vrot.slane %v14949_v36, 1  ;;  %v14997_v48 = vld [vmem:[#allocation42_spill] sm:$0xff] }
 0x350   : > { %14940 = vst [vmem:[#allocation129_spill] sm:$0xff] %v12499_v44  ;;  %14943 = vst [vmem:[#allocation130_spill] sm:$0xff] %v12516_v39  ;;  %v12524_v49 = vmul.f32 %v3790_v21, %v14947_v55  ;;  %v5167_v6 = vrot.slane %v5071_v46, 1  ;;  %v5411_v17 = vrot.slane %v5315_v10, 2  ;;  %v4412_v42 = vadd.f32 %v11954_v15, %v11950_v20  ;;  %v3730_v21 = vpop.permute.xlu1 %3729  ;;  %v14951_v46 = vld [vmem:[#allocation34_spill] sm:$0xff] }
 0x351   : > { %14946 = vst [vmem:[#allocation5_spill] sm:$0xff] %v12521_v41  ;;  %v4617_v1 = vsel %vm646_vm1, %v14950_v4, %v14948_v38  ;;  %v5035_v57 = vadd.f32 %v5003_v13, %v11996_v14  ;;  %v4762_v18 = vmul.f32 %v14792_v25, %v11962_v9  ;;  %v5074_v55 = vmul.f32 %v11339_v53, %v12020_v59  ;;  %v14955_v38 = vld [vmem:[#allocation77_spill] sm:$0xff]  ;;  %v14957_v9 = vld [vmem:[#allocation78_spill] sm:$0xff]  ;;  %v14968_v41 = vld [vmem:[#allocation76_spill] sm:$0xff] }
 0x352   : > { %v5318_v47 = vmul.f32 %v11710_v16, %v12020_v59  ;;  %v14952_v20 = vrot.slane %v14951_v46, 1  ;;  %v14954_v10 = vrot.slane %v14953_v35, 2  ;;  %v14956_v14 = vrot.slane %v14955_v38, 1  ;;  %v14959_v16 = vld [vmem:[#allocation53_spill] sm:$0xff] }
 0x353   : > { %v14958_v36 = vrot.slane %v14957_v9, 2  ;;  %v4480_v5 = vadd.f32 %v14959_v16, %v4412_v42  ;;  %v4860_v27 = vrot.slane %v4762_v18, 2  ;;  %v12556_v46 = vld [vmem:[%s14103_s7] ss:$0 sm:$0xff]  ;;  %v3800_v18 = vpop.permute.xlu0 %3799  ;;  %v14969_v0 = vrot.slane %v14968_v41, 2 }
 0x354   : > { %v5168_v15 = vsel %vm646_vm1, %v14952_v20, %v5167_v6  ;;  %v5412_v4 = vsel %vm957_vm2, %v14954_v10, %v5411_v17  ;;  %v5170_v13 = vsel %vm646_vm1, %v5167_v6, %v14956_v14  ;;  %v5172_v20 = vrot.slane %v5074_v55, 1  ;;  %v14960_v6 = vld [vmem:[#allocation19_spill] sm:$0xff]  ;;  %v14966_v55 = vld [vmem:[#allocation26_spill] sm:$0xff]  ;;  %v14975_v41 = vld [vmem:[#allocation33_spill] sm:$0xff] }
 0x355   : > { %v5414_v61 = vsel %vm957_vm2, %v5411_v17, %v14958_v36  ;;  %v5278_v3 = vadd.f32 %v5168_v15, %v5034_v8  ;;  %v5279_v22 = vadd.f32 %v5170_v13, %v5035_v57  ;;  %v5416_v35 = vrot.slane %v5318_v47, 2  ;;  %v14962_v57 = vld [vmem:[#allocation35_spill] sm:$0xff]  ;;  %v14964_v13 = vld [vmem:[#allocation28_spill] sm:$0xff] }
 0x356   : > { %v5005_v10 = vmul.f32 %v14944_v54, %v12020_v59  ;;  %v12561_v38 = vmul.f32 %v3730_v21, %v14960_v6  ;;  %v4724_v8 = vadd.f32 %v4617_v1, %v4480_v5  ;;  %v14963_v15 = vrot.slane %v14962_v57, 2  ;;  %v14972_v6 = vld [vmem:[#allocation82_spill] sm:$0xff] }
 0x357   : > { %v5522_v14 = vadd.f32 %v5412_v4, %v5278_v3  ;;  %v5523_v17 = vadd.f32 %v5414_v61, %v5279_v22  ;;  %v14965_v9 = vrot.slane %v14964_v13, 1  ;;  %v14967_v47 = vrot.slane %v14966_v55, 2  ;;  %v14970_v3 = vld [vmem:[#allocation44_spill] sm:$0xff] }
 0x358   : > { %14961 = vst [vmem:[#allocation52_spill] sm:$0xff] %v12561_v38  ;;  %v4861_v42 = vsel %vm957_vm2, %v14963_v15, %v4860_v27  ;;  %v4863_v21 = vsel %vm957_vm2, %v4860_v27, %v14969_v0  ;;  %v14971_v22 = vrot.slane %v14970_v3, 1  ;;  %v14973_v15 = vld [vmem:[#allocation54_spill] sm:$0xff]  ;;  %v3879_v55 = vmul.f32 %v3800_v18, %v14975_v41  ;;  %v14976_v0 = vld [vmem:[#allocation69_spill] sm:$0xff]  ;;  %v14982_v38 = vld [vmem:[#allocation24_spill] sm:$0xff] }
 0x359   : > { %v5173_v36 = vsel %vm646_vm1, %v14965_v9, %v5172_v20  ;;  %v5417_v16 = vsel %vm957_vm2, %v14967_v47, %v5416_v35  ;;  %v12579_v61 = vadd.f32 %v12556_v46, %v5522_v14  ;;  %v12582_v1 = vadd.f32 %v12556_v46, %v5523_v17  ;;  %v14978_v47 = vld [vmem:[#allocation8_spill] sm:$0xff]  ;;  %v14980_v14 = vld [vmem:[#allocation74_spill] sm:$0xff] }
 0x35a   : > { %v5175_v5 = vsel %vm646_vm1, %v5172_v20, %v14971_v22  ;;  %v4968_v4 = vadd.f32 %v4861_v42, %v4724_v8  ;;  %v4969_v57 = vadd.f32 %v4863_v21, %v14972_v6  ;;  %v14974_v13 = vrot.slane %v14973_v15, 2  ;;  %v14984_v21 = vld [vmem:[#allocation9_spill] sm:$0xff] }
 0x35b   : > { %v14977_v27 = vrot.slane %v14976_v0, 1  ;;  %v14979_v3 = vrot.slane %v14978_v47, 1  ;;  %v14981_v22 = vrot.slane %v14980_v14, 2  ;;  %v14983_v17 = vrot.slane %v14982_v38, 2  ;;  %v14991_v14 = vld [vmem:[#allocation30_spill] sm:$0xff] }
 0x35c   : > { %v5419_v9 = vsel %vm957_vm2, %v5416_v35, %v14974_v13  ;;  %v5593_v42 = vmul.f32 %v12579_v61, %v12579_v61  ;;  %v5594_v35 = vmul.f32 %v12582_v1, %v12582_v1  ;;  %v5036_v18 = vadd.f32 %v14984_v21, %v4968_v4 }
 0x35d   : > { %v4066_v20 = vsel %vm646_vm1, %v14979_v3, %v14977_v27  ;;  %v4310_v8 = vsel %vm957_vm2, %v14983_v17, %v14981_v22  ;;  %v5037_v6 = vadd.f32 %v5005_v10, %v4969_v57  ;;  %v12605_v15 = vmul.f32 %v14778_v62, %v3879_v55 }
 0x35e   : > { %v12608_v13 = vmul.f32 %v11315_v26, %v3879_v55  ;;  %v12611_v41 = vmul.f32 %v14790_v23, %v3879_v55  ;;  %v12614_v38 = vmul.f32 %v14792_v25, %v3879_v55  ;;  %v5625_v0 = vmul.f32 %v5593_v42, %v12579_v61  ;;  %v14989_v42 = vld [vmem:[#allocation6_spill] sm:$0xff] }
 0x35f   : > { %14985 = vst [vmem:[#allocation31_spill] sm:$0xff] %v12605_v15  ;;  %v5626_v27 = vmul.f32 %v5594_v35, %v12582_v1  ;;  %v5280_v47 = vadd.f32 %v5173_v36, %v5036_v18  ;;  %v5281_v3 = vadd.f32 %v5175_v5, %v5037_v6  ;;  %v12623_v44 = vmul.f32 %v11339_v53, %v3879_v55  ;;  %v12628_v36 = vld [vmem:[%s14102_s6 + $0x8] ss:$0 sm:$0xff] }
 0x360   : > { %14986 = vst [vmem:[#allocation12_spill] sm:$0xff] %v12608_v13  ;;  %v5657_v22 = vmul.f32 0.044715, %v5625_v0  ;;  %v12631_v5 = vmul.f32 %v12628_v36, %v3879_v55  ;;  %v4170_v35 = vadd.f32 %v4066_v20, %v14989_v42  ;;  %v4521_v18 = vmul.f32 %v14790_v23, %v12020_v59  ;;  %v14996_v15 = vld [vmem:[#allocation62_spill] sm:$0xff] }
 0x361   : > { %v5658_v17 = vmul.f32 0.044715, %v5626_v27  ;;  %v5524_v21 = vadd.f32 %v5417_v16, %v5280_v47  ;;  %v5525_v63 = vadd.f32 %v5419_v9, %v5281_v3  ;;  %14987 = vst [vmem:[#allocation34_spill] sm:$0xff] %v12623_v44  ;;  %v4765_v55 = vmul.f32 %v14792_v25, %v12020_v59 }
 0x362   : > { %14988 = vst [vmem:[#allocation51_spill] sm:$0xff] %v12631_v5  ;;  %v5689_v6 = vadd.f32 %v5657_v22, %v12579_v61  ;;  %v4414_v47 = vadd.f32 %v4310_v8, %v4170_v35  ;;  %v4621_v3 = vrot.slane %v4521_v18, 1  ;;  %v14993_v8 = vld [vmem:[#allocation61_spill] sm:$0xff]  ;;  %v3810_v5 = vpop.permute.xlu0 %3809 }
 0x363   : > { %v5690_v16 = vadd.f32 %v5658_v17, %v12582_v1  ;;  %v12639_v9 = vadd.f32 %v12556_v46, %v5524_v21  ;;  %v12642_v0 = vadd.f32 %v12556_v46, %v5525_v63  ;;  %v3745_v17 = vpop.permute.xlu1 %3744  ;;  %v14990_v21 = vld [vmem:[#allocation10_spill] sm:$0xff]  ;;  %v14992_v63 = vrot.slane %v14991_v14, 1 }
 0x364   : > { %v5721_v20 = vmul.f32 0.7978846, %v5689_v6  ;;  %v4482_v10 = vadd.f32 %v14990_v21, %v4414_v47  ;;  %v5176_v35 = vrot.slane %v14993_v8, 1  ;;  %v4865_v21 = vrot.slane %v4765_v55, 2 }
 0x365   : > { %v5722_v42 = vmul.f32 0.7978846, %v5690_v16  ;;  %v5595_v4 = vmul.f32 %v12639_v9, %v12639_v9  ;;  %v5596_v22 = vmul.f32 %v12642_v0, %v12642_v0  ;;  %v4622_v57 = vsel %vm646_vm1, %v14992_v63, %v4621_v3  ;;  %v14994_v16 = vld [vmem:[#allocation79_spill] sm:$0xff] }
 0x366   : > { %7945 = vtanh.f32 %v5721_v20  ;;  %v5321_v27 = vmul.f32 %v12628_v36, %v14994_v16  ;;  %v4726_v47 = vadd.f32 %v4622_v57, %v4482_v10  ;;  %v14995_v14 = vrot.slane %v12113_v24, 1 }
 0x367   : > { %v5627_v18 = vmul.f32 %v5595_v4, %v12639_v9  ;;  %v5628_v6 = vmul.f32 %v5596_v22, %v12642_v0  ;;  %7947 = vtanh.f32 %v5722_v42  ;;  %v5420_v8 = vrot.slane %v14996_v15, 2 }
 0x368   : > { %v5178_v63 = vsel %vm646_vm1, %v5176_v35, %v14995_v14  ;;  %v5421_v20 = vrot.slane %v5321_v27, 2  ;;  %v14998_v4 = vrot.slane %v14997_v48, 2  ;;  %v12669_v58 = vmul.f32 %v3745_v17, %v14999_v30  ;;  %v3755_v27 = vpop.permute.xlu1 %3754  ;;  %v15002_v48 = vld [vmem:[#allocation86_spill] sm:$0xff]  ;;  %v15005_v17 = vld [vmem:[#allocation23_spill] sm:$0xff] }
 0x369   : > { %v5659_v44 = vmul.f32 0.044715, %v5627_v18  ;;  %v5660_v13 = vmul.f32 0.044715, %v5628_v6  ;;  %v12672_v42 = vmul.f32 %v3810_v5, %v15001_v51  ;;  %v4451_v24 = vmul.f32 %v11369_v34, %v12020_v59  ;;  %v15003_v18 = vld [vmem:[#allocation11_spill] sm:$0xff] }
 0x36a   : > { %v4866_v22 = vsel %vm957_vm2, %v14998_v4, %v4865_v21  ;;  %15000 = vst [vmem:[#allocation77_spill] sm:$0xff] %v12669_v58  ;;  %v5422_v15 = vsel %vm957_vm2, %v5420_v8, %v5421_v20  ;;  %v15004_v6 = vrot.slane %v15003_v18, 1  ;;  %v15006_v51 = vrot.slane %v15005_v17, 2 }
 0x36b   : > { %v5691_v10 = vadd.f32 %v5659_v44, %v12639_v9  ;;  %v5692_v57 = vadd.f32 %v5660_v13, %v12642_v0  ;;  %v4970_v55 = vadd.f32 %v4866_v22, %v4726_v47  ;;  %v4483_v35 = vadd.f32 %v4451_v24, %v15002_v48  ;;  %v15007_v13 = vld [vmem:[#allocation60_spill] sm:$0xff]  ;;  %v15009_v24 = vld [vmem:[#allocation15_spill] sm:$0xff] }
 0x36c   : > { %v4624_v30 = vsel %vm646_vm1, %v4621_v3, %v15004_v6  ;;  %v4868_v5 = vsel %vm957_vm2, %v4865_v21, %v15006_v51  ;;  %v5007_v59 = vmul.f32 %v14944_v54, %v14994_v16  ;;  %v15008_v8 = vrot.slane %v12141_v60, 2 }
 0x36d   : > { %v5723_v44 = vmul.f32 0.7978846, %v5691_v10  ;;  %v5724_v14 = vmul.f32 0.7978846, %v5692_v57  ;;  %v5038_v47 = vadd.f32 %v15007_v13, %v4970_v55  ;;  %v4727_v22 = vadd.f32 %v4624_v30, %v4483_v35 }
 0x36e   : > { %v5424_v4 = vsel %vm957_vm2, %v5421_v20, %v15008_v8  ;;  %v3870_v48 = vmul.f32 %v3755_v27, %v15009_v24  ;;  %v3915_v3 = vmul.f32 %v14784_v45, %v12353_v37  ;;  %v12697_v21 = vmul.f32 %v14778_v62, %v12353_v37 }
 0x36f   : > { %7949 = vtanh.f32 %v5723_v44  ;;  %v5282_v16 = vadd.f32 %v5178_v63, %v5038_v47  ;;  %v12701_v10 = vmul.f32 %v11315_v26, %v12353_v37  ;;  %v4469_v60 = vmul.f32 %v11369_v34, %v12353_v37 }
 0x370   : > { %15010 = vst [vmem:[#allocation78_spill] sm:$0xff] %v12697_v21  ;;  %7951 = vtanh.f32 %v5724_v14  ;;  %v4971_v20 = vadd.f32 %v4868_v5, %v4727_v22  ;;  %v3996_v57 = vmul.f32 %v14778_v62, %v3870_v48  ;;  %v14417_v55 = vrot.slane %v12697_v21, 1  ;;  %v7946_v27 = vpop.eup %7945 }
 0x371   : > { %15011 = vst [vmem:[#allocation53_spill] sm:$0xff] %v12701_v10  ;;  %v5526_v35 = vadd.f32 %v5422_v15, %v5282_v16  ;;  %v4240_v18 = vmul.f32 %v11315_v26, %v3870_v48  ;;  %v14416_v6 = vrot.slane %v12701_v10, 2  ;;  %v4501_v63 = vadd.f32 %v4469_v60, %v12403_v11  ;;  %v7948_v30 = vpop.eup %7947 }
 0x372   : > { %v5785_v17 = vadd.f32 1.0, %v7946_v27  ;;  %v5039_v51 = vadd.f32 %v5007_v59, %v4971_v20  ;;  %v4117_v44 = vrot.slane %v3996_v57, 1  ;;  %v12712_v14 = vmul.f32 %v14790_v23, %v12353_v37 }
 0x373   : > { %v5786_v5 = vadd.f32 1.0, %v7948_v30  ;;  %v12715_v13 = vadd.f32 %v12556_v46, %v5526_v35  ;;  %v4361_v47 = vrot.slane %v4240_v18, 2  ;;  %v4549_v15 = vmul.f32 %v14790_v23, %v3870_v48 }
 0x374   : > { %15012 = vst [vmem:[#allocation19_spill] sm:$0xff] %v12712_v14  ;;  %v5817_v8 = vmul.f32 0.5, %v5785_v17  ;;  %v5283_v22 = vadd.f32 %v12171_v40, %v5039_v51  ;;  %v4118_v11 = vsel %vm646_vm1, %v14417_v55, %v4117_v44  ;;  %v14419_v59 = vrot.slane %v12712_v14, 1  ;;  %v12790_v55 = vld [vmem:[%s14100_s4] ss:$0 sm:$0xff] }
 0x375   : > { %v5818_v24 = vmul.f32 0.5, %v5786_v5  ;;  %v5597_v16 = vmul.f32 %v12715_v13, %v12715_v13  ;;  %v4191_v60 = vadd.f32 %v4118_v11, %v3915_v3  ;;  %v4362_v20 = vsel %vm957_vm2, %v14416_v6, %v4361_v47 }
 0x376   : > { %v5849_v57 = vmul.f32 %v5817_v8, %v12579_v61  ;;  %v5527_v27 = vadd.f32 %v5424_v4, %v5283_v22  ;;  %v4668_v35 = vrot.slane %v4549_v15, 1  ;;  %v12731_v40 = vmul.f32 %v14792_v25, %v12353_v37 }
 0x377   : > { %v5850_v18 = vmul.f32 %v5818_v24, %v12582_v1  ;;  %v5629_v30 = vmul.f32 %v5597_v16, %v12715_v13  ;;  %v12735_v17 = vadd.f32 %v4362_v20, %v4191_v60  ;;  %v4793_v3 = vmul.f32 %v14792_v25, %v3870_v48  ;;  %v15016_v24 = vld [vmem:[#allocation41_spill] sm:$0xff] }
 0x378   : > { %15013 = vst [vmem:[#allocation35_spill] sm:$0xff] %v12731_v40  ;;  %7496 = vmatprep.mubr.msk.f32.mxu0 %vm2681_vm3, %v5849_v57  ;;  %v12740_v51 = vadd.f32 %v12556_v46, %v5527_v27  ;;  %v4669_v61 = vsel %vm646_vm1, %v14419_v59, %v4668_v35  ;;  %v14418_v4 = vrot.slane %v12731_v40, 2  ;;  %v12748_v1 = vmul.f32 %v11339_v53, %v12353_v37  ;;  %v15018_v27 = vld [vmem:[#allocation43_spill] sm:$0xff]  ;;  %v15024_v59 = vld [vmem:[#allocation58_spill] sm:$0xff]  ;;  %v15040_v37 = vld [vmem:[#allocation65_spill] sm:$0xff] }
 0x379   : > { %15014 = vst [vmem:[#allocation28_spill] sm:$0xff] %v12735_v17  ;;  %v7950_v44 = vpop.eup %7949  ;;  %7497 = vmatmul.mubr.msk.f32.vlgmr.msra.gmra.mrb[0].mxu0 %vm2681_vm3, %v5850_v18  ;;  %v5661_v5 = vmul.f32 0.044715, %v5629_v30  ;;  %v4745_v47 = vadd.f32 %v4669_v61, %v4501_v63  ;;  %v4912_v15 = vrot.slane %v4793_v3, 2  ;;  %v5102_v8 = vmul.f32 %v11339_v53, %v3870_v48 }
 0x37a   : > { %15015 = vst [vmem:[#allocation26_spill] sm:$0xff] %v12748_v1  ;;  %v7952_v22 = vpop.eup %7951  ;;  %v5787_v11 = vadd.f32 1.0, %v7950_v44  ;;  %7683 = vmatpush3.bf16.msra.mxu0 %v15016_v24  ;;  %v5598_v16 = vmul.f32 %v12740_v51, %v12740_v51  ;;  %v14420_v60 = vrot.slane %v12748_v1, 1  ;;  %v12757_v20 = vmul.f32 %v12628_v36, %v3870_v48 }
 0x37b   : > { %v5788_v57 = vadd.f32 1.0, %v7952_v22  ;;  %7685 = vmatprep.subr.bf16.mxu0 %v15018_v27  ;;  %v5693_v63 = vadd.f32 %v5661_v5, %v12715_v13  ;;  %v4913_v35 = vsel %vm957_vm2, %v14418_v4, %v4912_v15  ;;  %v5219_v18 = vrot.slane %v5102_v8, 1  ;;  %v12776_v5 = vld [vmem:[%s14099_s3] ss:$0 sm:$0xff]  ;;  %v15021_v15 = vld [vmem:[#allocation16_spill] sm:$0xff] }
 0x37c   : > { %15017 = vst [vmem:[#allocation76_spill] sm:$0xff] %v12757_v20  ;;  %v5819_v30 = vmul.f32 0.5, %v5787_v11  ;;  %v5630_v3 = vmul.f32 %v5598_v16, %v12740_v51  ;;  %v12765_v61 = vadd.f32 %v4913_v35, %v4745_v47  ;;  %v3444_v8 = vmul.f32 %v12776_v5, %v15021_v15  ;;  %v3820_v16 = vpop.permute.xlu0 %3819  ;;  %v15023_v4 = vld [vmem:[#allocation56_spill] sm:$0xff] }
 0x37d   : > { %v5820_v6 = vmul.f32 0.5, %v5788_v57  ;;  %v5725_v48 = vmul.f32 0.7978846, %v5693_v63  ;;  %v12771_v22 = vsel %vm646_vm1, %v14420_v60, %v5219_v18  ;;  %v15022_v57 = vld [vmem:[#allocation13_spill] sm:$0xff]  ;;  %v5008_v44 = vmul.f32 %v14944_v54, %v15024_v59 }
 0x37e   : > { %15019 = vst [vmem:[#allocation44_spill] sm:$0xff] %v12765_v61  ;;  %15020 = vst [vmem:[#allocation82_spill] sm:$0xff] %v12771_v22  ;;  %v5851_v47 = vmul.f32 %v5819_v30, %v12639_v9  ;;  %7687 = vmatpush3.bf16.msra.mxu0 %v15018_v27  ;;  %v5662_v11 = vmul.f32 0.044715, %v5630_v3  ;;  %v3896_v63 = vmul.f32 %v14784_v45, %v15022_v57  ;;  %v3765_v61 = vpop.permute.xlu1 %3764  ;;  %v15033_v22 = vld [vmem:[#allocation93_spill] sm:$0xff]  ;;  %v15041_v58 = vrot.slane %v15040_v37, 1 }
 0x37f   : > { %v3967_v35 = vmul.f32 %v14778_v62, %v15022_v57  ;;  %v5852_v18 = vmul.f32 %v5820_v6, %v12642_v0  ;;  %7953 = vtanh.f32 %v5725_v48  ;;  %v3505_v9 = vadd.f32 %v12790_v55, %v3444_v8  ;;  %7697 = vmatprep.subr.bf16.mxu0 %v15016_v24 }
 0x380   : > { %v4211_v30 = vmul.f32 %v11315_v26, %v15022_v57  ;;  %7507 = vmatprep.mubr.msk.f32.mxu1 %vm2681_vm3, %v5851_v47  ;;  %v5694_v3 = vadd.f32 %v5662_v11, %v12740_v51  ;;  %v4452_v0 = vmul.f32 %v11369_v34, %v15023_v4  ;;  %v4523_v6 = vmul.f32 %v14790_v23, %v15023_v4  ;;  %v15025_v11 = vld [vmem:[#allocation45_spill] sm:$0xff] }
 0x381   : > { %v4069_v15 = vrot.slane %v3967_v35, 1  ;;  %7508 = vmatmul.mubr.msk.f32.vlgmr.msra.gmra.mrb[0].mxu1 %vm2681_vm3, %v5852_v18  ;;  %v3883_v48 = vmul.f32 %v3820_v16, %v3505_v9  ;;  %v4767_v57 = vmul.f32 %v14792_v25, %v15023_v4  ;;  %v15026_v35 = vrot.slane %v15025_v11, 1 }
 0x382   : > { %v4313_v8 = vrot.slane %v4211_v30, 2  ;;  %7691 = vmatpush3.bf16.msra.mxu1 %v15016_v24  ;;  %v5726_v47 = vmul.f32 0.7978846, %v5694_v3  ;;  %v4625_v17 = vrot.slane %v4523_v6, 1  ;;  %v5079_v10 = vmul.f32 %v11339_v53, %v15024_v59  ;;  %v15031_v6 = vld [vmem:[#allocation90_spill] sm:$0xff] }
 0x383   : > { %v4071_v60 = vsel %vm646_vm1, %v4069_v15, %v15026_v35  ;;  %7693 = vmatprep.subr.bf16.mxu1 %v15018_v27  ;;  %v12815_v16 = vmul.f32 %v14944_v54, %v3883_v48  ;;  %v12818_v18 = vmul.f32 %v11339_v53, %v3883_v48  ;;  %v12821_v9 = vmul.f32 %v12628_v36, %v3883_v48 }
 0x384   : > { %v4172_v30 = vadd.f32 %v4071_v60, %v3896_v63  ;;  %7955 = vtanh.f32 %v5726_v47  ;;  %v15030_v3 = vrot.slane %v12122_v33, 2  ;;  %v15032_v11 = vrot.slane %v15031_v6, 1  ;;  %v15034_v60 = vld [vmem:[#allocation91_spill] sm:$0xff] }
 0x385   : > { %15027 = vst [vmem:[#allocation54_spill] sm:$0xff] %v12815_v16  ;;  %15028 = vst [vmem:[#allocation33_spill] sm:$0xff] %v12818_v18  ;;  %v4869_v21 = vrot.slane %v4767_v57, 2  ;;  %v5080_v48 = vmul.f32 %v11339_v53, %v15033_v22  ;;  %v15035_v33 = vrot.slane %v15034_v60, 2  ;;  %v5324_v57 = vmul.f32 %v12628_v36, %v15033_v22 }
 0x386   : > { %15029 = vst [vmem:[#allocation69_spill] sm:$0xff] %v12821_v9  ;;  %v4315_v15 = vsel %vm957_vm2, %v4313_v8, %v15030_v3  ;;  %v4627_v35 = vsel %vm646_vm1, %v4625_v17, %v15032_v11  ;;  %7695 = vmatpush3.bf16.msra.mxu1 %v15018_v27  ;;  %v5181_v8 = vrot.slane %v5079_v10, 1  ;;  %v5323_v17 = vmul.f32 %v12628_v36, %v15024_v59  ;;  %v15038_v10 = vld [vmem:[#allocation59_spill] sm:$0xff] }
 0x387   : > { %v4416_v20 = vadd.f32 %v4315_v15, %v4172_v30  ;;  %v4871_v63 = vsel %vm957_vm2, %v4869_v21, %v15035_v33  ;;  %v5182_v3 = vrot.slane %v5080_v48, 1  ;;  %v5009_v30 = vmul.f32 %v14944_v54, %v15033_v22  ;;  %v15036_v15 = vld [vmem:[#allocation57_spill] sm:$0xff]  ;;  %7705 = vmatprep.subr.bf16.mxu1 %v15016_v24  ;;  %v15037_v21 = vld [vmem:[#allocation39_spill] sm:$0xff] }
 0x388   : > { %v12844_v6 = vmul.f32 %v3765_v61, %v15036_v15  ;;  %v5425_v11 = vrot.slane %v5323_v17, 2  ;;  %v5426_v60 = vrot.slane %v5324_v57, 2  ;;  %v3385_v33 = vmul.f32 %v15038_v10, %v15037_v21  ;;  %v15042_v57 = vld [vmem:[#allocation66_spill] sm:$0xff] }
 0x389   : > { %v4484_v47 = vadd.f32 %v4452_v0, %v4416_v20  ;;  %v3898_v14 = vmul.f32 %v14784_v45, %v15023_v4  ;;  %v7954_v40 = vpop.eup %7953  ;;  %v5183_v20 = vsel %vm646_vm1, %v5181_v8, %v5182_v3  ;;  %v15039_v0 = vld [vmem:[#allocation101_spill] sm:$0xff]  ;;  %v5185_v61 = vsel %vm646_vm1, %v5182_v3, %v15041_v58 }
 0x38a   : > { %v5041_v48 = vadd.f32 %v5009_v30, %v15039_v0  ;;  %v5789_v15 = vadd.f32 1.0, %v7954_v40  ;;  %v5427_v17 = vsel %vm957_vm2, %v5425_v11, %v5426_v60  ;;  %v15043_v16 = vrot.slane %v15042_v57, 2  ;;  %v15044_v57 = vld [vmem:[#allocation80_spill] sm:$0xff] }
 0x38b   : > { %v4728_v1 = vadd.f32 %v4627_v35, %v4484_v47  ;;  %v3446_v10 = vmul.f32 %v12776_v5, %v3385_v33  ;;  %v3830_v35 = vpop.permute.xlu0 %3829  ;;  %v3970_v8 = vmul.f32 %v14778_v62, %v15023_v4  ;;  %v4214_v37 = vmul.f32 %v11315_v26, %v15023_v4 }
 0x38c   : > { %v5429_v21 = vsel %vm957_vm2, %v5426_v60, %v15043_v16  ;;  %v5285_v18 = vadd.f32 %v5185_v61, %v5041_v48  ;;  %v5821_v47 = vmul.f32 0.5, %v5789_v15  ;;  %v4454_v40 = vmul.f32 %v11369_v34, %v15024_v59 }
 0x38d   : > { %v4972_v9 = vadd.f32 %v4871_v63, %v4728_v1  ;;  %v3507_v58 = vadd.f32 %v12790_v55, %v3446_v10  ;;  %v4526_v16 = vmul.f32 %v14790_v23, %v15024_v59  ;;  %v4074_v1 = vrot.slane %v3970_v8, 1 }
 0x38e   : > { %v5529_v30 = vadd.f32 %v5429_v21, %v5285_v18  ;;  %v4318_v63 = vrot.slane %v4214_v37, 2  ;;  %v7956_v11 = vpop.eup %7955  ;;  %v5853_v60 = vmul.f32 %v5821_v47, %v12715_v13  ;;  %v4527_v4 = vmul.f32 %v14790_v23, %v15033_v22  ;;  %v15046_v21 = vld [vmem:[#allocation81_spill] sm:$0xff] }
 0x38f   : > { %v5040_v3 = vadd.f32 %v5008_v44, %v4972_v9  ;;  %v3885_v33 = vmul.f32 %v3830_v35, %v3507_v58  ;;  %v4630_v0 = vrot.slane %v4526_v16, 1  ;;  %v5790_v48 = vadd.f32 1.0, %v7956_v11 }
 0x390   : > { %v12874_v15 = vadd.f32 %v12556_v46, %v5529_v30  ;;  %v15045_v10 = vrot.slane %v15044_v57, 1  ;;  %7518 = vmatprep.mubr.msk.f32.mxu0 %vm2681_vm3, %v5853_v60  ;;  %v15047_v35 = vrot.slane %v15046_v21, 2  ;;  %v4631_v58 = vrot.slane %v4527_v4, 1 }
 0x391   : > { %v5284_v61 = vadd.f32 %v5183_v20, %v5040_v3  ;;  %v12881_v18 = vmul.f32 %v11339_v53, %v3885_v33  ;;  %v12884_v13 = vmul.f32 %v12628_v36, %v3885_v33  ;;  %v5822_v8 = vmul.f32 0.5, %v5790_v48  ;;  %v15048_v48 = vld [vmem:[#allocation67_spill] sm:$0xff] }
 0x392   : > { %v4076_v44 = vsel %vm646_vm1, %v4074_v1, %v15045_v10  ;;  %v4320_v20 = vsel %vm957_vm2, %v4318_v63, %v15047_v35  ;;  %v5600_v47 = vmul.f32 %v12874_v15, %v12874_v15  ;;  %v4770_v1 = vmul.f32 %v14792_v25, %v15024_v59  ;;  %v15050_v35 = vld [vmem:[#allocation29_spill] sm:$0xff] }
 0x393   : > { %v4174_v9 = vadd.f32 %v4076_v44, %v3898_v14  ;;  %v5528_v37 = vadd.f32 %v5427_v17, %v5284_v61  ;;  %v5854_v14 = vmul.f32 %v5822_v8, %v12740_v51  ;;  %v4632_v17 = vsel %vm646_vm1, %v4630_v0, %v4631_v58 }
 0x394   : > { %v5632_v63 = vmul.f32 %v5600_v47, %v12874_v15  ;;  %v4771_v33 = vmul.f32 %v14792_v25, %v15033_v22  ;;  %v4874_v4 = vrot.slane %v4770_v1, 2  ;;  %v5010_v61 = vmul.f32 %v14944_v54, %v15048_v48 }
 0x395   : > { %v4418_v30 = vadd.f32 %v4320_v20, %v4174_v9  ;;  %v12897_v11 = vadd.f32 %v12556_v46, %v5528_v37  ;;  %7519 = vmatmul.mubr.msk.f32.vlgmr.msra.gmra.mrb[2].mxu0 %vm2681_vm3, %v5854_v14  ;;  %v5082_v10 = vmul.f32 %v11339_v53, %v15048_v48  ;;  %v5326_v0 = vmul.f32 %v12628_v36, %v15048_v48  ;;  %v15049_v9 = vld [vmem:[#allocation100_spill] sm:$0xff] }
 0x396   : > { %v5664_v57 = vmul.f32 0.044715, %v5632_v63  ;;  %7699 = vmatpush3.bf16.msra.mxu0 %v15016_v24  ;;  %v4875_v44 = vrot.slane %v4771_v33, 2  ;;  %v5327_v21 = vmul.f32 %v12628_v36, %v15049_v9  ;;  %v15051_v20 = vld [vmem:[#allocation36_spill] sm:$0xff] }
 0x397   : > { %v4486_v60 = vadd.f32 %v4454_v40, %v4418_v30  ;;  %v5599_v51 = vmul.f32 %v12897_v11, %v12897_v11  ;;  %v3374_v8 = vmul.f32 %v15051_v20, %v15050_v35  ;;  %7701 = vmatprep.subr.bf16.mxu0 %v15018_v27  ;;  %v5186_v30 = vrot.slane %v5082_v10, 1  ;;  %v15054_v20 = vld [vmem:[#allocation63_spill] sm:$0xff] }
 0x398   : > { %v5696_v47 = vadd.f32 %v5664_v57, %v12874_v15  ;;  %v5430_v1 = vrot.slane %v5326_v0, 2  ;;  %v4876_v14 = vsel %vm957_vm2, %v4874_v4, %v4875_v44  ;;  %v5431_v63 = vrot.slane %v5327_v21, 2  ;;  %v3775_v57 = vpop.permute.xlu1 %3774  ;;  %v15053_v0 = vld [vmem:[#allocation97_spill] sm:$0xff] }
 0x399   : > { %v4730_v40 = vadd.f32 %v4632_v17, %v4486_v60  ;;  %v5631_v37 = vmul.f32 %v5599_v51, %v12897_v11  ;;  %v3435_v17 = vmul.f32 %v12776_v5, %v3374_v8  ;;  %v4455_v60 = vmul.f32 %v11369_v34, %v15033_v22 }
 0x39a   : > { %v5728_v3 = vmul.f32 0.7978846, %v5696_v47  ;;  %v15052_v35 = vrot.slane %v12262_v31, 1  ;;  %7703 = vmatpush3.bf16.msra.mxu0 %v15018_v27  ;;  %v5432_v10 = vsel %vm957_vm2, %v5430_v1, %v5431_v63  ;;  %v15055_v8 = vrot.slane %v15054_v20, 1  ;;  %v15056_v31 = vld [vmem:[#allocation64_spill] sm:$0xff] }
 0x39b   : > { %v5663_v33 = vmul.f32 0.044715, %v5631_v37  ;;  %v4974_v16 = vadd.f32 %v4876_v14, %v4730_v40  ;;  %v3496_v4 = vadd.f32 %v12790_v55, %v3435_v17  ;;  %v4487_v21 = vadd.f32 %v4455_v60, %v15053_v0  ;;  %7713 = vmatprep.subr.bf16.mxu0 %v15016_v24 }
 0x39c   : > { %v5188_v51 = vsel %vm646_vm1, %v5186_v30, %v15052_v35  ;;  %v4634_v22 = vsel %vm646_vm1, %v4631_v58, %v15055_v8  ;;  %7957 = vtanh.f32 %v5728_v3  ;;  %v15057_v47 = vrot.slane %v15056_v31, 2  ;;  %v15059_v3 = vld [vmem:[#allocation21_spill] sm:$0xff]  ;;  %v3785_v20 = vpop.permute.xlu1 %3784 }
 0x39d   : > { %v5695_v37 = vadd.f32 %v5663_v33, %v12897_v11  ;;  %v5042_v40 = vadd.f32 %v5010_v61, %v4974_v16  ;;  %v12939_v14 = vmul.f32 %v3775_v57, %v3496_v4  ;;  %v4731_v1 = vadd.f32 %v4634_v22, %v4487_v21  ;;  %v15060_v16 = vld [vmem:[#allocation7_spill] sm:$0xff] }
 0x39e   : > { %v4878_v30 = vsel %vm957_vm2, %v4875_v44, %v15057_v47  ;;  %v5011_v17 = vmul.f32 %v14944_v54, %v15049_v9  ;;  %v15058_v60 = vrot.slane %v12286_v56, 2  ;;  %v3376_v61 = vmul.f32 %v15060_v16, %v15059_v3 }
 0x39f   : > { %v5727_v35 = vmul.f32 0.7978846, %v5695_v37  ;;  %v5286_v33 = vadd.f32 %v5188_v51, %v5042_v40  ;;  %v3917_v44 = vmul.f32 %v14784_v45, %v12844_v6  ;;  %v4975_v0 = vadd.f32 %v4878_v30, %v4731_v1 }
 0x3a0   : > { %v5434_v58 = vsel %vm957_vm2, %v5431_v63, %v15058_v60  ;;  %v3919_v57 = vmul.f32 %v14784_v45, %v12516_v39  ;;  %v12954_v4 = vmul.f32 %v14778_v62, %v12844_v6  ;;  %v12958_v56 = vmul.f32 %v14778_v62, %v12516_v39 }
 0x3a1   : > { %7959 = vtanh.f32 %v5727_v35  ;;  %v5530_v9 = vadd.f32 %v5432_v10, %v5286_v33  ;;  %v3437_v63 = vmul.f32 %v12776_v5, %v3376_v61  ;;  %v12963_v51 = vmul.f32 %v11315_v26, %v12844_v6 }
 0x3a2   : > { %15061 = vst [vmem:[#allocation8_spill] sm:$0xff] %v12954_v4  ;;  %v5043_v21 = vadd.f32 %v5011_v17, %v4975_v0  ;;  %v14433_v8 = vrot.slane %v12954_v4, 1  ;;  %v12969_v37 = vmul.f32 %v11315_v26, %v12516_v39  ;;  %v4473_v47 = vmul.f32 %v11369_v34, %v12516_v39 }
 0x3a3   : > { %15062 = vst [vmem:[#allocation74_spill] sm:$0xff] %v12963_v51  ;;  %v12972_v40 = vadd.f32 %v12556_v46, %v5530_v9  ;;  %v3498_v10 = vadd.f32 %v12790_v55, %v3437_v63  ;;  %v14432_v31 = vrot.slane %v12963_v51, 2  ;;  %v15063_v1 = vrot.slane %v12482_v50, 1 }
 0x3a4   : > { %v5287_v30 = vadd.f32 %v12315_v12, %v5043_v21  ;;  %v12987_v35 = vmul.f32 %v14790_v23, %v12516_v39  ;;  %v15065_v61 = vrot.slane %v12485_v19, 2  ;;  %v12999_v9 = vmul.f32 %v14792_v25, %v12516_v39 }
 0x3a5   : > { %v4123_v17 = vsel %vm646_vm1, %v14433_v8, %v15063_v1  ;;  %v5601_v33 = vmul.f32 %v12972_v40, %v12972_v40  ;;  %v3876_v3 = vmul.f32 %v3785_v20, %v3498_v10  ;;  %v13003_v63 = vmul.f32 %v11339_v53, %v12516_v39 }
 0x3a6   : > { %15064 = vst [vmem:[#allocation24_spill] sm:$0xff] %v12987_v35  ;;  %v4193_v16 = vadd.f32 %v4123_v17, %v3917_v44  ;;  %v4367_v12 = vsel %vm957_vm2, %v14432_v31, %v15065_v61  ;;  %v5531_v50 = vadd.f32 %v5434_v58, %v5287_v30  ;;  %15066 = vst [vmem:[#allocation9_spill] sm:$0xff] %v12999_v9  ;;  %v7958_v21 = vpop.eup %7957  ;;  %v15069_v4 = vrot.slane %v12969_v37, 2 }
 0x3a7   : > { %15067 = vst [vmem:[#allocation6_spill] sm:$0xff] %v13003_v63  ;;  %v5633_v44 = vmul.f32 %v5601_v33, %v12972_v40  ;;  %v4002_v19 = vmul.f32 %v14778_v62, %v3876_v3  ;;  %v4246_v20 = vmul.f32 %v11315_v26, %v3876_v3  ;;  %v5792_v1 = vadd.f32 1.0, %v7958_v21 }
 0x3a8   : > { %v4437_v10 = vadd.f32 %v4367_v12, %v4193_v16  ;;  %v13009_v58 = vadd.f32 %v12556_v46, %v5531_v50  ;;  %v4555_v30 = vmul.f32 %v14790_v23, %v3876_v3  ;;  %v4799_v17 = vmul.f32 %v14792_v25, %v3876_v3 }
 0x3a9   : > { %v5665_v61 = vmul.f32 0.044715, %v5633_v44  ;;  %v4127_v31 = vrot.slane %v4002_v19, 1  ;;  %v4371_v8 = vrot.slane %v4246_v20, 2  ;;  %v5824_v60 = vmul.f32 0.5, %v5792_v1 }
 0x3aa   : > { %v4505_v0 = vadd.f32 %v4473_v47, %v4437_v10  ;;  %v5602_v33 = vmul.f32 %v13009_v58, %v13009_v58  ;;  %v4678_v22 = vrot.slane %v4555_v30, 1  ;;  %v15068_v50 = vrot.slane %v12958_v56, 1 }
 0x3ab   : > { %v7960_v16 = vpop.eup %7959  ;;  %v5697_v12 = vadd.f32 %v5665_v61, %v12972_v40  ;;  %v13023_v44 = vsel %vm957_vm2, %v15069_v4, %v4371_v8  ;;  %v4922_v47 = vrot.slane %v4799_v17, 2  ;;  %v5856_v20 = vmul.f32 %v5824_v60, %v12874_v15 }
 0x3ac   : > { %v4128_v21 = vsel %vm646_vm1, %v15068_v50, %v4127_v31  ;;  %v5791_v19 = vadd.f32 1.0, %v7960_v16  ;;  %v5634_v10 = vmul.f32 %v5602_v33, %v13009_v58  ;;  %v15070_v61 = vrot.slane %v12987_v35, 1 }
 0x3ad   : > { %v13027_v1 = vadd.f32 %v4128_v21, %v3919_v57  ;;  %v5729_v30 = vmul.f32 0.7978846, %v5697_v12  ;;  %v15071_v31 = vrot.slane %v12999_v9, 2  ;;  %v5108_v4 = vmul.f32 %v11339_v53, %v3876_v3 }
 0x3ae   : > { %v4679_v51 = vsel %vm646_vm1, %v15070_v61, %v4678_v22  ;;  %v5823_v8 = vmul.f32 0.5, %v5791_v19  ;;  %v5666_v17 = vmul.f32 0.044715, %v5634_v10  ;;  %v14436_v15 = vrot.slane %v13003_v63, 1  ;;  %v15090_v63 = vld [vmem:[#allocation104_spill] sm:$0xff] }
 0x3af   : > { %v4923_v50 = vsel %vm957_vm2, %v15071_v31, %v4922_v47  ;;  %v4749_v16 = vadd.f32 %v4679_v51, %v4505_v0  ;;  %7961 = vtanh.f32 %v5729_v30  ;;  %v5229_v60 = vrot.slane %v5108_v4, 1 }
 0x3b0   : > { %v13038_v57 = vmul.f32 %v12628_v36, %v3876_v3  ;;  %v3900_v33 = vmul.f32 %v14784_v45, %v15024_v59  ;;  %v5855_v22 = vmul.f32 %v5823_v8, %v12897_v11  ;;  %v5698_v12 = vadd.f32 %v5666_v17, %v13009_v58 }
 0x3b1   : > { %v13044_v21 = vadd.f32 %v4923_v50, %v4749_v16  ;;  %v3973_v47 = vmul.f32 %v14778_v62, %v15024_v59  ;;  %v13051_v51 = vsel %vm646_vm1, %v14436_v15, %v5229_v60  ;;  %v4217_v0 = vmul.f32 %v11315_v26, %v15024_v59  ;;  %v15075_v50 = vld [vmem:[#allocation68_spill] sm:$0xff] }
 0x3b2   : > { %15072 = vst [vmem:[#allocation10_spill] sm:$0xff] %v13038_v57  ;;  %15074 = vst [vmem:[#allocation61_spill] sm:$0xff] %v13051_v51  ;;  %v4456_v11 = vmul.f32 %v11369_v34, %v15048_v48  ;;  %7529 = vmatprep.mubr.msk.f32.mxu1 %vm2681_vm3, %v5855_v22  ;;  %v5730_v19 = vmul.f32 0.7978846, %v5698_v12  ;;  %v4529_v30 = vmul.f32 %v14790_v23, %v15048_v48  ;;  %v15076_v17 = vrot.slane %v12273_v2, 1  ;;  %v15077_v12 = vld [vmem:[#allocation40_spill] sm:$0xff] }
 0x3b3   : > { %15073 = vst [vmem:[#allocation30_spill] sm:$0xff] %v13044_v21  ;;  %v4079_v10 = vrot.slane %v3973_v47, 1  ;;  %v4773_v61 = vmul.f32 %v14792_v25, %v15048_v48  ;;  %7530 = vmatmul.mubr.msk.f32.vlgmr.msra.gmra.mrb[2].mxu1 %vm2681_vm3, %v5856_v20  ;;  %v4323_v31 = vrot.slane %v4217_v0, 2  ;;  %v5012_v4 = vmul.f32 %v14944_v54, %v15075_v50  ;;  %v15079_v21 = vld [vmem:[#allocation109_spill] sm:$0xff] }
 0x3b4   : > { %v5085_v59 = vmul.f32 %v11339_v53, %v15075_v50  ;;  %v5086_v8 = vmul.f32 %v11339_v53, %v12350_v28  ;;  %7707 = vmatpush3.bf16.msra.mxu1 %v15016_v24  ;;  %7963 = vtanh.f32 %v5730_v19  ;;  %v4635_v60 = vrot.slane %v4529_v30, 1  ;;  %v15081_v19 = vld [vmem:[#allocation110_spill] sm:$0xff] }
 0x3b5   : > { %v4081_v16 = vsel %vm646_vm1, %v4079_v10, %v15076_v17  ;;  %v4879_v22 = vrot.slane %v4773_v61, 2  ;;  %7709 = vmatprep.subr.bf16.mxu1 %v15018_v27  ;;  %v15078_v47 = vrot.slane %v15077_v12, 2  ;;  %v15080_v9 = vrot.slane %v15079_v21, 1  ;;  %v15085_v17 = vld [vmem:[#allocation22_spill] sm:$0xff] }
 0x3b6   : > { %v4176_v20 = vadd.f32 %v4081_v16, %v3900_v33  ;;  %v5191_v3 = vrot.slane %v5085_v59, 1  ;;  %v5192_v15 = vrot.slane %v5086_v8, 1  ;;  %v15082_v51 = vrot.slane %v15081_v19, 2  ;;  %v15083_v59 = vld [vmem:[#allocation72_spill] sm:$0xff]  ;;  %v15086_v16 = vld [vmem:[#allocation27_spill] sm:$0xff] }
 0x3b7   : > { %v4325_v0 = vsel %vm957_vm2, %v4323_v31, %v15078_v47  ;;  %v4637_v35 = vsel %vm646_vm1, %v4635_v60, %v15080_v9  ;;  %v5329_v10 = vmul.f32 %v12628_v36, %v15075_v50  ;;  %v5330_v33 = vmul.f32 %v12628_v36, %v12350_v28 }
 0x3b8   : > { %v4881_v2 = vsel %vm957_vm2, %v4879_v22, %v15082_v51  ;;  %v4420_v30 = vadd.f32 %v4325_v0, %v4176_v20  ;;  %v5193_v61 = vsel %vm646_vm1, %v5191_v3, %v5192_v15  ;;  %v5013_v31 = vmul.f32 %v14944_v54, %v12350_v28  ;;  %7711 = vmatpush3.bf16.msra.mxu1 %v15018_v27  ;;  %v15087_v3 = vld [vmem:[#allocation50_spill] sm:$0xff] }
 0x3b9   : > { %v15084_v21 = vrot.slane %v15083_v59, 1  ;;  %v5435_v8 = vrot.slane %v5329_v10, 2  ;;  %v5436_v51 = vrot.slane %v5330_v33, 2  ;;  %v3378_v60 = vmul.f32 %v15086_v16, %v15085_v17  ;;  %v7962_v20 = vpop.eup %7961  ;;  %7721 = vmatprep.subr.bf16.mxu1 %v15016_v24  ;;  %v15088_v33 = vld [vmem:[#allocation73_spill] sm:$0xff] }
 0x3ba   : > { %v3902_v22 = vmul.f32 %v14784_v45, %v15048_v48  ;;  %v4488_v12 = vadd.f32 %v4456_v11, %v4420_v30  ;;  %v5045_v47 = vadd.f32 %v5013_v31, %v15087_v3  ;;  %v3976_v0 = vmul.f32 %v14778_v62, %v15048_v48  ;;  %v3795_v31 = vpop.permute.xlu1 %3794 }
 0x3bb   : > { %v5195_v9 = vsel %vm646_vm1, %v5192_v15, %v15084_v21  ;;  %v4220_v15 = vmul.f32 %v11315_v26, %v15048_v48  ;;  %v5793_v19 = vadd.f32 1.0, %v7962_v20  ;;  %v5437_v10 = vsel %vm957_vm2, %v5435_v8, %v5436_v51 }
 0x3bc   : > { %v15089_v59 = vrot.slane %v15088_v33, 2  ;;  %v3439_v17 = vmul.f32 %v12776_v5, %v3378_v60  ;;  %v4732_v11 = vadd.f32 %v4637_v35, %v4488_v12  ;;  %v5289_v30 = vadd.f32 %v5195_v9, %v5045_v47  ;;  %v15092_v35 = vld [vmem:[#allocation108_spill] sm:$0xff] }
 0x3bd   : > { %v4084_v16 = vrot.slane %v3976_v0, 1  ;;  %v4328_v3 = vrot.slane %v4220_v15, 2  ;;  %v5825_v57 = vmul.f32 0.5, %v5793_v19  ;;  %v4458_v48 = vmul.f32 %v11369_v34, %v15075_v50 }
 0x3be   : > { %v5439_v21 = vsel %vm957_vm2, %v5436_v51, %v15089_v59  ;;  %v3500_v39 = vadd.f32 %v12790_v55, %v3439_v17  ;;  %v4532_v8 = vmul.f32 %v14790_v23, %v15075_v50  ;;  %v4976_v20 = vadd.f32 %v4881_v2, %v4732_v11  ;;  %v7964_v47 = vpop.eup %7963 }
 0x3bf   : > { %v5533_v33 = vadd.f32 %v5439_v21, %v5289_v30  ;;  %v15091_v51 = vrot.slane %v15090_v63, 1  ;;  %v15093_v9 = vrot.slane %v15092_v35, 2  ;;  %v5857_v0 = vmul.f32 %v5825_v57, %v12972_v40 }
 0x3c0   : > { %v13122_v15 = vmul.f32 %v3795_v31, %v3500_v39  ;;  %v13126_v59 = vmul.f32 %v14790_v23, %v12350_v28  ;;  %v5794_v2 = vadd.f32 1.0, %v7964_v47  ;;  %v5044_v21 = vadd.f32 %v5012_v4, %v4976_v20  ;;  %v15094_v31 = vld [vmem:[#allocation37_spill] sm:$0xff] }
 0x3c1   : > { %v4086_v60 = vsel %vm646_vm1, %v4084_v16, %v15091_v51  ;;  %v4330_v12 = vsel %vm957_vm2, %v4328_v3, %v15093_v9  ;;  %v13129_v63 = vadd.f32 %v12556_v46, %v5533_v33  ;;  %v4640_v17 = vrot.slane %v4532_v8, 1  ;;  %7540 = vmatprep.mubr.msk.f32.mxu0 %vm2681_vm3, %v5857_v0 }
 0x3c2   : > { %v4178_v19 = vadd.f32 %v4086_v60, %v3902_v22  ;;  %v4641_v30 = vrot.slane %v13126_v59, 1  ;;  %v4776_v39 = vmul.f32 %v14792_v25, %v15075_v50  ;;  %v13137_v40 = vmul.f32 %v14792_v25, %v12350_v28 }
 0x3c3   : > { %v5826_v57 = vmul.f32 0.5, %v5794_v2  ;;  %v5288_v22 = vadd.f32 %v5193_v61, %v5044_v21  ;;  %v5604_v4 = vmul.f32 %v13129_v63, %v13129_v63  ;;  %v5014_v16 = vmul.f32 %v14944_v54, %v15094_v31 }
 0x3c4   : > { %v4422_v11 = vadd.f32 %v4330_v12, %v4178_v19  ;;  %v4642_v8 = vsel %vm646_vm1, %v4640_v17, %v4641_v30  ;;  %v4884_v20 = vrot.slane %v4776_v39, 2  ;;  %v4885_v33 = vrot.slane %v13137_v40, 2 }
 0x3c5   : > { %v5858_v51 = vmul.f32 %v5826_v57, %v13009_v58  ;;  %v5532_v60 = vadd.f32 %v5437_v10, %v5288_v22  ;;  %v5636_v35 = vmul.f32 %v5604_v4, %v13129_v63  ;;  %v5088_v61 = vmul.f32 %v11339_v53, %v15094_v31 }
 0x3c6   : > { %v4490_v3 = vadd.f32 %v4458_v48, %v4422_v11  ;;  %v4886_v48 = vsel %vm957_vm2, %v4884_v20, %v4885_v33  ;;  %v5332_v12 = vmul.f32 %v12628_v36, %v15094_v31  ;;  %v13158_v47 = vmul.f32 %v12628_v36, %v12366_v52 }
 0x3c7   : > { %7541 = vmatmul.mubr.msk.f32.vlgmr.msra.gmra.mrb[4].mxu0 %vm2681_vm3, %v5858_v51  ;;  %v13162_v58 = vadd.f32 %v12556_v46, %v5532_v60  ;;  %v5668_v10 = vmul.f32 0.044715, %v5636_v35  ;;  %v5196_v0 = vrot.slane %v5088_v61, 1  ;;  %v3918_v19 = vmul.f32 %v14784_v45, %v12939_v14  ;;  %v15096_v51 = vld [vmem:[#allocation17_spill] sm:$0xff]  ;;  %v15097_v60 = vld [vmem:[#allocation18_spill] sm:$0xff] }
 0x3c8   : > { %v4734_v9 = vadd.f32 %v4642_v8, %v4490_v3  ;;  %7715 = vmatpush3.bf16.msra.mxu0 %v15016_v24  ;;  %v5440_v21 = vrot.slane %v5332_v12, 2  ;;  %v5441_v17 = vrot.slane %v13158_v47, 2  ;;  %v4000_v11 = vmul.f32 %v14778_v62, %v12939_v14 }
 0x3c9   : > { %v5603_v39 = vmul.f32 %v13162_v58, %v13162_v58  ;;  %v5700_v46 = vadd.f32 %v5668_v10, %v13129_v63  ;;  %7717 = vmatprep.subr.bf16.mxu0 %v15018_v27  ;;  %v15095_v57 = vrot.slane %v12453_v7, 1  ;;  %v4244_v4 = vmul.f32 %v11315_v26, %v12939_v14 }
 0x3ca   : > { %v4978_v2 = vadd.f32 %v4886_v48, %v4734_v9  ;;  %v5442_v8 = vsel %vm957_vm2, %v5440_v21, %v5441_v17  ;;  %v4124_v20 = vrot.slane %v4000_v11, 1  ;;  %v3380_v35 = vmul.f32 %v15097_v60, %v15096_v51  ;;  %v3805_v11 = vpop.permute.xlu1 %3804 }
 0x3cb   : > { %v5198_v22 = vsel %vm646_vm1, %v5196_v0, %v15095_v57  ;;  %v5635_v61 = vmul.f32 %v5603_v39, %v13162_v58  ;;  %v5732_v9 = vmul.f32 0.7978846, %v5700_v46  ;;  %v4368_v48 = vrot.slane %v4244_v4, 2 }
 0x3cc   : > { %v5046_v3 = vadd.f32 %v5014_v16, %v4978_v2  ;;  %v4474_v7 = vmul.f32 %v11369_v34, %v12524_v49  ;;  %7719 = vmatpush3.bf16.msra.mxu0 %v15018_v27  ;;  %v3441_v16 = vmul.f32 %v12776_v5, %v3380_v35  ;;  %v15098_v10 = vrot.slane %v12958_v56, 1 }
 0x3cd   : > { %v4556_v2 = vmul.f32 %v14790_v23, %v12524_v49  ;;  %v5667_v21 = vmul.f32 0.044715, %v5635_v61  ;;  %7965 = vtanh.f32 %v5732_v9  ;;  %v15099_v46 = vrot.slane %v12969_v37, 2  ;;  %7729 = vmatprep.subr.bf16.mxu0 %v15016_v24 }
 0x3ce   : > { %v5290_v12 = vadd.f32 %v5198_v22, %v5046_v3  ;;  %v4126_v0 = vsel %vm646_vm1, %v4124_v20, %v15098_v10  ;;  %v3502_v4 = vadd.f32 %v12790_v55, %v3441_v16  ;;  %v4557_v56 = vmul.f32 %v14790_v23, %v13122_v15 }
 0x3cf   : > { %v4194_v39 = vadd.f32 %v4126_v0, %v3918_v19  ;;  %v4370_v57 = vsel %vm957_vm2, %v4368_v48, %v15099_v46  ;;  %v4680_v3 = vrot.slane %v4556_v2, 1  ;;  %v5699_v20 = vadd.f32 %v5667_v21, %v13162_v58  ;;  %v13209_v19 = vld [vmem:[%s14103_s7] ss:$0 sm:$0xff] }
 0x3d0   : > { %v5534_v22 = vadd.f32 %v5442_v8, %v5290_v12  ;;  %v4800_v60 = vmul.f32 %v14792_v25, %v12524_v49  ;;  %v4801_v37 = vmul.f32 %v14792_v25, %v13122_v15  ;;  %v3880_v35 = vmul.f32 %v3805_v11, %v3502_v4 }
 0x3d1   : > { %v4438_v51 = vadd.f32 %v4370_v57, %v4194_v39  ;;  %v4681_v61 = vrot.slane %v4557_v56, 1  ;;  %v4459_v9 = vmul.f32 %v11369_v34, %v12350_v28  ;;  %v5731_v48 = vmul.f32 0.7978846, %v5699_v20 }
 0x3d2   : > { %v13212_v8 = vadd.f32 %v13209_v19, %v5534_v22  ;;  %v4924_v16 = vrot.slane %v4800_v60, 2  ;;  %v4925_v10 = vrot.slane %v4801_v37, 2  ;;  %v13219_v2 = vmul.f32 %v11369_v34, %v3880_v35 }
 0x3d3   : > { %v4506_v12 = vadd.f32 %v4474_v7, %v4438_v51  ;;  %v13222_v21 = vmul.f32 %v14790_v23, %v3880_v35  ;;  %v4682_v39 = vsel %vm646_vm1, %v4680_v3, %v4681_v61  ;;  %7967 = vtanh.f32 %v5731_v48  ;;  %v15100_v51 = vld [vmem:[#allocation113_spill] sm:$0xff] }
 0x3d4   : > { %v5605_v0 = vmul.f32 %v13212_v8, %v13212_v8  ;;  %v13226_v46 = vmul.f32 %v14792_v25, %v3880_v35  ;;  %v4926_v28 = vsel %vm957_vm2, %v4924_v16, %v4925_v10  ;;  %v5030_v22 = vmul.f32 %v14944_v54, %v3880_v35 }
 0x3d5   : > { %v4750_v11 = vadd.f32 %v4682_v39, %v4506_v12  ;;  %v13233_v4 = vmul.f32 %v11339_v53, %v3880_v35  ;;  %v13237_v3 = vmul.f32 %v12628_v36, %v3880_v35  ;;  %v4491_v60 = vadd.f32 %v4459_v9, %v15100_v51  ;;  %v15101_v12 = vld [vmem:[#allocation70_spill] sm:$0xff]  ;;  %v15103_v39 = vld [vmem:[#allocation71_spill] sm:$0xff] }
 0x3d6   : > { %v5637_v7 = vmul.f32 %v5605_v0, %v13212_v8  ;;  %v4929_v56 = vrot.slane %v13226_v46, 2  ;;  %v15102_v16 = vrot.slane %v15101_v12, 1  ;;  %v15104_v57 = vrot.slane %v15103_v39, 2  ;;  %v15106_v12 = vld [vmem:[#allocation38_spill] sm:$0xff] }
 0x3d7   : > { %v4994_v20 = vadd.f32 %v4926_v28, %v4750_v11  ;;  %v7966_v28 = vpop.eup %7965 }
 0x3d8   : > { %v5669_v37 = vmul.f32 0.044715, %v5637_v7  ;;  %v4644_v0 = vsel %vm646_vm1, %v4641_v30, %v15102_v16  ;;  %v4888_v11 = vsel %vm957_vm2, %v4885_v33, %v15104_v57  ;;  %v5015_v7 = vmul.f32 %v14944_v54, %v12366_v52  ;;  %v15107_v33 = vld [vmem:[#allocation14_spill] sm:$0xff] }
 0x3d9   : > { %v13251_v36 = vadd.f32 %v5030_v22, %v4994_v20  ;;  %v4735_v9 = vadd.f32 %v4644_v0, %v4491_v60  ;;  %v5796_v51 = vadd.f32 1.0, %v7966_v28  ;;  %v15105_v30 = vrot.slane %v12461_v32, 2 }
 0x3da   : > { %v5701_v59 = vadd.f32 %v5669_v37, %v13212_v8  ;;  %v3382_v57 = vmul.f32 %v15107_v33, %v15106_v12  ;;  %v4439_v20 = vadd.f32 %v13023_v44, %v13027_v1  ;;  %v4475_v60 = vmul.f32 %v11369_v34, %v13122_v15 }
 0x3db   : > { %v5444_v40 = vsel %vm957_vm2, %v5441_v17, %v15105_v30  ;;  %v4979_v22 = vadd.f32 %v4888_v11, %v4735_v9  ;;  %v15108_v52 = vrot.slane %v12611_v41, 1  ;;  %v5828_v16 = vmul.f32 0.5, %v5796_v51  ;;  %v3815_v11 = vpop.permute.xlu1 %3814 }
 0x3dc   : > { %v5733_v32 = vmul.f32 0.7978846, %v5701_v59  ;;  %v3443_v47 = vmul.f32 %v12776_v5, %v3382_v57  ;;  %v15109_v17 = vrot.slane %v12614_v38, 2  ;;  %v4507_v28 = vadd.f32 %v4475_v60, %v4439_v20  ;;  %v13286_v38 = vld [vmem:[%s14102_s6 + $0x8] ss:$0 sm:$0xff] }
 0x3dd   : > { %v4684_v37 = vsel %vm646_vm1, %v4681_v61, %v15108_v52  ;;  %v5047_v39 = vadd.f32 %v5015_v7, %v4979_v22  ;;  %v5031_v44 = vmul.f32 %v14944_v54, %v12672_v42  ;;  %v13279_v1 = vmul.f32 %v11339_v53, %v12672_v42  ;;  %v7968_v9 = vpop.eup %7967 }
 0x3de   : > { %v4928_v0 = vsel %vm957_vm2, %v4925_v10, %v15109_v17  ;;  %v5860_v41 = vmul.f32 %v5828_v16, %v13129_v63  ;;  %7969 = vtanh.f32 %v5733_v32  ;;  %v3504_v61 = vadd.f32 %v12790_v55, %v3443_v47 }
 0x3df   : > { %v13290_v10 = vmul.f32 %v13286_v38, %v12672_v42  ;;  %v5291_v7 = vadd.f32 %v12479_v29, %v5047_v39  ;;  %v4751_v51 = vadd.f32 %v4684_v37, %v4507_v28  ;;  %v14444_v59 = vrot.slane %v13279_v1, 1 }
 0x3e0   : > { %v3904_v63 = vmul.f32 %v14784_v45, %v15075_v50  ;;  %v5795_v30 = vadd.f32 1.0, %v7968_v9  ;;  %v3882_v12 = vmul.f32 %v3815_v11, %v3504_v61  ;;  %v3979_v57 = vmul.f32 %v14778_v62, %v15075_v50 }
 0x3e1   : > { %v14443_v33 = vrot.slane %v13290_v10, 2  ;;  %v5535_v22 = vadd.f32 %v5444_v40, %v5291_v7  ;;  %v4995_v20 = vadd.f32 %v4928_v0, %v4751_v51  ;;  %v4223_v60 = vmul.f32 %v11315_v26, %v15075_v50 }
 0x3e2   : > { %v4460_v29 = vmul.f32 %v11369_v34, %v15094_v31  ;;  %v5827_v52 = vmul.f32 0.5, %v5795_v30  ;;  %v13304_v37 = vmul.f32 %v14790_v23, %v3882_v12  ;;  %v13307_v16 = vmul.f32 %v14792_v25, %v3882_v12 }
 0x3e3   : > { %v5114_v32 = vmul.f32 %v11339_v53, %v3882_v12  ;;  %v13311_v47 = vadd.f32 %v13209_v19, %v5535_v22  ;;  %v5063_v40 = vadd.f32 %v5031_v44, %v4995_v20  ;;  %v5358_v17 = vmul.f32 %v13286_v38, %v3882_v12 }
 0x3e4   : > { %v4089_v0 = vrot.slane %v3979_v57, 1  ;;  %v5859_v50 = vmul.f32 %v5827_v52, %v13162_v58  ;;  %v4688_v39 = vrot.slane %v13304_v37, 1  ;;  %v4932_v11 = vrot.slane %v13307_v16, 2 }
 0x3e5   : > { %v5239_v28 = vrot.slane %v5114_v32, 1  ;;  %v5606_v61 = vmul.f32 %v13311_v47, %v13311_v47  ;;  %v5483_v9 = vrot.slane %v5358_v17, 2  ;;  %v15110_v7 = vrot.slane %v12396_v43, 1 }
 0x3e6   : > { %v4333_v30 = vrot.slane %v4223_v60, 2  ;;  %7551 = vmatprep.mubr.msk.f32.mxu1 %vm2681_vm3, %v5859_v50  ;;  %v4535_v12 = vmul.f32 %v14790_v23, %v15094_v31  ;;  %v4779_v57 = vmul.f32 %v14792_v25, %v15094_v31  ;;  %v15111_v60 = vld [vmem:[#allocation120_spill] sm:$0xff] }
 0x3e7   : > { %v4091_v51 = vsel %vm646_vm1, %v4089_v0, %v15110_v7  ;;  %v5240_v58 = vsel %vm646_vm1, %v14444_v59, %v5239_v28  ;;  %7552 = vmatmul.mubr.msk.f32.vlgmr.msra.gmra.mrb[4].mxu1 %vm2681_vm3, %v5860_v41  ;;  %v5638_v43 = vmul.f32 %v5606_v61, %v13311_v47  ;;  %v5484_v20 = vsel %vm957_vm2, %v14443_v33, %v5483_v9  ;;  %v15113_v28 = vld [vmem:[#allocation75_spill] sm:$0xff] }
 0x3e8   : > { %v4180_v44 = vadd.f32 %v4091_v51, %v3904_v63  ;;  %v5307_v22 = vadd.f32 %v5240_v58, %v5063_v40  ;;  %v15112_v52 = vrot.slane %v15111_v60, 2  ;;  %v7970_v63 = vpop.eup %7969  ;;  %7723 = vmatpush3.bf16.msra.mxu1 %v15016_v24  ;;  %v4645_v0 = vrot.slane %v4535_v12, 1  ;;  %v15114_v58 = vld [vmem:[#allocation122_spill] sm:$0xff] }
 0x3e9   : > { %v4889_v50 = vrot.slane %v4779_v57, 2  ;;  %v5016_v41 = vmul.f32 %v14944_v54, %v15113_v28  ;;  %v5797_v7 = vadd.f32 1.0, %v7970_v63  ;;  %v5670_v61 = vmul.f32 0.044715, %v5638_v43  ;;  %7725 = vmatprep.subr.bf16.mxu1 %v15018_v27  ;;  %v15118_v57 = vld [vmem:[#allocation48_spill] sm:$0xff] }
 0x3ea   : > { %v4335_v32 = vsel %vm957_vm2, %v4333_v30, %v15112_v52  ;;  %v5551_v40 = vadd.f32 %v5484_v20, %v5307_v22  ;;  %v5091_v9 = vmul.f32 %v11339_v53, %v15113_v28  ;;  %v15115_v30 = vrot.slane %v15114_v58, 1  ;;  %v15116_v52 = vld [vmem:[#allocation123_spill] sm:$0xff] }
 0x3eb   : > { %v4424_v17 = vadd.f32 %v4335_v32, %v4180_v44  ;;  %v15117_v44 = vrot.slane %v15116_v52, 2  ;;  %v5092_v32 = vmul.f32 %v11339_v53, %v15118_v57  ;;  %v5829_v63 = vmul.f32 0.5, %v5797_v7 }
 0x3ec   : > { %v4647_v60 = vsel %vm646_vm1, %v4645_v0, %v15115_v30  ;;  %v5702_v43 = vadd.f32 %v5670_v61, %v13311_v47  ;;  %v13354_v22 = vadd.f32 %v13209_v19, %v5551_v40  ;;  %v5201_v20 = vrot.slane %v5091_v9, 1  ;;  %7727 = vmatpush3.bf16.msra.mxu1 %v15018_v27  ;;  %v15119_v61 = vld [vmem:[#allocation20_spill] sm:$0xff]  ;;  %v15120_v40 = vld [vmem:[#allocation55_spill] sm:$0xff] }
 0x3ed   : > { %v4492_v51 = vadd.f32 %v4460_v29, %v4424_v17  ;;  %v4891_v12 = vsel %vm957_vm2, %v4889_v50, %v15117_v44  ;;  %v5202_v17 = vrot.slane %v5092_v32, 1  ;;  %v5335_v0 = vmul.f32 %v13286_v38, %v15113_v28  ;;  %7737 = vmatprep.subr.bf16.mxu1 %v15016_v24  ;;  %v15121_v32 = vld [vmem:[#allocation129_spill] sm:$0xff] }
 0x3ee   : > { %v5336_v50 = vmul.f32 %v13286_v38, %v15118_v57  ;;  %v5861_v58 = vmul.f32 %v5829_v63, %v13212_v8  ;;  %v5734_v30 = vmul.f32 0.7978846, %v5702_v43  ;;  %v5017_v7 = vmul.f32 %v14944_v54, %v15118_v57  ;;  %v15122_v8 = vld [vmem:[#allocation88_spill] sm:$0xff] }
 0x3ef   : > { %v4736_v29 = vadd.f32 %v4647_v60, %v4492_v51  ;;  %v3384_v52 = vmul.f32 %v15120_v40, %v15119_v61  ;;  %v5203_v51 = vsel %vm646_vm1, %v5201_v20, %v5202_v17  ;;  %v5445_v60 = vrot.slane %v5335_v0, 2  ;;  %v15124_v40 = vld [vmem:[#allocation89_spill] sm:$0xff] }
 0x3f0   : > { %v5446_v44 = vrot.slane %v5336_v50, 2  ;;  %7562 = vmatprep.mubr.msk.f32.mxu0 %vm2681_vm3, %v5861_v58  ;;  %7971 = vtanh.f32 %v5734_v30  ;;  %v5049_v35 = vadd.f32 %v5017_v7, %v15121_v32  ;;  %v15123_v63 = vrot.slane %v15122_v8, 1 }
 0x3f1   : > { %v4980_v9 = vadd.f32 %v4891_v12, %v4736_v29  ;;  %v3445_v33 = vmul.f32 %v12776_v5, %v3384_v52  ;;  %v15125_v12 = vrot.slane %v15124_v40, 2  ;;  %v3825_v29 = vpop.permute.xlu1 %3824  ;;  %v3920_v0 = vmul.f32 %v14784_v45, %v12524_v49 }
 0x3f2   : > { %v5205_v43 = vsel %vm646_vm1, %v5202_v17, %v15123_v63  ;;  %v5447_v61 = vsel %vm957_vm2, %v5445_v60, %v5446_v44  ;;  %v3921_v30 = vmul.f32 %v14784_v45, %v13122_v15  ;;  %v4003_v5 = vmul.f32 %v14778_v62, %v12524_v49 }
 0x3f3   : > { %v5048_v48 = vadd.f32 %v5016_v41, %v4980_v9  ;;  %v5449_v20 = vsel %vm957_vm2, %v5446_v44, %v15125_v12  ;;  %v5293_v50 = vadd.f32 %v5205_v43, %v5049_v35  ;;  %v3506_v58 = vadd.f32 %v12790_v55, %v3445_v33 }
 0x3f4   : > { %v4004_v17 = vmul.f32 %v14778_v62, %v13122_v15  ;;  %v4247_v7 = vmul.f32 %v11315_v26, %v12524_v49  ;;  %v4248_v52 = vmul.f32 %v11315_v26, %v13122_v15  ;;  %v4129_v60 = vrot.slane %v4003_v5, 1 }
 0x3f5   : > { %v5292_v41 = vadd.f32 %v5203_v51, %v5048_v48  ;;  %v5537_v9 = vadd.f32 %v5449_v20, %v5293_v50  ;;  %v3884_v35 = vmul.f32 %v3825_v29, %v3506_v58  ;;  %v4477_v55 = vmul.f32 %v11369_v34, %v12672_v42 }
 0x3f6   : > { %v4130_v44 = vrot.slane %v4004_v17, 1  ;;  %v4373_v32 = vrot.slane %v4247_v7, 2  ;;  %v4374_v8 = vrot.slane %v4248_v52, 2  ;;  %v4560_v51 = vmul.f32 %v14790_v23, %v12672_v42  ;;  %v15128_v17 = vld [vmem:[#allocation12_spill] sm:$0xff] }
 0x3f7   : > { %v5536_v33 = vadd.f32 %v5447_v61, %v5292_v41  ;;  %v13394_v48 = vadd.f32 %v13209_v19, %v5537_v9  ;;  %v4804_v63 = vmul.f32 %v14792_v25, %v12672_v42  ;;  %v5033_v43 = vmul.f32 %v14944_v54, %v3884_v35  ;;  %v15126_v61 = vld [vmem:[#allocation31_spill] sm:$0xff] }
 0x3f8   : > { %v4131_v12 = vsel %vm646_vm1, %v4129_v60, %v4130_v44  ;;  %v15127_v20 = vrot.slane %v15126_v61, 1  ;;  %v4375_v50 = vsel %vm957_vm2, %v4373_v32, %v4374_v8  ;;  %v15129_v42 = vrot.slane %v15128_v17, 2 }
 0x3f9   : > { %v13402_v40 = vadd.f32 %v13209_v19, %v5536_v33  ;;  %v5608_v58 = vmul.f32 %v13394_v48, %v13394_v48  ;;  %v4196_v5 = vadd.f32 %v4131_v12, %v3920_v0  ;;  %v4686_v9 = vrot.slane %v4560_v51, 1 }
 0x3fa   : > { %v4133_v29 = vsel %vm646_vm1, %v4130_v44, %v15127_v20  ;;  %v4377_v7 = vsel %vm957_vm2, %v4374_v8, %v15129_v42  ;;  %v4930_v60 = vrot.slane %v4804_v63, 2  ;;  %v5116_v33 = vmul.f32 %v11339_v53, %v3884_v35  ;;  %v7972_v61 = vpop.eup %7971 }
 0x3fb   : > { %v4197_v41 = vadd.f32 %v4133_v29, %v3921_v30  ;;  %v5607_v52 = vmul.f32 %v13402_v40, %v13402_v40  ;;  %v5640_v44 = vmul.f32 %v5608_v58, %v13394_v48  ;;  %v4440_v32 = vadd.f32 %v4375_v50, %v4196_v5 }
 0x3fc   : > { %v5360_v59 = vmul.f32 %v13286_v38, %v3884_v35  ;;  %v5798_v0 = vadd.f32 1.0, %v7972_v61  ;;  %v15130_v12 = vrot.slane %v13222_v21, 1  ;;  %v4689_v51 = vsel %vm646_vm1, %v4686_v9, %v4688_v39 }
 0x3fd   : > { %v4441_v20 = vadd.f32 %v4377_v7, %v4197_v41  ;;  %v5639_v30 = vmul.f32 %v5607_v52, %v13402_v40  ;;  %v5672_v63 = vmul.f32 0.044715, %v5640_v44  ;;  %v4508_v29 = vadd.f32 %v13219_v2, %v4440_v32 }
 0x3fe   : > { %v4687_v8 = vsel %vm646_vm1, %v15130_v12, %v4686_v9  ;;  %v4931_v50 = vsel %vm957_vm2, %v4929_v56, %v4930_v60  ;;  %v5830_v35 = vmul.f32 0.5, %v5798_v0  ;;  %v4933_v21 = vsel %vm957_vm2, %v4930_v60, %v4932_v11  ;;  %v15137_v0 = vld [vmem:[#allocation54_spill] sm:$0xff] }
 0x3ff   : > { %v4509_v17 = vadd.f32 %v4477_v55, %v4441_v20  ;;  %v5671_v58 = vmul.f32 0.044715, %v5639_v30  ;;  %v5242_v5 = vrot.slane %v5116_v33, 1  ;;  %v5704_v41 = vadd.f32 %v5672_v63, %v13394_v48  ;;  %v15131_v55 = vld [vmem:[#allocation33_spill] sm:$0xff] }
 0x400   : > { %v4752_v37 = vadd.f32 %v4687_v8, %v4508_v29  ;;  %v5486_v39 = vrot.slane %v5360_v59, 2  ;;  %v5862_v7 = vmul.f32 %v5830_v35, %v13311_v47  ;;  %v15132_v46 = vrot.slane %v15131_v55, 1  ;;  %v15134_v33 = vld [vmem:[#allocation69_spill] sm:$0xff] }
 0x401   : > { %v4753_v42 = vadd.f32 %v4689_v51, %v4509_v17  ;;  %v5703_v2 = vadd.f32 %v5671_v58, %v13402_v40  ;;  %v15133_v52 = vrot.slane %v12881_v18, 1  ;;  %v5736_v9 = vmul.f32 0.7978846, %v5704_v41 }
 0x402   : > { %v5243_v56 = vsel %vm646_vm1, %v15132_v46, %v5242_v5  ;;  %v4996_v11 = vadd.f32 %v4931_v50, %v4752_v37  ;;  %v15135_v61 = vrot.slane %v15134_v33, 2  ;;  %7563 = vmatmul.mubr.msk.f32.vlgmr.msra.gmra.mrb[6].mxu0 %vm2681_vm3, %v5862_v7  ;;  %v15136_v47 = vrot.slane %v12884_v13, 2  ;;  %v15140_v7 = vld [vmem:[#allocation121_spill] sm:$0xff] }
 0x403   : > { %v5245_v16 = vsel %vm646_vm1, %v5242_v5, %v15133_v52  ;;  %v4997_v60 = vadd.f32 %v4933_v21, %v4753_v42  ;;  %v5735_v59 = vmul.f32 0.7978846, %v5703_v2  ;;  %v3906_v20 = vmul.f32 %v14784_v45, %v15094_v31  ;;  %7731 = vmatpush3.bf16.msra.mxu0 %v15016_v24 }
 0x404   : > { %v5487_v44 = vsel %vm957_vm2, %v15135_v61, %v5486_v39  ;;  %v5489_v32 = vsel %vm957_vm2, %v5486_v39, %v15136_v47  ;;  %v3982_v18 = vmul.f32 %v14778_v62, %v15094_v31  ;;  %7973 = vtanh.f32 %v5736_v9  ;;  %7733 = vmatprep.subr.bf16.mxu0 %v15018_v27 }
 0x405   : > { %v5064_v30 = vadd.f32 %v15137_v0, %v4996_v11  ;;  %v5065_v12 = vadd.f32 %v5033_v43, %v4997_v60  ;;  %v4226_v8 = vmul.f32 %v11315_v26, %v15094_v31  ;;  %7975 = vtanh.f32 %v5735_v59  ;;  %v15138_v43 = vld [vmem:[#allocation118_spill] sm:$0xff] }
 0x406   : > { %v4094_v13 = vrot.slane %v3982_v18, 1  ;;  %v4462_v51 = vmul.f32 %v11369_v34, %v15113_v28  ;;  %v4538_v63 = vmul.f32 %v14790_v23, %v15113_v28  ;;  %v4539_v35 = vmul.f32 %v14790_v23, %v15118_v57 }
 0x407   : > { %v5308_v29 = vadd.f32 %v5243_v56, %v5064_v30  ;;  %v5309_v17 = vadd.f32 %v5245_v16, %v5065_v12  ;;  %v4338_v50 = vrot.slane %v4226_v8, 2  ;;  %v15139_v58 = vrot.slane %v15138_v43, 1  ;;  %7735 = vmatpush3.bf16.msra.mxu0 %v15018_v27  ;;  %v15142_v16 = vld [vmem:[#allocation5_spill] sm:$0xff] }
 0x408   : > { %v4650_v21 = vrot.slane %v4538_v63, 1  ;;  %v4782_v5 = vmul.f32 %v14792_v25, %v15113_v28  ;;  %v4783_v41 = vmul.f32 %v14792_v25, %v15118_v57  ;;  %v15141_v2 = vrot.slane %v15140_v7, 2  ;;  %7745 = vmatprep.subr.bf16.mxu0 %v15016_v24  ;;  %v15144_v63 = vld [vmem:[#allocation85_spill] sm:$0xff] }
 0x409   : > { %v4096_v31 = vsel %vm646_vm1, %v4094_v13, %v15139_v58  ;;  %v5552_v37 = vadd.f32 %v5487_v44, %v5308_v29  ;;  %v5553_v42 = vadd.f32 %v5489_v32, %v5309_v17  ;;  %v4651_v46 = vrot.slane %v4539_v35, 1  ;;  %v15143_v32 = vld [vmem:[#allocation92_spill] sm:$0xff] }
 0x40a   : > { %v4182_v39 = vadd.f32 %v4096_v31, %v3906_v20  ;;  %v4340_v55 = vsel %vm957_vm2, %v4338_v50, %v15141_v2  ;;  %v4894_v56 = vrot.slane %v4782_v5, 2  ;;  %v4895_v52 = vrot.slane %v4783_v41, 2  ;;  %v15146_v50 = vld [vmem:[#allocation87_spill] sm:$0xff]  ;;  %v15150_v41 = vld [vmem:[#allocation124_spill] sm:$0xff] }
 0x40b   : > { %v5018_v9 = vmul.f32 %v14944_v54, %v15142_v16  ;;  %v13479_v11 = vadd.f32 %v13209_v19, %v5552_v37  ;;  %v13482_v60 = vadd.f32 %v13209_v19, %v5553_v42  ;;  %v5094_v61 = vmul.f32 %v11339_v53, %v15142_v16 }
 0x40c   : > { %v4426_v33 = vadd.f32 %v4340_v55, %v4182_v39  ;;  %v4652_v44 = vsel %vm646_vm1, %v4650_v21, %v4651_v46  ;;  %v4896_v59 = vsel %vm957_vm2, %v4894_v56, %v4895_v52  ;;  %v5338_v47 = vmul.f32 %v13286_v38, %v15142_v16  ;;  %v15148_v21 = vld [vmem:[#allocation99_spill] sm:$0xff]  ;;  %v15151_v55 = vld [vmem:[#allocation102_spill] sm:$0xff] }
 0x40d   : > { %v5339_v20 = vmul.f32 %v13286_v38, %v15143_v32  ;;  %v13494_v18 = vmul.f32 %v13482_v60, %v13482_v60  ;;  %v5206_v30 = vrot.slane %v5094_v61, 1  ;;  %v4463_v12 = vmul.f32 %v11369_v34, %v15118_v57 }
 0x40e   : > { %v4494_v0 = vadd.f32 %v4462_v51, %v4426_v33  ;;  %v5450_v8 = vrot.slane %v5338_v47, 2  ;;  %v15145_v29 = vrot.slane %v15144_v63, 1  ;;  %v15147_v35 = vrot.slane %v15146_v50, 2  ;;  %v7974_v58 = vpop.eup %7973 }
 0x40f   : > { %v5451_v13 = vrot.slane %v5339_v20, 2  ;;  %v15149_v5 = vrot.slane %v15148_v21, 1  ;;  %v4495_v37 = vadd.f32 %v4463_v12, %v15150_v41  ;;  %v5019_v42 = vmul.f32 %v14944_v54, %v15143_v32  ;;  %v7976_v39 = vpop.eup %7975 }
 0x410   : > { %v4654_v17 = vsel %vm646_vm1, %v4651_v46, %v15145_v29  ;;  %v4898_v43 = vsel %vm957_vm2, %v4895_v52, %v15147_v35  ;;  %v4738_v31 = vadd.f32 %v4652_v44, %v4494_v0  ;;  %v5800_v7 = vadd.f32 1.0, %v7974_v58 }
 0x411   : > { %v5208_v51 = vsel %vm646_vm1, %v5206_v30, %v15149_v5  ;;  %v5452_v2 = vsel %vm957_vm2, %v5450_v8, %v5451_v13  ;;  %v15152_v46 = vrot.slane %v15151_v55, 2  ;;  %v3908_v52 = vmul.f32 %v14784_v45, %v15113_v28 }
 0x412   : > { %v5799_v33 = vadd.f32 1.0, %v7976_v39  ;;  %v4982_v61 = vadd.f32 %v4896_v59, %v4738_v31  ;;  %v4739_v44 = vadd.f32 %v4654_v17, %v4495_v37  ;;  %v3985_v47 = vmul.f32 %v14778_v62, %v15113_v28  ;;  %v15153_v37 = vld [vmem:[#allocation107_spill] sm:$0xff] }
 0x413   : > { %v5454_v56 = vsel %vm957_vm2, %v5451_v13, %v15152_v46  ;;  %v5832_v20 = vmul.f32 0.5, %v5800_v7  ;;  %v3986_v0 = vmul.f32 %v14778_v62, %v15118_v57  ;;  %v4229_v30 = vmul.f32 %v11315_v26, %v15113_v28 }
 0x414   : > { %v4230_v12 = vmul.f32 %v11315_v26, %v15118_v57  ;;  %v5831_v8 = vmul.f32 0.5, %v5799_v33  ;;  %v5050_v13 = vadd.f32 %v5018_v9, %v4982_v61  ;;  %v4983_v63 = vadd.f32 %v4898_v43, %v4739_v44  ;;  %v15155_v44 = vld [vmem:[#allocation103_spill] sm:$0xff] }
 0x415   : > { %v4099_v29 = vrot.slane %v3985_v47, 1  ;;  %v5864_v59 = vmul.f32 %v5832_v20, %v13394_v48  ;;  %v4100_v17 = vrot.slane %v3986_v0, 1  ;;  %v4343_v50 = vrot.slane %v4229_v30, 2  ;;  %v15156_v20 = vld [vmem:[#allocation96_spill] sm:$0xff] }
 0x416   : > { %v4344_v35 = vrot.slane %v4230_v12, 2  ;;  %v5863_v58 = vmul.f32 %v5831_v8, %v13402_v40  ;;  %v5294_v31 = vadd.f32 %v5208_v51, %v5050_v13  ;;  %v5051_v21 = vadd.f32 %v5019_v42, %v4983_v63  ;;  %v15154_v42 = vld [vmem:[#allocation52_spill] sm:$0xff]  ;;  %v15158_v12 = vld [vmem:[#allocation98_spill] sm:$0xff] }
 0x417   : > { %v4464_v5 = vmul.f32 %v11369_v34, %v15142_v16  ;;  %v4101_v28 = vsel %vm646_vm1, %v4099_v29, %v4100_v17  ;;  %v4541_v9 = vmul.f32 %v14790_v23, %v15142_v16  ;;  %v4785_v48 = vmul.f32 %v14792_v25, %v15142_v16 }
 0x418   : > { %v4345_v41 = vsel %vm957_vm2, %v4343_v50, %v4344_v35  ;;  %7573 = vmatprep.mubr.msk.f32.mxu1 %vm2681_vm3, %v5863_v58  ;;  %v5538_v43 = vadd.f32 %v5452_v2, %v5294_v31  ;;  %v5295_v40 = vadd.f32 %v15153_v37, %v5051_v21  ;;  %v4184_v51 = vadd.f32 %v4101_v28, %v3908_v52  ;;  %v15160_v31 = vld [vmem:[#allocation116_spill] sm:$0xff] }
 0x419   : > { %v5020_v39 = vmul.f32 %v14944_v54, %v15154_v42  ;;  %7574 = vmatmul.mubr.msk.f32.vlgmr.msra.gmra.mrb[6].mxu1 %vm2681_vm3, %v5864_v59  ;;  %v4655_v7 = vrot.slane %v4541_v9, 1  ;;  %v4899_v55 = vrot.slane %v4785_v48, 2  ;;  %v5097_v46 = vmul.f32 %v11339_v53, %v15154_v42  ;;  %v15162_v9 = vld [vmem:[#allocation83_spill] sm:$0xff]  ;;  %v15164_v37 = vld [vmem:[#allocation84_spill] sm:$0xff] }
 0x41a   : > { %v5341_v33 = vmul.f32 %v13286_v38, %v15154_v42  ;;  %v13544_v61 = vadd.f32 %v13209_v19, %v5538_v43  ;;  %7739 = vmatpush3.bf16.msra.mxu1 %v15016_v24  ;;  %v5539_v2 = vadd.f32 %v5454_v56, %v5295_v40  ;;  %v4428_v52 = vadd.f32 %v4345_v41, %v4184_v51 }
 0x41b   : > { %v5342_v47 = vmul.f32 %v13286_v38, %v15155_v44  ;;  %7741 = vmatprep.subr.bf16.mxu1 %v15018_v27  ;;  %v15157_v0 = vrot.slane %v15156_v20, 1  ;;  %v15159_v8 = vrot.slane %v15158_v12, 2  ;;  %v5211_v63 = vrot.slane %v5097_v46, 1 }
 0x41c   : > { %v5455_v29 = vrot.slane %v5341_v33, 2  ;;  %v5609_v59 = vmul.f32 %v13544_v61, %v13544_v61  ;;  %v13559_v56 = vadd.f32 %v13209_v19, %v5539_v2  ;;  %v4496_v50 = vadd.f32 %v4464_v5, %v4428_v52  ;;  %v15166_v2 = vld [vmem:[#allocation117_spill] sm:$0xff] }
 0x41d   : > { %v4657_v30 = vsel %vm646_vm1, %v4655_v7, %v15157_v0  ;;  %v4901_v13 = vsel %vm957_vm2, %v4899_v55, %v15159_v8  ;;  %v5456_v58 = vrot.slane %v5342_v47, 2  ;;  %v15161_v21 = vrot.slane %v15160_v31, 1 }
 0x41e   : > { %v3909_v41 = vmul.f32 %v14784_v45, %v15118_v57  ;;  %v15163_v48 = vrot.slane %v15162_v9, 1  ;;  %v15165_v40 = vrot.slane %v15164_v37, 2  ;;  %v5641_v7 = vmul.f32 %v5609_v59, %v13544_v61  ;;  %7743 = vmatpush3.bf16.msra.mxu1 %v15018_v27 }
 0x41f   : > { %v5213_v28 = vsel %vm646_vm1, %v5211_v63, %v15161_v21  ;;  %v5610_v5 = vmul.f32 %v13559_v56, %v13559_v56  ;;  %v4740_v55 = vadd.f32 %v4657_v30, %v4496_v50  ;;  %v5457_v46 = vsel %vm957_vm2, %v5455_v29, %v5456_v58  ;;  %7753 = vmatprep.subr.bf16.mxu1 %v15016_v24 }
 0x420   : > { %v4103_v43 = vsel %vm646_vm1, %v4100_v17, %v15163_v48  ;;  %v4347_v51 = vsel %vm957_vm2, %v4344_v35, %v15165_v40  ;;  %v4465_v57 = vmul.f32 %v11369_v34, %v15143_v32  ;;  %v5021_v17 = vmul.f32 %v14944_v54, %v15155_v44  ;;  %v15169_v40 = vld [vmem:[#allocation94_spill] sm:$0xff] }
 0x421   : > { %v4185_v33 = vadd.f32 %v4103_v43, %v3909_v41  ;;  %v15167_v52 = vrot.slane %v15166_v2, 2  ;;  %v5673_v47 = vmul.f32 0.044715, %v5641_v7  ;;  %v5642_v20 = vmul.f32 %v5610_v5, %v13559_v56  ;;  %v15168_v43 = vld [vmem:[#allocation105_spill] sm:$0xff]  ;;  %v15171_v7 = vld [vmem:[#allocation95_spill] sm:$0xff] }
 0x422   : > { %v4984_v0 = vadd.f32 %v4901_v13, %v4740_v55  ;;  %v3910_v30 = vmul.f32 %v14784_v45, %v15142_v16  ;;  %v3988_v32 = vmul.f32 %v14778_v62, %v15142_v16  ;;  %v4232_v44 = vmul.f32 %v11315_v26, %v15142_v16 }
 0x423   : > { %v5459_v35 = vsel %vm957_vm2, %v5456_v58, %v15167_v52  ;;  %v4429_v12 = vadd.f32 %v4347_v51, %v4185_v33  ;;  %v4466_v8 = vmul.f32 %v11369_v34, %v15154_v42  ;;  %v5705_v63 = vadd.f32 %v5673_v47, %v13544_v61  ;;  %v15173_v47 = vld [vmem:[#allocation106_spill] sm:$0xff] }
 0x424   : > { %v5674_v29 = vmul.f32 0.044715, %v5642_v20  ;;  %v5052_v59 = vadd.f32 %v5020_v39, %v4984_v0  ;;  %v4544_v13 = vmul.f32 %v14790_v23, %v15154_v42  ;;  %v4104_v58 = vrot.slane %v3988_v32, 1  ;;  %v15174_v0 = vld [vmem:[#allocation114_spill] sm:$0xff]  ;;  %v15176_v32 = vld [vmem:[#allocation115_spill] sm:$0xff] }
 0x425   : > { %v4497_v50 = vadd.f32 %v4465_v57, %v4429_v12  ;;  %v4348_v31 = vrot.slane %v4232_v44, 2  ;;  %v4788_v21 = vmul.f32 %v14792_v25, %v15154_v42  ;;  %v5737_v41 = vmul.f32 0.7978846, %v5705_v63 }
 0x426   : > { %v5706_v9 = vadd.f32 %v5674_v29, %v13559_v56  ;;  %v5296_v16 = vadd.f32 %v5213_v28, %v5052_v59  ;;  %v4660_v48 = vrot.slane %v4544_v13, 1  ;;  %v15170_v51 = vrot.slane %v15169_v40, 1  ;;  %v15178_v29 = vld [vmem:[#allocation77_spill] sm:$0xff] }
 0x427   : > { %v4741_v37 = vadd.f32 %v15168_v43, %v4497_v50  ;;  %v15172_v5 = vrot.slane %v15171_v7, 2  ;;  %v4904_v33 = vrot.slane %v4788_v21, 2  ;;  %7977 = vtanh.f32 %v5737_v41 }
 0x428   : > { %v4106_v39 = vsel %vm646_vm1, %v4104_v58, %v15170_v51  ;;  %v5738_v57 = vmul.f32 0.7978846, %v5706_v9  ;;  %v5540_v2 = vadd.f32 %v5457_v46, %v5296_v16  ;;  %v15175_v28 = vrot.slane %v15174_v0, 1 }
 0x429   : > { %v4350_v55 = vsel %vm957_vm2, %v4348_v31, %v15172_v5  ;;  %v4186_v52 = vadd.f32 %v4106_v39, %v3910_v30  ;;  %v4985_v20 = vadd.f32 %v15173_v47, %v4741_v37  ;;  %v15177_v44 = vrot.slane %v15176_v32, 2  ;;  %v15179_v31 = vld [vmem:[#allocation46_spill] sm:$0xff]  ;;  %v15180_v37 = vld [vmem:[#allocation49_spill] sm:$0xff]  ;;  %v15181_v39 = vld [vmem:[#allocation119_spill] sm:$0xff] }
 0x42a   : > { %v4662_v12 = vsel %vm646_vm1, %v4660_v48, %v15175_v28  ;;  %v5022_v59 = vmul.f32 %v14944_v54, %v15178_v29  ;;  %7979 = vtanh.f32 %v5738_v57  ;;  %v13617_v13 = vadd.f32 %v13209_v19, %v5540_v2  ;;  %v15185_v28 = vld [vmem:[#allocation76_spill] sm:$0xff] }
 0x42b   : > { %v4906_v63 = vsel %vm957_vm2, %v4904_v33, %v15177_v44  ;;  %v4430_v50 = vadd.f32 %v4350_v55, %v4186_v52  ;;  %v5100_v46 = vmul.f32 %v11339_v53, %v15178_v29  ;;  %v5053_v30 = vadd.f32 %v5021_v17, %v4985_v20  ;;  %v15182_v33 = vld [vmem:[#allocation26_spill] sm:$0xff] }
 0x42c   : > { %v5344_v58 = vmul.f32 %v13286_v38, %v15178_v29  ;;  %v5345_v21 = vmul.f32 %v13286_v38, %v15179_v31  ;;  %v5023_v41 = vmul.f32 %v14944_v54, %v15179_v31  ;;  %v5611_v9 = vmul.f32 %v13617_v13, %v13617_v13  ;;  %v15184_v20 = vld [vmem:[#allocation82_spill] sm:$0xff] }
 0x42d   : > { %v4498_v16 = vadd.f32 %v4466_v8, %v4430_v50  ;;  %v5216_v48 = vrot.slane %v5100_v46, 1  ;;  %v3912_v43 = vmul.f32 %v14784_v45, %v15154_v42  ;;  %v5297_v40 = vadd.f32 %v15180_v37, %v5053_v30 }
 0x42e   : > { %v5460_v17 = vrot.slane %v5344_v58, 2  ;;  %v5461_v51 = vrot.slane %v5345_v21, 2  ;;  %v5055_v7 = vadd.f32 %v5023_v41, %v15181_v39  ;;  %v5643_v5 = vmul.f32 %v5611_v9, %v13617_v13 }
 0x42f   : > { %v4742_v55 = vadd.f32 %v4662_v12, %v4498_v16  ;;  %v15183_v57 = vrot.slane %v15182_v33, 1  ;;  %v3991_v8 = vmul.f32 %v14778_v62, %v15154_v42  ;;  %v5541_v52 = vadd.f32 %v5459_v35, %v5297_v40  ;;  %v15189_v33 = vld [vmem:[#allocation112_spill] sm:$0xff] }
 0x430   : > { %v5462_v47 = vsel %vm957_vm2, %v5460_v17, %v5461_v51  ;;  %v5299_v0 = vadd.f32 %v15184_v20, %v5055_v7  ;;  %v15186_v32 = vrot.slane %v15185_v28, 2  ;;  %v5675_v50 = vmul.f32 0.044715, %v5643_v5 }
 0x431   : > { %v5218_v2 = vsel %vm646_vm1, %v5216_v48, %v15183_v57  ;;  %v4986_v46 = vadd.f32 %v4906_v63, %v4742_v55  ;;  %v4109_v30 = vrot.slane %v3991_v8, 1  ;;  %v4235_v12 = vmul.f32 %v11315_v26, %v15154_v42  ;;  %v7978_v41 = vpop.eup %7977  ;;  %v15187_v48 = vld [vmem:[#allocation111_spill] sm:$0xff] }
 0x432   : > { %v5464_v44 = vsel %vm957_vm2, %v5461_v51, %v15186_v32  ;;  %v13647_v58 = vadd.f32 %v13209_v19, %v5541_v52  ;;  %v4468_v35 = vmul.f32 %v11369_v34, %v15178_v29  ;;  %v4547_v21 = vmul.f32 %v14790_v23, %v15178_v29 }
 0x433   : > { %v5543_v31 = vadd.f32 %v5464_v44, %v5299_v0  ;;  %v5707_v9 = vadd.f32 %v5675_v50, %v13617_v13  ;;  %v5054_v16 = vadd.f32 %v5022_v59, %v4986_v46  ;;  %v15188_v63 = vrot.slane %v15187_v48, 1  ;;  %v15191_v50 = vld [vmem:[#allocation19_spill] sm:$0xff] }
 0x434   : > { %v4353_v40 = vrot.slane %v4235_v12, 2  ;;  %v5801_v42 = vadd.f32 1.0, %v7978_v41  ;;  %v5612_v17 = vmul.f32 %v13647_v58, %v13647_v58  ;;  %v7980_v7 = vpop.eup %7979  ;;  %v15190_v57 = vrot.slane %v15189_v33, 2  ;;  %v15194_v33 = vld [vmem:[#allocation35_spill] sm:$0xff] }
 0x435   : > { %v4111_v37 = vsel %vm646_vm1, %v4109_v30, %v15188_v63  ;;  %v13660_v51 = vadd.f32 %v13209_v19, %v5543_v31  ;;  %v5739_v5 = vmul.f32 0.7978846, %v5707_v9  ;;  %v5298_v55 = vadd.f32 %v5218_v2, %v5054_v16  ;;  %v15193_v16 = vld [vmem:[#allocation47_spill] sm:$0xff] }
 0x436   : > { %v4188_v39 = vadd.f32 %v4111_v37, %v3912_v43  ;;  %v4355_v59 = vsel %vm957_vm2, %v4353_v40, %v15190_v57  ;;  %v4665_v8 = vrot.slane %v4547_v21, 1  ;;  %v5833_v52 = vmul.f32 0.5, %v5801_v42 }
 0x437   : > { %v5802_v20 = vadd.f32 1.0, %v7980_v7  ;;  %v5644_v0 = vmul.f32 %v5612_v17, %v13647_v58  ;;  %v5614_v28 = vmul.f32 %v13660_v51, %v13660_v51  ;;  %7981 = vtanh.f32 %v5739_v5 }
 0x438   : > { %v5542_v32 = vadd.f32 %v5462_v47, %v5298_v55  ;;  %v4432_v44 = vadd.f32 %v4355_v59, %v4188_v39  ;;  %v15192_v43 = vrot.slane %v15191_v50, 1  ;;  %v5865_v2 = vmul.f32 %v5833_v52, %v13544_v61 }
 0x439   : > { %v5834_v30 = vmul.f32 0.5, %v5802_v20  ;;  %v5676_v12 = vmul.f32 0.044715, %v5644_v0  ;;  %v5646_v31 = vmul.f32 %v5614_v28, %v13660_v51  ;;  %v4791_v9 = vmul.f32 %v14792_v25, %v15178_v29 }
 0x43a   : > { %v4667_v46 = vsel %vm646_vm1, %v4665_v8, %v15192_v43  ;;  %v13674_v21 = vadd.f32 %v13209_v19, %v5542_v32  ;;  %v4500_v41 = vadd.f32 %v4468_v35, %v4432_v44  ;;  %v5024_v47 = vmul.f32 %v14944_v54, %v15193_v16  ;;  %7584 = vmatprep.mubr.msk.f32.mxu0 %vm2681_vm3, %v5865_v2  ;;  %v15196_v2 = vld [vmem:[#allocation127_spill] sm:$0xff] }
 0x43b   : > { %v5866_v48 = vmul.f32 %v5834_v30, %v13559_v56  ;;  %v5708_v61 = vadd.f32 %v5676_v12, %v13647_v58  ;;  %v5678_v63 = vmul.f32 0.044715, %v5646_v31  ;;  %v5103_v37 = vmul.f32 %v11339_v53, %v15193_v16 }
 0x43c   : > { %v5613_v40 = vmul.f32 %v13674_v21, %v13674_v21  ;;  %v4744_v35 = vadd.f32 %v4667_v46, %v4500_v41  ;;  %v4909_v42 = vrot.slane %v4791_v9, 2  ;;  %v5104_v17 = vmul.f32 %v11339_v53, %v12844_v6 }
 0x43d   : > { %7585 = vmatmul.mubr.msk.f32.vlgmr.msra.gmra.mrb[8].mxu0 %vm2681_vm3, %v5866_v48  ;;  %v5740_v39 = vmul.f32 0.7978846, %v5708_v61  ;;  %v5710_v7 = vadd.f32 %v5678_v63, %v13660_v51  ;;  %v5221_v56 = vrot.slane %v5103_v37, 1  ;;  %v5347_v5 = vmul.f32 %v13286_v38, %v15193_v16  ;;  %v15198_v61 = vld [vmem:[#allocation44_spill] sm:$0xff] }
 0x43e   : > { %7747 = vmatpush3.bf16.msra.mxu0 %v15016_v24  ;;  %v5645_v55 = vmul.f32 %v5613_v40, %v13674_v21  ;;  %v15195_v57 = vrot.slane %v15194_v33, 2  ;;  %v5222_v8 = vrot.slane %v5104_v17, 1  ;;  %v5348_v52 = vmul.f32 %v13286_v38, %v12844_v6  ;;  %v15199_v37 = vld [vmem:[#allocation128_spill] sm:$0xff] }
 0x43f   : > { %7983 = vtanh.f32 %v5740_v39  ;;  %7749 = vmatprep.subr.bf16.mxu0 %v15018_v27  ;;  %v5742_v20 = vmul.f32 0.7978846, %v5710_v7  ;;  %v5465_v28 = vrot.slane %v5347_v5, 2  ;;  %v5025_v43 = vmul.f32 %v14944_v54, %v12844_v6 }
 0x440   : > { %v4911_v59 = vsel %vm957_vm2, %v4909_v42, %v15195_v57  ;;  %v5677_v32 = vmul.f32 0.044715, %v5645_v55  ;;  %v5223_v44 = vsel %vm646_vm1, %v5221_v56, %v5222_v8  ;;  %v5466_v50 = vrot.slane %v5348_v52, 2 }
 0x441   : > { %v4988_v0 = vadd.f32 %v4911_v59, %v4744_v35  ;;  %7985 = vtanh.f32 %v5742_v20  ;;  %v15197_v30 = vrot.slane %v15196_v2, 1  ;;  %v3914_v31 = vmul.f32 %v14784_v45, %v15178_v29  ;;  %v7982_v41 = vpop.eup %7981 }
 0x442   : > { %7751 = vmatpush3.bf16.msra.mxu0 %v15018_v27  ;;  %v5709_v9 = vadd.f32 %v5677_v32, %v13674_v21  ;;  %v5467_v48 = vsel %vm957_vm2, %v5465_v28, %v5466_v50  ;;  %v5057_v63 = vadd.f32 %v5025_v43, %v15198_v61  ;;  %v15200_v40 = vrot.slane %v15199_v37, 2  ;;  %v15201_v32 = vld [vmem:[#allocation78_spill] sm:$0xff]  ;;  %v15203_v43 = vld [vmem:[#allocation53_spill] sm:$0xff] }
 0x443   : > { %v5056_v46 = vadd.f32 %v5024_v47, %v4988_v0  ;;  %v5225_v12 = vsel %vm646_vm1, %v5222_v8, %v15197_v30  ;;  %v5803_v35 = vadd.f32 1.0, %v7982_v41  ;;  %7761 = vmatprep.subr.bf16.mxu0 %v15016_v24  ;;  %v3994_v17 = vmul.f32 %v14778_v62, %v15178_v29 }
 0x444   : > { %v5469_v47 = vsel %vm957_vm2, %v5466_v50, %v15200_v40  ;;  %v4238_v39 = vmul.f32 %v11315_v26, %v15178_v29  ;;  %v5741_v7 = vmul.f32 0.7978846, %v5709_v9  ;;  %v5301_v56 = vadd.f32 %v5225_v12, %v5057_v63 }
 0x445   : > { %v5300_v42 = vadd.f32 %v5223_v44, %v5056_v46  ;;  %v4470_v5 = vmul.f32 %v11369_v34, %v15193_v16  ;;  %v4550_v55 = vmul.f32 %v14790_v23, %v15193_v16  ;;  %v5835_v33 = vmul.f32 0.5, %v5803_v35 }
 0x446   : > { %v4114_v59 = vrot.slane %v3994_v17, 1  ;;  %v4358_v8 = vrot.slane %v4238_v39, 2  ;;  %7987 = vtanh.f32 %v5741_v7  ;;  %v5545_v52 = vadd.f32 %v5469_v47, %v5301_v56 }
 0x447   : > { %v5544_v57 = vadd.f32 %v5467_v48, %v5300_v42  ;;  %v4551_v20 = vmul.f32 %v14790_v23, %v12844_v6  ;;  %v4670_v0 = vrot.slane %v4550_v55, 1  ;;  %v5867_v29 = vmul.f32 %v5835_v33, %v13617_v13 }
 0x448   : > { %v15202_v44 = vrot.slane %v15201_v32, 1  ;;  %v15204_v46 = vrot.slane %v15203_v43, 2  ;;  %v13738_v30 = vadd.f32 %v13209_v19, %v5545_v52  ;;  %v4794_v9 = vmul.f32 %v14792_v25, %v15193_v16  ;;  %v15205_v52 = vld [vmem:[#allocation6_spill] sm:$0xff] }
 0x449   : > { %v13729_v28 = vadd.f32 %v13209_v19, %v5544_v57  ;;  %v4671_v41 = vrot.slane %v4551_v20, 1  ;;  %v7984_v13 = vpop.eup %7983  ;;  %7595 = vmatprep.mubr.msk.f32.mxu1 %vm2681_vm3, %v5867_v29  ;;  %v4795_v61 = vmul.f32 %v14792_v25, %v12844_v6  ;;  %v5026_v63 = vmul.f32 %v14944_v54, %v12939_v14 }
 0x44a   : > { %v4116_v50 = vsel %vm646_vm1, %v4114_v59, %v15202_v44  ;;  %v4360_v2 = vsel %vm957_vm2, %v4358_v8, %v15204_v46  ;;  %v5106_v19 = vmul.f32 %v11339_v53, %v12939_v14  ;;  %v5616_v37 = vmul.f32 %v13738_v30, %v13738_v30 }
 0x44b   : > { %v4190_v12 = vadd.f32 %v4116_v50, %v3914_v31  ;;  %v5615_v48 = vmul.f32 %v13729_v28, %v13729_v28  ;;  %v5804_v31 = vadd.f32 1.0, %v7984_v13  ;;  %v4672_v47 = vsel %vm646_vm1, %v4670_v0, %v4671_v41  ;;  %v7986_v35 = vpop.eup %7985 }
 0x44c   : > { %v4914_v17 = vrot.slane %v4794_v9, 2  ;;  %v4915_v39 = vrot.slane %v4795_v61, 2  ;;  %v5226_v7 = vrot.slane %v5106_v19, 1  ;;  %v5806_v55 = vadd.f32 1.0, %v7986_v35  ;;  %v15208_v19 = vld [vmem:[#allocation125_spill] sm:$0xff] }
 0x44d   : > { %v4434_v40 = vadd.f32 %v4360_v2, %v4190_v12  ;;  %v5647_v42 = vmul.f32 %v5615_v48, %v13729_v28  ;;  %v5836_v56 = vmul.f32 0.5, %v5804_v31  ;;  %v5648_v33 = vmul.f32 %v5616_v37, %v13738_v30  ;;  %v15207_v2 = vld [vmem:[#allocation130_spill] sm:$0xff] }
 0x44e   : > { %v4916_v8 = vsel %vm957_vm2, %v4914_v17, %v4915_v39  ;;  %v15206_v20 = vrot.slane %v15205_v52, 1  ;;  %v5350_v0 = vmul.f32 %v13286_v38, %v12939_v14  ;;  %v5838_v44 = vmul.f32 0.5, %v5806_v55  ;;  %v15213_v52 = vld [vmem:[#allocation10_spill] sm:$0xff] }
 0x44f   : > { %v4502_v57 = vadd.f32 %v4470_v5, %v4434_v40  ;;  %v5679_v59 = vmul.f32 0.044715, %v5647_v42  ;;  %v5868_v32 = vmul.f32 %v5836_v56, %v13647_v58  ;;  %v5680_v50 = vmul.f32 0.044715, %v5648_v33  ;;  %v15210_v42 = vld [vmem:[#allocation28_spill] sm:$0xff]  ;;  %v15211_v56 = vld [vmem:[#allocation126_spill] sm:$0xff] }
 0x450   : > { %v5228_v29 = vsel %vm646_vm1, %v5226_v7, %v15206_v20  ;;  %v5351_v5 = vmul.f32 %v13286_v38, %v15207_v2  ;;  %v5470_v12 = vrot.slane %v5350_v0, 2  ;;  %v4471_v9 = vmul.f32 %v11369_v34, %v12844_v6  ;;  %v7988_v13 = vpop.eup %7987 }
 0x451   : > { %v4746_v43 = vadd.f32 %v4672_v47, %v4502_v57  ;;  %v5711_v46 = vadd.f32 %v5679_v59, %v13729_v28  ;;  %7596 = vmatmul.mubr.msk.f32.vlgmr.msra.gmra.mrb[8].mxu1 %vm2681_vm3, %v5868_v32  ;;  %v5870_v48 = vmul.f32 %v5838_v44, %v13660_v51  ;;  %v5712_v61 = vadd.f32 %v5680_v50, %v13738_v30 }
 0x452   : > { %v15209_v31 = vrot.slane %v15208_v19, 1  ;;  %7755 = vmatpush3.bf16.msra.mxu1 %v15016_v24  ;;  %v5805_v40 = vadd.f32 1.0, %v7988_v13  ;;  %v5471_v35 = vrot.slane %v5351_v5, 2  ;;  %v4503_v17 = vadd.f32 %v4471_v9, %v15210_v42  ;;  %v15215_v5 = vld [vmem:[#allocation61_spill] sm:$0xff]  ;;  %v15216_v9 = vld [vmem:[#allocation8_spill] sm:$0xff] }
 0x453   : > { %v4990_v58 = vadd.f32 %v4916_v8, %v4746_v43  ;;  %v5743_v47 = vmul.f32 0.7978846, %v5711_v46  ;;  %7757 = vmatprep.subr.bf16.mxu1 %v15018_v27  ;;  %v5744_v6 = vmul.f32 0.7978846, %v5712_v61  ;;  %v15212_v51 = vrot.slane %v15211_v56, 2  ;;  %v15218_v61 = vld [vmem:[#allocation74_spill] sm:$0xff] }
 0x454   : > { %v4674_v37 = vsel %vm646_vm1, %v4671_v41, %v15209_v31  ;;  %v5027_v33 = vmul.f32 %v14944_v54, %v15207_v2  ;;  %v5837_v57 = vmul.f32 0.5, %v5805_v40  ;;  %v5472_v41 = vsel %vm957_vm2, %v5470_v12, %v5471_v35 }
 0x455   : > { %v5058_v7 = vadd.f32 %v5026_v63, %v4990_v58  ;;  %v4918_v55 = vsel %vm957_vm2, %v4915_v39, %v15212_v51  ;;  %7989 = vtanh.f32 %v5743_v47  ;;  %v4747_v59 = vadd.f32 %v4674_v37, %v4503_v17  ;;  %v15220_v47 = vld [vmem:[#allocation24_spill] sm:$0xff]  ;;  %v15222_v17 = vld [vmem:[#allocation9_spill] sm:$0xff] }
 0x456   : > { %7991 = vtanh.f32 %v5744_v6  ;;  %v15214_v20 = vrot.slane %v15213_v52, 2  ;;  %v3916_v63 = vmul.f32 %v14784_v45, %v15193_v16  ;;  %v5869_v32 = vmul.f32 %v5837_v57, %v13674_v21  ;;  %7759 = vmatpush3.bf16.msra.mxu1 %v15018_v27 }
 0x457   : > { %v5302_v8 = vadd.f32 %v5228_v29, %v5058_v7  ;;  %v4991_v39 = vadd.f32 %v4918_v55, %v4747_v59  ;;  %v3997_v44 = vmul.f32 %v14778_v62, %v15193_v16  ;;  %v4241_v50 = vmul.f32 %v11315_v26, %v15193_v16  ;;  %7769 = vmatprep.subr.bf16.mxu1 %v15016_v24  ;;  %v8023_v59 = vld [vmem:[%s14102_s6 + $0x8] ss:$0 sm:$0xff] }
 0x458   : > { %v5474_v0 = vsel %vm957_vm2, %v5471_v35, %v15214_v20  ;;  %v4472_v29 = vmul.f32 %v11369_v34, %v12939_v14  ;;  %v4553_v45 = vmul.f32 %v14790_v23, %v12939_v14  ;;  %v4797_v21 = vmul.f32 %v14792_v25, %v12939_v14  ;;  %7606 = vmatprep.mubr.msk.f32.mxu0 %vm2681_vm3, %v5869_v32  ;;  %v13810_v34 = vld [vmem:[%s14103_s7] ss:$0 sm:$0xff]  ;;  %v15224_v32 = vld [vmem:[#allocation34_spill] sm:$0xff] }
 0x459   : > { %v5546_v43 = vadd.f32 %v5472_v41, %v5302_v8  ;;  %v5059_v46 = vadd.f32 %v5027_v33, %v4991_v39  ;;  %v4119_v2 = vrot.slane %v3997_v44, 1  ;;  %v4363_v62 = vrot.slane %v4241_v50, 2  ;;  %7607 = vmatmul.mubr.msk.f32.vlgmr.msra.gmra.mrb[10].mxu0 %vm2681_vm3, %v5870_v48  ;;  %v7498_v33 = vpop.f32.mrb[0].mxu0 }
 0x45a   : > { %v13804_v26 = vmul.f32 %v14944_v54, %v12524_v49  ;;  %v4675_v25 = vrot.slane %v4553_v45, 1  ;;  %v4919_v14 = vrot.slane %v4797_v21, 2  ;;  %v5109_v16 = vmul.f32 %v11339_v53, %v12524_v49  ;;  %7763 = vmatpush3.bf16.msra.mxu0 %v15016_v24  ;;  %v5964_v20 = vpop.f32.mrb[1].mxu0 }
 0x45b   : > { %v13813_v23 = vadd.f32 %v13810_v34, %v5546_v43  ;;  %v5303_v12 = vadd.f32 %v15215_v5, %v5059_v46  ;;  %v15217_v13 = vrot.slane %v15216_v9, 1  ;;  %v15219_v58 = vrot.slane %v15218_v61, 2  ;;  %7765 = vmatprep.subr.bf16.mxu0 %v15018_v27 }
 0x45c   : > { %v5110_v31 = vmul.f32 %v11339_v53, %v13122_v15  ;;  %v15221_v35 = vrot.slane %v15220_v47, 1  ;;  %v15223_v6 = vrot.slane %v15222_v17, 2  ;;  %v5231_v51 = vrot.slane %v5109_v16, 1 }
 0x45d   : > { %v4121_v48 = vsel %vm646_vm1, %v4119_v2, %v15217_v13  ;;  %v4365_v19 = vsel %vm957_vm2, %v4363_v62, %v15219_v58  ;;  %v5617_v37 = vmul.f32 %v13813_v23, %v13813_v23  ;;  %v5547_v56 = vadd.f32 %v5474_v0, %v5303_v12  ;;  %v15226_v2 = vld [vmem:[#allocation30_spill] sm:$0xff]  ;;  %v15229_v58 = vld [vmem:[#allocation51_spill] sm:$0xff] }
 0x45e   : > { %v4192_v40 = vadd.f32 %v4121_v48, %v3916_v63  ;;  %v4677_v42 = vsel %vm646_vm1, %v4675_v25, %v15221_v35  ;;  %v4921_v7 = vsel %vm957_vm2, %v4919_v14, %v15223_v6  ;;  %v5232_v55 = vrot.slane %v5110_v31, 1  ;;  %7767 = vmatpush3.bf16.msra.mxu0 %v15018_v27 }
 0x45f   : > { %v5353_v53 = vmul.f32 %v13286_v38, %v12524_v49  ;;  %v5649_v57 = vmul.f32 %v5617_v37, %v13813_v23  ;;  %v5354_v8 = vmul.f32 %v8023_v59, %v13122_v15  ;;  %v5029_v52 = vmul.f32 %v14944_v54, %v13122_v15  ;;  %v7990_v0 = vpop.eup %7989  ;;  %7777 = vmatprep.subr.bf16.mxu0 %v15016_v24 }
 0x460   : > { %v4436_v41 = vadd.f32 %v4365_v19, %v4192_v40  ;;  %v13847_v49 = vadd.f32 %v13810_v34, %v5547_v56  ;;  %v5233_v38 = vsel %vm646_vm1, %v5231_v51, %v5232_v55  ;;  %v15225_v39 = vrot.slane %v15224_v32, 1  ;;  %v7992_v50 = vpop.eup %7991 }
 0x461   : > { %v5475_v63 = vrot.slane %v5353_v53, 2  ;;  %v5807_v43 = vadd.f32 1.0, %v7990_v0  ;;  %v5681_v45 = vmul.f32 0.044715, %v5649_v57  ;;  %v5476_v54 = vrot.slane %v5354_v8, 2 }
 0x462   : > { %v5235_v44 = vsel %vm646_vm1, %v5232_v55, %v15225_v39  ;;  %v4504_v21 = vadd.f32 %v4472_v29, %v4436_v41  ;;  %v5808_v15 = vadd.f32 1.0, %v7992_v50  ;;  %v5618_v46 = vmul.f32 %v13847_v49, %v13847_v49 }
 0x463   : > { %v5061_v62 = vadd.f32 %v5029_v52, %v15226_v2  ;;  %v15227_v25 = vrot.slane %v13279_v1, 1  ;;  %v15228_v14 = vrot.slane %v13233_v4, 1  ;;  %v5839_v5 = vmul.f32 0.5, %v5807_v43 }
 0x464   : > { %v5713_v29 = vadd.f32 %v5681_v45, %v13813_v23  ;;  %v4748_v12 = vadd.f32 %v4677_v42, %v4504_v21  ;;  %v5477_v9 = vsel %vm957_vm2, %v5475_v63, %v5476_v54  ;;  %v5840_v13 = vmul.f32 0.5, %v5808_v15 }
 0x465   : > { %v5238_v16 = vsel %vm646_vm1, %v15228_v14, %v15227_v25  ;;  %v5650_v48 = vmul.f32 %v5618_v46, %v13847_v49  ;;  %v5305_v61 = vadd.f32 %v5235_v44, %v5061_v62  ;;  %v15230_v19 = vrot.slane %v15229_v58, 2 }
 0x466   : > { %v5871_v1 = vmul.f32 %v5839_v5, %v13729_v28  ;;  %v5745_v4 = vmul.f32 0.7978846, %v5713_v29  ;;  %v4992_v37 = vadd.f32 %v4921_v7, %v4748_v12  ;;  %v5306_v40 = vadd.f32 %v5238_v16, %v13251_v36  ;;  %v13882_v28 = vld [vmem:[%s14105_s9] ss:$0 sm:$0xff]  ;;  %v7509_v7 = vpop.f32.mrb[0].mxu1 }
 0x467   : > { %v5479_v31 = vsel %vm957_vm2, %v5476_v54, %v15230_v19  ;;  %v5872_v47 = vmul.f32 %v5840_v13, %v13738_v30  ;;  %v5682_v35 = vmul.f32 0.044715, %v5650_v48  ;;  %v15231_v17 = vrot.slane %v13290_v10, 2  ;;  %v6047_v10 = vpop.f32.mrb[1].mxu1 }
 0x468   : > { %v5549_v42 = vadd.f32 %v5479_v31, %v5305_v61  ;;  %v15232_v6 = vrot.slane %v13237_v3, 2  ;;  %7617 = vmatprep.mubr.msk.f32.mxu1 %vm2681_vm3, %v5871_v1  ;;  %7993 = vtanh.f32 %v5745_v4  ;;  %v5060_v36 = vadd.f32 %v13804_v26, %v4992_v37 }
 0x469   : > { %v5622_v51 = vmul.f32 %v13354_v22, %v13354_v22  ;;  %7618 = vmatmul.mubr.msk.f32.vlgmr.msra.gmra.mrb[10].mxu1 %vm2681_vm3, %v5872_v47  ;;  %v5714_v3 = vadd.f32 %v5682_v35, %v13847_v49  ;;  %v5623_v53 = vmul.f32 %v13479_v11, %v13479_v11  ;;  %v5970_v59 = vadd.f32 %v7498_v33, %v13882_v28  ;;  %v7520_v35 = vpop.f32.mrb[2].mxu0 }
 0x46a   : > { %v5482_v56 = vsel %vm957_vm2, %v15232_v6, %v15231_v17  ;;  %v13891_v55 = vadd.f32 %v13810_v34, %v5549_v42  ;;  %7771 = vmatpush3.bf16.msra.mxu1 %v15016_v24  ;;  %v5304_v57 = vadd.f32 %v5233_v38, %v5060_v36  ;;  %v5656_v63 = vmul.f32 %v13494_v18, %v13482_v60 }
 0x46b   : > { %v5550_v30 = vadd.f32 %v5482_v56, %v5306_v40  ;;  %v5654_v41 = vmul.f32 %v5622_v51, %v13354_v22  ;;  %v5746_v8 = vmul.f32 0.7978846, %v5714_v3  ;;  %7773 = vmatprep.subr.bf16.mxu1 %v15018_v27  ;;  %v5655_v0 = vmul.f32 %v5623_v53, %v13479_v11  ;;  %5974 = vst.msk [vmem:[%s13909_s27 + $0x8] sm:$0xff] %vm2681_vm3, %v5970_v59  ;;  %v6131_v56 = vpop.f32.mrb[3].mxu0 }
 0x46c   : > { %v5620_v52 = vmul.f32 %v13891_v55, %v13891_v55  ;;  %v5548_v32 = vadd.f32 %v5477_v9, %v5304_v57  ;;  %v5965_v33 = vadd.f32 %v13882_v28, %v5964_v20  ;;  %v6053_v21 = vadd.f32 %v7509_v7, %v13882_v28 }
 0x46d   : > { %v13897_v26 = vadd.f32 %v13810_v34, %v5550_v30  ;;  %v5686_v39 = vmul.f32 0.044715, %v5654_v41  ;;  %7995 = vtanh.f32 %v5746_v8  ;;  %v5687_v50 = vmul.f32 0.044715, %v5655_v0 }
 0x46e   : > { %v5652_v44 = vmul.f32 %v5620_v52, %v13891_v55  ;;  %7775 = vmatpush3.bf16.msra.mxu1 %v15018_v27  ;;  %v13917_v18 = vadd.f32 %v13810_v34, %v5548_v32  ;;  %5973 = vst.msk [vmem:[%s13909_s27] sm:$0xff] %vm2681_vm3, %v5965_v33  ;;  %v5688_v15 = vmul.f32 0.044715, %v5656_v63  ;;  %v6048_v46 = vadd.f32 %v13882_v28, %v6047_v10 }
 0x46f   : > { %v5621_v38 = vmul.f32 %v13897_v26, %v13897_v26  ;;  %v5718_v45 = vadd.f32 %v5686_v39, %v13354_v22  ;;  %7785 = vmatprep.subr.bf16.mxu1 %v15016_v24  ;;  %v5719_v54 = vadd.f32 %v5687_v50, %v13479_v11  ;;  %7329 = vst.msk [vmem:[%s13909_s27 + $0x18] sm:$0xff] %vm2681_vm3, %v6053_v21 }
 0x470   : > { %v5684_v20 = vmul.f32 0.044715, %v5652_v44  ;;  %v5619_v34 = vmul.f32 %v13917_v18, %v13917_v18  ;;  %7328 = vst.msk [vmem:[%s13909_s27 + $0x10] sm:$0xff] %vm2681_vm3, %v6048_v46  ;;  %v5720_v13 = vadd.f32 %v5688_v15, %v13482_v60  ;;  %v6137_v6 = vadd.f32 %v7520_v35, %v13882_v28 }
 0x471   : > { %v5653_v43 = vmul.f32 %v5621_v38, %v13897_v26  ;;  %v5750_v62 = vmul.f32 0.7978846, %v5718_v45  ;;  %v5751_v14 = vmul.f32 0.7978846, %v5719_v54 }
 0x472   : > { %v5716_v25 = vadd.f32 %v5684_v20, %v13891_v55  ;;  %v7994_v16 = vpop.eup %7993  ;;  %v5651_v5 = vmul.f32 %v5619_v34, %v13917_v18  ;;  %v5752_v4 = vmul.f32 0.7978846, %v5720_v13  ;;  %7333 = vst.msk [vmem:[%s13909_s27 + $0x28] sm:$0xff] %vm2681_vm3, %v6137_v6 }
 0x473   : > { %v5685_v2 = vmul.f32 0.044715, %v5653_v43  ;;  %7997 = vtanh.f32 %v5750_v62  ;;  %v5809_v12 = vadd.f32 1.0, %v7994_v16 }
 0x474   : > { %v5748_v9 = vmul.f32 0.7978846, %v5716_v25  ;;  %v5683_v48 = vmul.f32 0.044715, %v5651_v5  ;;  %7999 = vtanh.f32 %v5751_v14 }
 0x475   : > { %v5717_v29 = vadd.f32 %v5685_v2, %v13897_v26  ;;  %v5841_v58 = vmul.f32 0.5, %v5809_v12 }
 0x476   : > { %8001 = vtanh.f32 %v5748_v9  ;;  %v5715_v19 = vadd.f32 %v5683_v48, %v13917_v18 }
 0x477   : > { %v5749_v61 = vmul.f32 0.7978846, %v5717_v29  ;;  %v7996_v31 = vpop.eup %7995  ;;  %v5873_v1 = vmul.f32 %v5841_v58, %v13813_v23  ;;  %v6132_v23 = vadd.f32 %v13882_v28, %v6131_v56 }
 0x478   : > { %v5810_v37 = vadd.f32 1.0, %v7996_v31  ;;  %v5747_v40 = vmul.f32 0.7978846, %v5715_v19 }
 0x479   : > { %8003 = vtanh.f32 %v5749_v61  ;;  %7628 = vmatprep.mubr.msk.f32.mxu0 %vm2681_vm3, %v5873_v1  ;;  %7332 = vst.msk [vmem:[%s13909_s27 + $0x20] sm:$0xff] %vm2681_vm3, %v6132_v23 }
 0x47a   : > { %v5842_v47 = vmul.f32 0.5, %v5810_v37  ;;  %8005 = vtanh.f32 %v5747_v40 }
 0x47b   : > { %8007 = vtanh.f32 %v5752_v4 }
 0x47c   : > { %v5874_v17 = vmul.f32 %v5842_v47, %v13847_v49 }
 0x47d   : > { %v7998_v42 = vpop.eup %7997 }
 0x47e   : > { %v5814_v7 = vadd.f32 1.0, %v7998_v42  ;;  %v8000_v36 = vpop.eup %7999  ;;  %7629 = vmatmul.mubr.msk.f32.vlgmr.msra.gmra.mrb[12].mxu0 %vm2681_vm3, %v5874_v17 }
 0x47f   : > { %7779 = vmatpush3.bf16.msra.mxu0 %v15016_v24  ;;  %v5815_v53 = vadd.f32 1.0, %v8000_v36 }
 0x480   : > { %v8002_v30 = vpop.eup %8001  ;;  %7781 = vmatprep.subr.bf16.mxu0 %v15018_v27  ;;  %v5846_v49 = vmul.f32 0.5, %v5814_v7 }
 0x481   : > { %v5812_v10 = vadd.f32 1.0, %v8002_v30  ;;  %v5847_v32 = vmul.f32 0.5, %v5815_v53 }
 0x482   : > { %v5878_v8 = vmul.f32 %v5846_v49, %v13354_v22 }
 0x483   : > { %v8004_v51 = vpop.eup %8003  ;;  %7783 = vmatpush3.bf16.msra.mxu0 %v15018_v27  ;;  %v5844_v59 = vmul.f32 0.5, %v5812_v10  ;;  %v5879_v50 = vmul.f32 %v5847_v32, %v13479_v11 }
 0x484   : > { %v5813_v3 = vadd.f32 1.0, %v8004_v51  ;;  %v8006_v41 = vpop.eup %8005 }
 0x485   : > { %v8008_v52 = vpop.eup %8007  ;;  %v5811_v0 = vadd.f32 1.0, %v8006_v41  ;;  %v5876_v39 = vmul.f32 %v5844_v59, %v13891_v55 }
 0x486   : > { %v5845_v57 = vmul.f32 0.5, %v5813_v3  ;;  %v5816_v33 = vadd.f32 1.0, %v8008_v52  ;;  %v7531_v11 = vpop.f32.mrb[2].mxu1 }
 0x487   : > { %v5843_v38 = vmul.f32 0.5, %v5811_v0 }
 0x488   : > { %v5877_v63 = vmul.f32 %v5845_v57, %v13897_v26  ;;  %v5848_v22 = vmul.f32 0.5, %v5816_v33  ;;  %v6221_v26 = vadd.f32 %v7531_v11, %v13882_v28 }
 0x489   : > { %v5875_v44 = vmul.f32 %v5843_v38, %v13917_v18  ;;  %v6215_v18 = vpop.f32.mrb[3].mxu1 }
 0x48a   : > { %7650 = vmatprep.mubr.msk.f32.mxu0 %vm2681_vm3, %v5877_v63  ;;  %v5880_v55 = vmul.f32 %v5848_v22, %v13482_v60  ;;  %7337 = vst.msk [vmem:[%s13909_s27 + $0x38] sm:$0xff] %vm2681_vm3, %v6221_v26 }
 0x48b   : > { %7651 = vmatmul.mubr.msk.f32.vlgmr.msra.gmra.mrb[14].mxu0 %vm2681_vm3, %v5878_v8  ;;  %7639 = vmatprep.mubr.msk.f32.mxu1 %vm2681_vm3, %v5875_v44 }
 0x48c   : > { %7640 = vmatmul.mubr.msk.f32.vlgmr.msra.gmra.mrb[12].mxu1 %vm2681_vm3, %v5876_v39 }
 0x48d   : > { %7787 = vmatpush3.bf16.msra.mxu1 %v15016_v24  ;;  %7661 = vmatprep.mubr.msk.f32.mxu1 %vm2681_vm3, %v5879_v50  ;;  %v6216_v24 = vadd.f32 %v13882_v28, %v6215_v18 }
 0x48e   : > { %7789 = vmatprep.subr.bf16.mxu1 %v15018_v27 }
 0x48f   : > { %7336 = vst.msk [vmem:[%s13909_s27 + $0x30] sm:$0xff] %vm2681_vm3, %v6216_v24 }
 0x491   : > { %7791 = vmatpush3.bf16.msra.mxu1 %v15018_v27 }
 0x494   : > { %7662 = vmatmul.mubr.msk.f32.vlgmr.msra.gmra.mrb[14].mxu1 %vm2681_vm3, %v5880_v55 }
 0x49a   : > { %v7542_v43 = vpop.f32.mrb[4].mxu0 }
 0x49b   : > { %v6305_v60 = vadd.f32 %v7542_v43, %v13882_v28  ;;  %v6299_v27 = vpop.f32.mrb[5].mxu0 }
 0x49c   : > { %v6300_v45 = vadd.f32 %v13882_v28, %v6299_v27 }
 0x49d   : > { %7341 = vst.msk [vmem:[%s13909_s27 + $0x48] sm:$0xff] %vm2681_vm3, %v6305_v60 }
 0x49e   : > { %7340 = vst.msk [vmem:[%s13909_s27 + $0x40] sm:$0xff] %vm2681_vm3, %v6300_v45 }
 0x4ba   : > { %v7553_v21 = vpop.f32.mrb[4].mxu1 }
 0x4bb   : > { %v6389_v20 = vadd.f32 %v7553_v21, %v13882_v28  ;;  %v6383_v54 = vpop.f32.mrb[5].mxu1 }
 0x4bc   : > { %v6384_v15 = vadd.f32 %v13882_v28, %v6383_v54 }
 0x4bd   : > { %7345 = vst.msk [vmem:[%s13909_s27 + $0x58] sm:$0xff] %vm2681_vm3, %v6389_v20 }
 0x4be   : > { %7344 = vst.msk [vmem:[%s13909_s27 + $0x50] sm:$0xff] %vm2681_vm3, %v6384_v15 }
 0x4d5   : > { %v7564_v46 = vpop.f32.mrb[6].mxu0 }
 0x4d6   : > { %v6473_v34 = vadd.f32 %v7564_v46, %v13882_v28  ;;  %v6467_v2 = vpop.f32.mrb[7].mxu0 }
 0x4d7   : > { %v6468_v62 = vadd.f32 %v13882_v28, %v6467_v2 }
 0x4d8   : > { %7349 = vst.msk [vmem:[%s13909_s27 + $0x68] sm:$0xff] %vm2681_vm3, %v6473_v34 }
 0x4d9   : > { %7348 = vst.msk [vmem:[%s13909_s27 + $0x60] sm:$0xff] %vm2681_vm3, %v6468_v62 }
 0x4ec   : > { %v7575_v25 = vpop.f32.mrb[6].mxu1 }
 0x4ed   : > { %v6557_v14 = vadd.f32 %v7575_v25, %v13882_v28  ;;  %v6551_v16 = vpop.f32.mrb[7].mxu1 }
 0x4ee   : > { %v6552_v5 = vadd.f32 %v13882_v28, %v6551_v16 }
 0x4ef   : > { %7353 = vst.msk [vmem:[%s13909_s27 + $0x78] sm:$0xff] %vm2681_vm3, %v6557_v14 }
 0x4f0   : > { %7352 = vst.msk [vmem:[%s13909_s27 + $0x70] sm:$0xff] %vm2681_vm3, %v6552_v5 }
 0x510   : > { %v7586_v29 = vpop.f32.mrb[8].mxu0 }
 0x511   : > { %v6641_v12 = vadd.f32 %v7586_v29, %v13882_v28  ;;  %v6635_v9 = vpop.f32.mrb[9].mxu0 }
 0x512   : > { %v6636_v13 = vadd.f32 %v13882_v28, %v6635_v9 }
 0x513   : > { %7357 = vst.msk [vmem:[%s13909_s27 + $0x88] sm:$0xff] %vm2681_vm3, %v6641_v12 }
 0x514   : > { %7356 = vst.msk [vmem:[%s13909_s27 + $0x80] sm:$0xff] %vm2681_vm3, %v6636_v13 }
 0x524   : > { %v7597_v48 = vpop.f32.mrb[8].mxu1 }
 0x525   : > { %v6725_v61 = vadd.f32 %v7597_v48, %v13882_v28  ;;  %v6719_v58 = vpop.f32.mrb[9].mxu1 }
 0x526   : > { %v6720_v19 = vadd.f32 %v13882_v28, %v6719_v58 }
 0x527   : > { %7361 = vst.msk [vmem:[%s13909_s27 + $0x98] sm:$0xff] %vm2681_vm3, %v6725_v61 }
 0x528   : > { %7360 = vst.msk [vmem:[%s13909_s27 + $0x90] sm:$0xff] %vm2681_vm3, %v6720_v19 }
 0x52c   : > { %v7608_v31 = vpop.f32.mrb[10].mxu0 }
 0x52d   : > { %v6809_v1 = vadd.f32 %v7608_v31, %v13882_v28  ;;  %v6803_v4 = vpop.f32.mrb[11].mxu0 }
 0x52e   : > { %v6804_v37 = vadd.f32 %v13882_v28, %v6803_v4 }
 0x52f   : > { %7365 = vst.msk [vmem:[%s13909_s27 + $0xa8] sm:$0xff] %vm2681_vm3, %v6809_v1 }
 0x530   : > { %7364 = vst.msk [vmem:[%s13909_s27 + $0xa0] sm:$0xff] %vm2681_vm3, %v6804_v37 }
 0x53c   : > { %v7619_v40 = vpop.f32.mrb[10].mxu1 }
 0x53d   : > { %v6893_v47 = vadd.f32 %v7619_v40, %v13882_v28  ;;  %v6887_v35 = vpop.f32.mrb[11].mxu1 }
 0x53e   : > { %v6888_v42 = vadd.f32 %v13882_v28, %v6887_v35 }
 0x53f   : > { %7369 = vst.msk [vmem:[%s13909_s27 + $0xb8] sm:$0xff] %vm2681_vm3, %v6893_v47 }
 0x540   : > { %7368 = vst.msk [vmem:[%s13909_s27 + $0xb0] sm:$0xff] %vm2681_vm3, %v6888_v42 }
 0x551   : > { %v7630_v17 = vpop.f32.mrb[12].mxu0 }
 0x552   : > { %v6977_v6 = vadd.f32 %v7630_v17, %v13882_v28  ;;  %v6971_v56 = vpop.f32.mrb[13].mxu0 }
 0x553   : > { %v6972_v7 = vadd.f32 %v13882_v28, %v6971_v56 }
 0x554   : > { %7373 = vst.msk [vmem:[%s13909_s27 + $0xc8] sm:$0xff] %vm2681_vm3, %v6977_v6 }
 0x555   : > { %7372 = vst.msk [vmem:[%s13909_s27 + $0xc0] sm:$0xff] %vm2681_vm3, %v6972_v7 }
 0x55e   : > { %v7652_v23 = vpop.f32.mrb[14].mxu0 }
 0x55f   : > { %v7145_v36 = vadd.f32 %v7652_v23, %v13882_v28  ;;  %v7139_v30 = vpop.f32.mrb[15].mxu0  ;;  %v7641_v10 = vpop.f32.mrb[12].mxu1 }
 0x560   : > { %v7140_v51 = vadd.f32 %v13882_v28, %v7139_v30  ;;  %v7061_v49 = vadd.f32 %v7641_v10, %v13882_v28  ;;  %v7055_v3 = vpop.f32.mrb[13].mxu1 }
 0x561   : > { %7381 = vst.msk [vmem:[%s13909_s27 + $0xe8] sm:$0xff] %vm2681_vm3, %v7145_v36  ;;  %v7056_v53 = vadd.f32 %v13882_v28, %v7055_v3 }
 0x562   : > { %7380 = vst.msk [vmem:[%s13909_s27 + $0xe0] sm:$0xff] %vm2681_vm3, %v7140_v51  ;;  %7377 = vst.msk [vmem:[%s13909_s27 + $0xd8] sm:$0xff] %vm2681_vm3, %v7061_v49 }
 0x563   : > { %7376 = vst.msk [vmem:[%s13909_s27 + $0xd0] sm:$0xff] %vm2681_vm3, %v7056_v53 }
 0x567   : > { %v7663_v57 = vpop.f32.mrb[14].mxu1 }
 0x568   : > { %v7229_v41 = vadd.f32 %v7663_v57, %v13882_v28  ;;  %v7223_v59 = vpop.f32.mrb[15].mxu1 }
 0x569   : > { %v7224_v8 = vadd.f32 %v13882_v28, %v7223_v59 }
 0x56a   : > { %7385 = vst.msk [vmem:[%s13909_s27 + $0xf8] sm:$0xff] %vm2681_vm3, %v7229_v41 }
 0x56b   : > { %7384 = vst.msk [vmem:[%s13909_s27 + $0xf0] sm:$0xff] %vm2681_vm3, %v7224_v8 }
 0x56c   : > { %8037 = shalt.err (!%p8034_p3)
}
 0x56d   : > { %s8038_s21 = scalar_lea.hbm %s14044_s18, 4096  ;;  %s8042_s30 = scalar_lea.hbm %s14106_s10, 8192 }
 0x56e   : > { %p8039_p4 = scmp.ne.s32.totalorder %s14044_s18, %s8038_s21  ;;  %p8043_p9 = scmp.lt.u32.totalorder %s14044_s18, %s14106_s10 }
 0x56f   : > { %p8044_p10 = scmp.lt.u32.totalorder %s8042_s30, %s8038_s21  ;;  %p8046_p12 = scmp.lt.u32.totalorder %s8038_s21, %s14044_s18 }
 0x570   : > { %p8040_p7 = pnand %p8039_p4, %p8185_p5 }
 0x571   : > { %p8045_p11 = por %p8044_p10, %p8043_p9 }
 0x572   : > { %p8041_p8 = pneg %p8040_p7 }
 0x573   : > { %p8047_p13 = por %p8046_p12, %p8045_p11 }
 0x575   : > { %p8048_p0 = pnand %p8047_p13, %p8041_p8 }
 0x577   : > { %8051 = shalt.err (!%p8048_p0)
}
 0x578   : > { %s8090_s20 = smov 128   ;;  %s8091_s25 = smov 8  }
 0x579   : > { %7793 = dma.vmem_to_hbm [thread:$0]  (%p8185_p5), %s14046_s29, 4096, %s14044_s18, %s14055_s17, %s8090_s20, %s8090_s20, %s8091_s25  }
 0x57a PF: > { %p7799_p1 = scmp.ge.s32.totalorder %s8086_s16, 2  ;;  %s7264_s26 = sand.u32 1, %s8074_s13  }
 0x57b   : > { %s7265_s21 = scalar_lea.sflag [#allocation3], %s7264_s26 }
 0x57c   : > { %p7796_p2 = pnand %p7799_p1, %p8189_p6 }
 0x57e   : > { %8069 = dma.done.wait (!%p7796_p2), %s7265_s21, 4096  }
 0x57f   : > { %8071 = vsyncadd (!%p7796_p2), %s7265_s21, 4294963200  ;;  %p20_p3 = scmp.ge.s32.totalorder %s8172_s19, 4   ;;  %s15233_s13 = smov %s8078_s14 }
 0x580   : > { %s15234_s14 = smov %s8082_s15  ;;  %s15235_s15 = smov %s8183_s22 }
 0x581   : > { %s15236_s16 = smov %s8172_s19  ;;  %22 = sbr.rel (!%p20_p3) target bundleno = 3 (0x3), region = 110 }
 0x588   :  { %7270 = vsyncpa [#allocation3], 1 }
 0x589   :  { %7272 = vsyncpa [#allocation3 + $0x1], 1 }

</bundles_post_ra>
